<compile_context>
chip_gen: v7x
topology: tpu7x:2x2x1
jax: 0.10.0
libtpu: 0.0.40
codegen_flags: <defaults>
</compile_context>

<pallas_src>
import math

import jax
import jax.numpy as jnp
from jax.experimental import pallas as pl
from jax.experimental.pallas import tpu as pltpu


# ---------------- tiling helpers ----------------

def _pick_rows(m, cap=512):
    """Row tile: a multiple of 8 that never exceeds the array (so no padding is
    needed; the trailing partial block is handled by Pallas masked stores)."""
    if m <= 8:
        return m                        # equal to the full dim -> allowed
    return min(cap, (m // 8) * 8)


def _pick_tn(n, m_blocks):
    """Lane tile for the matmul output: keep MXU-friendly 256-wide tiles, but
    ensure some parallel grid axis has >=2 programs (v7x megacore)."""
    if n % 256 == 0 and (m_blocks >= 2 or n >= 512):
        return 256
    if n % 128 == 0:
        return 128
    return n


# ---------------- fused matmul + bias + ReLU kernel ----------------

def _mm_bias_relu_kernel(x_ref, w_ref, b_ref, o_ref):
    # Single K step: direct dot -> bias -> ReLU -> store (no scratch, no init).
    y = jnp.dot(x_ref[...], w_ref[...], preferred_element_type=jnp.float32)
    o_ref[...] = jnp.maximum(y + b_ref[...], 0.0).astype(o_ref.dtype)


def matmul_bias_relu(x, w, b, out_dtype=jnp.bfloat16):
    """relu(x @ w + b).  x:(M,K) bf16, w:(K,N) bf16 (BN scale pre-folded),
    b:(1,N) f32.  K is lane-aligned and small enough for one VMEM tile."""
    m, k = x.shape
    k2, n = w.shape
    assert k == k2 and k % 128 == 0 and n % 128 == 0
    assert k <= 8192  # TODO(synk): add a K-tiled accumulation path for huge K
    tm = _pick_rows(m, cap=512)
    m_blocks = pl.cdiv(m, tm)
    tn = _pick_tn(n, m_blocks)
    grid = (m_blocks, pl.cdiv(n, tn))

    return pl.pallas_call(
        _mm_bias_relu_kernel,
        out_shape=jax.ShapeDtypeStruct((m, n), out_dtype),
        grid_spec=pltpu.PrefetchScalarGridSpec(
            num_scalar_prefetch=0,
            grid=grid,
            in_specs=[
                pl.BlockSpec((tm, k), lambda i, j: (i, 0)),
                pl.BlockSpec((k, tn), lambda i, j: (0, j)),
                pl.BlockSpec((1, tn), lambda i, j: (0, j)),
            ],
            out_specs=pl.BlockSpec((tm, tn), lambda i, j: (i, j)),
        ),
        compiler_params=pltpu.CompilerParams(
            dimension_semantics=("parallel", "parallel")),
    )(x, w, b)


# ---------------- maxpool 3x3 stride 2 ----------------

def _maxpool9_kernel(t_ref, o_ref):
    acc = t_ref[0]
    for k in range(1, 9):
        acc = jnp.maximum(acc, t_ref[k])
    o_ref[...] = acc.astype(o_ref.dtype)


def maxpool3x3_s2(x_nhwc):
    """MaxPool2d(kernel=3, stride=2, pad=0) on an NHWC bf16 tensor."""
    b, h, w, c = x_nhwc.shape
    ho = (h - 3) // 2 + 1
    wo = (w - 3) // 2 + 1
    taps = [x_nhwc[:, kh:kh + 2 * (ho - 1) + 1:2, kw:kw + 2 * (wo - 1) + 1:2, :]
            for kh in range(3) for kw in range(3)]
    n = b * ho * wo
    t = jnp.stack(taps, axis=0).reshape(9, n, c)          # bf16 taps

    tr = _pick_rows(n, cap=256)
    # one lane-dense channel block while the 9-tap tile stays small (VMEM safe
    # on v7x's 64 MiB too), otherwise fall back to 128-wide channel tiles
    if 9 * tr * c * t.dtype.itemsize <= 2 * 1024 * 1024 or c % 128 != 0:
        tc = c
    else:
        tc = 128
    grid = (pl.cdiv(n, tr), pl.cdiv(c, tc))

    out = pl.pallas_call(
        _maxpool9_kernel,
        out_shape=jax.ShapeDtypeStruct((n, c), x_nhwc.dtype),
        grid_spec=pltpu.PrefetchScalarGridSpec(
            num_scalar_prefetch=0,
            grid=grid,
            in_specs=[pl.BlockSpec((9, tr, tc), lambda i, j: (0, i, j))],
            out_specs=pl.BlockSpec((tr, tc), lambda i, j: (i, j)),
        ),
        compiler_params=pltpu.CompilerParams(
            dimension_semantics=("parallel", "parallel")),
    )(t)
    return out.reshape(b, ho, wo, c)


# ---------------- conv blocks (thin XLA glue feeding the kernels) ----------------

def _im2col3x3(x_nhwc, stride, pad):
    b, h, w, c = x_nhwc.shape
    if pad:
        x_nhwc = jnp.pad(x_nhwc, ((0, 0), (pad, pad), (pad, pad), (0, 0)))
    hp, wp = h + 2 * pad, w + 2 * pad
    ho = (hp - 3) // stride + 1
    wo = (wp - 3) // stride + 1
    taps = [x_nhwc[:, kh:kh + (ho - 1) * stride + 1:stride,
                      kw:kw + (wo - 1) * stride + 1:stride, :]
            for kh in range(3) for kw in range(3)]
    cols = jnp.stack(taps, axis=3)                     # (B, Ho, Wo, 9, C)
    return cols.reshape(b * ho * wo, 9 * c), ho, wo


def conv3x3_bn_relu(x_nhwc, packed, stride, pad):
    b = x_nhwc.shape[0]
    cols, ho, wo = _im2col3x3(x_nhwc, stride, pad)
    y = matmul_bias_relu(cols, packed["w"], packed["b"])
    return y.reshape(b, ho, wo, packed["w"].shape[1])


# ---------------- parameters (deterministic synthetic init) + prepack ----------------

def _fold_bn(gamma, beta, mean, var, eps=1e-3):
    scale = gamma / jnp.sqrt(var + eps)
    return scale, beta - mean * scale


def _init_basic_conv(key, cin, cout, ksize):
    kw_, kg, kb, km, kv = jax.random.split(key, 5)
    fan_in = cin * ksize * ksize
    w = jax.random.normal(kw_, (cout, cin, ksize, ksize), jnp.float32) / math.sqrt(fan_in)
    gamma = jax.random.uniform(kg, (cout,), jnp.float32, 0.8, 1.2)
    beta = 0.05 * jax.random.normal(kb, (cout,), jnp.float32)
    mean = 0.05 * jax.random.normal(km, (cout,), jnp.float32)
    var = jax.random.uniform(kv, (cout,), jnp.float32, 0.8, 1.2)
    return {"w": w, "gamma": gamma, "beta": beta, "mean": mean, "var": var}


def init_params(key):
    ks = jax.random.split(key, 7)
    return {
        "b0": [_init_basic_conv(ks[0], 896, 256, 1),
               _init_basic_conv(ks[1], 256, 384, 3)],
        "b1": [_init_basic_conv(ks[2], 896, 256, 1),
               _init_basic_conv(ks[3], 256, 256, 3)],
        "b2": [_init_basic_conv(ks[4], 896, 256, 1),
               _init_basic_conv(ks[5], 256, 256, 3),
               _init_basic_conv(ks[6], 256, 256, 3)],
    }


def _pack_basic_conv(p):
    """Fold BN(eps=1e-3) scale into the conv weight, reshape to a lane-dense
    (K, Cout) matmul operand and cast to bf16 — done ONCE, not per forward."""
    w = p["w"]
    scale, bias = _fold_bn(p["gamma"], p["beta"], p["mean"], p["var"], eps=1e-3)
    cout, cin, kh, kw_ = w.shape
    wf = w * scale[:, None, None, None]
    if kh == 1 and kw_ == 1:
        wm = wf.reshape(cout, cin).T                                  # (Cin, Cout)
    else:
        wm = jnp.transpose(wf, (2, 3, 1, 0)).reshape(kh * kw_ * cin, cout)
    return {"w": wm.astype(jnp.bfloat16),
            "b": bias.reshape(1, cout).astype(jnp.float32)}


def pack_params(params):
    # the three branch-entry 1x1 convs share the same input -> one 768-wide matmul
    one_by_ones = [_pack_basic_conv(params[b][0]) for b in ("b0", "b1", "b2")]
    return {
        "fused1x1": {"w": jnp.concatenate([q["w"] for q in one_by_ones], axis=1),
                     "b": jnp.concatenate([q["b"] for q in one_by_ones], axis=1)},
        "b0c2": _pack_basic_conv(params["b0"][1]),
        "b1c2": _pack_basic_conv(params["b1"][1]),
        "b2c2": _pack_basic_conv(params["b2"][1]),
        "b2c3": _pack_basic_conv(params["b2"][2]),
    }


# ---------------- full forward ----------------

@jax.jit
def mixed_7a_forward(x_nchw, packed):
    b, cin, h, w = x_nchw.shape
    # single NCHW -> NHWC transpose in bf16, feeding both the 1x1s and the maxpool
    x = jnp.transpose(x_nchw, (0, 2, 3, 1)).astype(jnp.bfloat16)

    # fused branch-entry 1x1 convs (Cout = 256 + 256 + 256 = 768, lane dense)
    y_all = matmul_bias_relu(x.reshape(b * h * w, cin),
                             packed["fused1x1"]["w"], packed["fused1x1"]["b"])
    y_all = y_all.reshape(b, h, w, 768)

    x0 = conv3x3_bn_relu(y_all[..., 0:256],   packed["b0c2"], stride=2, pad=0)  # 384
    x1 = conv3x3_bn_relu(y_all[..., 256:512], packed["b1c2"], stride=2, pad=0)  # 256
    z2 = conv3x3_bn_relu(y_all[..., 512:768], packed["b2c2"], stride=1, pad=1)  # 256
    x2 = conv3x3_bn_relu(z2,                  packed["b2c3"], stride=2, pad=0)  # 256
    x3 = maxpool3x3_s2(x)                                                        # 896

    out = jnp.concatenate([x0, x1, x2, x3], axis=-1)       # (B, Ho, Wo, 1792) bf16
    return jnp.transpose(out, (0, 3, 1, 2)).astype(jnp.float32)   # back to NCHW


if __name__ == "__main__":
    key = jax.random.PRNGKey(0)
    kx, kp = jax.random.split(key)
    # channel count 896 is fixed by the module; 9x9 spatial -> all branches 4x4
    x = jax.random.normal(kx, (2, 896, 9, 9), jnp.float32)
    packed = pack_params(init_params(kp))
    out = jax.block_until_ready(mixed_7a_forward(x, packed))
    assert out.shape == (2, 384 + 256 + 256 + 896, 4, 4), out.shape
    assert bool(jnp.all(jnp.isfinite(out)))
    print("KERNEL_OK")
</pallas_src>

<mosaic_0001>
module attributes {stable_mosaic.version = 11 : i64} {
  func.func @_mm_bias_relu_kernel(%arg0: i32, %arg1: i32, %arg2: memref<160x896xbf16, #tpu.memory_space<vmem>>, %arg3: memref<896x256xbf16, #tpu.memory_space<vmem>>, %arg4: memref<1x256xf32, #tpu.memory_space<vmem>>, %arg5: memref<160x256xbf16, #tpu.memory_space<vmem>>) attributes {dimension_semantics = [#tpu.dimension_semantics<parallel>, #tpu.dimension_semantics<parallel>], iteration_bounds = array<i64: 2, 3>, scalar_prefetch = 0 : i64, scratch_operands = 0 : i64, tpu.core_type = #tpu.core_type<tc>, window_params = [{transform_indices = @transform_0, window_bounds = array<i64: 160, 896>}, {transform_indices = @transform_1, window_bounds = array<i64: 896, 256>}, {transform_indices = @transform_2, window_bounds = array<i64: 1, 256>}, {transform_indices = @transform_3, window_bounds = array<i64: 160, 256>}]} {
    %c0 = arith.constant 0 : index
    %c0_0 = arith.constant 0 : index
    %0 = vector.load %arg2[%c0, %c0_0] : memref<160x896xbf16, #tpu.memory_space<vmem>>, vector<160x896xbf16>
    %c0_1 = arith.constant 0 : index
    %c0_2 = arith.constant 0 : index
    %1 = vector.load %arg3[%c0_1, %c0_2] : memref<896x256xbf16, #tpu.memory_space<vmem>>, vector<896x256xbf16>
    %cst = arith.constant dense<0.000000e+00> : vector<160x256xf32>
    %2 = tpu.matmul %0, %1, %cst {dimension_numbers = #tpu.dot_dimension_numbers<[1], [0], [0], [1], [0, 0, 1, 1], [], []>} : vector<160x896xbf16>, vector<896x256xbf16>, vector<160x256xf32> -> vector<160x256xf32>
    %c0_3 = arith.constant 0 : index
    %c0_4 = arith.constant 0 : index
    %3 = vector.load %arg4[%c0_3, %c0_4] : memref<1x256xf32, #tpu.memory_space<vmem>>, vector<1x256xf32>
    %4 = vector.broadcast %3 : vector<1x256xf32> to vector<160x256xf32>
    %5 = arith.addf %2, %4 : vector<160x256xf32>
    %cst_5 = arith.constant 0.000000e+00 : f32
    %6 = vector.broadcast %cst_5 : f32 to vector<160x256xf32>
    %7 = arith.maximumf %5, %6 : vector<160x256xf32>
    %8 = arith.truncf %7 : vector<160x256xf32> to vector<160x256xbf16>
    %c0_6 = arith.constant 0 : index
    %c0_7 = arith.constant 0 : index
    %9 = vector.load %arg5[%c0_6, %c0_7] : memref<160x256xbf16, #tpu.memory_space<vmem>>, vector<160x256xbf16>
    tpu.vector_store %arg5[%c0_6, %c0_7], %8 {strides = array<i32>} : memref<160x256xbf16, #tpu.memory_space<vmem>>, vector<160x256xbf16>,
    return
  }
  func.func @transform_0(%arg0: i32, %arg1: i32) -> (i32, i32) {
    %c0_i32 = arith.constant 0 : i32
    %c0_i32_0 = arith.constant 0 : i32
    return %arg0, %c0_i32 : i32, i32
  }
  func.func @transform_1(%arg0: i32, %arg1: i32) -> (i32, i32) {
    %c0_i32 = arith.constant 0 : i32
    %c0_i32_0 = arith.constant 0 : i32
    return %c0_i32, %arg1 : i32, i32
  }
  func.func @transform_2(%arg0: i32, %arg1: i32) -> (i32, i32) {
    %c0_i32 = arith.constant 0 : i32
    %c0_i32_0 = arith.constant 0 : i32
    return %c0_i32, %arg1 : i32, i32
  }
  func.func @transform_3(%arg0: i32, %arg1: i32) -> (i32, i32) {
    %c0_i32 = arith.constant 0 : i32
    return %arg0, %arg1 : i32, i32
  }
}

module attributes {stable_mosaic.version = 11 : i64} {
  func.func @_mm_bias_relu_kernel(%arg0: i32, %arg1: i32, %arg2: memref<32x2304xbf16, #tpu.memory_space<vmem>>, %arg3: memref<2304x128xbf16, #tpu.memory_space<vmem>>, %arg4: memref<1x128xf32, #tpu.memory_space<vmem>>, %arg5: memref<32x128xbf16, #tpu.memory_space<vmem>>) attributes {dimension_semantics = [#tpu.dimension_semantics<parallel>, #tpu.dimension_semantics<parallel>], iteration_bounds = array<i64: 1, 2>, scalar_prefetch = 0 : i64, scratch_operands = 0 : i64, tpu.core_type = #tpu.core_type<tc>, window_params = [{transform_indices = @transform_0, window_bounds = array<i64: 32, 2304>}, {transform_indices = @transform_1, window_bounds = array<i64: 2304, 128>}, {transform_indices = @transform_2, window_bounds = array<i64: 1, 128>}, {transform_indices = @transform_3, window_bounds = array<i64: 32, 128>}]} {
    %c0 = arith.constant 0 : index
    %c0_0 = arith.constant 0 : index
    %0 = vector.load %arg2[%c0, %c0_0] : memref<32x2304xbf16, #tpu.memory_space<vmem>>, vector<32x2304xbf16>
    %c0_1 = arith.constant 0 : index
    %c0_2 = arith.constant 0 : index
    %1 = vector.load %arg3[%c0_1, %c0_2] : memref<2304x128xbf16, #tpu.memory_space<vmem>>, vector<2304x128xbf16>
    %cst = arith.constant dense<0.000000e+00> : vector<32x128xf32>
    %2 = tpu.matmul %0, %1, %cst {dimension_numbers = #tpu.dot_dimension_numbers<[1], [0], [0], [1], [0, 0, 1, 1], [], []>} : vector<32x2304xbf16>, vector<2304x128xbf16>, vector<32x128xf32> -> vector<32x128xf32>
    %c0_3 = arith.constant 0 : index
    %c0_4 = arith.constant 0 : index
    %3 = vector.load %arg4[%c0_3, %c0_4] : memref<1x128xf32, #tpu.memory_space<vmem>>, vector<1x128xf32>
    %4 = vector.broadcast %3 : vector<1x128xf32> to vector<32x128xf32>
    %5 = arith.addf %2, %4 : vector<32x128xf32>
    %cst_5 = arith.constant 0.000000e+00 : f32
    %6 = vector.broadcast %cst_5 : f32 to vector<32x128xf32>
    %7 = arith.maximumf %5, %6 : vector<32x128xf32>
    %8 = arith.truncf %7 : vector<32x128xf32> to vector<32x128xbf16>
    %c0_6 = arith.constant 0 : index
    %c0_7 = arith.constant 0 : index
    %9 = vector.load %arg5[%c0_6, %c0_7] : memref<32x128xbf16, #tpu.memory_space<vmem>>, vector<32x128xbf16>
    tpu.vector_store %arg5[%c0_6, %c0_7], %8 {strides = array<i32>} : memref<32x128xbf16, #tpu.memory_space<vmem>>, vector<32x128xbf16>,
    return
  }
  func.func @transform_0(%arg0: i32, %arg1: i32) -> (i32, i32) {
    %c0_i32 = arith.constant 0 : i32
    %c0_i32_0 = arith.constant 0 : i32
    return %arg0, %c0_i32 : i32, i32
  }
  func.func @transform_1(%arg0: i32, %arg1: i32) -> (i32, i32) {
    %c0_i32 = arith.constant 0 : i32
    %c0_i32_0 = arith.constant 0 : i32
    return %c0_i32, %arg1 : i32, i32
  }
  func.func @transform_2(%arg0: i32, %arg1: i32) -> (i32, i32) {
    %c0_i32 = arith.constant 0 : i32
    %c0_i32_0 = arith.constant 0 : i32
    return %c0_i32, %arg1 : i32, i32
  }
  func.func @transform_3(%arg0: i32, %arg1: i32) -> (i32, i32) {
    %c0_i32 = arith.constant 0 : i32
    return %arg0, %arg1 : i32, i32
  }
}

module attributes {stable_mosaic.version = 11 : i64} {
  func.func @_mm_bias_relu_kernel(%arg0: i32, %arg1: i32, %arg2: memref<32x2304xbf16, #tpu.memory_space<vmem>>, %arg3: memref<2304x128xbf16, #tpu.memory_space<vmem>>, %arg4: memref<1x128xf32, #tpu.memory_space<vmem>>, %arg5: memref<32x128xbf16, #tpu.memory_space<vmem>>) attributes {dimension_semantics = [#tpu.dimension_semantics<parallel>, #tpu.dimension_semantics<parallel>], iteration_bounds = array<i64: 1, 3>, scalar_prefetch = 0 : i64, scratch_operands = 0 : i64, tpu.core_type = #tpu.core_type<tc>, window_params = [{transform_indices = @transform_0, window_bounds = array<i64: 32, 2304>}, {transform_indices = @transform_1, window_bounds = array<i64: 2304, 128>}, {transform_indices = @transform_2, window_bounds = array<i64: 1, 128>}, {transform_indices = @transform_3, window_bounds = array<i64: 32, 128>}]} {
    %c0 = arith.constant 0 : index
    %c0_0 = arith.constant 0 : index
    %0 = vector.load %arg2[%c0, %c0_0] : memref<32x2304xbf16, #tpu.memory_space<vmem>>, vector<32x2304xbf16>
    %c0_1 = arith.constant 0 : index
    %c0_2 = arith.constant 0 : index
    %1 = vector.load %arg3[%c0_1, %c0_2] : memref<2304x128xbf16, #tpu.memory_space<vmem>>, vector<2304x128xbf16>
    %cst = arith.constant dense<0.000000e+00> : vector<32x128xf32>
    %2 = tpu.matmul %0, %1, %cst {dimension_numbers = #tpu.dot_dimension_numbers<[1], [0], [0], [1], [0, 0, 1, 1], [], []>} : vector<32x2304xbf16>, vector<2304x128xbf16>, vector<32x128xf32> -> vector<32x128xf32>
    %c0_3 = arith.constant 0 : index
    %c0_4 = arith.constant 0 : index
    %3 = vector.load %arg4[%c0_3, %c0_4] : memref<1x128xf32, #tpu.memory_space<vmem>>, vector<1x128xf32>
    %4 = vector.broadcast %3 : vector<1x128xf32> to vector<32x128xf32>
    %5 = arith.addf %2, %4 : vector<32x128xf32>
    %cst_5 = arith.constant 0.000000e+00 : f32
    %6 = vector.broadcast %cst_5 : f32 to vector<32x128xf32>
    %7 = arith.maximumf %5, %6 : vector<32x128xf32>
    %8 = arith.truncf %7 : vector<32x128xf32> to vector<32x128xbf16>
    %c0_6 = arith.constant 0 : index
    %c0_7 = arith.constant 0 : index
    %9 = vector.load %arg5[%c0_6, %c0_7] : memref<32x128xbf16, #tpu.memory_space<vmem>>, vector<32x128xbf16>
    tpu.vector_store %arg5[%c0_6, %c0_7], %8 {strides = array<i32>} : memref<32x128xbf16, #tpu.memory_space<vmem>>, vector<32x128xbf16>,
    return
  }
  func.func @transform_0(%arg0: i32, %arg1: i32) -> (i32, i32) {
    %c0_i32 = arith.constant 0 : i32
    %c0_i32_0 = arith.constant 0 : i32
    return %arg0, %c0_i32 : i32, i32
  }
  func.func @transform_1(%arg0: i32, %arg1: i32) -> (i32, i32) {
    %c0_i32 = arith.constant 0 : i32
    %c0_i32_0 = arith.constant 0 : i32
    return %c0_i32, %arg1 : i32, i32
  }
  func.func @transform_2(%arg0: i32, %arg1: i32) -> (i32, i32) {
    %c0_i32 = arith.constant 0 : i32
    %c0_i32_0 = arith.constant 0 : i32
    return %c0_i32, %arg1 : i32, i32
  }
  func.func @transform_3(%arg0: i32, %arg1: i32) -> (i32, i32) {
    %c0_i32 = arith.constant 0 : i32
    return %arg0, %arg1 : i32, i32
  }
}

module attributes {stable_mosaic.version = 11 : i64} {
  func.func @_maxpool9_kernel(%arg0: i32, %arg1: i32, %arg2: memref<9x32x896xbf16, #tpu.memory_space<vmem>>, %arg3: memref<32x896xbf16, #tpu.memory_space<vmem>>) attributes {dimension_semantics = [#tpu.dimension_semantics<parallel>, #tpu.dimension_semantics<parallel>], iteration_bounds = array<i64: 1, 1>, scalar_prefetch = 0 : i64, scratch_operands = 0 : i64, tpu.core_type = #tpu.core_type<tc>, window_params = [{transform_indices = @transform_0, window_bounds = array<i64: 9, 32, 896>}, {transform_indices = @transform_1, window_bounds = array<i64: 32, 896>}]} {
    %c0 = arith.constant 0 : index
    %c0_0 = arith.constant 0 : index
    %c0_1 = arith.constant 0 : index
    %0 = vector.load %arg2[%c0, %c0_0, %c0_1] : memref<9x32x896xbf16, #tpu.memory_space<vmem>>, vector<1x32x896xbf16>
    %1 = vector.shape_cast %0 : vector<1x32x896xbf16> to vector<32x896xbf16>
    %c1 = arith.constant 1 : index
    %c0_2 = arith.constant 0 : index
    %c0_3 = arith.constant 0 : index
    %2 = vector.load %arg2[%c1, %c0_2, %c0_3] : memref<9x32x896xbf16, #tpu.memory_space<vmem>>, vector<1x32x896xbf16>
    %3 = vector.shape_cast %2 : vector<1x32x896xbf16> to vector<32x896xbf16>
    %4 = arith.maximumf %1, %3 : vector<32x896xbf16>
    %c2 = arith.constant 2 : index
    %c0_4 = arith.constant 0 : index
    %c0_5 = arith.constant 0 : index
    %5 = vector.load %arg2[%c2, %c0_4, %c0_5] : memref<9x32x896xbf16, #tpu.memory_space<vmem>>, vector<1x32x896xbf16>
    %6 = vector.shape_cast %5 : vector<1x32x896xbf16> to vector<32x896xbf16>
    %7 = arith.maximumf %4, %6 : vector<32x896xbf16>
    %c3 = arith.constant 3 : index
    %c0_6 = arith.constant 0 : index
    %c0_7 = arith.constant 0 : index
    %8 = vector.load %arg2[%c3, %c0_6, %c0_7] : memref<9x32x896xbf16, #tpu.memory_space<vmem>>, vector<1x32x896xbf16>
    %9 = vector.shape_cast %8 : vector<1x32x896xbf16> to vector<32x896xbf16>
    %10 = arith.maximumf %7, %9 : vector<32x896xbf16>
    %c4 = arith.constant 4 : index
    %c0_8 = arith.constant 0 : index
    %c0_9 = arith.constant 0 : index
    %11 = vector.load %arg2[%c4, %c0_8, %c0_9] : memref<9x32x896xbf16, #tpu.memory_space<vmem>>, vector<1x32x896xbf16>
    %12 = vector.shape_cast %11 : vector<1x32x896xbf16> to vector<32x896xbf16>
    %13 = arith.maximumf %10, %12 : vector<32x896xbf16>
    %c5 = arith.constant 5 : index
    %c0_10 = arith.constant 0 : index
    %c0_11 = arith.constant 0 : index
    %14 = vector.load %arg2[%c5, %c0_10, %c0_11] : memref<9x32x896xbf16, #tpu.memory_space<vmem>>, vector<1x32x896xbf16>
    %15 = vector.shape_cast %14 : vector<1x32x896xbf16> to vector<32x896xbf16>
    %16 = arith.maximumf %13, %15 : vector<32x896xbf16>
    %c6 = arith.constant 6 : index
    %c0_12 = arith.constant 0 : index
    %c0_13 = arith.constant 0 : index
    %17 = vector.load %arg2[%c6, %c0_12, %c0_13] : memref<9x32x896xbf16, #tpu.memory_space<vmem>>, vector<1x32x896xbf16>
    %18 = vector.shape_cast %17 : vector<1x32x896xbf16> to vector<32x896xbf16>
    %19 = arith.maximumf %16, %18 : vector<32x896xbf16>
    %c7 = arith.constant 7 : index
    %c0_14 = arith.constant 0 : index
    %c0_15 = arith.constant 0 : index
    %20 = vector.load %arg2[%c7, %c0_14, %c0_15] : memref<9x32x896xbf16, #tpu.memory_space<vmem>>, vector<1x32x896xbf16>
    %21 = vector.shape_cast %20 : vector<1x32x896xbf16> to vector<32x896xbf16>
    %22 = arith.maximumf %19, %21 : vector<32x896xbf16>
    %c8 = arith.constant 8 : index
    %c0_16 = arith.constant 0 : index
    %c0_17 = arith.constant 0 : index
    %23 = vector.load %arg2[%c8, %c0_16, %c0_17] : memref<9x32x896xbf16, #tpu.memory_space<vmem>>, vector<1x32x896xbf16>
    %24 = vector.shape_cast %23 : vector<1x32x896xbf16> to vector<32x896xbf16>
    %25 = arith.maximumf %22, %24 : vector<32x896xbf16>
    %c0_18 = arith.constant 0 : index
    %c0_19 = arith.constant 0 : index
    %26 = vector.load %arg3[%c0_18, %c0_19] : memref<32x896xbf16, #tpu.memory_space<vmem>>, vector<32x896xbf16>
    tpu.vector_store %arg3[%c0_18, %c0_19], %25 {strides = array<i32>} : memref<32x896xbf16, #tpu.memory_space<vmem>>, vector<32x896xbf16>,
    return
  }
  func.func @transform_0(%arg0: i32, %arg1: i32) -> (i32, i32, i32) {
    %c0_i32 = arith.constant 0 : i32
    %c0_i32_0 = arith.constant 0 : i32
    return %c0_i32, %arg0, %arg1 : i32, i32, i32
  }
  func.func @transform_1(%arg0: i32, %arg1: i32) -> (i32, i32) {
    %c0_i32 = arith.constant 0 : i32
    return %arg0, %arg1 : i32, i32
  }
}

module attributes {stable_mosaic.version = 11 : i64} {
  func.func @_mm_bias_relu_kernel(%arg0: i32, %arg1: i32, %arg2: memref<160x2304xbf16, #tpu.memory_space<vmem>>, %arg3: memref<2304x256xbf16, #tpu.memory_space<vmem>>, %arg4: memref<1x256xf32, #tpu.memory_space<vmem>>, %arg5: memref<160x256xbf16, #tpu.memory_space<vmem>>) attributes {dimension_semantics = [#tpu.dimension_semantics<parallel>, #tpu.dimension_semantics<parallel>], iteration_bounds = array<i64: 2, 1>, scalar_prefetch = 0 : i64, scratch_operands = 0 : i64, tpu.core_type = #tpu.core_type<tc>, window_params = [{transform_indices = @transform_0, window_bounds = array<i64: 160, 2304>}, {transform_indices = @transform_1, window_bounds = array<i64: 2304, 256>}, {transform_indices = @transform_2, window_bounds = array<i64: 1, 256>}, {transform_indices = @transform_3, window_bounds = array<i64: 160, 256>}]} {
    %c0 = arith.constant 0 : index
    %c0_0 = arith.constant 0 : index
    %0 = vector.load %arg2[%c0, %c0_0] : memref<160x2304xbf16, #tpu.memory_space<vmem>>, vector<160x2304xbf16>
    %c0_1 = arith.constant 0 : index
    %c0_2 = arith.constant 0 : index
    %1 = vector.load %arg3[%c0_1, %c0_2] : memref<2304x256xbf16, #tpu.memory_space<vmem>>, vector<2304x256xbf16>
    %cst = arith.constant dense<0.000000e+00> : vector<160x256xf32>
    %2 = tpu.matmul %0, %1, %cst {dimension_numbers = #tpu.dot_dimension_numbers<[1], [0], [0], [1], [0, 0, 1, 1], [], []>} : vector<160x2304xbf16>, vector<2304x256xbf16>, vector<160x256xf32> -> vector<160x256xf32>
    %c0_3 = arith.constant 0 : index
    %c0_4 = arith.constant 0 : index
    %3 = vector.load %arg4[%c0_3, %c0_4] : memref<1x256xf32, #tpu.memory_space<vmem>>, vector<1x256xf32>
    %4 = vector.broadcast %3 : vector<1x256xf32> to vector<160x256xf32>
    %5 = arith.addf %2, %4 : vector<160x256xf32>
    %cst_5 = arith.constant 0.000000e+00 : f32
    %6 = vector.broadcast %cst_5 : f32 to vector<160x256xf32>
    %7 = arith.maximumf %5, %6 : vector<160x256xf32>
    %8 = arith.truncf %7 : vector<160x256xf32> to vector<160x256xbf16>
    %c0_6 = arith.constant 0 : index
    %c0_7 = arith.constant 0 : index
    %9 = vector.load %arg5[%c0_6, %c0_7] : memref<160x256xbf16, #tpu.memory_space<vmem>>, vector<160x256xbf16>
    tpu.vector_store %arg5[%c0_6, %c0_7], %8 {strides = array<i32>} : memref<160x256xbf16, #tpu.memory_space<vmem>>, vector<160x256xbf16>,
    return
  }
  func.func @transform_0(%arg0: i32, %arg1: i32) -> (i32, i32) {
    %c0_i32 = arith.constant 0 : i32
    %c0_i32_0 = arith.constant 0 : i32
    return %arg0, %c0_i32 : i32, i32
  }
  func.func @transform_1(%arg0: i32, %arg1: i32) -> (i32, i32) {
    %c0_i32 = arith.constant 0 : i32
    %c0_i32_0 = arith.constant 0 : i32
    return %c0_i32, %arg1 : i32, i32
  }
  func.func @transform_2(%arg0: i32, %arg1: i32) -> (i32, i32) {
    %c0_i32 = arith.constant 0 : i32
    %c0_i32_0 = arith.constant 0 : i32
    return %c0_i32, %arg1 : i32, i32
  }
  func.func @transform_3(%arg0: i32, %arg1: i32) -> (i32, i32) {
    %c0_i32 = arith.constant 0 : i32
    return %arg0, %arg1 : i32, i32
  }
}

</mosaic_0001>

<bundles_post_ra>
// kernel: mixed_7a_forward.6
= control target key start
LH: loop header
LB: loop body
LE: loop exit
PB: predicated region body
PF: predicated region fallthrough
CT: control target
= control target key end

     0   :  { %s3889_s12 = smov 0   ;;  %s3891_s13 = smov 0   ;;  %s4605_s0 = inlined_call_operand.vmem [shape: bf16[162,896], index: 0, kind: input, shape index: {}]   ;;  %s4606_s1 = inlined_call_operand.vmem [shape: bf16[896,768], index: 1, kind: input, shape index: {}]   ;;  %s4607_s2 = inlined_call_operand.vmem [shape: f32[1,768], index: 2, kind: input, shape index: {}]   ;;  %s4608_s3 = inlined_call_operand.vmem [shape: bf16[162,768], index: 3, kind: output, shape index: {}]  }
   0x1   :  { %s3893_s14 = smov 0   ;;  %s3895_s15 = smov 0  }
   0x2   :  { %s3897_s16 = smov 0   ;;  %s3899_s17 = smov 0  }
   0x3   :  { %s3901_s18 = smov 0   ;;  %s3903_s19 = smov 0  }
   0x4   :  { %s3905_s20 = smov 0  }
   0x5 LB: > { %s2910_s21 = sadd.s32 4294967295, %s3834_s20   ;;  %s22_s22 = sadd.s32 1, %s3826_s18  ;;  %s3834_s20 = sphi %s3905_s20, %s13_s20   ;;  %s3830_s19 = sphi %s3903_s19, %s4620_s19   ;;  %s3826_s18 = sphi %s3901_s18, %s4619_s18   ;;  %s3822_s17 = sphi %s3899_s17, %s4618_s17   ;;  %s3818_s16 = sphi %s3897_s16, %s4617_s16   ;;  %s3814_s15 = sphi %s3895_s15, %s4616_s15   ;;  %s3810_s14 = sphi %s3893_s14, %s4615_s14   ;;  %s3806_s13 = sphi %s3891_s13, %s4614_s13   ;;  %s3802_s12 = sphi %s3889_s12, %s4613_s12  }
   0x6   : > { %p23_p0 = scmp.ge.s32.totalorder %s22_s22, 3  ;;  %s25_s23 = sadd.s32 1, %s3830_s19 }
   0x7   : > { %s58_s24 = sadd.s32 1, %s3814_s15  ;;  %p65_p1 = scmp.ne.s32.totalorder %s3814_s15, %s3810_s14 }
   0x8   : > { %s4622_s22 = smov (%p23_p0, %s22_s22), 0  ;;  %s4624_s23 = smov (!%p23_p0, %s25_s23), %s3830_s19 }
   0x9   : > { %s55_s25 = ssub.s32 %s3826_s18, %s4622_s22  ;;  %p66_p2 = scmp.eq.s32.totalorder %s3834_s20, 0 }
   0xa   : > { %p27_p3 = scmp.ge.s32.totalorder %s4624_s23, 2  ;;  %p56_p4 = scmp.eq.s32.totalorder %s55_s25, 0 }
   0xb   : > { %p67_p5 = por %p66_p2, %p65_p1  ;;  %s112_s26 = sadd.s32 1, %s3806_s13 }
   0xc   : > { %s4626_s23 = smov (%p27_p3, %s4624_s23), 0  ;;  %p122_p6 = scmp.ne.s32.totalorder %s3806_s13, %s3802_s12 }
   0xd   : > { %s3950_s27 = scalar_select %p56_p4, %s3814_s15, %s58_s24  }
   0xe   : > { %s107_s28 = ssub.s32 %s3830_s19, %s4626_s23  ;;  %p123_p7 = scmp.eq.s32.totalorder %s2910_s21, 5 }
   0xf   : > { %s109_s29 = sor.u32 %s107_s28, %s55_s25  ;;  %p2913_p10 = scmp.ge.s32.totalorder %s3834_s20, 6 }
  0x10   : > { %p110_p8 = scmp.eq.s32.totalorder %s109_s29, 0  ;;  %p3956_p9 = por %p123_p7, %p122_p6 }
  0x11   : > { %145 = sbr.rel (%p2913_p10) target bundleno = 85 (0x55), region = 16 }
  0x12   : > { %s3961_s4 = scalar_select %p110_p8, %s3806_s13, %s112_s26  }
  0x18   : > { %168 = sbr.rel (!%p67_p5) target bundleno = 85 (0x55), region = 24  ;;  %s170_s5 = sand.u32 (%p67_p5), 1, %s3814_s15  }
  0x19   : > { %s3134_s6 = sshll.u32 (%p67_p5), %s3826_s18, 3  ;;  %s3316_s7 = smul.u32 (%p67_p5), 896, %s170_s5 }
  0x1a   : > { %s3969_s10 = scalar_lea.vmem (%p67_p5), %s4606_s1, %s3134_s6 }
  0x1b   : > { %v425_v0 = vld [vmem:[%s3969_s10] sm:$0xff] (%p67_p5)  ;;  %v427_v1 = vld [vmem:[%s3969_s10 + $0x18] sm:$0xff] (%p67_p5)  ;;  %v429_v2 = vld [vmem:[%s3969_s10 + $0x30] sm:$0xff] (%p67_p5)  ;;  %s3977_s11 = scalar_lea.vmem (%p67_p5), [#allocation2], %s3316_s7 }
  0x1c   : > { %v431_v3 = vld [vmem:[%s3969_s10 + $0x48] sm:$0xff] (%p67_p5)  ;;  %v433_v4 = vld [vmem:[%s3969_s10 + $0x60] sm:$0xff] (%p67_p5)  ;;  %v435_v5 = vld [vmem:[%s3969_s10 + $0x78] sm:$0xff] (%p67_p5)  ;;  %426 = vst [vmem:[%s3977_s11] sm:$0xff] (%p67_p5), %v425_v0 }
  0x1d   : > { %428 = vst [vmem:[%s3977_s11 + $0x8] sm:$0xff] (%p67_p5), %v427_v1  ;;  %430 = vst [vmem:[%s3977_s11 + $0x10] sm:$0xff] (%p67_p5), %v429_v2  ;;  %v437_v6 = vld [vmem:[%s3969_s10 + $0x90] sm:$0xff] (%p67_p5)  ;;  %v439_v7 = vld [vmem:[%s3969_s10 + $0xa8] sm:$0xff] (%p67_p5) }
  0x1e   : > { %432 = vst [vmem:[%s3977_s11 + $0x18] sm:$0xff] (%p67_p5), %v431_v3  ;;  %434 = vst [vmem:[%s3977_s11 + $0x20] sm:$0xff] (%p67_p5), %v433_v4  ;;  %v441_v8 = vld [vmem:[%s3969_s10 + $0xc0] sm:$0xff] (%p67_p5)  ;;  %v443_v9 = vld [vmem:[%s3969_s10 + $0xd8] sm:$0xff] (%p67_p5) }
  0x1f   : > { %436 = vst [vmem:[%s3977_s11 + $0x28] sm:$0xff] %v435_v5  ;;  %438 = vst [vmem:[%s3977_s11 + $0x30] sm:$0xff] %v437_v6  ;;  %v445_v10 = vld [vmem:[%s3969_s10 + $0xf0] sm:$0xff]  ;;  %v447_v11 = vld [vmem:[%s3969_s10 + $0x108] sm:$0xff] }
  0x20   : > { %440 = vst [vmem:[%s3977_s11 + $0x38] sm:$0xff] %v439_v7  ;;  %442 = vst [vmem:[%s3977_s11 + $0x40] sm:$0xff] %v441_v8  ;;  %v449_v12 = vld [vmem:[%s3969_s10 + $0x120] sm:$0xff]  ;;  %v451_v13 = vld [vmem:[%s3969_s10 + $0x138] sm:$0xff] }
  0x21   : > { %444 = vst [vmem:[%s3977_s11 + $0x48] sm:$0xff] %v443_v9  ;;  %446 = vst [vmem:[%s3977_s11 + $0x50] sm:$0xff] %v445_v10  ;;  %v453_v14 = vld [vmem:[%s3969_s10 + $0x150] sm:$0xff]  ;;  %v455_v15 = vld [vmem:[%s3969_s10 + $0x168] sm:$0xff] }
  0x22   : > { %448 = vst [vmem:[%s3977_s11 + $0x58] sm:$0xff] %v447_v11  ;;  %450 = vst [vmem:[%s3977_s11 + $0x60] sm:$0xff] %v449_v12  ;;  %v457_v16 = vld [vmem:[%s3969_s10 + $0x180] sm:$0xff]  ;;  %v459_v17 = vld [vmem:[%s3969_s10 + $0x198] sm:$0xff] }
  0x23   : > { %452 = vst [vmem:[%s3977_s11 + $0x68] sm:$0xff] %v451_v13  ;;  %454 = vst [vmem:[%s3977_s11 + $0x70] sm:$0xff] %v453_v14  ;;  %v461_v18 = vld [vmem:[%s3969_s10 + $0x1b0] sm:$0xff]  ;;  %v463_v19 = vld [vmem:[%s3969_s10 + $0x1c8] sm:$0xff] }
  0x24   : > { %456 = vst [vmem:[%s3977_s11 + $0x78] sm:$0xff] %v455_v15  ;;  %458 = vst [vmem:[%s3977_s11 + $0x80] sm:$0xff] %v457_v16  ;;  %v465_v20 = vld [vmem:[%s3969_s10 + $0x1e0] sm:$0xff]  ;;  %v467_v21 = vld [vmem:[%s3969_s10 + $0x1f8] sm:$0xff] }
  0x25   : > { %460 = vst [vmem:[%s3977_s11 + $0x88] sm:$0xff] %v459_v17  ;;  %462 = vst [vmem:[%s3977_s11 + $0x90] sm:$0xff] %v461_v18  ;;  %v469_v22 = vld [vmem:[%s3969_s10 + $0x210] sm:$0xff]  ;;  %v471_v23 = vld [vmem:[%s3969_s10 + $0x228] sm:$0xff] }
  0x26   : > { %464 = vst [vmem:[%s3977_s11 + $0x98] sm:$0xff] %v463_v19  ;;  %466 = vst [vmem:[%s3977_s11 + $0xa0] sm:$0xff] %v465_v20  ;;  %v473_v24 = vld [vmem:[%s3969_s10 + $0x240] sm:$0xff]  ;;  %v475_v25 = vld [vmem:[%s3969_s10 + $0x258] sm:$0xff] }
  0x27   : > { %468 = vst [vmem:[%s3977_s11 + $0xa8] sm:$0xff] %v467_v21  ;;  %470 = vst [vmem:[%s3977_s11 + $0xb0] sm:$0xff] %v469_v22  ;;  %v477_v26 = vld [vmem:[%s3969_s10 + $0x270] sm:$0xff]  ;;  %v479_v27 = vld [vmem:[%s3969_s10 + $0x288] sm:$0xff] }
  0x28   : > { %472 = vst [vmem:[%s3977_s11 + $0xb8] sm:$0xff] %v471_v23  ;;  %474 = vst [vmem:[%s3977_s11 + $0xc0] sm:$0xff] %v473_v24  ;;  %v481_v28 = vld [vmem:[%s3969_s10 + $0x2a0] sm:$0xff]  ;;  %v483_v29 = vld [vmem:[%s3969_s10 + $0x2b8] sm:$0xff] }
  0x29   : > { %476 = vst [vmem:[%s3977_s11 + $0xc8] sm:$0xff] %v475_v25  ;;  %478 = vst [vmem:[%s3977_s11 + $0xd0] sm:$0xff] %v477_v26  ;;  %v485_v30 = vld [vmem:[%s3969_s10 + $0x2d0] sm:$0xff]  ;;  %v487_v31 = vld [vmem:[%s3969_s10 + $0x2e8] sm:$0xff] }
  0x2a   : > { %480 = vst [vmem:[%s3977_s11 + $0xd8] sm:$0xff] %v479_v27  ;;  %482 = vst [vmem:[%s3977_s11 + $0xe0] sm:$0xff] %v481_v28  ;;  %v489_v32 = vld [vmem:[%s3969_s10 + $0x300] sm:$0xff]  ;;  %v491_v33 = vld [vmem:[%s3969_s10 + $0x318] sm:$0xff] }
  0x2b   : > { %484 = vst [vmem:[%s3977_s11 + $0xe8] sm:$0xff] %v483_v29  ;;  %486 = vst [vmem:[%s3977_s11 + $0xf0] sm:$0xff] %v485_v30  ;;  %v493_v34 = vld [vmem:[%s3969_s10 + $0x330] sm:$0xff]  ;;  %v495_v35 = vld [vmem:[%s3969_s10 + $0x348] sm:$0xff] }
  0x2c   : > { %488 = vst [vmem:[%s3977_s11 + $0xf8] sm:$0xff] %v487_v31  ;;  %490 = vst [vmem:[%s3977_s11 + $0x100] sm:$0xff] %v489_v32  ;;  %v497_v36 = vld [vmem:[%s3969_s10 + $0x360] sm:$0xff]  ;;  %v499_v37 = vld [vmem:[%s3969_s10 + $0x378] sm:$0xff] }
  0x2d   : > { %492 = vst [vmem:[%s3977_s11 + $0x108] sm:$0xff] %v491_v33  ;;  %494 = vst [vmem:[%s3977_s11 + $0x110] sm:$0xff] %v493_v34  ;;  %v501_v38 = vld [vmem:[%s3969_s10 + $0x390] sm:$0xff]  ;;  %v503_v39 = vld [vmem:[%s3969_s10 + $0x3a8] sm:$0xff] }
  0x2e   : > { %496 = vst [vmem:[%s3977_s11 + $0x118] sm:$0xff] %v495_v35  ;;  %498 = vst [vmem:[%s3977_s11 + $0x120] sm:$0xff] %v497_v36  ;;  %v505_v40 = vld [vmem:[%s3969_s10 + $0x3c0] sm:$0xff]  ;;  %v507_v41 = vld [vmem:[%s3969_s10 + $0x3d8] sm:$0xff] }
  0x2f   : > { %500 = vst [vmem:[%s3977_s11 + $0x128] sm:$0xff] %v499_v37  ;;  %502 = vst [vmem:[%s3977_s11 + $0x130] sm:$0xff] %v501_v38  ;;  %v509_v42 = vld [vmem:[%s3969_s10 + $0x3f0] sm:$0xff]  ;;  %v511_v43 = vld [vmem:[%s3969_s10 + $0x408] sm:$0xff] }
  0x30   : > { %504 = vst [vmem:[%s3977_s11 + $0x138] sm:$0xff] %v503_v39  ;;  %506 = vst [vmem:[%s3977_s11 + $0x140] sm:$0xff] %v505_v40  ;;  %v513_v44 = vld [vmem:[%s3969_s10 + $0x420] sm:$0xff]  ;;  %v515_v45 = vld [vmem:[%s3969_s10 + $0x438] sm:$0xff] }
  0x31   : > { %508 = vst [vmem:[%s3977_s11 + $0x148] sm:$0xff] %v507_v41  ;;  %510 = vst [vmem:[%s3977_s11 + $0x150] sm:$0xff] %v509_v42  ;;  %v517_v46 = vld [vmem:[%s3969_s10 + $0x450] sm:$0xff]  ;;  %v519_v47 = vld [vmem:[%s3969_s10 + $0x468] sm:$0xff] }
  0x32   : > { %512 = vst [vmem:[%s3977_s11 + $0x158] sm:$0xff] %v511_v43  ;;  %514 = vst [vmem:[%s3977_s11 + $0x160] sm:$0xff] %v513_v44  ;;  %v521_v48 = vld [vmem:[%s3969_s10 + $0x480] sm:$0xff]  ;;  %v523_v49 = vld [vmem:[%s3969_s10 + $0x498] sm:$0xff] }
  0x33   : > { %516 = vst [vmem:[%s3977_s11 + $0x168] sm:$0xff] %v515_v45  ;;  %518 = vst [vmem:[%s3977_s11 + $0x170] sm:$0xff] %v517_v46  ;;  %v525_v50 = vld [vmem:[%s3969_s10 + $0x4b0] sm:$0xff]  ;;  %v527_v51 = vld [vmem:[%s3969_s10 + $0x4c8] sm:$0xff] }
  0x34   : > { %520 = vst [vmem:[%s3977_s11 + $0x178] sm:$0xff] %v519_v47  ;;  %522 = vst [vmem:[%s3977_s11 + $0x180] sm:$0xff] %v521_v48  ;;  %v529_v52 = vld [vmem:[%s3969_s10 + $0x4e0] sm:$0xff]  ;;  %v531_v53 = vld [vmem:[%s3969_s10 + $0x4f8] sm:$0xff] }
  0x35   : > { %524 = vst [vmem:[%s3977_s11 + $0x188] sm:$0xff] %v523_v49  ;;  %526 = vst [vmem:[%s3977_s11 + $0x190] sm:$0xff] %v525_v50  ;;  %v533_v54 = vld [vmem:[%s3969_s10 + $0x510] sm:$0xff]  ;;  %v535_v55 = vld [vmem:[%s3969_s10 + $0x528] sm:$0xff] }
  0x36   : > { %528 = vst [vmem:[%s3977_s11 + $0x198] sm:$0xff] %v527_v51  ;;  %530 = vst [vmem:[%s3977_s11 + $0x1a0] sm:$0xff] %v529_v52  ;;  %v537_v56 = vld [vmem:[%s3969_s10 + $0x540] sm:$0xff]  ;;  %v539_v57 = vld [vmem:[%s3969_s10 + $0x558] sm:$0xff] }
  0x37   : > { %532 = vst [vmem:[%s3977_s11 + $0x1a8] sm:$0xff] %v531_v53  ;;  %534 = vst [vmem:[%s3977_s11 + $0x1b0] sm:$0xff] %v533_v54  ;;  %v541_v58 = vld [vmem:[%s3969_s10 + $0x570] sm:$0xff]  ;;  %v543_v59 = vld [vmem:[%s3969_s10 + $0x588] sm:$0xff] }
  0x38   : > { %536 = vst [vmem:[%s3977_s11 + $0x1b8] sm:$0xff] %v535_v55  ;;  %538 = vst [vmem:[%s3977_s11 + $0x1c0] sm:$0xff] %v537_v56  ;;  %v545_v60 = vld [vmem:[%s3969_s10 + $0x5a0] sm:$0xff]  ;;  %v547_v61 = vld [vmem:[%s3969_s10 + $0x5b8] sm:$0xff] }
  0x39   : > { %540 = vst [vmem:[%s3977_s11 + $0x1c8] sm:$0xff] %v539_v57  ;;  %542 = vst [vmem:[%s3977_s11 + $0x1d0] sm:$0xff] %v541_v58  ;;  %v549_v62 = vld [vmem:[%s3969_s10 + $0x5d0] sm:$0xff]  ;;  %v551_v63 = vld [vmem:[%s3969_s10 + $0x5e8] sm:$0xff] }
  0x3a   : > { %544 = vst [vmem:[%s3977_s11 + $0x1d8] sm:$0xff] %v543_v59  ;;  %546 = vst [vmem:[%s3977_s11 + $0x1e0] sm:$0xff] %v545_v60  ;;  %v553_v0 = vld [vmem:[%s3969_s10 + $0x600] sm:$0xff]  ;;  %v555_v1 = vld [vmem:[%s3969_s10 + $0x618] sm:$0xff] }
  0x3b   : > { %548 = vst [vmem:[%s3977_s11 + $0x1e8] sm:$0xff] %v547_v61  ;;  %550 = vst [vmem:[%s3977_s11 + $0x1f0] sm:$0xff] %v549_v62  ;;  %v557_v2 = vld [vmem:[%s3969_s10 + $0x630] sm:$0xff]  ;;  %v559_v3 = vld [vmem:[%s3969_s10 + $0x648] sm:$0xff] }
  0x3c   : > { %552 = vst [vmem:[%s3977_s11 + $0x1f8] sm:$0xff] %v551_v63  ;;  %554 = vst [vmem:[%s3977_s11 + $0x200] sm:$0xff] %v553_v0  ;;  %v561_v4 = vld [vmem:[%s3969_s10 + $0x660] sm:$0xff]  ;;  %v563_v5 = vld [vmem:[%s3969_s10 + $0x678] sm:$0xff] }
  0x3d   : > { %556 = vst [vmem:[%s3977_s11 + $0x208] sm:$0xff] %v555_v1  ;;  %558 = vst [vmem:[%s3977_s11 + $0x210] sm:$0xff] %v557_v2  ;;  %v565_v6 = vld [vmem:[%s3969_s10 + $0x690] sm:$0xff]  ;;  %v567_v7 = vld [vmem:[%s3969_s10 + $0x6a8] sm:$0xff] }
  0x3e   : > { %560 = vst [vmem:[%s3977_s11 + $0x218] sm:$0xff] %v559_v3  ;;  %562 = vst [vmem:[%s3977_s11 + $0x220] sm:$0xff] %v561_v4  ;;  %v569_v8 = vld [vmem:[%s3969_s10 + $0x6c0] sm:$0xff]  ;;  %v571_v9 = vld [vmem:[%s3969_s10 + $0x6d8] sm:$0xff] }
  0x3f   : > { %564 = vst [vmem:[%s3977_s11 + $0x228] sm:$0xff] %v563_v5  ;;  %566 = vst [vmem:[%s3977_s11 + $0x230] sm:$0xff] %v565_v6  ;;  %v573_v10 = vld [vmem:[%s3969_s10 + $0x6f0] sm:$0xff]  ;;  %v575_v11 = vld [vmem:[%s3969_s10 + $0x708] sm:$0xff] }
  0x40   : > { %568 = vst [vmem:[%s3977_s11 + $0x238] sm:$0xff] %v567_v7  ;;  %570 = vst [vmem:[%s3977_s11 + $0x240] sm:$0xff] %v569_v8  ;;  %v577_v12 = vld [vmem:[%s3969_s10 + $0x720] sm:$0xff]  ;;  %v579_v13 = vld [vmem:[%s3969_s10 + $0x738] sm:$0xff] }
  0x41   : > { %572 = vst [vmem:[%s3977_s11 + $0x248] sm:$0xff] %v571_v9  ;;  %574 = vst [vmem:[%s3977_s11 + $0x250] sm:$0xff] %v573_v10  ;;  %v581_v14 = vld [vmem:[%s3969_s10 + $0x750] sm:$0xff]  ;;  %v583_v15 = vld [vmem:[%s3969_s10 + $0x768] sm:$0xff] }
  0x42   : > { %576 = vst [vmem:[%s3977_s11 + $0x258] sm:$0xff] %v575_v11  ;;  %578 = vst [vmem:[%s3977_s11 + $0x260] sm:$0xff] %v577_v12  ;;  %v585_v16 = vld [vmem:[%s3969_s10 + $0x780] sm:$0xff]  ;;  %v587_v17 = vld [vmem:[%s3969_s10 + $0x798] sm:$0xff] }
  0x43   : > { %580 = vst [vmem:[%s3977_s11 + $0x268] sm:$0xff] %v579_v13  ;;  %582 = vst [vmem:[%s3977_s11 + $0x270] sm:$0xff] %v581_v14  ;;  %v589_v18 = vld [vmem:[%s3969_s10 + $0x7b0] sm:$0xff]  ;;  %v591_v19 = vld [vmem:[%s3969_s10 + $0x7c8] sm:$0xff] }
  0x44   : > { %584 = vst [vmem:[%s3977_s11 + $0x278] sm:$0xff] %v583_v15  ;;  %586 = vst [vmem:[%s3977_s11 + $0x280] sm:$0xff] %v585_v16  ;;  %v593_v20 = vld [vmem:[%s3969_s10 + $0x7e0] sm:$0xff]  ;;  %v595_v21 = vld [vmem:[%s3969_s10 + $0x7f8] sm:$0xff] }
  0x45   : > { %588 = vst [vmem:[%s3977_s11 + $0x288] sm:$0xff] %v587_v17  ;;  %590 = vst [vmem:[%s3977_s11 + $0x290] sm:$0xff] %v589_v18  ;;  %v597_v22 = vld [vmem:[%s3969_s10 + $0x810] sm:$0xff]  ;;  %v599_v23 = vld [vmem:[%s3969_s10 + $0x828] sm:$0xff] }
  0x46   : > { %592 = vst [vmem:[%s3977_s11 + $0x298] sm:$0xff] %v591_v19  ;;  %594 = vst [vmem:[%s3977_s11 + $0x2a0] sm:$0xff] %v593_v20  ;;  %v601_v24 = vld [vmem:[%s3969_s10 + $0x840] sm:$0xff]  ;;  %v603_v25 = vld [vmem:[%s3969_s10 + $0x858] sm:$0xff] }
  0x47   : > { %596 = vst [vmem:[%s3977_s11 + $0x2a8] sm:$0xff] %v595_v21  ;;  %598 = vst [vmem:[%s3977_s11 + $0x2b0] sm:$0xff] %v597_v22  ;;  %v605_v26 = vld [vmem:[%s3969_s10 + $0x870] sm:$0xff]  ;;  %v607_v27 = vld [vmem:[%s3969_s10 + $0x888] sm:$0xff] }
  0x48   : > { %600 = vst [vmem:[%s3977_s11 + $0x2b8] sm:$0xff] %v599_v23  ;;  %602 = vst [vmem:[%s3977_s11 + $0x2c0] sm:$0xff] %v601_v24  ;;  %v609_v28 = vld [vmem:[%s3969_s10 + $0x8a0] sm:$0xff]  ;;  %v611_v29 = vld [vmem:[%s3969_s10 + $0x8b8] sm:$0xff] }
  0x49   : > { %604 = vst [vmem:[%s3977_s11 + $0x2c8] sm:$0xff] %v603_v25  ;;  %606 = vst [vmem:[%s3977_s11 + $0x2d0] sm:$0xff] %v605_v26  ;;  %v613_v30 = vld [vmem:[%s3969_s10 + $0x8d0] sm:$0xff]  ;;  %v615_v31 = vld [vmem:[%s3969_s10 + $0x8e8] sm:$0xff] }
  0x4a   : > { %608 = vst [vmem:[%s3977_s11 + $0x2d8] sm:$0xff] %v607_v27  ;;  %610 = vst [vmem:[%s3977_s11 + $0x2e0] sm:$0xff] %v609_v28  ;;  %v617_v32 = vld [vmem:[%s3969_s10 + $0x900] sm:$0xff]  ;;  %v619_v33 = vld [vmem:[%s3969_s10 + $0x918] sm:$0xff] }
  0x4b   : > { %612 = vst [vmem:[%s3977_s11 + $0x2e8] sm:$0xff] %v611_v29  ;;  %614 = vst [vmem:[%s3977_s11 + $0x2f0] sm:$0xff] %v613_v30  ;;  %v621_v34 = vld [vmem:[%s3969_s10 + $0x930] sm:$0xff]  ;;  %v623_v35 = vld [vmem:[%s3969_s10 + $0x948] sm:$0xff] }
  0x4c   : > { %616 = vst [vmem:[%s3977_s11 + $0x2f8] sm:$0xff] %v615_v31  ;;  %618 = vst [vmem:[%s3977_s11 + $0x300] sm:$0xff] %v617_v32  ;;  %v625_v36 = vld [vmem:[%s3969_s10 + $0x960] sm:$0xff]  ;;  %v627_v37 = vld [vmem:[%s3969_s10 + $0x978] sm:$0xff] }
  0x4d   : > { %620 = vst [vmem:[%s3977_s11 + $0x308] sm:$0xff] %v619_v33  ;;  %622 = vst [vmem:[%s3977_s11 + $0x310] sm:$0xff] %v621_v34  ;;  %v629_v38 = vld [vmem:[%s3969_s10 + $0x990] sm:$0xff]  ;;  %v631_v39 = vld [vmem:[%s3969_s10 + $0x9a8] sm:$0xff] }
  0x4e   : > { %624 = vst [vmem:[%s3977_s11 + $0x318] sm:$0xff] %v623_v35  ;;  %626 = vst [vmem:[%s3977_s11 + $0x320] sm:$0xff] %v625_v36  ;;  %v633_v40 = vld [vmem:[%s3969_s10 + $0x9c0] sm:$0xff]  ;;  %v635_v41 = vld [vmem:[%s3969_s10 + $0x9d8] sm:$0xff] }
  0x4f   : > { %628 = vst [vmem:[%s3977_s11 + $0x328] sm:$0xff] %v627_v37  ;;  %630 = vst [vmem:[%s3977_s11 + $0x330] sm:$0xff] %v629_v38  ;;  %v637_v42 = vld [vmem:[%s3969_s10 + $0x9f0] sm:$0xff]  ;;  %v639_v43 = vld [vmem:[%s3969_s10 + $0xa08] sm:$0xff] }
  0x50   : > { %632 = vst [vmem:[%s3977_s11 + $0x338] sm:$0xff] %v631_v39  ;;  %634 = vst [vmem:[%s3977_s11 + $0x340] sm:$0xff] %v633_v40  ;;  %v641_v44 = vld [vmem:[%s3969_s10 + $0xa20] sm:$0xff]  ;;  %v643_v45 = vld [vmem:[%s3969_s10 + $0xa38] sm:$0xff] }
  0x51   : > { %636 = vst [vmem:[%s3977_s11 + $0x348] sm:$0xff] %v635_v41  ;;  %638 = vst [vmem:[%s3977_s11 + $0x350] sm:$0xff] %v637_v42  ;;  %v645_v46 = vld [vmem:[%s3969_s10 + $0xa50] sm:$0xff]  ;;  %v647_v47 = vld [vmem:[%s3969_s10 + $0xa68] sm:$0xff] }
  0x52   : > { %640 = vst [vmem:[%s3977_s11 + $0x358] sm:$0xff] %v639_v43  ;;  %642 = vst [vmem:[%s3977_s11 + $0x360] sm:$0xff] %v641_v44 }
  0x53   : > { %644 = vst [vmem:[%s3977_s11 + $0x368] sm:$0xff] %v643_v45  ;;  %646 = vst [vmem:[%s3977_s11 + $0x370] sm:$0xff] %v645_v46 }
  0x54   : > { %648 = vst [vmem:[%s3977_s11 + $0x378] sm:$0xff] %v647_v47 }
  0x55 PF: > { %p2916_p11 = scmp.ge.s32.totalorder %s3834_s20, 1  ;;  %p661_p12 = scmp.lt.s32.totalorder %s3834_s20, 7 }
  0x57   : > { %p662_p13 = pnand %p2916_p11, %p661_p12 }
  0x58   : > { %s668_s21 = sand.u32 (!%p662_p13), 1, %s3810_s14   ;;  %s4232_s14 = smul.u32 (!%p662_p13), 20, %s3822_s17 }
  0x59   : > { %665 = sbr.rel (%p662_p13) target bundleno = 598 (0x256), region = 66  ;;  %s4405_s7 = sshll.u32 (!%p662_p13), %s3818_s16, 1 }
  0x5a   : > { %s3317_s24 = smul.u32 (!%p662_p13), 896, %s668_s21  ;;  %p711_p0 = scmp.lt.s32.totalorder (!%p662_p13), %s4232_s14, 20 }
  0x5b   : > { %p724_p1 = scmp.lt.s32.totalorder (!%p662_p13), %s4405_s7, 5  ;;  %s702_s16 = sand.u32 (!%p662_p13), 1, %s3802_s12  }
  0x5c   : > { %s4200_s25 = scalar_lea.vmem (!%p662_p13), [#allocation2], %s3317_s24  ;;  %s3318_s21 = smul.u32 (!%p662_p13), 160, %s702_s16 }
  0x5d   : > { %v3460_v48 = vld [vmem:[%s4200_s25 + $0x4] ss:$8 sps:$4 sm:$0xff] (!%p662_p13)   ;;  %v3464_v50 = vld [vmem:[%s4200_s25] ss:$8 sps:$4 sm:$0xff] (!%p662_p13)   ;;  %v3466_v52 = vld [vmem:[%s4200_s25 + $0x14] ss:$8 sps:$4 sm:$0xff] (!%p662_p13)  }
  0x5e   : > { %v3462_v49 = vld [vmem:[%s4200_s25 + $0x204] ss:$8 sps:$4 sm:$0xff] (!%p662_p13)   ;;  %1860 = vmatprep.subr.bf16.mxu1 (!%p662_p13), %v3460_v48  ;;  %v3465_v51 = vld [vmem:[%s4200_s25 + $0x200] ss:$8 sps:$4 sm:$0xff] (!%p662_p13)   ;;  %v3468_v53 = vld [vmem:[%s4200_s25 + $0x214] ss:$8 sps:$4 sm:$0xff] (!%p662_p13)  }
  0x5f   : > { %2126 = vmatprep.subr.bf16.mxu0 (!%p662_p13), %v3462_v49  ;;  %1861 = vmatpush1.bf16.msra.mxu1 (!%p662_p13), %v3464_v50  ;;  %v3470_v54 = vld [vmem:[%s4200_s25 + $0x10] ss:$8 sps:$4 sm:$0xff] (!%p662_p13)   ;;  %v3472_v56 = vld [vmem:[%s4200_s25 + $0x24] ss:$8 sps:$4 sm:$0xff] (!%p662_p13)   ;;  %v3476_v58 = vld [vmem:[%s4200_s25 + $0x20] ss:$8 sps:$4 sm:$0xff] (!%p662_p13)  }
  0x60   : > { %2127 = vmatpush1.bf16.msra.mxu0 %v3465_v51  ;;  %1862 = vmatprep.subr.bf16.mxu1 %v3466_v52  ;;  %v3471_v55 = vld [vmem:[%s4200_s25 + $0x210] ss:$8 sps:$4 sm:$0xff]   ;;  %v3474_v57 = vld [vmem:[%s4200_s25 + $0x224] ss:$8 sps:$4 sm:$0xff]   ;;  %v3477_v59 = vld [vmem:[%s4200_s25 + $0x220] ss:$8 sps:$4 sm:$0xff]  }
  0x61   : > { %2128 = vmatprep.subr.bf16.mxu0 %v3468_v53  ;;  %v3478_v60 = vld [vmem:[%s4200_s25 + $0x34] ss:$8 sps:$4 sm:$0xff]   ;;  %v3482_v62 = vld [vmem:[%s4200_s25 + $0x30] ss:$8 sps:$4 sm:$0xff]   ;;  %v3484_v0 = vld [vmem:[%s4200_s25 + $0x44] ss:$8 sps:$4 sm:$0xff]  }
  0x62   : > { %v3480_v61 = vld [vmem:[%s4200_s25 + $0x234] ss:$8 sps:$4 sm:$0xff]   ;;  %v3483_v63 = vld [vmem:[%s4200_s25 + $0x230] ss:$8 sps:$4 sm:$0xff]   ;;  %v3486_v1 = vld [vmem:[%s4200_s25 + $0x244] ss:$8 sps:$4 sm:$0xff]  }
  0x63   : > { %1863 = vmatpush1.bf16.msra.mxu1 %v3470_v54  ;;  %v3488_v2 = vld [vmem:[%s4200_s25 + $0x40] ss:$8 sps:$4 sm:$0xff]   ;;  %v3490_v4 = vld [vmem:[%s4200_s25 + $0x54] ss:$8 sps:$4 sm:$0xff]   ;;  %v3494_v6 = vld [vmem:[%s4200_s25 + $0x50] ss:$8 sps:$4 sm:$0xff]  }
  0x64   : > { %2129 = vmatpush1.bf16.msra.mxu0 %v3471_v55  ;;  %1864 = vmatprep.subr.bf16.mxu1 %v3472_v56  ;;  %v3489_v3 = vld [vmem:[%s4200_s25 + $0x240] ss:$8 sps:$4 sm:$0xff]   ;;  %v3492_v5 = vld [vmem:[%s4200_s25 + $0x254] ss:$8 sps:$4 sm:$0xff]   ;;  %v3495_v7 = vld [vmem:[%s4200_s25 + $0x250] ss:$8 sps:$4 sm:$0xff]  }
  0x65   : > { %2130 = vmatprep.subr.bf16.mxu0 %v3474_v57  ;;  %v3496_v8 = vld [vmem:[%s4200_s25 + $0x64] ss:$8 sps:$4 sm:$0xff]   ;;  %v3500_v10 = vld [vmem:[%s4200_s25 + $0x60] ss:$8 sps:$4 sm:$0xff]   ;;  %v3502_v12 = vld [vmem:[%s4200_s25 + $0x74] ss:$8 sps:$4 sm:$0xff]  }
  0x66   : > { %v3498_v9 = vld [vmem:[%s4200_s25 + $0x264] ss:$8 sps:$4 sm:$0xff]   ;;  %v3501_v11 = vld [vmem:[%s4200_s25 + $0x260] ss:$8 sps:$4 sm:$0xff]   ;;  %v3504_v13 = vld [vmem:[%s4200_s25 + $0x274] ss:$8 sps:$4 sm:$0xff]  }
  0x67   : > { %1865 = vmatpush1.bf16.msra.mxu1 %v3476_v58  ;;  %v3506_v14 = vld [vmem:[%s4200_s25 + $0x70] ss:$8 sps:$4 sm:$0xff]   ;;  %v3508_v16 = vld [vmem:[%s4200_s25 + $0x84] ss:$8 sps:$4 sm:$0xff]   ;;  %v3512_v18 = vld [vmem:[%s4200_s25 + $0x80] ss:$8 sps:$4 sm:$0xff]  }
  0x68   : > { %2131 = vmatpush1.bf16.msra.mxu0 %v3477_v59  ;;  %1866 = vmatprep.subr.bf16.mxu1 %v3478_v60  ;;  %v3507_v15 = vld [vmem:[%s4200_s25 + $0x270] ss:$8 sps:$4 sm:$0xff]   ;;  %v3510_v17 = vld [vmem:[%s4200_s25 + $0x284] ss:$8 sps:$4 sm:$0xff]   ;;  %v3513_v19 = vld [vmem:[%s4200_s25 + $0x280] ss:$8 sps:$4 sm:$0xff]  }
  0x69   : > { %2132 = vmatprep.subr.bf16.mxu0 %v3480_v61  ;;  %v3514_v20 = vld [vmem:[%s4200_s25 + $0x94] ss:$8 sps:$4 sm:$0xff]   ;;  %s712_s26 = scalar_select %p711_p0, %s4232_s14, 20  ;;  %v3518_v22 = vld [vmem:[%s4200_s25 + $0x90] ss:$8 sps:$4 sm:$0xff]  }
  0x6a   : > { %v3516_v21 = vld [vmem:[%s4200_s25 + $0x294] ss:$8 sps:$4 sm:$0xff]   ;;  %v3519_v23 = vld [vmem:[%s4200_s25 + $0x290] ss:$8 sps:$4 sm:$0xff]   ;;  %v3520_v24 = vld [vmem:[%s4200_s25 + $0xa4] ss:$8 sps:$4 sm:$0xff]  }
  0x6b   : > { %1867 = vmatpush1.bf16.msra.mxu1 %v3482_v62  ;;  %s3319_s28 = smul.u32 28, %s712_s26  ;;  %v3522_v25 = vld [vmem:[%s4200_s25 + $0x2a4] ss:$8 sps:$4 sm:$0xff]   ;;  %v3524_v26 = vld [vmem:[%s4200_s25 + $0xa0] ss:$8 sps:$4 sm:$0xff]   ;;  %s4422_s12 = scalar_lea.vmem [#allocation3], %s3318_s21  }
  0x6c   : > { %2133 = vmatpush1.bf16.msra.mxu0 %v3483_v63  ;;  %1868 = vmatprep.subr.bf16.mxu1 %v3484_v0  ;;  %v3525_v27 = vld [vmem:[%s4200_s25 + $0x2a0] ss:$8 sps:$4 sm:$0xff]   ;;  %v3526_v28 = vld [vmem:[%s4200_s25 + $0xb4] ss:$8 sps:$4 sm:$0xff]   ;;  %v3530_v30 = vld [vmem:[%s4200_s25 + $0xb0] ss:$8 sps:$4 sm:$0xff]  }
  0x6d   : > { %2134 = vmatprep.subr.bf16.mxu0 %v3486_v1  ;;  %s4255_s6 = scalar_lea.vmem %s4605_s0, %s3319_s28  ;;  %v3528_v29 = vld [vmem:[%s4200_s25 + $0x2b4] ss:$8 sps:$4 sm:$0xff]   ;;  %v3531_v31 = vld [vmem:[%s4200_s25 + $0x2b0] ss:$8 sps:$4 sm:$0xff]   ;;  %v3532_v32 = vld [vmem:[%s4200_s25 + $0xc4] ss:$8 sps:$4 sm:$0xff]  }
  0x6e   : > { %v3558_v33 = vld [vmem:[%s4255_s6 + $0x4] ss:$28 sps:$4 sm:$0xff]   ;;  %v3561_v35 = vld [vmem:[%s4255_s6 + $0x14] ss:$28 sps:$4 sm:$0xff]   ;;  %v3571_v57 = vld [vmem:[%s4255_s6 + $0x3c] ss:$28 sps:$4 sm:$0xff]  }
  0x6f   : > { %1869 = vmatpush1.bf16.msra.mxu1 %v3488_v2  ;;  %v3534_v34 = vld [vmem:[%s4200_s25 + $0x2c4] ss:$8 sps:$4 sm:$0xff]   ;;  %1892 = vmatprep.mubr.bf16.mxu1 %v3558_v33  ;;  %v3536_v36 = vld [vmem:[%s4200_s25 + $0xc0] ss:$8 sps:$4 sm:$0xff]   ;;  %v3538_v38 = vld [vmem:[%s4200_s25 + $0xd4] ss:$8 sps:$4 sm:$0xff]  }
  0x70   : > { %2135 = vmatpush1.bf16.msra.mxu0 %v3489_v3  ;;  %1870 = vmatprep.subr.bf16.mxu1 %v3490_v4  ;;  %v3537_v37 = vld [vmem:[%s4200_s25 + $0x2c0] ss:$8 sps:$4 sm:$0xff]   ;;  %v3540_v39 = vld [vmem:[%s4200_s25 + $0x2d4] ss:$8 sps:$4 sm:$0xff]   ;;  %v3542_v40 = vld [vmem:[%s4200_s25 + $0xd0] ss:$8 sps:$4 sm:$0xff]  }
  0x71   : > { %2136 = vmatprep.subr.bf16.mxu0 %v3492_v5  ;;  %2158 = vmatprep.mubr.bf16.mxu0 %v3561_v35  ;;  %v3543_v41 = vld [vmem:[%s4200_s25 + $0x2d0] ss:$8 sps:$4 sm:$0xff]   ;;  %v3544_v42 = vld [vmem:[%s4200_s25 + $0xe4] ss:$8 sps:$4 sm:$0xff]   ;;  %v3548_v44 = vld [vmem:[%s4200_s25 + $0xe0] ss:$8 sps:$4 sm:$0xff]  }
  0x72   : > { %v3546_v43 = vld [vmem:[%s4200_s25 + $0x2e4] ss:$8 sps:$4 sm:$0xff]   ;;  %v3549_v45 = vld [vmem:[%s4200_s25 + $0x2e0] ss:$8 sps:$4 sm:$0xff]   ;;  %v3550_v46 = vld [vmem:[%s4200_s25 + $0xf4] ss:$8 sps:$4 sm:$0xff]  }
  0x73   : > { %1871 = vmatpush1.bf16.msra.mxu1 %v3494_v6  ;;  %v3552_v47 = vld [vmem:[%s4200_s25 + $0x2f4] ss:$8 sps:$4 sm:$0xff]   ;;  %v3554_v48 = vld [vmem:[%s4200_s25 + $0xf0] ss:$8 sps:$4 sm:$0xff]   ;;  %v3564_v50 = vld [vmem:[%s4200_s25 + $0x104] ss:$8 sps:$4 sm:$0xff]  }
  0x74   : > { %2137 = vmatpush1.bf16.msra.mxu0 %v3495_v7  ;;  %1872 = vmatprep.subr.bf16.mxu1 %v3496_v8  ;;  %v3555_v49 = vld [vmem:[%s4200_s25 + $0x2f0] ss:$8 sps:$4 sm:$0xff]   ;;  %v3567_v51 = vld [vmem:[%s4200_s25 + $0x304] ss:$8 sps:$4 sm:$0xff]   ;;  %v3556_v52 = vld [vmem:[%s4255_s6] ss:$28 sps:$4 sm:$0xff]  }
  0x75   : > { %2138 = vmatprep.subr.bf16.mxu0 %v3498_v9  ;;  %v3559_v53 = vld [vmem:[%s4255_s6 + $0x10] ss:$28 sps:$4 sm:$0xff]   ;;  %v3562_v54 = vld [vmem:[%s4200_s25 + $0x100] ss:$8 sps:$4 sm:$0xff]   ;;  %v3570_v56 = vld [vmem:[%s4200_s25 + $0x114] ss:$8 sps:$4 sm:$0xff]  }
  0x76   : > { %v3565_v55 = vld [vmem:[%s4200_s25 + $0x300] ss:$8 sps:$4 sm:$0xff]   ;;  %v3582_v59 = vld [vmem:[%s4200_s25 + $0x314] ss:$8 sps:$4 sm:$0xff]   ;;  %v3568_v60 = vld [vmem:[%s4200_s25 + $0x110] ss:$8 sps:$4 sm:$0xff]  }
  0x77   : > { %1873 = vmatpush1.bf16.msra.mxu1 %v3500_v10  ;;  %v3573_v58 = vld [vmem:[%s4255_s6 + $0x4c] ss:$28 sps:$4 sm:$0xff]   ;;  %v3580_v62 = vld [vmem:[%s4200_s25 + $0x310] ss:$8 sps:$4 sm:$0xff]   ;;  %v3587_v4 = vld [vmem:[%s4200_s25 + $0x134] ss:$8 sps:$4 sm:$0xff]  }
  0x78   : > { %2139 = vmatpush1.bf16.msra.mxu0 %v3501_v11  ;;  %1874 = vmatprep.subr.bf16.mxu1 %v3502_v12  ;;  %v3579_v61 = vld [vmem:[%s4200_s25 + $0x124] ss:$8 sps:$4 sm:$0xff]   ;;  %v3575_v0 = vld [vmem:[%s4255_s6 + $0x38] ss:$28 sps:$4 sm:$0xff]   ;;  %v3577_v2 = vld [vmem:[%s4200_s25 + $0x120] ss:$8 sps:$4 sm:$0xff]  }
  0x79   : > { %2140 = vmatprep.subr.bf16.mxu0 %v3504_v13  ;;  %v3597_v63 = vld [vmem:[%s4200_s25 + $0x324] ss:$8 sps:$4 sm:$0xff]   ;;  %v3583_v3 = vld [vmem:[%s4255_s6 + $0x74] ss:$28 sps:$4 sm:$0xff]   ;;  %v3595_v6 = vld [vmem:[%s4200_s25 + $0x320] ss:$8 sps:$4 sm:$0xff]  }
  0x7a   : > { %v3576_v1 = vld [vmem:[%s4255_s6 + $0x48] ss:$28 sps:$4 sm:$0xff]   ;;  %v3618_v7 = vld [vmem:[%s4200_s25 + $0x334] ss:$8 sps:$4 sm:$0xff]   ;;  %v3585_v8 = vld [vmem:[%s4200_s25 + $0x130] ss:$8 sps:$4 sm:$0xff]  }
  0x7b   : > { %1875 = vmatpush1.bf16.msra.mxu1 %v3506_v14  ;;  %v3588_v5 = vld [vmem:[%s4255_s6 + $0x84] ss:$28 sps:$4 sm:$0xff]   ;;  %v3590_v9 = vld [vmem:[%s4255_s6 + $0x70] ss:$28 sps:$4 sm:$0xff]   ;;  %v3622_v35 = vld [vmem:[%s4255_s6 + $0x11c] ss:$28 sps:$4 sm:$0xff]  }
  0x7c   : > { %2141 = vmatpush1.bf16.msra.mxu0 %v3507_v15  ;;  %1876 = vmatprep.subr.bf16.mxu1 %v3508_v16  ;;  %v3594_v10 = vld [vmem:[%s4200_s25 + $0x144] ss:$8 sps:$4 sm:$0xff]   ;;  %v3591_v11 = vld [vmem:[%s4255_s6 + $0x80] ss:$28 sps:$4 sm:$0xff]   ;;  %v3616_v12 = vld [vmem:[%s4200_s25 + $0x330] ss:$8 sps:$4 sm:$0xff]  }
  0x7d   : > { %2142 = vmatprep.subr.bf16.mxu0 %v3510_v17  ;;  %v3592_v13 = vld [vmem:[%s4200_s25 + $0x140] ss:$8 sps:$4 sm:$0xff]   ;;  %v3600_v15 = vld [vmem:[%s4255_s6 + $0xbc] ss:$28 sps:$4 sm:$0xff]   ;;  %v3633_v17 = vld [vmem:[%s4200_s25 + $0x344] ss:$8 sps:$4 sm:$0xff]  }
  0x7e   : > { %v3598_v14 = vld [vmem:[%s4255_s6 + $0xac] ss:$28 sps:$4 sm:$0xff]   ;;  %v3606_v16 = vld [vmem:[%s4200_s25 + $0x154] ss:$8 sps:$4 sm:$0xff]   ;;  %s725_s8 = scalar_select %p724_p1, %s4405_s7, 5 }
  0x7f   : > { %1877 = vmatpush1.bf16.msra.mxu1 %v3512_v18  ;;  %v3604_v18 = vld [vmem:[%s4200_s25 + $0x150] ss:$8 sps:$4 sm:$0xff]   ;;  %v3661_v33 = vld [vmem:[%s4200_s25 + $0x360] ss:$8 sps:$4 sm:$0xff]   ;;  %s2581_s24 = ssub.s32 (%p3956_p9), 21, %s4232_s14 }
  0x80   : > { %2143 = vmatpush1.bf16.msra.mxu0 %v3513_v19  ;;  %1878 = vmatprep.subr.bf16.mxu1 %v3514_v20  ;;  %v3631_v19 = vld [vmem:[%s4200_s25 + $0x340] ss:$8 sps:$4 sm:$0xff]   ;;  %v3648_v20 = vld [vmem:[%s4200_s25 + $0x354] ss:$8 sps:$4 sm:$0xff]   ;;  %s726_s11 = scalar_lea.vmem %s4607_s2, %s725_s8  ;;  %p2582_p2 = scmp.lt.s32.totalorder (%p3956_p9), %s2581_s24, 20 }
  0x81   : > { %2144 = vmatprep.subr.bf16.mxu0 %v3516_v21  ;;  %v3609_v21 = vld [vmem:[%s4200_s25 + $0x164] ss:$8 sps:$4 sm:$0xff]  }
  0x83   : > { %1879 = vmatpush1.bf16.msra.mxu1 %v3518_v22  ;;  %v3602_v22 = vld [vmem:[%s4255_s6 + $0xa8] ss:$28 sps:$4 sm:$0xff]  }
  0x84   : > { %2145 = vmatpush1.bf16.msra.mxu0 %v3519_v23  ;;  %1880 = vmatprep.subr.bf16.mxu1 %v3520_v24  ;;  %v3603_v23 = vld [vmem:[%s4255_s6 + $0xb8] ss:$28 sps:$4 sm:$0xff]   ;;  %v3607_v24 = vld [vmem:[%s4200_s25 + $0x160] ss:$8 sps:$4 sm:$0xff]  }
  0x85   : > { %2146 = vmatprep.subr.bf16.mxu0 %v3522_v25  ;;  %v3610_v25 = vld [vmem:[%s4255_s6 + $0xe4] ss:$28 sps:$4 sm:$0xff]  }
  0x87   : > { %1881 = vmatpush1.bf16.msra.mxu1 %v3524_v26  ;;  %v3612_v26 = vld [vmem:[%s4255_s6 + $0xf4] ss:$28 sps:$4 sm:$0xff]  }
  0x88   : > { %2147 = vmatpush1.bf16.msra.mxu0 %v3525_v27  ;;  %1882 = vmatprep.subr.bf16.mxu1 %v3526_v28  ;;  %v3621_v27 = vld [vmem:[%s4200_s25 + $0x174] ss:$8 sps:$4 sm:$0xff]   ;;  %v3646_v28 = vld [vmem:[%s4200_s25 + $0x350] ss:$8 sps:$4 sm:$0xff]  }
  0x89   : > { %2148 = vmatprep.subr.bf16.mxu0 %v3528_v29  ;;  %v3663_v29 = vld [vmem:[%s4200_s25 + $0x364] ss:$8 sps:$4 sm:$0xff]  }
  0x8b   : > { %1883 = vmatpush1.bf16.msra.mxu1 %v3530_v30  ;;  %v3619_v30 = vld [vmem:[%s4200_s25 + $0x170] ss:$8 sps:$4 sm:$0xff]  }
  0x8c   : > { %2149 = vmatpush1.bf16.msra.mxu0 %v3531_v31  ;;  %1884 = vmatprep.subr.bf16.mxu1 %v3532_v32  ;;  %v3629_v31 = vld [vmem:[%s4200_s25 + $0x184] ss:$8 sps:$4 sm:$0xff]   ;;  %v3614_v32 = vld [vmem:[%s4255_s6 + $0xe0] ss:$28 sps:$4 sm:$0xff]  }
  0x8d   : > { %2150 = vmatprep.subr.bf16.mxu0 %v3534_v34  ;;  %v3615_v34 = vld [vmem:[%s4255_s6 + $0xf0] ss:$28 sps:$4 sm:$0xff]  }
  0x8f   : > { %1885 = vmatpush1.bf16.msra.mxu1 %v3536_v36  ;;  %v3624_v36 = vld [vmem:[%s4255_s6 + $0x12c] ss:$28 sps:$4 sm:$0xff]  }
  0x90   : > { %2151 = vmatpush1.bf16.msra.mxu0 %v3537_v37  ;;  %1886 = vmatprep.subr.bf16.mxu1 %v3538_v38  ;;  %v3627_v37 = vld [vmem:[%s4200_s25 + $0x180] ss:$8 sps:$4 sm:$0xff]   ;;  %v3636_v38 = vld [vmem:[%s4200_s25 + $0x194] ss:$8 sps:$4 sm:$0xff]  }
  0x91   : > { %2152 = vmatprep.subr.bf16.mxu0 %v3540_v39  ;;  %v3682_v39 = vld [vmem:[%s4200_s25 + $0x370] ss:$8 sps:$4 sm:$0xff]  }
  0x93   : > { %1887 = vmatpush1.bf16.msra.mxu1 %v3542_v40  ;;  %v3684_v40 = vld [vmem:[%s4200_s25 + $0x374] ss:$8 sps:$4 sm:$0xff]  }
  0x94   : > { %2153 = vmatpush1.bf16.msra.mxu0 %v3543_v41  ;;  %1888 = vmatprep.subr.bf16.mxu1 %v3544_v42  ;;  %v3634_v41 = vld [vmem:[%s4200_s25 + $0x190] ss:$8 sps:$4 sm:$0xff]  }
  0x95   : > { %2154 = vmatprep.subr.bf16.mxu0 %v3546_v43  ;;  %v3626_v42 = vld [vmem:[%s4255_s6 + $0x118] ss:$28 sps:$4 sm:$0xff]   ;;  %v3645_v43 = vld [vmem:[%s4200_s25 + $0x1a4] ss:$8 sps:$4 sm:$0xff]  }
  0x97   : > { %1889 = vmatpush1.bf16.msra.mxu1 %v3548_v44  ;;  %v3630_v44 = vld [vmem:[%s4255_s6 + $0x128] ss:$28 sps:$4 sm:$0xff]  }
  0x98   : > { %2155 = vmatpush1.bf16.msra.mxu0 %v3549_v45  ;;  %1890 = vmatprep.subr.bf16.mxu1 %v3550_v46  ;;  %v3637_v45 = vld [vmem:[%s4255_s6 + $0x154] ss:$28 sps:$4 sm:$0xff]   ;;  %v3639_v46 = vld [vmem:[%s4255_s6 + $0x164] ss:$28 sps:$4 sm:$0xff]  }
  0x99   : > { %2156 = vmatprep.subr.bf16.mxu0 %v3552_v47  ;;  %v3643_v47 = vld [vmem:[%s4200_s25 + $0x1a0] ss:$8 sps:$4 sm:$0xff]  }
  0x9b   : > { %1891 = vmatpush1.bf16.msra.mxu1 %v3554_v48  ;;  %v3653_v48 = vld [vmem:[%s4200_s25 + $0x1b4] ss:$8 sps:$4 sm:$0xff]  }
  0x9c   : > { %2157 = vmatpush1.bf16.msra.mxu0 %v3555_v49  ;;  %1993 = vmatprep.subr.bf16.mxu1 %v3564_v50  ;;  %v3641_v49 = vld [vmem:[%s4255_s6 + $0x150] ss:$28 sps:$4 sm:$0xff]  }
  0x9d   : > { %2259 = vmatprep.subr.bf16.mxu0 %v3567_v51  ;;  %v3651_v50 = vld [vmem:[%s4200_s25 + $0x1b0] ss:$8 sps:$4 sm:$0xff]   ;;  %v3660_v51 = vld [vmem:[%s4200_s25 + $0x1c4] ss:$8 sps:$4 sm:$0xff]  }
  0x9e   : > { %1893 = vmatmul.mubr.bf16.vlgmr.msra.gmra.mrb[0].mxu1 %v3556_v52  ;;  %v3642_v52 = vld [vmem:[%s4255_s6 + $0x160] ss:$28 sps:$4 sm:$0xff]  }
  0x9f   : > { %2159 = vmatmul.mubr.bf16.vlgmr.msra.gmra.mrb[0].mxu0 %v3559_v53  ;;  %1994 = vmatpush1.bf16.msra.mxu1 %v3562_v54  ;;  %v3649_v53 = vld [vmem:[%s4255_s6 + $0x18c] ss:$28 sps:$4 sm:$0xff]   ;;  %v3654_v54 = vld [vmem:[%s4255_s6 + $0x19c] ss:$28 sps:$4 sm:$0xff]  }
  0xa0   : > { %2260 = vmatpush1.bf16.msra.mxu0 %v3565_v55  ;;  %1995 = vmatprep.subr.bf16.mxu1 %v3570_v56  ;;  %v3658_v55 = vld [vmem:[%s4200_s25 + $0x1c0] ss:$8 sps:$4 sm:$0xff]   ;;  %v3672_v56 = vld [vmem:[%s4200_s25 + $0x1d4] ss:$8 sps:$4 sm:$0xff]  }
  0xa1   : > { %1902 = vmatprep.mubr.bf16.mxu1 %v3571_v57  ;;  %2168 = vmatprep.mubr.bf16.mxu0 %v3573_v58  ;;  %v3656_v57 = vld [vmem:[%s4255_s6 + $0x188] ss:$28 sps:$4 sm:$0xff]   ;;  %v3670_v58 = vld [vmem:[%s4200_s25 + $0x1d0] ss:$8 sps:$4 sm:$0xff]  }
  0xa2   : > { %2261 = vmatprep.subr.bf16.mxu0 %v3582_v59  ;;  %v3657_v59 = vld [vmem:[%s4255_s6 + $0x198] ss:$28 sps:$4 sm:$0xff]  }
  0xa3   : > { %1996 = vmatpush1.bf16.msra.mxu1 %v3568_v60  ;;  %v3675_v60 = vld [vmem:[%s4200_s25 + $0x1e4] ss:$8 sps:$4 sm:$0xff]  }
  0xa4   : > { %2262 = vmatpush1.bf16.msra.mxu0 %v3580_v62  ;;  %1997 = vmatprep.subr.bf16.mxu1 %v3579_v61  ;;  %v3664_v61 = vld [vmem:[%s4255_s6 + $0x1c4] ss:$28 sps:$4 sm:$0xff]   ;;  %v3666_v62 = vld [vmem:[%s4255_s6 + $0x1d4] ss:$28 sps:$4 sm:$0xff]  }
  0xa5   : > { %2263 = vmatprep.subr.bf16.mxu0 %v3597_v63  ;;  %v3673_v63 = vld [vmem:[%s4200_s25 + $0x1e0] ss:$8 sps:$4 sm:$0xff]  }
  0xa6   : > { %1903 = vmatmul.mubr.bf16.gmra.mrb[4].mxu1 %v3575_v0  ;;  %v3687_v0 = vld [vmem:[%s4200_s25 + $0x1f4] ss:$8 sps:$4 sm:$0xff]  }
  0xa7   : > { %2169 = vmatmul.mubr.bf16.gmra.mrb[4].mxu0 %v3576_v1  ;;  %1998 = vmatpush1.bf16.msra.mxu1 %v3577_v2  ;;  %v3685_v1 = vld [vmem:[%s4200_s25 + $0x1f0] ss:$8 sps:$4 sm:$0xff]   ;;  %v3668_v2 = vld [vmem:[%s4255_s6 + $0x1c0] ss:$28 sps:$4 sm:$0xff]   ;;  %s3321_s25 = smul.u32 (%p3956_p9), 120, %s3822_s17 }
  0xa8   : > { %1912 = vmatprep.mubr.bf16.mxu1 %v3583_v3  ;;  %1999 = vmatprep.subr.bf16.mxu1 %v3587_v4  ;;  %v3669_v3 = vld [vmem:[%s4255_s6 + $0x1d0] ss:$28 sps:$4 sm:$0xff]   ;;  %v3676_v4 = vld [vmem:[%s4255_s6 + $0x1fc] ss:$28 sps:$4 sm:$0xff]  }
  0xa9   : > { %2178 = vmatprep.mubr.bf16.mxu0 %v3588_v5  ;;  %2264 = vmatpush1.bf16.msra.mxu0 %v3595_v6  ;;  %v3678_v5 = vld [vmem:[%s4255_s6 + $0x20c] ss:$28 sps:$4 sm:$0xff]   ;;  %v3680_v6 = vld [vmem:[%s4255_s6 + $0x1f8] ss:$28 sps:$4 sm:$0xff]   ;;  %s2588_s26 = sadd.s32 (%p3956_p9), %s3321_s25, %s4405_s7 }
  0xaa   : > { %2265 = vmatprep.subr.bf16.mxu0 %v3618_v7  ;;  %v3681_v7 = vld [vmem:[%s4255_s6 + $0x208] ss:$28 sps:$4 sm:$0xff]   ;;  %s3125_s28 = sshll.u32 (%p3956_p9), %s2588_s26, 2 }
  0xab   : > { %2000 = vmatpush1.bf16.msra.mxu1 %v3585_v8  ;;  %v3690_v8 = vld [vmem:[%s4255_s6 + $0xc] ss:$28 sps:$4 sm:$0xff]   ;;  %s4490_s8 = scalar_lea.vmem (%p3956_p9), %s4608_s3, %s3125_s28  }
  0xac   : > { %2001 = vmatprep.subr.bf16.mxu1 %v3594_v10  ;;  %v3688_v10 = vld [vmem:[%s4255_s6 + $0x8] ss:$28 sps:$4 sm:$0xff]  }
  0xad   : > { %2266 = vmatpush1.bf16.msra.mxu0 %v3616_v12  ;;  %v3692_v12 = vld [vmem:[%s4255_s6 + $0x44] ss:$28 sps:$4 sm:$0xff]  }
  0xae   : > { %1913 = vmatmul.mubr.bf16.gmra.mrb[8].mxu1 %v3590_v9  ;;  %2267 = vmatprep.subr.bf16.mxu0 %v3633_v17  ;;  %v3868_v9 = vmov 0   ;;  %v3699_v17 = vld [vmem:[%s4255_s6 + $0x88] ss:$28 sps:$4 sm:$0xff]  }
  0xaf   : > { %2179 = vmatmul.mubr.bf16.gmra.mrb[8].mxu0 %v3591_v11  ;;  %2002 = vmatpush1.bf16.msra.mxu1 %v3592_v13  ;;  %v3691_v11 = vld [vmem:[%s4255_s6 + $0x18] ss:$28 sps:$4 sm:$0xff]   ;;  %v3694_v13 = vld [vmem:[%s4255_s6 + $0x40] ss:$28 sps:$4 sm:$0xff]  }
  0xb0   : > { %1922 = vmatprep.mubr.bf16.mxu1 %v3598_v14  ;;  %2188 = vmatprep.mubr.bf16.mxu0 %v3600_v15  ;;  %v3695_v14 = vld [vmem:[%s4255_s6 + $0x50] ss:$28 sps:$4 sm:$0xff]   ;;  %v3696_v15 = vld [vmem:[%s4255_s6 + $0x7c] ss:$28 sps:$4 sm:$0xff]  }
  0xb1   : > { %2003 = vmatprep.subr.bf16.mxu1 %v3606_v16  ;;  %2268 = vmatpush1.bf16.msra.mxu0 %v3631_v19  ;;  %v3698_v16 = vld [vmem:[%s4255_s6 + $0x78] ss:$28 sps:$4 sm:$0xff]   ;;  %v3702_v19 = vld [vmem:[%s4255_s6 + $0xb0] ss:$28 sps:$4 sm:$0xff]  }
  0xb2   : > { %2269 = vmatprep.subr.bf16.mxu0 %v3648_v20  ;;  %v3703_v20 = vld [vmem:[%s4255_s6 + $0xc0] ss:$28 sps:$4 sm:$0xff]  }
  0xb3   : > { %2004 = vmatpush1.bf16.msra.mxu1 %v3604_v18  ;;  %v3700_v18 = vld [vmem:[%s4255_s6 + $0xb4] ss:$28 sps:$4 sm:$0xff]  }
  0xb4   : > { %2005 = vmatprep.subr.bf16.mxu1 %v3609_v21  ;;  %v3704_v21 = vld [vmem:[%s4255_s6 + $0xec] ss:$28 sps:$4 sm:$0xff]  }
  0xb5   : > { %2270 = vmatpush1.bf16.msra.mxu0 %v3646_v28  ;;  %v3714_v28 = vld [vmem:[%s4255_s6 + $0x158] ss:$28 sps:$4 sm:$0xff]  }
  0xb6   : > { %1923 = vmatmul.mubr.bf16.gmra.mrb[12].mxu1 %v3602_v22  ;;  %2271 = vmatprep.subr.bf16.mxu0 %v3663_v29  ;;  %v3706_v22 = vld [vmem:[%s4255_s6 + $0xe8] ss:$28 sps:$4 sm:$0xff]  }
  0xb7   : > { %2189 = vmatmul.mubr.bf16.gmra.mrb[12].mxu0 %v3603_v23  ;;  %1932 = vmatprep.mubr.bf16.mxu1 %v3610_v25  ;;  %v3707_v23 = vld [vmem:[%s4255_s6 + $0xf8] ss:$28 sps:$4 sm:$0xff]   ;;  %v3710_v25 = vld [vmem:[%s4255_s6 + $0x120] ss:$28 sps:$4 sm:$0xff]   ;;  %v3715_v29 = vld [vmem:[%s4255_s6 + $0x168] ss:$28 sps:$4 sm:$0xff]  }
  0xb8   : > { %2006 = vmatpush1.bf16.msra.mxu1 %v3607_v24  ;;  %2198 = vmatprep.mubr.bf16.mxu0 %v3612_v26  ;;  %v3708_v24 = vld [vmem:[%s4255_s6 + $0x124] ss:$28 sps:$4 sm:$0xff]   ;;  %v3711_v26 = vld [vmem:[%s4255_s6 + $0x130] ss:$28 sps:$4 sm:$0xff]  }
  0xb9   : > { %2007 = vmatprep.subr.bf16.mxu1 %v3621_v27  ;;  %2272 = vmatpush1.bf16.msra.mxu0 %v3661_v33  ;;  %v3712_v27 = vld [vmem:[%s4255_s6 + $0x15c] ss:$28 sps:$4 sm:$0xff]   ;;  %v3720_v33 = vld [vmem:[%s4255_s6 + $0x1cc] ss:$28 sps:$4 sm:$0xff]  }
  0xba   : > { %2273 = vmatprep.subr.bf16.mxu0 %v3684_v40 }
  0xbc   : > { %2008 = vmatpush1.bf16.msra.mxu1 %v3619_v30  ;;  %v3716_v30 = vld [vmem:[%s4255_s6 + $0x194] ss:$28 sps:$4 sm:$0xff]  }
  0xbd   : > { %2009 = vmatprep.subr.bf16.mxu1 %v3629_v31  ;;  %2274 = vmatpush1.bf16.msra.mxu0 %v3682_v39  ;;  %v3718_v31 = vld [vmem:[%s4255_s6 + $0x190] ss:$28 sps:$4 sm:$0xff]   ;;  %v930_v39 = vlaneseq }
  0xbe   : > { %1933 = vmatmul.mubr.bf16.gmra.mrb[16].mxu1 %v3614_v32  ;;  %v3719_v32 = vld [vmem:[%s4255_s6 + $0x1a0] ss:$28 sps:$4 sm:$0xff]  }
  0xbf   : > { %2199 = vmatmul.mubr.bf16.gmra.mrb[16].mxu0 %v3615_v34  ;;  %1942 = vmatprep.mubr.bf16.mxu1 %v3622_v35  ;;  %v3722_v34 = vld [vmem:[%s4255_s6 + $0x1c8] ss:$28 sps:$4 sm:$0xff]   ;;  %v3723_v35 = vld [vmem:[%s4255_s6 + $0x1d8] ss:$28 sps:$4 sm:$0xff]   ;;  %v931_v40 = vshrl.u32 %v930_v39, 7 }
  0xc0   : > { %2208 = vmatprep.mubr.bf16.mxu0 %v3624_v36  ;;  %2010 = vmatpush1.bf16.msra.mxu1 %v3627_v37  ;;  %v3724_v36 = vld [vmem:[%s4255_s6 + $0x204] ss:$28 sps:$4 sm:$0xff]  }
  0xc1   : > { %2011 = vmatprep.subr.bf16.mxu1 %v3636_v38  ;;  %v3726_v37 = vld [vmem:[%s4255_s6 + $0x200] ss:$28 sps:$4 sm:$0xff]   ;;  %v3727_v38 = vld [vmem:[%s4255_s6 + $0x210] ss:$28 sps:$4 sm:$0xff]  }
  0xc4   : > { %2012 = vmatpush1.bf16.msra.mxu1 %v3634_v41  ;;  %v932_v41 = vsub.s32 0, %v931_v40 }
  0xc5   : > { %2013 = vmatprep.subr.bf16.mxu1 %v3645_v43  ;;  %v936_v43 = vsub.s32 1, %v931_v40 }
  0xc6   : > { %1943 = vmatmul.mubr.bf16.gmra.mrb[20].mxu1 %v3626_v42  ;;  %v928_v42 = vld [vmem:[%s726_s11] sm:$0x3] }
  0xc7   : > { %2209 = vmatmul.mubr.bf16.gmra.mrb[20].mxu0 %v3630_v44  ;;  %1952 = vmatprep.mubr.bf16.mxu1 %v3637_v45  ;;  %v4412_v44 = vrot.slane %v928_v42, %v932_v41  ;;  %v4414_v45 = vrot.slane %v928_v42, %v936_v43 }
  0xc8   : > { %2218 = vmatprep.mubr.bf16.mxu0 %v3639_v46  ;;  %2014 = vmatpush1.bf16.msra.mxu1 %v3643_v47 }
  0xc9   : > { %2015 = vmatprep.subr.bf16.mxu1 %v3653_v48 }
  0xcc   : > { %2016 = vmatpush1.bf16.msra.mxu1 %v3651_v50 }
  0xcd   : > { %2017 = vmatprep.subr.bf16.mxu1 %v3660_v51 }
  0xce   : > { %1953 = vmatmul.mubr.bf16.gmra.mrb[24].mxu1 %v3641_v49 }
  0xcf   : > { %2219 = vmatmul.mubr.bf16.gmra.mrb[24].mxu0 %v3642_v52  ;;  %1962 = vmatprep.mubr.bf16.mxu1 %v3649_v53 }
  0xd0   : > { %2228 = vmatprep.mubr.bf16.mxu0 %v3654_v54  ;;  %2018 = vmatpush1.bf16.msra.mxu1 %v3658_v55 }
  0xd1   : > { %2019 = vmatprep.subr.bf16.mxu1 %v3672_v56 }
  0xd4   : > { %2020 = vmatpush1.bf16.msra.mxu1 %v3670_v58 }
  0xd5   : > { %2021 = vmatprep.subr.bf16.mxu1 %v3675_v60 }
  0xd6   : > { %1963 = vmatmul.mubr.bf16.gmra.mrb[28].mxu1 %v3656_v57 }
  0xd7   : > { %2229 = vmatmul.mubr.bf16.gmra.mrb[28].mxu0 %v3657_v59  ;;  %1972 = vmatprep.mubr.bf16.mxu1 %v3664_v61 }
  0xd8   : > { %2238 = vmatprep.mubr.bf16.mxu0 %v3666_v62  ;;  %2022 = vmatpush1.bf16.msra.mxu1 %v3673_v63 }
  0xd9   : > { %2023 = vmatprep.subr.bf16.mxu1 %v3687_v0 }
  0xdc   : > { %2024 = vmatpush1.bf16.msra.mxu1 %v3685_v1 }
  0xde   : > { %1973 = vmatmul.mubr.bf16.gmra.mrb[32].mxu1 %v3668_v2 }
  0xdf   : > { %2239 = vmatmul.mubr.bf16.gmra.mrb[32].mxu0 %v3669_v3  ;;  %1982 = vmatprep.mubr.bf16.mxu1 %v3676_v4 }
  0xe0   : > { %2248 = vmatprep.mubr.bf16.mxu0 %v3678_v5 }
  0xe6   : > { %1983 = vmatmul.mubr.bf16.gmra.mrb[36].mxu1 %v3680_v6 }
  0xe7   : > { %2249 = vmatmul.mubr.bf16.gmra.mrb[36].mxu0 %v3681_v7  ;;  %2025 = vmatprep.mubr.bf16.mxu1 %v3690_v8 }
  0xe8   : > { %2291 = vmatprep.mubr.bf16.mxu0 %v3868_v9 }
  0xee   : > { %2026 = vmatmul.mubr.bf16.vlgmr.msra.gmra.mrb[0].mxu1 %v3688_v10 }
  0xef   : > { %2292 = vmatmul.mubr.bf16.vlgmr.msra.gmra.mrb[0].mxu0 %v3691_v11  ;;  %2035 = vmatprep.mubr.bf16.mxu1 %v3692_v12 }
  0xf0   : > { %2301 = vmatprep.mubr.bf16.mxu0 %v3868_v9 }
  0xf6   : > { %2036 = vmatmul.mubr.bf16.gmra.mrb[4].mxu1 %v3694_v13 }
  0xf7   : > { %2302 = vmatmul.mubr.bf16.gmra.mrb[4].mxu0 %v3695_v14  ;;  %2045 = vmatprep.mubr.bf16.mxu1 %v3696_v15 }
  0xf8   : > { %2311 = vmatprep.mubr.bf16.mxu0 %v3868_v9 }
  0xfe   : > { %2046 = vmatmul.mubr.bf16.gmra.mrb[8].mxu1 %v3698_v16 }
  0xff   : > { %2312 = vmatmul.mubr.bf16.gmra.mrb[8].mxu0 %v3699_v17  ;;  %2055 = vmatprep.mubr.bf16.mxu1 %v3700_v18 }
 0x100   : > { %2321 = vmatprep.mubr.bf16.mxu0 %v3868_v9 }
 0x106   : > { %2056 = vmatmul.mubr.bf16.gmra.mrb[12].mxu1 %v3702_v19 }
 0x107   : > { %2322 = vmatmul.mubr.bf16.gmra.mrb[12].mxu0 %v3703_v20  ;;  %2065 = vmatprep.mubr.bf16.mxu1 %v3704_v21 }
 0x108   : > { %2331 = vmatprep.mubr.bf16.mxu0 %v3868_v9 }
 0x10e   : > { %2066 = vmatmul.mubr.bf16.gmra.mrb[16].mxu1 %v3706_v22 }
 0x10f   : > { %2332 = vmatmul.mubr.bf16.gmra.mrb[16].mxu0 %v3707_v23  ;;  %2075 = vmatprep.mubr.bf16.mxu1 %v3708_v24 }
 0x110   : > { %2341 = vmatprep.mubr.bf16.mxu0 %v3868_v9 }
 0x116   : > { %2076 = vmatmul.mubr.bf16.gmra.mrb[20].mxu1 %v3710_v25 }
 0x117   : > { %2342 = vmatmul.mubr.bf16.gmra.mrb[20].mxu0 %v3711_v26  ;;  %2085 = vmatprep.mubr.bf16.mxu1 %v3712_v27 }
 0x118   : > { %2351 = vmatprep.mubr.bf16.mxu0 %v3868_v9 }
 0x11e   : > { %2086 = vmatmul.mubr.bf16.gmra.mrb[24].mxu1 %v3714_v28 }
 0x11f   : > { %2352 = vmatmul.mubr.bf16.gmra.mrb[24].mxu0 %v3715_v29  ;;  %2095 = vmatprep.mubr.bf16.mxu1 %v3716_v30 }
 0x120   : > { %2361 = vmatprep.mubr.bf16.mxu0 %v3868_v9 }
 0x126   : > { %2096 = vmatmul.mubr.bf16.gmra.mrb[28].mxu1 %v3718_v31 }
 0x127   : > { %2362 = vmatmul.mubr.bf16.gmra.mrb[28].mxu0 %v3719_v32  ;;  %2105 = vmatprep.mubr.bf16.mxu1 %v3720_v33 }
 0x128   : > { %2371 = vmatprep.mubr.bf16.mxu0 %v3868_v9 }
 0x12e   : > { %2106 = vmatmul.mubr.bf16.gmra.mrb[32].mxu1 %v3722_v34 }
 0x12f   : > { %2372 = vmatmul.mubr.bf16.gmra.mrb[32].mxu0 %v3723_v35  ;;  %2115 = vmatprep.mubr.bf16.mxu1 %v3724_v36 }
 0x130   : > { %2381 = vmatprep.mubr.bf16.mxu0 %v3868_v9 }
 0x136   : > { %2116 = vmatmul.mubr.bf16.gmra.mrb[36].mxu1 %v3726_v37 }
 0x137   : > { %2382 = vmatmul.mubr.bf16.gmra.mrb[36].mxu0 %v3727_v38 }
 0x1c1   : > { %v2027_v46 = vpop.f32.mrb[0].mxu1 }
 0x1c2   : > { %v2293_v47 = vpop.f32.mrb[0].mxu0  ;;  %v3156_v48 = vadd.f32 %v2027_v46, %v4412_v44  ;;  %v2029_v49 = vpop.f32.mrb[1].mxu1 }
 0x1c3   : > { %v2295_v50 = vpop.f32.mrb[1].mxu0  ;;  %v3158_v51 = vadd.f32 %v2029_v49, %v4414_v45  ;;  %v2031_v52 = vpop.f32.mrb[2].mxu1 }
 0x1c4   : > { %v2297_v53 = vpop.f32.mrb[2].mxu0  ;;  %v3157_v54 = vadd.f32 %v3156_v48, %v2293_v47  ;;  %v3160_v55 = vadd.f32 %v2031_v52, %v4412_v44  ;;  %v2033_v56 = vpop.f32.mrb[3].mxu1 }
 0x1c5   : > { %v2299_v57 = vpop.f32.mrb[3].mxu0  ;;  %v3159_v58 = vadd.f32 %v3158_v51, %v2295_v50  ;;  %v3162_v59 = vadd.f32 %v2033_v56, %v4414_v45 }
 0x1c6   : > { %v2392_v60 = vmax.f32 %v3157_v54, 0.0  ;;  %v3161_v61 = vadd.f32 %v3160_v55, %v2297_v53 }
 0x1c7   : > { %v2393_v62 = vmax.f32 %v3159_v58, 0.0  ;;  %v3163_v63 = vadd.f32 %v3162_v59, %v2299_v57 }
 0x1c8   : > { %v2394_v0 = vmax.f32 %v3161_v61, 0.0 }
 0x1c9   : > { %v3135_v1 = vpack.c.bf16 %v2393_v62, %v2392_v60  ;;  %v2395_v2 = vmax.f32 %v3163_v63, 0.0  ;;  %v2037_v3 = vpop.f32.mrb[4].mxu1 }
 0x1ca   : > { %v2303_v4 = vpop.f32.mrb[4].mxu0  ;;  %v3164_v5 = vadd.f32 %v2037_v3, %v4412_v44  ;;  %v2039_v6 = vpop.f32.mrb[5].mxu1 }
 0x1cb   : > { %v2305_v7 = vpop.f32.mrb[5].mxu0  ;;  %2552 = vst [vmem:[%s4422_s12] sm:$0xff] %v3135_v1  ;;  %v3136_v8 = vpack.c.bf16 %v2395_v2, %v2394_v0  ;;  %v3166_v9 = vadd.f32 %v2039_v6, %v4414_v45  ;;  %v2041_v10 = vpop.f32.mrb[6].mxu1 }
 0x1cc   : > { %v2307_v11 = vpop.f32.mrb[6].mxu0  ;;  %v3165_v12 = vadd.f32 %v3164_v5, %v2303_v4  ;;  %v3168_v13 = vadd.f32 %v2041_v10, %v4412_v44  ;;  %v2043_v14 = vpop.f32.mrb[7].mxu1 }
 0x1cd   : > { %v2309_v15 = vpop.f32.mrb[7].mxu0  ;;  %2553 = vst [vmem:[%s4422_s12 + $0x8] sm:$0xff] %v3136_v8  ;;  %v3167_v16 = vadd.f32 %v3166_v9, %v2305_v7  ;;  %v3170_v17 = vadd.f32 %v2043_v14, %v4414_v45 }
 0x1ce   : > { %v2396_v18 = vmax.f32 %v3165_v12, 0.0  ;;  %v3169_v19 = vadd.f32 %v3168_v13, %v2307_v11 }
 0x1cf   : > { %v2397_v20 = vmax.f32 %v3167_v16, 0.0  ;;  %v3171_v21 = vadd.f32 %v3170_v17, %v2309_v15 }
 0x1d0   : > { %v2398_v22 = vmax.f32 %v3169_v19, 0.0 }
 0x1d1   : > { %v3137_v23 = vpack.c.bf16 %v2397_v20, %v2396_v18  ;;  %v2399_v24 = vmax.f32 %v3171_v21, 0.0  ;;  %v2047_v25 = vpop.f32.mrb[8].mxu1 }
 0x1d2   : > { %v2313_v26 = vpop.f32.mrb[8].mxu0  ;;  %v3172_v27 = vadd.f32 %v2047_v25, %v4412_v44  ;;  %v2049_v28 = vpop.f32.mrb[9].mxu1 }
 0x1d3   : > { %v2315_v29 = vpop.f32.mrb[9].mxu0  ;;  %2554 = vst [vmem:[%s4422_s12 + $0x10] sm:$0xff] %v3137_v23  ;;  %v3138_v30 = vpack.c.bf16 %v2399_v24, %v2398_v22  ;;  %v3174_v31 = vadd.f32 %v2049_v28, %v4414_v45  ;;  %v2051_v32 = vpop.f32.mrb[10].mxu1 }
 0x1d4   : > { %v2317_v33 = vpop.f32.mrb[10].mxu0  ;;  %v3173_v34 = vadd.f32 %v3172_v27, %v2313_v26  ;;  %v3176_v35 = vadd.f32 %v2051_v32, %v4412_v44  ;;  %v2053_v36 = vpop.f32.mrb[11].mxu1 }
 0x1d5   : > { %v2319_v37 = vpop.f32.mrb[11].mxu0  ;;  %2555 = vst [vmem:[%s4422_s12 + $0x18] sm:$0xff] %v3138_v30  ;;  %v3175_v38 = vadd.f32 %v3174_v31, %v2315_v29  ;;  %v3178_v39 = vadd.f32 %v2053_v36, %v4414_v45 }
 0x1d6   : > { %v2400_v40 = vmax.f32 %v3173_v34, 0.0  ;;  %v3177_v41 = vadd.f32 %v3176_v35, %v2317_v33 }
 0x1d7   : > { %v2401_v42 = vmax.f32 %v3175_v38, 0.0  ;;  %v3179_v43 = vadd.f32 %v3178_v39, %v2319_v37 }
 0x1d8   : > { %v2402_v46 = vmax.f32 %v3177_v41, 0.0 }
 0x1d9   : > { %v3139_v47 = vpack.c.bf16 %v2401_v42, %v2400_v40  ;;  %v2403_v48 = vmax.f32 %v3179_v43, 0.0  ;;  %v2057_v49 = vpop.f32.mrb[12].mxu1 }
 0x1da   : > { %v2323_v50 = vpop.f32.mrb[12].mxu0  ;;  %v3180_v51 = vadd.f32 %v2057_v49, %v4412_v44  ;;  %v2059_v52 = vpop.f32.mrb[13].mxu1 }
 0x1db   : > { %v2325_v53 = vpop.f32.mrb[13].mxu0  ;;  %2556 = vst [vmem:[%s4422_s12 + $0x20] sm:$0xff] %v3139_v47  ;;  %v3140_v54 = vpack.c.bf16 %v2403_v48, %v2402_v46  ;;  %v3182_v55 = vadd.f32 %v2059_v52, %v4414_v45  ;;  %v2061_v56 = vpop.f32.mrb[14].mxu1 }
 0x1dc   : > { %v2327_v57 = vpop.f32.mrb[14].mxu0  ;;  %v3181_v58 = vadd.f32 %v3180_v51, %v2323_v50  ;;  %v3184_v59 = vadd.f32 %v2061_v56, %v4412_v44  ;;  %v2063_v60 = vpop.f32.mrb[15].mxu1 }
 0x1dd   : > { %v2329_v61 = vpop.f32.mrb[15].mxu0  ;;  %2557 = vst [vmem:[%s4422_s12 + $0x28] sm:$0xff] %v3140_v54  ;;  %v3183_v62 = vadd.f32 %v3182_v55, %v2325_v53  ;;  %v3186_v63 = vadd.f32 %v2063_v60, %v4414_v45 }
 0x1de   : > { %v2404_v0 = vmax.f32 %v3181_v58, 0.0  ;;  %v3185_v1 = vadd.f32 %v3184_v59, %v2327_v57 }
 0x1df   : > { %v2405_v2 = vmax.f32 %v3183_v62, 0.0  ;;  %v3187_v3 = vadd.f32 %v3186_v63, %v2329_v61 }
 0x1e0   : > { %v2406_v4 = vmax.f32 %v3185_v1, 0.0 }
 0x1e1   : > { %v3141_v5 = vpack.c.bf16 %v2405_v2, %v2404_v0  ;;  %v2407_v6 = vmax.f32 %v3187_v3, 0.0  ;;  %v2067_v7 = vpop.f32.mrb[16].mxu1 }
 0x1e2   : > { %v2333_v8 = vpop.f32.mrb[16].mxu0  ;;  %v3188_v9 = vadd.f32 %v2067_v7, %v4412_v44  ;;  %v2069_v10 = vpop.f32.mrb[17].mxu1 }
 0x1e3   : > { %v2335_v11 = vpop.f32.mrb[17].mxu0  ;;  %2558 = vst [vmem:[%s4422_s12 + $0x30] sm:$0xff] %v3141_v5  ;;  %v3142_v12 = vpack.c.bf16 %v2407_v6, %v2406_v4  ;;  %v3190_v13 = vadd.f32 %v2069_v10, %v4414_v45  ;;  %v2071_v14 = vpop.f32.mrb[18].mxu1 }
 0x1e4   : > { %v2337_v15 = vpop.f32.mrb[18].mxu0  ;;  %v3189_v16 = vadd.f32 %v3188_v9, %v2333_v8  ;;  %v3192_v17 = vadd.f32 %v2071_v14, %v4412_v44  ;;  %v2073_v18 = vpop.f32.mrb[19].mxu1 }
 0x1e5   : > { %v2339_v19 = vpop.f32.mrb[19].mxu0  ;;  %2559 = vst [vmem:[%s4422_s12 + $0x38] sm:$0xff] %v3142_v12  ;;  %v3191_v20 = vadd.f32 %v3190_v13, %v2335_v11  ;;  %v3194_v21 = vadd.f32 %v2073_v18, %v4414_v45 }
 0x1e6   : > { %v2408_v22 = vmax.f32 %v3189_v16, 0.0  ;;  %v3193_v23 = vadd.f32 %v3192_v17, %v2337_v15 }
 0x1e7   : > { %v2409_v24 = vmax.f32 %v3191_v20, 0.0  ;;  %v3195_v25 = vadd.f32 %v3194_v21, %v2339_v19 }
 0x1e8   : > { %v2410_v26 = vmax.f32 %v3193_v23, 0.0 }
 0x1e9   : > { %v3143_v27 = vpack.c.bf16 %v2409_v24, %v2408_v22  ;;  %v2411_v28 = vmax.f32 %v3195_v25, 0.0  ;;  %v2077_v29 = vpop.f32.mrb[20].mxu1 }
 0x1ea   : > { %v2343_v30 = vpop.f32.mrb[20].mxu0  ;;  %v3196_v31 = vadd.f32 %v2077_v29, %v4412_v44  ;;  %v2079_v32 = vpop.f32.mrb[21].mxu1 }
 0x1eb   : > { %v2345_v33 = vpop.f32.mrb[21].mxu0  ;;  %2560 = vst [vmem:[%s4422_s12 + $0x40] sm:$0xff] %v3143_v27  ;;  %v3144_v34 = vpack.c.bf16 %v2411_v28, %v2410_v26  ;;  %v3198_v35 = vadd.f32 %v2079_v32, %v4414_v45  ;;  %v2081_v36 = vpop.f32.mrb[22].mxu1 }
 0x1ec   : > { %v2347_v37 = vpop.f32.mrb[22].mxu0  ;;  %v3197_v38 = vadd.f32 %v3196_v31, %v2343_v30  ;;  %v3200_v39 = vadd.f32 %v2081_v36, %v4412_v44  ;;  %v2083_v40 = vpop.f32.mrb[23].mxu1 }
 0x1ed   : > { %v2349_v41 = vpop.f32.mrb[23].mxu0  ;;  %2561 = vst [vmem:[%s4422_s12 + $0x48] sm:$0xff] %v3144_v34  ;;  %v3199_v42 = vadd.f32 %v3198_v35, %v2345_v33  ;;  %v3202_v43 = vadd.f32 %v2083_v40, %v4414_v45 }
 0x1ee   : > { %v2412_v46 = vmax.f32 %v3197_v38, 0.0  ;;  %v3201_v47 = vadd.f32 %v3200_v39, %v2347_v37 }
 0x1ef   : > { %v2413_v48 = vmax.f32 %v3199_v42, 0.0  ;;  %v3203_v49 = vadd.f32 %v3202_v43, %v2349_v41 }
 0x1f0   : > { %v2414_v50 = vmax.f32 %v3201_v47, 0.0 }
 0x1f1   : > { %v3145_v51 = vpack.c.bf16 %v2413_v48, %v2412_v46  ;;  %v2415_v52 = vmax.f32 %v3203_v49, 0.0  ;;  %v2087_v53 = vpop.f32.mrb[24].mxu1 }
 0x1f2   : > { %v2353_v54 = vpop.f32.mrb[24].mxu0  ;;  %v3204_v55 = vadd.f32 %v2087_v53, %v4412_v44  ;;  %v2089_v56 = vpop.f32.mrb[25].mxu1 }
 0x1f3   : > { %v2355_v57 = vpop.f32.mrb[25].mxu0  ;;  %2562 = vst [vmem:[%s4422_s12 + $0x50] sm:$0xff] %v3145_v51  ;;  %v3146_v58 = vpack.c.bf16 %v2415_v52, %v2414_v50  ;;  %v3206_v59 = vadd.f32 %v2089_v56, %v4414_v45  ;;  %v2091_v60 = vpop.f32.mrb[26].mxu1 }
 0x1f4   : > { %v2357_v61 = vpop.f32.mrb[26].mxu0  ;;  %v3205_v62 = vadd.f32 %v3204_v55, %v2353_v54  ;;  %v3208_v63 = vadd.f32 %v2091_v60, %v4412_v44  ;;  %v2093_v0 = vpop.f32.mrb[27].mxu1 }
 0x1f5   : > { %v2359_v1 = vpop.f32.mrb[27].mxu0  ;;  %2563 = vst [vmem:[%s4422_s12 + $0x58] sm:$0xff] %v3146_v58  ;;  %v3207_v2 = vadd.f32 %v3206_v59, %v2355_v57  ;;  %v3210_v3 = vadd.f32 %v2093_v0, %v4414_v45 }
 0x1f6   : > { %v2416_v4 = vmax.f32 %v3205_v62, 0.0  ;;  %v3209_v5 = vadd.f32 %v3208_v63, %v2357_v61 }
 0x1f7   : > { %v2417_v6 = vmax.f32 %v3207_v2, 0.0  ;;  %v3211_v7 = vadd.f32 %v3210_v3, %v2359_v1 }
 0x1f8   : > { %v2418_v8 = vmax.f32 %v3209_v5, 0.0 }
 0x1f9   : > { %v3147_v9 = vpack.c.bf16 %v2417_v6, %v2416_v4  ;;  %v2419_v10 = vmax.f32 %v3211_v7, 0.0  ;;  %v2097_v11 = vpop.f32.mrb[28].mxu1 }
 0x1fa   : > { %v2363_v12 = vpop.f32.mrb[28].mxu0  ;;  %v3212_v13 = vadd.f32 %v2097_v11, %v4412_v44  ;;  %v2099_v14 = vpop.f32.mrb[29].mxu1 }
 0x1fb   : > { %v2365_v15 = vpop.f32.mrb[29].mxu0  ;;  %2564 = vst [vmem:[%s4422_s12 + $0x60] sm:$0xff] %v3147_v9  ;;  %v3148_v16 = vpack.c.bf16 %v2419_v10, %v2418_v8  ;;  %v3214_v17 = vadd.f32 %v2099_v14, %v4414_v45  ;;  %v2101_v18 = vpop.f32.mrb[30].mxu1 }
 0x1fc   : > { %v2367_v19 = vpop.f32.mrb[30].mxu0  ;;  %v3213_v20 = vadd.f32 %v3212_v13, %v2363_v12  ;;  %v3216_v21 = vadd.f32 %v2101_v18, %v4412_v44  ;;  %v2103_v22 = vpop.f32.mrb[31].mxu1 }
 0x1fd   : > { %v2369_v23 = vpop.f32.mrb[31].mxu0  ;;  %2565 = vst [vmem:[%s4422_s12 + $0x68] sm:$0xff] %v3148_v16  ;;  %v3215_v24 = vadd.f32 %v3214_v17, %v2365_v15  ;;  %v3218_v25 = vadd.f32 %v2103_v22, %v4414_v45 }
 0x1fe   : > { %v2420_v26 = vmax.f32 %v3213_v20, 0.0  ;;  %v3217_v27 = vadd.f32 %v3216_v21, %v2367_v19 }
 0x1ff   : > { %v2421_v28 = vmax.f32 %v3215_v24, 0.0  ;;  %v3219_v29 = vadd.f32 %v3218_v25, %v2369_v23 }
 0x200   : > { %v2422_v30 = vmax.f32 %v3217_v27, 0.0 }
 0x201   : > { %v3149_v31 = vpack.c.bf16 %v2421_v28, %v2420_v26  ;;  %v2423_v32 = vmax.f32 %v3219_v29, 0.0  ;;  %v2107_v33 = vpop.f32.mrb[32].mxu1 }
 0x202   : > { %v2373_v34 = vpop.f32.mrb[32].mxu0  ;;  %v3220_v35 = vadd.f32 %v2107_v33, %v4412_v44  ;;  %v2109_v36 = vpop.f32.mrb[33].mxu1 }
 0x203   : > { %v2375_v37 = vpop.f32.mrb[33].mxu0  ;;  %2566 = vst [vmem:[%s4422_s12 + $0x70] sm:$0xff] %v3149_v31  ;;  %v3150_v38 = vpack.c.bf16 %v2423_v32, %v2422_v30  ;;  %v3222_v39 = vadd.f32 %v2109_v36, %v4414_v45  ;;  %v2111_v40 = vpop.f32.mrb[34].mxu1 }
 0x204   : > { %v2377_v41 = vpop.f32.mrb[34].mxu0  ;;  %v3221_v42 = vadd.f32 %v3220_v35, %v2373_v34  ;;  %v3224_v43 = vadd.f32 %v2111_v40, %v4412_v44  ;;  %v2113_v46 = vpop.f32.mrb[35].mxu1 }
 0x205   : > { %v2379_v47 = vpop.f32.mrb[35].mxu0  ;;  %2567 = vst [vmem:[%s4422_s12 + $0x78] sm:$0xff] %v3150_v38  ;;  %v3223_v48 = vadd.f32 %v3222_v39, %v2375_v37  ;;  %v3226_v49 = vadd.f32 %v2113_v46, %v4414_v45 }
 0x206   : > { %v2424_v50 = vmax.f32 %v3221_v42, 0.0  ;;  %v3225_v51 = vadd.f32 %v3224_v43, %v2377_v41 }
 0x207   : > { %v2425_v52 = vmax.f32 %v3223_v48, 0.0  ;;  %v3227_v53 = vadd.f32 %v3226_v49, %v2379_v47 }
 0x208   : > { %v2426_v54 = vmax.f32 %v3225_v51, 0.0 }
 0x209   : > { %v3151_v55 = vpack.c.bf16 %v2425_v52, %v2424_v50  ;;  %v2427_v56 = vmax.f32 %v3227_v53, 0.0  ;;  %v2117_v57 = vpop.f32.mrb[36].mxu1 }
 0x20a   : > { %v2383_v58 = vpop.f32.mrb[36].mxu0  ;;  %v3228_v59 = vadd.f32 %v2117_v57, %v4412_v44  ;;  %v2119_v60 = vpop.f32.mrb[37].mxu1 }
 0x20b   : > { %v2385_v61 = vpop.f32.mrb[37].mxu0  ;;  %2568 = vst [vmem:[%s4422_s12 + $0x80] sm:$0xff] %v3151_v55  ;;  %v3152_v62 = vpack.c.bf16 %v2427_v56, %v2426_v54  ;;  %v3230_v63 = vadd.f32 %v2119_v60, %v4414_v45  ;;  %v2121_v0 = vpop.f32.mrb[38].mxu1 }
 0x20c   : > { %v2387_v1 = vpop.f32.mrb[38].mxu0  ;;  %v3229_v2 = vadd.f32 %v3228_v59, %v2383_v58  ;;  %v3232_v3 = vadd.f32 %v2121_v0, %v4412_v44  ;;  %v2123_v4 = vpop.f32.mrb[39].mxu1 }
 0x20d   : > { %v2389_v5 = vpop.f32.mrb[39].mxu0  ;;  %2569 = vst [vmem:[%s4422_s12 + $0x88] sm:$0xff] %v3152_v62  ;;  %v3231_v6 = vadd.f32 %v3230_v63, %v2385_v61  ;;  %v3234_v7 = vadd.f32 %v2123_v4, %v4414_v45 }
 0x20e   : > { %v2428_v8 = vmax.f32 %v3229_v2, 0.0  ;;  %v3233_v9 = vadd.f32 %v3232_v3, %v2387_v1 }
 0x20f   : > { %v2429_v10 = vmax.f32 %v3231_v6, 0.0  ;;  %v3235_v11 = vadd.f32 %v3234_v7, %v2389_v5  ;;  %2578 = sbr.rel (!%p3956_p9) target bundleno = 598 (0x256), region = 74 }
 0x210   : > { %v2430_v12 = vmax.f32 %v3233_v9, 0.0 }
 0x211   : > { %v3153_v13 = vpack.c.bf16 %v2429_v10, %v2428_v8  ;;  %v2431_v14 = vmax.f32 %v3235_v11, 0.0 }
 0x213   : > { %2570 = vst [vmem:[%s4422_s12 + $0x90] sm:$0xff] %v3153_v13  ;;  %v3154_v15 = vpack.c.bf16 %v2431_v14, %v2430_v12 }
 0x215   : > { %2571 = vst [vmem:[%s4422_s12 + $0x98] sm:$0xff] %v3154_v15 }
 0x216   : > { %s4628_s24 = smov (!%p2582_p2, %s2581_s24), 20 }
 0x217   : > { %s3155_s29 = sshll.u32 %s4628_s24, 7 }
 0x218   : > { %p3126_p3 = scmp.eq.s32.totalorder %s3155_s29, 0 }
 0x219   : > { %3728 = sdivrem.u32 (!%p3126_p3), %s4628_s24, 20 }
 0x21a   : > { %2593 = sbr.rel (%p3126_p3) target bundleno = 598 (0x256), region = 78 }
 0x222   : > { %s4493_s30 = spop.drf %3728 }
 0x223   : > { %p3127_p4 = scmp.le.s32.totalorder %s4493_s30, 0 }
 0x224   : > { %s4610_s17 = smov (!%p3127_p4), %s4490_s8  ;;  %s4611_s14 = smov (!%p3127_p4), %s4422_s12 }
 0x225   : > { %2843 = sbr.rel (%p3127_p4) target bundleno = 569 (0x239), region = 165  ;;  %s4502_s7 = smov (!%p3127_p4), 0  }
 0x226   : > { %s4504_s9 = smov (!%p3127_p4), 0  }
 0x22c LB: >> { %v2695_v44 = vld [vmem:[%s3842_s14] sm:$0xff]  ;;  %v2697_v45 = vld [vmem:[%s3842_s14 + $0x8] sm:$0xff]  ;;  %v2699_v16 = vld [vmem:[%s3842_s14 + $0x10] sm:$0xff]  ;;  %s2735_s10 = sadd.s32 1, %s3846_s7  ;;  %s2689_s9 = sadd.s32 1, %s3850_s9   ;;  %s3850_s9 = sphi %s4504_s9, %s2689_s9   ;;  %s3846_s7 = sphi %s4502_s7, %s4612_s7   ;;  %s3842_s14 = sphi %s4611_s14, %s2740_s14   ;;  %s3838_s17 = sphi %s4610_s17, %s2741_s17  }
 0x22d   : >> { %2696 = vst [vmem:[%s3838_s17] sm:$0xff] %v2695_v44  ;;  %2698 = vst [vmem:[%s3838_s17 + $0x18] sm:$0xff] %v2697_v45  ;;  %v2701_v17 = vld [vmem:[%s3842_s14 + $0x18] sm:$0xff]  ;;  %v2703_v18 = vld [vmem:[%s3842_s14 + $0x20] sm:$0xff]  ;;  %p2736_p5 = scmp.ge.s32.totalorder %s2735_s10, %s4493_s30  ;;  %p2688_p6 = scmp.ge.s32.totalorder %s2689_s9, %s4493_s30 }
 0x22e   : >> { %2700 = vst [vmem:[%s3838_s17 + $0x30] sm:$0xff] %v2699_v16  ;;  %v2705_v19 = vld [vmem:[%s3842_s14 + $0x28] sm:$0xff]  ;;  %2702 = vst [vmem:[%s3838_s17 + $0x48] sm:$0xff] %v2701_v17  ;;  %v2707_v20 = vld [vmem:[%s3842_s14 + $0x30] sm:$0xff] }
 0x22f   : >> { %2704 = vst [vmem:[%s3838_s17 + $0x60] sm:$0xff] %v2703_v18  ;;  %2706 = vst [vmem:[%s3838_s17 + $0x78] sm:$0xff] %v2705_v19  ;;  %v2709_v21 = vld [vmem:[%s3842_s14 + $0x38] sm:$0xff]  ;;  %v2711_v22 = vld [vmem:[%s3842_s14 + $0x40] sm:$0xff]  ;;  %s4630_s10 = smov (%p2736_p5, %s2735_s10), 0 }
 0x230   : >> { %2708 = vst [vmem:[%s3838_s17 + $0x90] sm:$0xff] %v2707_v20  ;;  %2710 = vst [vmem:[%s3838_s17 + $0xa8] sm:$0xff] %v2709_v21  ;;  %v2713_v23 = vld [vmem:[%s3842_s14 + $0x48] sm:$0xff]  ;;  %v2715_v24 = vld [vmem:[%s3842_s14 + $0x50] sm:$0xff]  ;;  %s2738_s11 = smul.u32 160, %s4630_s10  ;;  %s4612_s7 = smov %s4630_s10 }
 0x231   : >> { %2712 = vst [vmem:[%s3838_s17 + $0xc0] sm:$0xff] %v2711_v22  ;;  %v2717_v25 = vld [vmem:[%s3842_s14 + $0x58] sm:$0xff]  ;;  %2714 = vst [vmem:[%s3838_s17 + $0xd8] sm:$0xff] %v2713_v23  ;;  %v2719_v26 = vld [vmem:[%s3842_s14 + $0x60] sm:$0xff]  ;;  %s2739_s16 = smul.u32 480, %s4630_s10 }
 0x232   : >> { %2716 = vst [vmem:[%s3838_s17 + $0xf0] sm:$0xff] %v2715_v24  ;;  %2718 = vst [vmem:[%s3838_s17 + $0x108] sm:$0xff] %v2717_v25  ;;  %v2721_v27 = vld [vmem:[%s3842_s14 + $0x68] sm:$0xff]  ;;  %v2723_v28 = vld [vmem:[%s3842_s14 + $0x70] sm:$0xff]  ;;  %2691 = sbr.rel (!%p2688_p6) target bundleno = 556 (0x22c), region = 171 }
 0x233   : >> { %2720 = vst [vmem:[%s3838_s17 + $0x120] sm:$0xff] %v2719_v26  ;;  %2722 = vst [vmem:[%s3838_s17 + $0x138] sm:$0xff] %v2721_v27  ;;  %v2725_v29 = vld [vmem:[%s3842_s14 + $0x78] sm:$0xff]  ;;  %v2727_v30 = vld [vmem:[%s3842_s14 + $0x80] sm:$0xff] }
 0x234   : >> { %2724 = vst [vmem:[%s3838_s17 + $0x150] sm:$0xff] %v2723_v28  ;;  %v2729_v31 = vld [vmem:[%s3842_s14 + $0x88] sm:$0xff]  ;;  %2726 = vst [vmem:[%s3838_s17 + $0x168] sm:$0xff] %v2725_v29  ;;  %v2731_v32 = vld [vmem:[%s3842_s14 + $0x90] sm:$0xff] }
 0x235   : >> { %2728 = vst [vmem:[%s3838_s17 + $0x180] sm:$0xff] %v2727_v30  ;;  %2730 = vst [vmem:[%s3838_s17 + $0x198] sm:$0xff] %v2729_v31  ;;  %v2733_v33 = vld [vmem:[%s3842_s14 + $0x98] sm:$0xff]  ;;  %s2740_s14 = scalar_lea.vmem %s4422_s12, %s2738_s11 [#allocation3]  }
 0x236   : >> { %2732 = vst [vmem:[%s3838_s17 + $0x1b0] sm:$0xff] %v2731_v32  ;;  %2734 = vst [vmem:[%s3838_s17 + $0x1c8] sm:$0xff] %v2733_v33  ;;  %s2741_s17 = scalar_lea.vmem %s4490_s8, %s2739_s16  }
 0x239 PF: > { %3730 = sdivrem.u32 %s4628_s24, 20 }
 0x23a   : > { %s3128_s21 = smul.u32 160, %s4493_s30 }
 0x23b   : > { %s3129_s25 = smul.u32 480, %s4493_s30 }
 0x23c   : > { %s4573_s26 = scalar_lea.vmem %s4422_s12, %s3128_s21 [#allocation3]  }
 0x23d   : > { %s2748_s28 = scalar_lea.vmem %s4490_s8, %s3129_s25  }
 0x242   : > { %s3731_s29 = spop.drf %3730 }
 0x243   : > { %p3130_p7 = scmp.le.s32.totalorder %s3731_s29, 0 }
 0x244   : > { %s3852_s5 = smov (!%p3130_p7), %s2748_s28   ;;  %s3856_s6 = smov (!%p3130_p7), %s4573_s26  }
 0x245   : > { %2857 = sbr.rel (%p3130_p7) target bundleno = 598 (0x256), region = 176  ;;  %s3860_s9 = smov (!%p3130_p7), 0  }
 0x246   : > { %s3864_s10 = smov (!%p3130_p7), 0  }
 0x24c LB: >> { %v2758_v34 = vld [vmem:[%s3858_s6] sm:$0xff]  ;;  %s2760_s24 = sadd.s32 1, %s3862_s9  ;;  %s2752_s10 = sadd.s32 1, %s3866_s10   ;;  %s3866_s10 = sphi %s3864_s10, %s2752_s10   ;;  %s3862_s9 = sphi %s3860_s9, %s3861_s9   ;;  %s3858_s6 = sphi %s3856_s6, %s2765_s6   ;;  %s3854_s5 = sphi %s3852_s5, %s2766_s5  }
 0x24d   : >> { %2759 = vst [vmem:[%s3854_s5] sm:$0xff] %v2758_v34  ;;  %p2761_p8 = scmp.ge.s32.totalorder %s2760_s24, %s3731_s29  ;;  %p2751_p9 = scmp.ge.s32.totalorder %s2752_s10, %s3731_s29 }
 0x24f   : >> { %s4632_s24 = smov (%p2761_p8, %s2760_s24), 0  ;;  %2754 = sbr.rel (!%p2751_p9) target bundleno = 588 (0x24c), region = 182 }
 0x250   : >> { %s3131_s12 = sshll.u32 %s4632_s24, 3  ;;  %s2764_s8 = smul.u32 24, %s4632_s24 }
 0x251   : >> { %s2765_s6 = scalar_lea.vmem %s4573_s26, %s3131_s12 [#allocation3]   ;;  %s3861_s9 = smov %s4632_s24  }
 0x252   : >> { %s2766_s5 = scalar_lea.vmem %s2748_s28, %s2764_s8  }
 0x256 PF: > { %s13_s20 = sadd.s32 1, %s3834_s20   ;;  %s4613_s12 = smov %s3806_s13 }
 0x257   : > { %p10_p10 = scmp.ge.s32.totalorder %s13_s20, 8   ;;  %s4614_s13 = smov %s3961_s4 }
 0x258   : > { %s4615_s14 = smov %s3814_s15  ;;  %s4616_s15 = smov %s3950_s27 }
 0x259   : > { %s4617_s16 = smov %s3826_s18  ;;  %s4618_s17 = smov %s3830_s19 }
 0x25a   : > { %s4619_s18 = smov %s4622_s22  ;;  %s4620_s19 = smov %s4626_s23 }
 0x25b   :  { %12 = sbr.rel (!%p10_p10) target bundleno = 5 (0x5), region = 193 }

// kernel: mixed_7a_forward.8
= control target key start
LH: loop header
LB: loop body
LE: loop exit
PB: predicated region body
PF: predicated region fallthrough
CT: control target
= control target key end

     0   :  { %s4183_s12 = smov 0   ;;  %s4185_s13 = smov 0   ;;  %s5098_s0 = inlined_call_operand.vmem [shape: bf16[32,2304], index: 0, kind: input, shape index: {}]   ;;  %s5099_s1 = inlined_call_operand.vmem [shape: bf16[2304,256], index: 1, kind: input, shape index: {}]   ;;  %s5100_s2 = inlined_call_operand.vmem [shape: f32[1,256], index: 2, kind: input, shape index: {}]   ;;  %s5101_s3 = inlined_call_operand.vmem [shape: bf16[32,256], index: 3, kind: output, shape index: {}]  }
   0x1   :  { %s4187_s14 = smov 0   ;;  %s4189_s15 = smov 0  }
   0x2   :  { %s4191_s16 = smov 0  }
   0x3 LB: > { %s22_s17 = sadd.s32 1, %s4157_s15  ;;  %s3403_s18 = sadd.s32 4294967295, %s4161_s16   ;;  %s4161_s16 = sphi %s4191_s16, %s13_s16   ;;  %s4157_s15 = sphi %s4189_s15, %s5106_s15   ;;  %s4153_s14 = sphi %s4187_s14, %s5105_s14   ;;  %s4149_s13 = sphi %s4185_s13, %s5104_s13   ;;  %s4145_s12 = sphi %s4183_s12, %s5103_s12  }
   0x4   : > { %p23_p0 = scmp.ge.s32.totalorder %s22_s17, 2  ;;  %p65_p1 = scmp.ne.s32.totalorder %s4149_s13, %s4145_s12 }
   0x5   : > { %p66_p2 = scmp.eq.s32.totalorder %s4161_s16, 0  ;;  %p123_p4 = scmp.eq.s32.totalorder %s3403_s18, 1 }
   0x6   : > { %s5108_s17 = smov (%p23_p0, %s22_s17), 0  ;;  %s58_s20 = sadd.s32 1, %s4149_s13 }
   0x7   : > { %p67_p3 = por %p66_p2, %p65_p1  ;;  %s55_s19 = ssub.s32 %s4157_s15, %s5108_s17 }
   0x8   : > { %p56_p5 = scmp.eq.s32.totalorder %s55_s19, 0  ;;  %p4218_p6 = por %p123_p4, %p65_p1 }
   0x9   : > { %p3407_p7 = scmp.ge.s32.totalorder %s4161_s16, 2 }
   0xa   : > { %s4223_s22 = scalar_select %p56_p5, %s4149_s13, %s58_s20  }
   0xb   : > { %155 = sbr.rel (%p3407_p7) target bundleno = 214 (0xd6), region = 20 }
  0x12   : > { %158 = sbr.rel (!%p67_p3) target bundleno = 214 (0xd6), region = 24  ;;  %s160_s23 = sand.u32 (%p67_p3), 1, %s4149_s13  }
  0x13   : > { %s3408_s24 = sshll.u32 (%p67_p3), %s4157_s15, 2  ;;  %s3883_s25 = smul.u32 (%p67_p3), 1152, %s160_s23 }
  0x14   : > { %s4231_s28 = scalar_lea.vmem (%p67_p3), %s5099_s1, %s3408_s24 }
  0x15   : > { %v180_v0 = vld [vmem:[%s4231_s28] sm:$0xf] (%p67_p3)  ;;  %v182_v1 = vld [vmem:[%s4231_s28 + $0x8] sm:$0xf] (%p67_p3)  ;;  %v184_v2 = vld [vmem:[%s4231_s28 + $0x10] sm:$0xf] (%p67_p3) }
  0x16   : > { %v186_v3 = vld [vmem:[%s4231_s28 + $0x18] sm:$0xf] (%p67_p3)  ;;  %v188_v4 = vld [vmem:[%s4231_s28 + $0x20] sm:$0xf] (%p67_p3)  ;;  %s4238_s29 = scalar_lea.vmem (%p67_p3), [#allocation2], %s3883_s25 }
  0x17   : > { %181 = vst [vmem:[%s4238_s29] sm:$0xf] (%p67_p3), %v180_v0  ;;  %183 = vst [vmem:[%s4238_s29 + $0x4] sm:$0xf] (%p67_p3), %v182_v1  ;;  %v190_v5 = vld [vmem:[%s4231_s28 + $0x28] sm:$0xf] (%p67_p3) }
  0x18   : > { %185 = vst [vmem:[%s4238_s29 + $0x8] sm:$0xf] (%p67_p3), %v184_v2  ;;  %187 = vst [vmem:[%s4238_s29 + $0xc] sm:$0xf] (%p67_p3), %v186_v3  ;;  %v192_v6 = vld [vmem:[%s4231_s28 + $0x30] sm:$0xf] (%p67_p3) }
  0x19   : > { %189 = vst [vmem:[%s4238_s29 + $0x10] sm:$0xf] %v188_v4  ;;  %v194_v7 = vld [vmem:[%s4231_s28 + $0x38] sm:$0xf]  ;;  %191 = vst [vmem:[%s4238_s29 + $0x14] sm:$0xf] %v190_v5 }
  0x1a   : > { %193 = vst [vmem:[%s4238_s29 + $0x18] sm:$0xf] %v192_v6  ;;  %195 = vst [vmem:[%s4238_s29 + $0x1c] sm:$0xf] %v194_v7  ;;  %v196_v8 = vld [vmem:[%s4231_s28 + $0x40] sm:$0xf] }
  0x1b   : > { %v198_v9 = vld [vmem:[%s4231_s28 + $0x48] sm:$0xf]  ;;  %v200_v10 = vld [vmem:[%s4231_s28 + $0x50] sm:$0xf]  ;;  %197 = vst [vmem:[%s4238_s29 + $0x20] sm:$0xf] %v196_v8 }
  0x1c   : > { %199 = vst [vmem:[%s4238_s29 + $0x24] sm:$0xf] %v198_v9  ;;  %201 = vst [vmem:[%s4238_s29 + $0x28] sm:$0xf] %v200_v10  ;;  %v202_v11 = vld [vmem:[%s4231_s28 + $0x58] sm:$0xf] }
  0x1d   : > { %v204_v12 = vld [vmem:[%s4231_s28 + $0x60] sm:$0xf]  ;;  %v206_v13 = vld [vmem:[%s4231_s28 + $0x68] sm:$0xf]  ;;  %203 = vst [vmem:[%s4238_s29 + $0x2c] sm:$0xf] %v202_v11 }
  0x1e   : > { %205 = vst [vmem:[%s4238_s29 + $0x30] sm:$0xf] %v204_v12  ;;  %207 = vst [vmem:[%s4238_s29 + $0x34] sm:$0xf] %v206_v13  ;;  %v208_v14 = vld [vmem:[%s4231_s28 + $0x70] sm:$0xf] }
  0x1f   : > { %v210_v15 = vld [vmem:[%s4231_s28 + $0x78] sm:$0xf]  ;;  %v212_v16 = vld [vmem:[%s4231_s28 + $0x80] sm:$0xf]  ;;  %209 = vst [vmem:[%s4238_s29 + $0x38] sm:$0xf] %v208_v14 }
  0x20   : > { %211 = vst [vmem:[%s4238_s29 + $0x3c] sm:$0xf] %v210_v15  ;;  %213 = vst [vmem:[%s4238_s29 + $0x40] sm:$0xf] %v212_v16  ;;  %v214_v17 = vld [vmem:[%s4231_s28 + $0x88] sm:$0xf] }
  0x21   : > { %v216_v18 = vld [vmem:[%s4231_s28 + $0x90] sm:$0xf]  ;;  %v218_v19 = vld [vmem:[%s4231_s28 + $0x98] sm:$0xf]  ;;  %215 = vst [vmem:[%s4238_s29 + $0x44] sm:$0xf] %v214_v17 }
  0x22   : > { %217 = vst [vmem:[%s4238_s29 + $0x48] sm:$0xf] %v216_v18  ;;  %219 = vst [vmem:[%s4238_s29 + $0x4c] sm:$0xf] %v218_v19  ;;  %v220_v20 = vld [vmem:[%s4231_s28 + $0xa0] sm:$0xf] }
  0x23   : > { %v222_v21 = vld [vmem:[%s4231_s28 + $0xa8] sm:$0xf]  ;;  %v224_v22 = vld [vmem:[%s4231_s28 + $0xb0] sm:$0xf]  ;;  %221 = vst [vmem:[%s4238_s29 + $0x50] sm:$0xf] %v220_v20 }
  0x24   : > { %223 = vst [vmem:[%s4238_s29 + $0x54] sm:$0xf] %v222_v21  ;;  %225 = vst [vmem:[%s4238_s29 + $0x58] sm:$0xf] %v224_v22  ;;  %v226_v23 = vld [vmem:[%s4231_s28 + $0xb8] sm:$0xf] }
  0x25   : > { %v228_v24 = vld [vmem:[%s4231_s28 + $0xc0] sm:$0xf]  ;;  %v230_v25 = vld [vmem:[%s4231_s28 + $0xc8] sm:$0xf]  ;;  %227 = vst [vmem:[%s4238_s29 + $0x5c] sm:$0xf] %v226_v23 }
  0x26   : > { %229 = vst [vmem:[%s4238_s29 + $0x60] sm:$0xf] %v228_v24  ;;  %231 = vst [vmem:[%s4238_s29 + $0x64] sm:$0xf] %v230_v25  ;;  %v232_v26 = vld [vmem:[%s4231_s28 + $0xd0] sm:$0xf] }
  0x27   : > { %v234_v27 = vld [vmem:[%s4231_s28 + $0xd8] sm:$0xf]  ;;  %v236_v28 = vld [vmem:[%s4231_s28 + $0xe0] sm:$0xf]  ;;  %233 = vst [vmem:[%s4238_s29 + $0x68] sm:$0xf] %v232_v26 }
  0x28   : > { %235 = vst [vmem:[%s4238_s29 + $0x6c] sm:$0xf] %v234_v27  ;;  %237 = vst [vmem:[%s4238_s29 + $0x70] sm:$0xf] %v236_v28  ;;  %v238_v29 = vld [vmem:[%s4231_s28 + $0xe8] sm:$0xf] }
  0x29   : > { %v240_v30 = vld [vmem:[%s4231_s28 + $0xf0] sm:$0xf]  ;;  %v242_v31 = vld [vmem:[%s4231_s28 + $0xf8] sm:$0xf]  ;;  %239 = vst [vmem:[%s4238_s29 + $0x74] sm:$0xf] %v238_v29 }
  0x2a   : > { %241 = vst [vmem:[%s4238_s29 + $0x78] sm:$0xf] %v240_v30  ;;  %243 = vst [vmem:[%s4238_s29 + $0x7c] sm:$0xf] %v242_v31  ;;  %v244_v32 = vld [vmem:[%s4231_s28 + $0x100] sm:$0xf] }
  0x2b   : > { %v246_v33 = vld [vmem:[%s4231_s28 + $0x108] sm:$0xf]  ;;  %v248_v34 = vld [vmem:[%s4231_s28 + $0x110] sm:$0xf]  ;;  %245 = vst [vmem:[%s4238_s29 + $0x80] sm:$0xf] %v244_v32 }
  0x2c   : > { %247 = vst [vmem:[%s4238_s29 + $0x84] sm:$0xf] %v246_v33  ;;  %249 = vst [vmem:[%s4238_s29 + $0x88] sm:$0xf] %v248_v34  ;;  %v250_v35 = vld [vmem:[%s4231_s28 + $0x118] sm:$0xf] }
  0x2d   : > { %v252_v36 = vld [vmem:[%s4231_s28 + $0x120] sm:$0xf]  ;;  %v254_v37 = vld [vmem:[%s4231_s28 + $0x128] sm:$0xf]  ;;  %251 = vst [vmem:[%s4238_s29 + $0x8c] sm:$0xf] %v250_v35 }
  0x2e   : > { %253 = vst [vmem:[%s4238_s29 + $0x90] sm:$0xf] %v252_v36  ;;  %255 = vst [vmem:[%s4238_s29 + $0x94] sm:$0xf] %v254_v37  ;;  %v256_v38 = vld [vmem:[%s4231_s28 + $0x130] sm:$0xf] }
  0x2f   : > { %v258_v39 = vld [vmem:[%s4231_s28 + $0x138] sm:$0xf]  ;;  %v260_v40 = vld [vmem:[%s4231_s28 + $0x140] sm:$0xf]  ;;  %257 = vst [vmem:[%s4238_s29 + $0x98] sm:$0xf] %v256_v38 }
  0x30   : > { %259 = vst [vmem:[%s4238_s29 + $0x9c] sm:$0xf] %v258_v39  ;;  %261 = vst [vmem:[%s4238_s29 + $0xa0] sm:$0xf] %v260_v40  ;;  %v262_v41 = vld [vmem:[%s4231_s28 + $0x148] sm:$0xf] }
  0x31   : > { %v264_v42 = vld [vmem:[%s4231_s28 + $0x150] sm:$0xf]  ;;  %v266_v43 = vld [vmem:[%s4231_s28 + $0x158] sm:$0xf]  ;;  %263 = vst [vmem:[%s4238_s29 + $0xa4] sm:$0xf] %v262_v41 }
  0x32   : > { %265 = vst [vmem:[%s4238_s29 + $0xa8] sm:$0xf] %v264_v42  ;;  %267 = vst [vmem:[%s4238_s29 + $0xac] sm:$0xf] %v266_v43  ;;  %v268_v44 = vld [vmem:[%s4231_s28 + $0x160] sm:$0xf] }
  0x33   : > { %v270_v45 = vld [vmem:[%s4231_s28 + $0x168] sm:$0xf]  ;;  %v272_v46 = vld [vmem:[%s4231_s28 + $0x170] sm:$0xf]  ;;  %269 = vst [vmem:[%s4238_s29 + $0xb0] sm:$0xf] %v268_v44 }
  0x34   : > { %271 = vst [vmem:[%s4238_s29 + $0xb4] sm:$0xf] %v270_v45  ;;  %273 = vst [vmem:[%s4238_s29 + $0xb8] sm:$0xf] %v272_v46  ;;  %v274_v47 = vld [vmem:[%s4231_s28 + $0x178] sm:$0xf] }
  0x35   : > { %v276_v48 = vld [vmem:[%s4231_s28 + $0x180] sm:$0xf]  ;;  %v278_v49 = vld [vmem:[%s4231_s28 + $0x188] sm:$0xf]  ;;  %275 = vst [vmem:[%s4238_s29 + $0xbc] sm:$0xf] %v274_v47 }
  0x36   : > { %277 = vst [vmem:[%s4238_s29 + $0xc0] sm:$0xf] %v276_v48  ;;  %279 = vst [vmem:[%s4238_s29 + $0xc4] sm:$0xf] %v278_v49  ;;  %v280_v50 = vld [vmem:[%s4231_s28 + $0x190] sm:$0xf] }
  0x37   : > { %v282_v51 = vld [vmem:[%s4231_s28 + $0x198] sm:$0xf]  ;;  %v284_v52 = vld [vmem:[%s4231_s28 + $0x1a0] sm:$0xf]  ;;  %281 = vst [vmem:[%s4238_s29 + $0xc8] sm:$0xf] %v280_v50 }
  0x38   : > { %283 = vst [vmem:[%s4238_s29 + $0xcc] sm:$0xf] %v282_v51  ;;  %285 = vst [vmem:[%s4238_s29 + $0xd0] sm:$0xf] %v284_v52  ;;  %v286_v53 = vld [vmem:[%s4231_s28 + $0x1a8] sm:$0xf] }
  0x39   : > { %v288_v54 = vld [vmem:[%s4231_s28 + $0x1b0] sm:$0xf]  ;;  %v290_v55 = vld [vmem:[%s4231_s28 + $0x1b8] sm:$0xf]  ;;  %287 = vst [vmem:[%s4238_s29 + $0xd4] sm:$0xf] %v286_v53 }
  0x3a   : > { %289 = vst [vmem:[%s4238_s29 + $0xd8] sm:$0xf] %v288_v54  ;;  %291 = vst [vmem:[%s4238_s29 + $0xdc] sm:$0xf] %v290_v55  ;;  %v292_v56 = vld [vmem:[%s4231_s28 + $0x1c0] sm:$0xf] }
  0x3b   : > { %v294_v57 = vld [vmem:[%s4231_s28 + $0x1c8] sm:$0xf]  ;;  %v296_v58 = vld [vmem:[%s4231_s28 + $0x1d0] sm:$0xf]  ;;  %293 = vst [vmem:[%s4238_s29 + $0xe0] sm:$0xf] %v292_v56 }
  0x3c   : > { %295 = vst [vmem:[%s4238_s29 + $0xe4] sm:$0xf] %v294_v57  ;;  %297 = vst [vmem:[%s4238_s29 + $0xe8] sm:$0xf] %v296_v58  ;;  %v298_v59 = vld [vmem:[%s4231_s28 + $0x1d8] sm:$0xf] }
  0x3d   : > { %v300_v60 = vld [vmem:[%s4231_s28 + $0x1e0] sm:$0xf]  ;;  %v302_v61 = vld [vmem:[%s4231_s28 + $0x1e8] sm:$0xf]  ;;  %299 = vst [vmem:[%s4238_s29 + $0xec] sm:$0xf] %v298_v59 }
  0x3e   : > { %301 = vst [vmem:[%s4238_s29 + $0xf0] sm:$0xf] %v300_v60  ;;  %303 = vst [vmem:[%s4238_s29 + $0xf4] sm:$0xf] %v302_v61  ;;  %v304_v62 = vld [vmem:[%s4231_s28 + $0x1f0] sm:$0xf] }
  0x3f   : > { %v306_v63 = vld [vmem:[%s4231_s28 + $0x1f8] sm:$0xf]  ;;  %v308_v0 = vld [vmem:[%s4231_s28 + $0x200] sm:$0xf]  ;;  %305 = vst [vmem:[%s4238_s29 + $0xf8] sm:$0xf] %v304_v62 }
  0x40   : > { %307 = vst [vmem:[%s4238_s29 + $0xfc] sm:$0xf] %v306_v63  ;;  %309 = vst [vmem:[%s4238_s29 + $0x100] sm:$0xf] %v308_v0  ;;  %v310_v1 = vld [vmem:[%s4231_s28 + $0x208] sm:$0xf] }
  0x41   : > { %v312_v2 = vld [vmem:[%s4231_s28 + $0x210] sm:$0xf]  ;;  %v314_v3 = vld [vmem:[%s4231_s28 + $0x218] sm:$0xf]  ;;  %311 = vst [vmem:[%s4238_s29 + $0x104] sm:$0xf] %v310_v1 }
  0x42   : > { %313 = vst [vmem:[%s4238_s29 + $0x108] sm:$0xf] %v312_v2  ;;  %315 = vst [vmem:[%s4238_s29 + $0x10c] sm:$0xf] %v314_v3  ;;  %v316_v4 = vld [vmem:[%s4231_s28 + $0x220] sm:$0xf] }
  0x43   : > { %v318_v5 = vld [vmem:[%s4231_s28 + $0x228] sm:$0xf]  ;;  %v320_v6 = vld [vmem:[%s4231_s28 + $0x230] sm:$0xf]  ;;  %317 = vst [vmem:[%s4238_s29 + $0x110] sm:$0xf] %v316_v4 }
  0x44   : > { %319 = vst [vmem:[%s4238_s29 + $0x114] sm:$0xf] %v318_v5  ;;  %321 = vst [vmem:[%s4238_s29 + $0x118] sm:$0xf] %v320_v6  ;;  %v322_v7 = vld [vmem:[%s4231_s28 + $0x238] sm:$0xf] }
  0x45   : > { %v324_v8 = vld [vmem:[%s4231_s28 + $0x240] sm:$0xf]  ;;  %v326_v9 = vld [vmem:[%s4231_s28 + $0x248] sm:$0xf]  ;;  %323 = vst [vmem:[%s4238_s29 + $0x11c] sm:$0xf] %v322_v7 }
  0x46   : > { %325 = vst [vmem:[%s4238_s29 + $0x120] sm:$0xf] %v324_v8  ;;  %327 = vst [vmem:[%s4238_s29 + $0x124] sm:$0xf] %v326_v9  ;;  %v328_v10 = vld [vmem:[%s4231_s28 + $0x250] sm:$0xf] }
  0x47   : > { %v330_v11 = vld [vmem:[%s4231_s28 + $0x258] sm:$0xf]  ;;  %v332_v12 = vld [vmem:[%s4231_s28 + $0x260] sm:$0xf]  ;;  %329 = vst [vmem:[%s4238_s29 + $0x128] sm:$0xf] %v328_v10 }
  0x48   : > { %331 = vst [vmem:[%s4238_s29 + $0x12c] sm:$0xf] %v330_v11  ;;  %333 = vst [vmem:[%s4238_s29 + $0x130] sm:$0xf] %v332_v12  ;;  %v334_v13 = vld [vmem:[%s4231_s28 + $0x268] sm:$0xf] }
  0x49   : > { %v336_v14 = vld [vmem:[%s4231_s28 + $0x270] sm:$0xf]  ;;  %v338_v15 = vld [vmem:[%s4231_s28 + $0x278] sm:$0xf]  ;;  %335 = vst [vmem:[%s4238_s29 + $0x134] sm:$0xf] %v334_v13 }
  0x4a   : > { %337 = vst [vmem:[%s4238_s29 + $0x138] sm:$0xf] %v336_v14  ;;  %339 = vst [vmem:[%s4238_s29 + $0x13c] sm:$0xf] %v338_v15  ;;  %v340_v16 = vld [vmem:[%s4231_s28 + $0x280] sm:$0xf] }
  0x4b   : > { %v342_v17 = vld [vmem:[%s4231_s28 + $0x288] sm:$0xf]  ;;  %v344_v18 = vld [vmem:[%s4231_s28 + $0x290] sm:$0xf]  ;;  %341 = vst [vmem:[%s4238_s29 + $0x140] sm:$0xf] %v340_v16 }
  0x4c   : > { %343 = vst [vmem:[%s4238_s29 + $0x144] sm:$0xf] %v342_v17  ;;  %345 = vst [vmem:[%s4238_s29 + $0x148] sm:$0xf] %v344_v18  ;;  %v346_v19 = vld [vmem:[%s4231_s28 + $0x298] sm:$0xf] }
  0x4d   : > { %v348_v20 = vld [vmem:[%s4231_s28 + $0x2a0] sm:$0xf]  ;;  %v350_v21 = vld [vmem:[%s4231_s28 + $0x2a8] sm:$0xf]  ;;  %347 = vst [vmem:[%s4238_s29 + $0x14c] sm:$0xf] %v346_v19 }
  0x4e   : > { %349 = vst [vmem:[%s4238_s29 + $0x150] sm:$0xf] %v348_v20  ;;  %351 = vst [vmem:[%s4238_s29 + $0x154] sm:$0xf] %v350_v21  ;;  %v352_v22 = vld [vmem:[%s4231_s28 + $0x2b0] sm:$0xf] }
  0x4f   : > { %v354_v23 = vld [vmem:[%s4231_s28 + $0x2b8] sm:$0xf]  ;;  %v356_v24 = vld [vmem:[%s4231_s28 + $0x2c0] sm:$0xf]  ;;  %353 = vst [vmem:[%s4238_s29 + $0x158] sm:$0xf] %v352_v22 }
  0x50   : > { %355 = vst [vmem:[%s4238_s29 + $0x15c] sm:$0xf] %v354_v23  ;;  %357 = vst [vmem:[%s4238_s29 + $0x160] sm:$0xf] %v356_v24  ;;  %v358_v25 = vld [vmem:[%s4231_s28 + $0x2c8] sm:$0xf] }
  0x51   : > { %v360_v26 = vld [vmem:[%s4231_s28 + $0x2d0] sm:$0xf]  ;;  %v362_v27 = vld [vmem:[%s4231_s28 + $0x2d8] sm:$0xf]  ;;  %359 = vst [vmem:[%s4238_s29 + $0x164] sm:$0xf] %v358_v25 }
  0x52   : > { %361 = vst [vmem:[%s4238_s29 + $0x168] sm:$0xf] %v360_v26  ;;  %363 = vst [vmem:[%s4238_s29 + $0x16c] sm:$0xf] %v362_v27  ;;  %v364_v28 = vld [vmem:[%s4231_s28 + $0x2e0] sm:$0xf] }
  0x53   : > { %v366_v29 = vld [vmem:[%s4231_s28 + $0x2e8] sm:$0xf]  ;;  %v368_v30 = vld [vmem:[%s4231_s28 + $0x2f0] sm:$0xf]  ;;  %365 = vst [vmem:[%s4238_s29 + $0x170] sm:$0xf] %v364_v28 }
  0x54   : > { %367 = vst [vmem:[%s4238_s29 + $0x174] sm:$0xf] %v366_v29  ;;  %369 = vst [vmem:[%s4238_s29 + $0x178] sm:$0xf] %v368_v30  ;;  %v370_v31 = vld [vmem:[%s4231_s28 + $0x2f8] sm:$0xf] }
  0x55   : > { %v372_v32 = vld [vmem:[%s4231_s28 + $0x300] sm:$0xf]  ;;  %v374_v33 = vld [vmem:[%s4231_s28 + $0x308] sm:$0xf]  ;;  %371 = vst [vmem:[%s4238_s29 + $0x17c] sm:$0xf] %v370_v31 }
  0x56   : > { %373 = vst [vmem:[%s4238_s29 + $0x180] sm:$0xf] %v372_v32  ;;  %375 = vst [vmem:[%s4238_s29 + $0x184] sm:$0xf] %v374_v33  ;;  %v376_v34 = vld [vmem:[%s4231_s28 + $0x310] sm:$0xf] }
  0x57   : > { %v378_v35 = vld [vmem:[%s4231_s28 + $0x318] sm:$0xf]  ;;  %v380_v36 = vld [vmem:[%s4231_s28 + $0x320] sm:$0xf]  ;;  %377 = vst [vmem:[%s4238_s29 + $0x188] sm:$0xf] %v376_v34 }
  0x58   : > { %379 = vst [vmem:[%s4238_s29 + $0x18c] sm:$0xf] %v378_v35  ;;  %381 = vst [vmem:[%s4238_s29 + $0x190] sm:$0xf] %v380_v36  ;;  %v382_v37 = vld [vmem:[%s4231_s28 + $0x328] sm:$0xf] }
  0x59   : > { %v384_v38 = vld [vmem:[%s4231_s28 + $0x330] sm:$0xf]  ;;  %v386_v39 = vld [vmem:[%s4231_s28 + $0x338] sm:$0xf]  ;;  %383 = vst [vmem:[%s4238_s29 + $0x194] sm:$0xf] %v382_v37 }
  0x5a   : > { %385 = vst [vmem:[%s4238_s29 + $0x198] sm:$0xf] %v384_v38  ;;  %387 = vst [vmem:[%s4238_s29 + $0x19c] sm:$0xf] %v386_v39  ;;  %v388_v40 = vld [vmem:[%s4231_s28 + $0x340] sm:$0xf] }
  0x5b   : > { %v390_v41 = vld [vmem:[%s4231_s28 + $0x348] sm:$0xf]  ;;  %v392_v42 = vld [vmem:[%s4231_s28 + $0x350] sm:$0xf]  ;;  %389 = vst [vmem:[%s4238_s29 + $0x1a0] sm:$0xf] %v388_v40 }
  0x5c   : > { %391 = vst [vmem:[%s4238_s29 + $0x1a4] sm:$0xf] %v390_v41  ;;  %393 = vst [vmem:[%s4238_s29 + $0x1a8] sm:$0xf] %v392_v42  ;;  %v394_v43 = vld [vmem:[%s4231_s28 + $0x358] sm:$0xf] }
  0x5d   : > { %v396_v44 = vld [vmem:[%s4231_s28 + $0x360] sm:$0xf]  ;;  %v398_v45 = vld [vmem:[%s4231_s28 + $0x368] sm:$0xf]  ;;  %395 = vst [vmem:[%s4238_s29 + $0x1ac] sm:$0xf] %v394_v43 }
  0x5e   : > { %397 = vst [vmem:[%s4238_s29 + $0x1b0] sm:$0xf] %v396_v44  ;;  %399 = vst [vmem:[%s4238_s29 + $0x1b4] sm:$0xf] %v398_v45  ;;  %v400_v46 = vld [vmem:[%s4231_s28 + $0x370] sm:$0xf] }
  0x5f   : > { %v402_v47 = vld [vmem:[%s4231_s28 + $0x378] sm:$0xf]  ;;  %v404_v48 = vld [vmem:[%s4231_s28 + $0x380] sm:$0xf]  ;;  %401 = vst [vmem:[%s4238_s29 + $0x1b8] sm:$0xf] %v400_v46 }
  0x60   : > { %403 = vst [vmem:[%s4238_s29 + $0x1bc] sm:$0xf] %v402_v47  ;;  %405 = vst [vmem:[%s4238_s29 + $0x1c0] sm:$0xf] %v404_v48  ;;  %v406_v49 = vld [vmem:[%s4231_s28 + $0x388] sm:$0xf] }
  0x61   : > { %v408_v50 = vld [vmem:[%s4231_s28 + $0x390] sm:$0xf]  ;;  %v410_v51 = vld [vmem:[%s4231_s28 + $0x398] sm:$0xf]  ;;  %407 = vst [vmem:[%s4238_s29 + $0x1c4] sm:$0xf] %v406_v49 }
  0x62   : > { %409 = vst [vmem:[%s4238_s29 + $0x1c8] sm:$0xf] %v408_v50  ;;  %411 = vst [vmem:[%s4238_s29 + $0x1cc] sm:$0xf] %v410_v51  ;;  %v412_v52 = vld [vmem:[%s4231_s28 + $0x3a0] sm:$0xf] }
  0x63   : > { %v414_v53 = vld [vmem:[%s4231_s28 + $0x3a8] sm:$0xf]  ;;  %v416_v54 = vld [vmem:[%s4231_s28 + $0x3b0] sm:$0xf]  ;;  %413 = vst [vmem:[%s4238_s29 + $0x1d0] sm:$0xf] %v412_v52 }
  0x64   : > { %415 = vst [vmem:[%s4238_s29 + $0x1d4] sm:$0xf] %v414_v53  ;;  %417 = vst [vmem:[%s4238_s29 + $0x1d8] sm:$0xf] %v416_v54  ;;  %v418_v55 = vld [vmem:[%s4231_s28 + $0x3b8] sm:$0xf] }
  0x65   : > { %v420_v56 = vld [vmem:[%s4231_s28 + $0x3c0] sm:$0xf]  ;;  %v422_v57 = vld [vmem:[%s4231_s28 + $0x3c8] sm:$0xf]  ;;  %419 = vst [vmem:[%s4238_s29 + $0x1dc] sm:$0xf] %v418_v55 }
  0x66   : > { %421 = vst [vmem:[%s4238_s29 + $0x1e0] sm:$0xf] %v420_v56  ;;  %423 = vst [vmem:[%s4238_s29 + $0x1e4] sm:$0xf] %v422_v57  ;;  %v424_v58 = vld [vmem:[%s4231_s28 + $0x3d0] sm:$0xf] }
  0x67   : > { %v426_v59 = vld [vmem:[%s4231_s28 + $0x3d8] sm:$0xf]  ;;  %v428_v60 = vld [vmem:[%s4231_s28 + $0x3e0] sm:$0xf]  ;;  %425 = vst [vmem:[%s4238_s29 + $0x1e8] sm:$0xf] %v424_v58 }
  0x68   : > { %427 = vst [vmem:[%s4238_s29 + $0x1ec] sm:$0xf] %v426_v59  ;;  %429 = vst [vmem:[%s4238_s29 + $0x1f0] sm:$0xf] %v428_v60  ;;  %v430_v61 = vld [vmem:[%s4231_s28 + $0x3e8] sm:$0xf] }
  0x69   : > { %v432_v62 = vld [vmem:[%s4231_s28 + $0x3f0] sm:$0xf]  ;;  %v434_v63 = vld [vmem:[%s4231_s28 + $0x3f8] sm:$0xf]  ;;  %431 = vst [vmem:[%s4238_s29 + $0x1f4] sm:$0xf] %v430_v61 }
  0x6a   : > { %433 = vst [vmem:[%s4238_s29 + $0x1f8] sm:$0xf] %v432_v62  ;;  %435 = vst [vmem:[%s4238_s29 + $0x1fc] sm:$0xf] %v434_v63  ;;  %v436_v0 = vld [vmem:[%s4231_s28 + $0x400] sm:$0xf] }
  0x6b   : > { %v438_v1 = vld [vmem:[%s4231_s28 + $0x408] sm:$0xf]  ;;  %v440_v2 = vld [vmem:[%s4231_s28 + $0x410] sm:$0xf]  ;;  %437 = vst [vmem:[%s4238_s29 + $0x200] sm:$0xf] %v436_v0 }
  0x6c   : > { %439 = vst [vmem:[%s4238_s29 + $0x204] sm:$0xf] %v438_v1  ;;  %441 = vst [vmem:[%s4238_s29 + $0x208] sm:$0xf] %v440_v2  ;;  %v442_v3 = vld [vmem:[%s4231_s28 + $0x418] sm:$0xf] }
  0x6d   : > { %v444_v4 = vld [vmem:[%s4231_s28 + $0x420] sm:$0xf]  ;;  %v446_v5 = vld [vmem:[%s4231_s28 + $0x428] sm:$0xf]  ;;  %443 = vst [vmem:[%s4238_s29 + $0x20c] sm:$0xf] %v442_v3 }
  0x6e   : > { %445 = vst [vmem:[%s4238_s29 + $0x210] sm:$0xf] %v444_v4  ;;  %447 = vst [vmem:[%s4238_s29 + $0x214] sm:$0xf] %v446_v5  ;;  %v448_v6 = vld [vmem:[%s4231_s28 + $0x430] sm:$0xf] }
  0x6f   : > { %v450_v7 = vld [vmem:[%s4231_s28 + $0x438] sm:$0xf]  ;;  %v452_v8 = vld [vmem:[%s4231_s28 + $0x440] sm:$0xf]  ;;  %449 = vst [vmem:[%s4238_s29 + $0x218] sm:$0xf] %v448_v6 }
  0x70   : > { %451 = vst [vmem:[%s4238_s29 + $0x21c] sm:$0xf] %v450_v7  ;;  %453 = vst [vmem:[%s4238_s29 + $0x220] sm:$0xf] %v452_v8  ;;  %v454_v9 = vld [vmem:[%s4231_s28 + $0x448] sm:$0xf] }
  0x71   : > { %v456_v10 = vld [vmem:[%s4231_s28 + $0x450] sm:$0xf]  ;;  %v458_v11 = vld [vmem:[%s4231_s28 + $0x458] sm:$0xf]  ;;  %455 = vst [vmem:[%s4238_s29 + $0x224] sm:$0xf] %v454_v9 }
  0x72   : > { %457 = vst [vmem:[%s4238_s29 + $0x228] sm:$0xf] %v456_v10  ;;  %459 = vst [vmem:[%s4238_s29 + $0x22c] sm:$0xf] %v458_v11  ;;  %v460_v12 = vld [vmem:[%s4231_s28 + $0x460] sm:$0xf] }
  0x73   : > { %v462_v13 = vld [vmem:[%s4231_s28 + $0x468] sm:$0xf]  ;;  %v464_v14 = vld [vmem:[%s4231_s28 + $0x470] sm:$0xf]  ;;  %461 = vst [vmem:[%s4238_s29 + $0x230] sm:$0xf] %v460_v12 }
  0x74   : > { %463 = vst [vmem:[%s4238_s29 + $0x234] sm:$0xf] %v462_v13  ;;  %465 = vst [vmem:[%s4238_s29 + $0x238] sm:$0xf] %v464_v14  ;;  %v466_v15 = vld [vmem:[%s4231_s28 + $0x478] sm:$0xf] }
  0x75   : > { %v468_v16 = vld [vmem:[%s4231_s28 + $0x480] sm:$0xf]  ;;  %v470_v17 = vld [vmem:[%s4231_s28 + $0x488] sm:$0xf]  ;;  %467 = vst [vmem:[%s4238_s29 + $0x23c] sm:$0xf] %v466_v15 }
  0x76   : > { %469 = vst [vmem:[%s4238_s29 + $0x240] sm:$0xf] %v468_v16  ;;  %471 = vst [vmem:[%s4238_s29 + $0x244] sm:$0xf] %v470_v17  ;;  %v472_v18 = vld [vmem:[%s4231_s28 + $0x490] sm:$0xf] }
  0x77   : > { %v474_v19 = vld [vmem:[%s4231_s28 + $0x498] sm:$0xf]  ;;  %v476_v20 = vld [vmem:[%s4231_s28 + $0x4a0] sm:$0xf]  ;;  %473 = vst [vmem:[%s4238_s29 + $0x248] sm:$0xf] %v472_v18 }
  0x78   : > { %475 = vst [vmem:[%s4238_s29 + $0x24c] sm:$0xf] %v474_v19  ;;  %477 = vst [vmem:[%s4238_s29 + $0x250] sm:$0xf] %v476_v20  ;;  %v478_v21 = vld [vmem:[%s4231_s28 + $0x4a8] sm:$0xf] }
  0x79   : > { %v480_v22 = vld [vmem:[%s4231_s28 + $0x4b0] sm:$0xf]  ;;  %v482_v23 = vld [vmem:[%s4231_s28 + $0x4b8] sm:$0xf]  ;;  %479 = vst [vmem:[%s4238_s29 + $0x254] sm:$0xf] %v478_v21 }
  0x7a   : > { %481 = vst [vmem:[%s4238_s29 + $0x258] sm:$0xf] %v480_v22  ;;  %483 = vst [vmem:[%s4238_s29 + $0x25c] sm:$0xf] %v482_v23  ;;  %v484_v24 = vld [vmem:[%s4231_s28 + $0x4c0] sm:$0xf] }
  0x7b   : > { %v486_v25 = vld [vmem:[%s4231_s28 + $0x4c8] sm:$0xf]  ;;  %v488_v26 = vld [vmem:[%s4231_s28 + $0x4d0] sm:$0xf]  ;;  %485 = vst [vmem:[%s4238_s29 + $0x260] sm:$0xf] %v484_v24 }
  0x7c   : > { %487 = vst [vmem:[%s4238_s29 + $0x264] sm:$0xf] %v486_v25  ;;  %489 = vst [vmem:[%s4238_s29 + $0x268] sm:$0xf] %v488_v26  ;;  %v490_v27 = vld [vmem:[%s4231_s28 + $0x4d8] sm:$0xf] }
  0x7d   : > { %v492_v28 = vld [vmem:[%s4231_s28 + $0x4e0] sm:$0xf]  ;;  %v494_v29 = vld [vmem:[%s4231_s28 + $0x4e8] sm:$0xf]  ;;  %491 = vst [vmem:[%s4238_s29 + $0x26c] sm:$0xf] %v490_v27 }
  0x7e   : > { %493 = vst [vmem:[%s4238_s29 + $0x270] sm:$0xf] %v492_v28  ;;  %495 = vst [vmem:[%s4238_s29 + $0x274] sm:$0xf] %v494_v29  ;;  %v496_v30 = vld [vmem:[%s4231_s28 + $0x4f0] sm:$0xf] }
  0x7f   : > { %v498_v31 = vld [vmem:[%s4231_s28 + $0x4f8] sm:$0xf]  ;;  %v500_v32 = vld [vmem:[%s4231_s28 + $0x500] sm:$0xf]  ;;  %497 = vst [vmem:[%s4238_s29 + $0x278] sm:$0xf] %v496_v30 }
  0x80   : > { %499 = vst [vmem:[%s4238_s29 + $0x27c] sm:$0xf] %v498_v31  ;;  %501 = vst [vmem:[%s4238_s29 + $0x280] sm:$0xf] %v500_v32  ;;  %v502_v33 = vld [vmem:[%s4231_s28 + $0x508] sm:$0xf] }
  0x81   : > { %v504_v34 = vld [vmem:[%s4231_s28 + $0x510] sm:$0xf]  ;;  %v506_v35 = vld [vmem:[%s4231_s28 + $0x518] sm:$0xf]  ;;  %503 = vst [vmem:[%s4238_s29 + $0x284] sm:$0xf] %v502_v33 }
  0x82   : > { %505 = vst [vmem:[%s4238_s29 + $0x288] sm:$0xf] %v504_v34  ;;  %507 = vst [vmem:[%s4238_s29 + $0x28c] sm:$0xf] %v506_v35  ;;  %v508_v36 = vld [vmem:[%s4231_s28 + $0x520] sm:$0xf] }
  0x83   : > { %v510_v37 = vld [vmem:[%s4231_s28 + $0x528] sm:$0xf]  ;;  %v512_v38 = vld [vmem:[%s4231_s28 + $0x530] sm:$0xf]  ;;  %509 = vst [vmem:[%s4238_s29 + $0x290] sm:$0xf] %v508_v36 }
  0x84   : > { %511 = vst [vmem:[%s4238_s29 + $0x294] sm:$0xf] %v510_v37  ;;  %513 = vst [vmem:[%s4238_s29 + $0x298] sm:$0xf] %v512_v38  ;;  %v514_v39 = vld [vmem:[%s4231_s28 + $0x538] sm:$0xf] }
  0x85   : > { %v516_v40 = vld [vmem:[%s4231_s28 + $0x540] sm:$0xf]  ;;  %v518_v41 = vld [vmem:[%s4231_s28 + $0x548] sm:$0xf]  ;;  %515 = vst [vmem:[%s4238_s29 + $0x29c] sm:$0xf] %v514_v39 }
  0x86   : > { %517 = vst [vmem:[%s4238_s29 + $0x2a0] sm:$0xf] %v516_v40  ;;  %519 = vst [vmem:[%s4238_s29 + $0x2a4] sm:$0xf] %v518_v41  ;;  %v520_v42 = vld [vmem:[%s4231_s28 + $0x550] sm:$0xf] }
  0x87   : > { %v522_v43 = vld [vmem:[%s4231_s28 + $0x558] sm:$0xf]  ;;  %v524_v44 = vld [vmem:[%s4231_s28 + $0x560] sm:$0xf]  ;;  %521 = vst [vmem:[%s4238_s29 + $0x2a8] sm:$0xf] %v520_v42 }
  0x88   : > { %523 = vst [vmem:[%s4238_s29 + $0x2ac] sm:$0xf] %v522_v43  ;;  %525 = vst [vmem:[%s4238_s29 + $0x2b0] sm:$0xf] %v524_v44  ;;  %v526_v45 = vld [vmem:[%s4231_s28 + $0x568] sm:$0xf] }
  0x89   : > { %v528_v46 = vld [vmem:[%s4231_s28 + $0x570] sm:$0xf]  ;;  %v530_v47 = vld [vmem:[%s4231_s28 + $0x578] sm:$0xf]  ;;  %527 = vst [vmem:[%s4238_s29 + $0x2b4] sm:$0xf] %v526_v45 }
  0x8a   : > { %529 = vst [vmem:[%s4238_s29 + $0x2b8] sm:$0xf] %v528_v46  ;;  %531 = vst [vmem:[%s4238_s29 + $0x2bc] sm:$0xf] %v530_v47  ;;  %v532_v48 = vld [vmem:[%s4231_s28 + $0x580] sm:$0xf] }
  0x8b   : > { %v534_v49 = vld [vmem:[%s4231_s28 + $0x588] sm:$0xf]  ;;  %v536_v50 = vld [vmem:[%s4231_s28 + $0x590] sm:$0xf]  ;;  %533 = vst [vmem:[%s4238_s29 + $0x2c0] sm:$0xf] %v532_v48 }
  0x8c   : > { %535 = vst [vmem:[%s4238_s29 + $0x2c4] sm:$0xf] %v534_v49  ;;  %537 = vst [vmem:[%s4238_s29 + $0x2c8] sm:$0xf] %v536_v50  ;;  %v538_v51 = vld [vmem:[%s4231_s28 + $0x598] sm:$0xf] }
  0x8d   : > { %v540_v52 = vld [vmem:[%s4231_s28 + $0x5a0] sm:$0xf]  ;;  %v542_v53 = vld [vmem:[%s4231_s28 + $0x5a8] sm:$0xf]  ;;  %539 = vst [vmem:[%s4238_s29 + $0x2cc] sm:$0xf] %v538_v51 }
  0x8e   : > { %541 = vst [vmem:[%s4238_s29 + $0x2d0] sm:$0xf] %v540_v52  ;;  %543 = vst [vmem:[%s4238_s29 + $0x2d4] sm:$0xf] %v542_v53  ;;  %v544_v54 = vld [vmem:[%s4231_s28 + $0x5b0] sm:$0xf] }
  0x8f   : > { %v546_v55 = vld [vmem:[%s4231_s28 + $0x5b8] sm:$0xf]  ;;  %v548_v56 = vld [vmem:[%s4231_s28 + $0x5c0] sm:$0xf]  ;;  %545 = vst [vmem:[%s4238_s29 + $0x2d8] sm:$0xf] %v544_v54 }
  0x90   : > { %547 = vst [vmem:[%s4238_s29 + $0x2dc] sm:$0xf] %v546_v55  ;;  %549 = vst [vmem:[%s4238_s29 + $0x2e0] sm:$0xf] %v548_v56  ;;  %v550_v57 = vld [vmem:[%s4231_s28 + $0x5c8] sm:$0xf] }
  0x91   : > { %v552_v58 = vld [vmem:[%s4231_s28 + $0x5d0] sm:$0xf]  ;;  %v554_v59 = vld [vmem:[%s4231_s28 + $0x5d8] sm:$0xf]  ;;  %551 = vst [vmem:[%s4238_s29 + $0x2e4] sm:$0xf] %v550_v57 }
  0x92   : > { %553 = vst [vmem:[%s4238_s29 + $0x2e8] sm:$0xf] %v552_v58  ;;  %555 = vst [vmem:[%s4238_s29 + $0x2ec] sm:$0xf] %v554_v59  ;;  %v556_v60 = vld [vmem:[%s4231_s28 + $0x5e0] sm:$0xf] }
  0x93   : > { %v558_v61 = vld [vmem:[%s4231_s28 + $0x5e8] sm:$0xf]  ;;  %v560_v62 = vld [vmem:[%s4231_s28 + $0x5f0] sm:$0xf]  ;;  %557 = vst [vmem:[%s4238_s29 + $0x2f0] sm:$0xf] %v556_v60 }
  0x94   : > { %559 = vst [vmem:[%s4238_s29 + $0x2f4] sm:$0xf] %v558_v61  ;;  %561 = vst [vmem:[%s4238_s29 + $0x2f8] sm:$0xf] %v560_v62  ;;  %v562_v63 = vld [vmem:[%s4231_s28 + $0x5f8] sm:$0xf] }
  0x95   : > { %v564_v0 = vld [vmem:[%s4231_s28 + $0x600] sm:$0xf]  ;;  %v566_v1 = vld [vmem:[%s4231_s28 + $0x608] sm:$0xf]  ;;  %563 = vst [vmem:[%s4238_s29 + $0x2fc] sm:$0xf] %v562_v63 }
  0x96   : > { %565 = vst [vmem:[%s4238_s29 + $0x300] sm:$0xf] %v564_v0  ;;  %567 = vst [vmem:[%s4238_s29 + $0x304] sm:$0xf] %v566_v1  ;;  %v568_v2 = vld [vmem:[%s4231_s28 + $0x610] sm:$0xf] }
  0x97   : > { %v570_v3 = vld [vmem:[%s4231_s28 + $0x618] sm:$0xf]  ;;  %v572_v4 = vld [vmem:[%s4231_s28 + $0x620] sm:$0xf]  ;;  %569 = vst [vmem:[%s4238_s29 + $0x308] sm:$0xf] %v568_v2 }
  0x98   : > { %571 = vst [vmem:[%s4238_s29 + $0x30c] sm:$0xf] %v570_v3  ;;  %573 = vst [vmem:[%s4238_s29 + $0x310] sm:$0xf] %v572_v4  ;;  %v574_v5 = vld [vmem:[%s4231_s28 + $0x628] sm:$0xf] }
  0x99   : > { %v576_v6 = vld [vmem:[%s4231_s28 + $0x630] sm:$0xf]  ;;  %v578_v7 = vld [vmem:[%s4231_s28 + $0x638] sm:$0xf]  ;;  %575 = vst [vmem:[%s4238_s29 + $0x314] sm:$0xf] %v574_v5 }
  0x9a   : > { %577 = vst [vmem:[%s4238_s29 + $0x318] sm:$0xf] %v576_v6  ;;  %579 = vst [vmem:[%s4238_s29 + $0x31c] sm:$0xf] %v578_v7  ;;  %v580_v8 = vld [vmem:[%s4231_s28 + $0x640] sm:$0xf] }
  0x9b   : > { %v582_v9 = vld [vmem:[%s4231_s28 + $0x648] sm:$0xf]  ;;  %v584_v10 = vld [vmem:[%s4231_s28 + $0x650] sm:$0xf]  ;;  %581 = vst [vmem:[%s4238_s29 + $0x320] sm:$0xf] %v580_v8 }
  0x9c   : > { %583 = vst [vmem:[%s4238_s29 + $0x324] sm:$0xf] %v582_v9  ;;  %585 = vst [vmem:[%s4238_s29 + $0x328] sm:$0xf] %v584_v10  ;;  %v586_v11 = vld [vmem:[%s4231_s28 + $0x658] sm:$0xf] }
  0x9d   : > { %v588_v12 = vld [vmem:[%s4231_s28 + $0x660] sm:$0xf]  ;;  %v590_v13 = vld [vmem:[%s4231_s28 + $0x668] sm:$0xf]  ;;  %587 = vst [vmem:[%s4238_s29 + $0x32c] sm:$0xf] %v586_v11 }
  0x9e   : > { %589 = vst [vmem:[%s4238_s29 + $0x330] sm:$0xf] %v588_v12  ;;  %591 = vst [vmem:[%s4238_s29 + $0x334] sm:$0xf] %v590_v13  ;;  %v592_v14 = vld [vmem:[%s4231_s28 + $0x670] sm:$0xf] }
  0x9f   : > { %v594_v15 = vld [vmem:[%s4231_s28 + $0x678] sm:$0xf]  ;;  %v596_v16 = vld [vmem:[%s4231_s28 + $0x680] sm:$0xf]  ;;  %593 = vst [vmem:[%s4238_s29 + $0x338] sm:$0xf] %v592_v14 }
  0xa0   : > { %595 = vst [vmem:[%s4238_s29 + $0x33c] sm:$0xf] %v594_v15  ;;  %597 = vst [vmem:[%s4238_s29 + $0x340] sm:$0xf] %v596_v16  ;;  %v598_v17 = vld [vmem:[%s4231_s28 + $0x688] sm:$0xf] }
  0xa1   : > { %v600_v18 = vld [vmem:[%s4231_s28 + $0x690] sm:$0xf]  ;;  %v602_v19 = vld [vmem:[%s4231_s28 + $0x698] sm:$0xf]  ;;  %599 = vst [vmem:[%s4238_s29 + $0x344] sm:$0xf] %v598_v17 }
  0xa2   : > { %601 = vst [vmem:[%s4238_s29 + $0x348] sm:$0xf] %v600_v18  ;;  %603 = vst [vmem:[%s4238_s29 + $0x34c] sm:$0xf] %v602_v19  ;;  %v604_v20 = vld [vmem:[%s4231_s28 + $0x6a0] sm:$0xf] }
  0xa3   : > { %v606_v21 = vld [vmem:[%s4231_s28 + $0x6a8] sm:$0xf]  ;;  %v608_v22 = vld [vmem:[%s4231_s28 + $0x6b0] sm:$0xf]  ;;  %605 = vst [vmem:[%s4238_s29 + $0x350] sm:$0xf] %v604_v20 }
  0xa4   : > { %607 = vst [vmem:[%s4238_s29 + $0x354] sm:$0xf] %v606_v21  ;;  %609 = vst [vmem:[%s4238_s29 + $0x358] sm:$0xf] %v608_v22  ;;  %v610_v23 = vld [vmem:[%s4231_s28 + $0x6b8] sm:$0xf] }
  0xa5   : > { %v612_v24 = vld [vmem:[%s4231_s28 + $0x6c0] sm:$0xf]  ;;  %v614_v25 = vld [vmem:[%s4231_s28 + $0x6c8] sm:$0xf]  ;;  %611 = vst [vmem:[%s4238_s29 + $0x35c] sm:$0xf] %v610_v23 }
  0xa6   : > { %613 = vst [vmem:[%s4238_s29 + $0x360] sm:$0xf] %v612_v24  ;;  %615 = vst [vmem:[%s4238_s29 + $0x364] sm:$0xf] %v614_v25  ;;  %v616_v26 = vld [vmem:[%s4231_s28 + $0x6d0] sm:$0xf] }
  0xa7   : > { %v618_v27 = vld [vmem:[%s4231_s28 + $0x6d8] sm:$0xf]  ;;  %v620_v28 = vld [vmem:[%s4231_s28 + $0x6e0] sm:$0xf]  ;;  %617 = vst [vmem:[%s4238_s29 + $0x368] sm:$0xf] %v616_v26 }
  0xa8   : > { %619 = vst [vmem:[%s4238_s29 + $0x36c] sm:$0xf] %v618_v27  ;;  %621 = vst [vmem:[%s4238_s29 + $0x370] sm:$0xf] %v620_v28  ;;  %v622_v29 = vld [vmem:[%s4231_s28 + $0x6e8] sm:$0xf] }
  0xa9   : > { %v624_v30 = vld [vmem:[%s4231_s28 + $0x6f0] sm:$0xf]  ;;  %v626_v31 = vld [vmem:[%s4231_s28 + $0x6f8] sm:$0xf]  ;;  %623 = vst [vmem:[%s4238_s29 + $0x374] sm:$0xf] %v622_v29 }
  0xaa   : > { %625 = vst [vmem:[%s4238_s29 + $0x378] sm:$0xf] %v624_v30  ;;  %627 = vst [vmem:[%s4238_s29 + $0x37c] sm:$0xf] %v626_v31  ;;  %v628_v32 = vld [vmem:[%s4231_s28 + $0x700] sm:$0xf] }
  0xab   : > { %v630_v33 = vld [vmem:[%s4231_s28 + $0x708] sm:$0xf]  ;;  %v632_v34 = vld [vmem:[%s4231_s28 + $0x710] sm:$0xf]  ;;  %629 = vst [vmem:[%s4238_s29 + $0x380] sm:$0xf] %v628_v32 }
  0xac   : > { %631 = vst [vmem:[%s4238_s29 + $0x384] sm:$0xf] %v630_v33  ;;  %633 = vst [vmem:[%s4238_s29 + $0x388] sm:$0xf] %v632_v34  ;;  %v634_v35 = vld [vmem:[%s4231_s28 + $0x718] sm:$0xf] }
  0xad   : > { %v636_v36 = vld [vmem:[%s4231_s28 + $0x720] sm:$0xf]  ;;  %v638_v37 = vld [vmem:[%s4231_s28 + $0x728] sm:$0xf]  ;;  %635 = vst [vmem:[%s4238_s29 + $0x38c] sm:$0xf] %v634_v35 }
  0xae   : > { %637 = vst [vmem:[%s4238_s29 + $0x390] sm:$0xf] %v636_v36  ;;  %639 = vst [vmem:[%s4238_s29 + $0x394] sm:$0xf] %v638_v37  ;;  %v640_v38 = vld [vmem:[%s4231_s28 + $0x730] sm:$0xf] }
  0xaf   : > { %v642_v39 = vld [vmem:[%s4231_s28 + $0x738] sm:$0xf]  ;;  %v644_v40 = vld [vmem:[%s4231_s28 + $0x740] sm:$0xf]  ;;  %641 = vst [vmem:[%s4238_s29 + $0x398] sm:$0xf] %v640_v38 }
  0xb0   : > { %643 = vst [vmem:[%s4238_s29 + $0x39c] sm:$0xf] %v642_v39  ;;  %645 = vst [vmem:[%s4238_s29 + $0x3a0] sm:$0xf] %v644_v40  ;;  %v646_v41 = vld [vmem:[%s4231_s28 + $0x748] sm:$0xf] }
  0xb1   : > { %v648_v42 = vld [vmem:[%s4231_s28 + $0x750] sm:$0xf]  ;;  %v650_v43 = vld [vmem:[%s4231_s28 + $0x758] sm:$0xf]  ;;  %647 = vst [vmem:[%s4238_s29 + $0x3a4] sm:$0xf] %v646_v41 }
  0xb2   : > { %649 = vst [vmem:[%s4238_s29 + $0x3a8] sm:$0xf] %v648_v42  ;;  %651 = vst [vmem:[%s4238_s29 + $0x3ac] sm:$0xf] %v650_v43  ;;  %v652_v44 = vld [vmem:[%s4231_s28 + $0x760] sm:$0xf] }
  0xb3   : > { %v654_v45 = vld [vmem:[%s4231_s28 + $0x768] sm:$0xf]  ;;  %v656_v46 = vld [vmem:[%s4231_s28 + $0x770] sm:$0xf]  ;;  %653 = vst [vmem:[%s4238_s29 + $0x3b0] sm:$0xf] %v652_v44 }
  0xb4   : > { %655 = vst [vmem:[%s4238_s29 + $0x3b4] sm:$0xf] %v654_v45  ;;  %657 = vst [vmem:[%s4238_s29 + $0x3b8] sm:$0xf] %v656_v46  ;;  %v658_v47 = vld [vmem:[%s4231_s28 + $0x778] sm:$0xf] }
  0xb5   : > { %v660_v48 = vld [vmem:[%s4231_s28 + $0x780] sm:$0xf]  ;;  %v662_v49 = vld [vmem:[%s4231_s28 + $0x788] sm:$0xf]  ;;  %659 = vst [vmem:[%s4238_s29 + $0x3bc] sm:$0xf] %v658_v47 }
  0xb6   : > { %661 = vst [vmem:[%s4238_s29 + $0x3c0] sm:$0xf] %v660_v48  ;;  %663 = vst [vmem:[%s4238_s29 + $0x3c4] sm:$0xf] %v662_v49  ;;  %v664_v50 = vld [vmem:[%s4231_s28 + $0x790] sm:$0xf] }
  0xb7   : > { %v666_v51 = vld [vmem:[%s4231_s28 + $0x798] sm:$0xf]  ;;  %v668_v52 = vld [vmem:[%s4231_s28 + $0x7a0] sm:$0xf]  ;;  %665 = vst [vmem:[%s4238_s29 + $0x3c8] sm:$0xf] %v664_v50 }
  0xb8   : > { %667 = vst [vmem:[%s4238_s29 + $0x3cc] sm:$0xf] %v666_v51  ;;  %669 = vst [vmem:[%s4238_s29 + $0x3d0] sm:$0xf] %v668_v52  ;;  %v670_v53 = vld [vmem:[%s4231_s28 + $0x7a8] sm:$0xf] }
  0xb9   : > { %v672_v54 = vld [vmem:[%s4231_s28 + $0x7b0] sm:$0xf]  ;;  %v674_v55 = vld [vmem:[%s4231_s28 + $0x7b8] sm:$0xf]  ;;  %671 = vst [vmem:[%s4238_s29 + $0x3d4] sm:$0xf] %v670_v53 }
  0xba   : > { %673 = vst [vmem:[%s4238_s29 + $0x3d8] sm:$0xf] %v672_v54  ;;  %675 = vst [vmem:[%s4238_s29 + $0x3dc] sm:$0xf] %v674_v55  ;;  %v676_v56 = vld [vmem:[%s4231_s28 + $0x7c0] sm:$0xf] }
  0xbb   : > { %v678_v57 = vld [vmem:[%s4231_s28 + $0x7c8] sm:$0xf]  ;;  %v680_v58 = vld [vmem:[%s4231_s28 + $0x7d0] sm:$0xf]  ;;  %677 = vst [vmem:[%s4238_s29 + $0x3e0] sm:$0xf] %v676_v56 }
  0xbc   : > { %679 = vst [vmem:[%s4238_s29 + $0x3e4] sm:$0xf] %v678_v57  ;;  %681 = vst [vmem:[%s4238_s29 + $0x3e8] sm:$0xf] %v680_v58  ;;  %v682_v59 = vld [vmem:[%s4231_s28 + $0x7d8] sm:$0xf] }
  0xbd   : > { %v684_v60 = vld [vmem:[%s4231_s28 + $0x7e0] sm:$0xf]  ;;  %v686_v61 = vld [vmem:[%s4231_s28 + $0x7e8] sm:$0xf]  ;;  %683 = vst [vmem:[%s4238_s29 + $0x3ec] sm:$0xf] %v682_v59 }
  0xbe   : > { %685 = vst [vmem:[%s4238_s29 + $0x3f0] sm:$0xf] %v684_v60  ;;  %687 = vst [vmem:[%s4238_s29 + $0x3f4] sm:$0xf] %v686_v61  ;;  %v688_v62 = vld [vmem:[%s4231_s28 + $0x7f0] sm:$0xf] }
  0xbf   : > { %v690_v63 = vld [vmem:[%s4231_s28 + $0x7f8] sm:$0xf]  ;;  %v692_v0 = vld [vmem:[%s4231_s28 + $0x800] sm:$0xf]  ;;  %689 = vst [vmem:[%s4238_s29 + $0x3f8] sm:$0xf] %v688_v62 }
  0xc0   : > { %691 = vst [vmem:[%s4238_s29 + $0x3fc] sm:$0xf] %v690_v63  ;;  %693 = vst [vmem:[%s4238_s29 + $0x400] sm:$0xf] %v692_v0  ;;  %v694_v1 = vld [vmem:[%s4231_s28 + $0x808] sm:$0xf] }
  0xc1   : > { %v696_v2 = vld [vmem:[%s4231_s28 + $0x810] sm:$0xf]  ;;  %v698_v3 = vld [vmem:[%s4231_s28 + $0x818] sm:$0xf]  ;;  %695 = vst [vmem:[%s4238_s29 + $0x404] sm:$0xf] %v694_v1 }
  0xc2   : > { %697 = vst [vmem:[%s4238_s29 + $0x408] sm:$0xf] %v696_v2  ;;  %699 = vst [vmem:[%s4238_s29 + $0x40c] sm:$0xf] %v698_v3  ;;  %v700_v4 = vld [vmem:[%s4231_s28 + $0x820] sm:$0xf] }
  0xc3   : > { %v702_v5 = vld [vmem:[%s4231_s28 + $0x828] sm:$0xf]  ;;  %v704_v6 = vld [vmem:[%s4231_s28 + $0x830] sm:$0xf]  ;;  %701 = vst [vmem:[%s4238_s29 + $0x410] sm:$0xf] %v700_v4 }
  0xc4   : > { %703 = vst [vmem:[%s4238_s29 + $0x414] sm:$0xf] %v702_v5  ;;  %705 = vst [vmem:[%s4238_s29 + $0x418] sm:$0xf] %v704_v6  ;;  %v706_v7 = vld [vmem:[%s4231_s28 + $0x838] sm:$0xf] }
  0xc5   : > { %v708_v8 = vld [vmem:[%s4231_s28 + $0x840] sm:$0xf]  ;;  %v710_v9 = vld [vmem:[%s4231_s28 + $0x848] sm:$0xf]  ;;  %707 = vst [vmem:[%s4238_s29 + $0x41c] sm:$0xf] %v706_v7 }
  0xc6   : > { %709 = vst [vmem:[%s4238_s29 + $0x420] sm:$0xf] %v708_v8  ;;  %711 = vst [vmem:[%s4238_s29 + $0x424] sm:$0xf] %v710_v9  ;;  %v712_v10 = vld [vmem:[%s4231_s28 + $0x850] sm:$0xf] }
  0xc7   : > { %v714_v11 = vld [vmem:[%s4231_s28 + $0x858] sm:$0xf]  ;;  %v716_v12 = vld [vmem:[%s4231_s28 + $0x860] sm:$0xf]  ;;  %713 = vst [vmem:[%s4238_s29 + $0x428] sm:$0xf] %v712_v10 }
  0xc8   : > { %715 = vst [vmem:[%s4238_s29 + $0x42c] sm:$0xf] %v714_v11  ;;  %717 = vst [vmem:[%s4238_s29 + $0x430] sm:$0xf] %v716_v12  ;;  %v718_v13 = vld [vmem:[%s4231_s28 + $0x868] sm:$0xf] }
  0xc9   : > { %v720_v14 = vld [vmem:[%s4231_s28 + $0x870] sm:$0xf]  ;;  %v722_v15 = vld [vmem:[%s4231_s28 + $0x878] sm:$0xf]  ;;  %719 = vst [vmem:[%s4238_s29 + $0x434] sm:$0xf] %v718_v13 }
  0xca   : > { %721 = vst [vmem:[%s4238_s29 + $0x438] sm:$0xf] %v720_v14  ;;  %723 = vst [vmem:[%s4238_s29 + $0x43c] sm:$0xf] %v722_v15  ;;  %v724_v16 = vld [vmem:[%s4231_s28 + $0x880] sm:$0xf] }
  0xcb   : > { %v726_v17 = vld [vmem:[%s4231_s28 + $0x888] sm:$0xf]  ;;  %v728_v18 = vld [vmem:[%s4231_s28 + $0x890] sm:$0xf]  ;;  %725 = vst [vmem:[%s4238_s29 + $0x440] sm:$0xf] %v724_v16 }
  0xcc   : > { %727 = vst [vmem:[%s4238_s29 + $0x444] sm:$0xf] %v726_v17  ;;  %729 = vst [vmem:[%s4238_s29 + $0x448] sm:$0xf] %v728_v18  ;;  %v730_v19 = vld [vmem:[%s4231_s28 + $0x898] sm:$0xf] }
  0xcd   : > { %v732_v20 = vld [vmem:[%s4231_s28 + $0x8a0] sm:$0xf]  ;;  %v734_v21 = vld [vmem:[%s4231_s28 + $0x8a8] sm:$0xf]  ;;  %731 = vst [vmem:[%s4238_s29 + $0x44c] sm:$0xf] %v730_v19 }
  0xce   : > { %733 = vst [vmem:[%s4238_s29 + $0x450] sm:$0xf] %v732_v20  ;;  %735 = vst [vmem:[%s4238_s29 + $0x454] sm:$0xf] %v734_v21  ;;  %v736_v22 = vld [vmem:[%s4231_s28 + $0x8b0] sm:$0xf] }
  0xcf   : > { %v738_v23 = vld [vmem:[%s4231_s28 + $0x8b8] sm:$0xf]  ;;  %v740_v24 = vld [vmem:[%s4231_s28 + $0x8c0] sm:$0xf]  ;;  %737 = vst [vmem:[%s4238_s29 + $0x458] sm:$0xf] %v736_v22 }
  0xd0   : > { %739 = vst [vmem:[%s4238_s29 + $0x45c] sm:$0xf] %v738_v23  ;;  %741 = vst [vmem:[%s4238_s29 + $0x460] sm:$0xf] %v740_v24  ;;  %v742_v25 = vld [vmem:[%s4231_s28 + $0x8c8] sm:$0xf] }
  0xd1   : > { %v744_v26 = vld [vmem:[%s4231_s28 + $0x8d0] sm:$0xf]  ;;  %v746_v27 = vld [vmem:[%s4231_s28 + $0x8d8] sm:$0xf]  ;;  %743 = vst [vmem:[%s4238_s29 + $0x464] sm:$0xf] %v742_v25 }
  0xd2   : > { %745 = vst [vmem:[%s4238_s29 + $0x468] sm:$0xf] %v744_v26  ;;  %747 = vst [vmem:[%s4238_s29 + $0x46c] sm:$0xf] %v746_v27  ;;  %v748_v28 = vld [vmem:[%s4231_s28 + $0x8e0] sm:$0xf] }
  0xd3   : > { %v750_v29 = vld [vmem:[%s4231_s28 + $0x8e8] sm:$0xf]  ;;  %v752_v30 = vld [vmem:[%s4231_s28 + $0x8f0] sm:$0xf]  ;;  %749 = vst [vmem:[%s4238_s29 + $0x470] sm:$0xf] %v748_v28 }
  0xd4   : > { %751 = vst [vmem:[%s4238_s29 + $0x474] sm:$0xf] %v750_v29  ;;  %753 = vst [vmem:[%s4238_s29 + $0x478] sm:$0xf] %v752_v30  ;;  %v754_v31 = vld [vmem:[%s4231_s28 + $0x8f8] sm:$0xf] }
  0xd5   : > { %755 = vst [vmem:[%s4238_s29 + $0x47c] sm:$0xf] %v754_v31 }
  0xd6 PF: > { %p3409_p8 = scmp.ge.s32.totalorder %s4161_s16, 1  ;;  %p1359_p9 = scmp.lt.s32.totalorder %s4161_s16, 3 }
  0xd8   : > { %p1360_p10 = pnand %p3409_p8, %p1359_p9 }
  0xd9   : > { %s1366_s30 = sand.u32 (!%p1360_p10), 1, %s4145_s12   ;;  %v3959_v32 = vld [vmem:[%s5098_s0 + $0x4] ss:$72 sps:$4 sm:$0xff] (!%p1360_p10)   ;;  %v3957_v0 = vld [vmem:[%s5098_s0] ss:$72 sps:$4 sm:$0xff] (!%p1360_p10)   ;;  %p1404_p11 = scmp.lt.s32.totalorder (!%p1360_p10), %s4153_s14, 1 }
  0xda   : > { %1363 = sbr.rel (%p1360_p10) target bundleno = 618 (0x26a), region = 69  ;;  %v3962_v33 = vld [vmem:[%s5098_s0 + $0xc] ss:$72 sps:$4 sm:$0xff] (!%p1360_p10)   ;;  %2816 = vmatprep.mubr.bf16.mxu0 (!%p1360_p10), %v3959_v32  ;;  %v3960_v2 = vld [vmem:[%s5098_s0 + $0x8] ss:$72 sps:$4 sm:$0xff] (!%p1360_p10)   ;;  %s3410_s19 = sshll.u32 (!%p1360_p10), %s1366_s30, 4 }
  0xdb   : > { %s3884_s4 = smul.u32 (!%p1360_p10), 1152, %s1366_s30  ;;  %2865 = vmatprep.mubr.bf16.mxu1 (!%p1360_p10), %v3962_v33  ;;  %v3983_v4 = vld [vmem:[%s5098_s0 + $0x94] ss:$72 sps:$4 sm:$0xff] (!%p1360_p10)   ;;  %v3985_v11 = vld [vmem:[%s5098_s0 + $0x90] ss:$72 sps:$4 sm:$0xff] (!%p1360_p10)   ;;  %s1396_s20 = scalar_lea.vmem (!%p1360_p10), [#allocation3], %s3410_s19 }
  0xdc   : > { %v3988_v28 = vld [vmem:[%s5098_s0 + $0x9c] ss:$72 sps:$4 sm:$0xff] (!%p1360_p10)   ;;  %v3992_v31 = vld [vmem:[%s5098_s0 + $0x98] ss:$72 sps:$4 sm:$0xff] (!%p1360_p10)  }
  0xdd   : > { %s4822_s9 = scalar_lea.vmem (!%p1360_p10), [#allocation2], %s3884_s4 }
  0xde   : > { %v3925_v34 = vld [vmem:[%s4822_s9 + $0x40] sm:$0xff] (!%p1360_p10)   ;;  %v3929_v38 = vld [vmem:[%s4822_s9 + $0x48] sm:$0xff] (!%p1360_p10)   ;;  %v3933_v42 = vld [vmem:[%s4822_s9 + $0x50] sm:$0xff] (!%p1360_p10)  }
  0xdf   : > { %v3926_v35 = vld [vmem:[%s4822_s9 + $0xc0] sm:$0xff] (!%p1360_p10)   ;;  %3615 = vmatprep.subr.bf16.mxu0 (!%p1360_p10), %v3925_v34  ;;  %v3930_v39 = vld [vmem:[%s4822_s9 + $0xc8] sm:$0xff] (!%p1360_p10)   ;;  %v3934_v43 = vld [vmem:[%s4822_s9 + $0xd0] sm:$0xff] (!%p1360_p10)  }
  0xe0   : > { %v3927_v36 = vld [vmem:[%s4822_s9] sm:$0xff] (!%p1360_p10)   ;;  %3643 = vmatprep.subr.bf16.mxu1 (!%p1360_p10), %v3926_v35  ;;  %v3931_v40 = vld [vmem:[%s4822_s9 + $0x8] sm:$0xff] (!%p1360_p10)   ;;  %v3935_v44 = vld [vmem:[%s4822_s9 + $0x10] sm:$0xff] (!%p1360_p10)  }
  0xe1   : > { %v3928_v37 = vld [vmem:[%s4822_s9 + $0x80] sm:$0xff]   ;;  %3616 = vmatpush3.bf16.msra.mxu0 %v3927_v36  ;;  %v3932_v41 = vld [vmem:[%s4822_s9 + $0x88] sm:$0xff]   ;;  %v3936_v45 = vld [vmem:[%s4822_s9 + $0x90] sm:$0xff]   ;;  %s1405_s10 = scalar_select %p1404_p11, %s4153_s14, 1 }
  0xe2   : > { %3644 = vmatpush3.bf16.msra.mxu1 %v3928_v37  ;;  %3617 = vmatprep.subr.bf16.mxu0 %v3929_v38  ;;  %v3937_v46 = vld [vmem:[%s4822_s9 + $0x58] sm:$0xff]   ;;  %v3941_v50 = vld [vmem:[%s4822_s9 + $0x60] sm:$0xff]   ;;  %v3945_v54 = vld [vmem:[%s4822_s9 + $0x68] sm:$0xff]   ;;  %s3597_s23 = sshll.u32 (%p4218_p6), %s4153_s14, 2 }
  0xe3   : > { %3645 = vmatprep.subr.bf16.mxu1 %v3930_v39  ;;  %v3938_v47 = vld [vmem:[%s4822_s9 + $0xd8] sm:$0xff]   ;;  %v3942_v51 = vld [vmem:[%s4822_s9 + $0xe0] sm:$0xff]   ;;  %v3946_v55 = vld [vmem:[%s4822_s9 + $0xe8] sm:$0xff]   ;;  %s3260_s24 = scalar_lea.vmem (%p4218_p6), %s5101_s3, %s3597_s23 }
  0xe4   : > { %v3939_v48 = vld [vmem:[%s4822_s9 + $0x18] sm:$0xff]   ;;  %v3943_v52 = vld [vmem:[%s4822_s9 + $0x20] sm:$0xff]   ;;  %v3947_v56 = vld [vmem:[%s4822_s9 + $0x28] sm:$0xff]  }
  0xe5   : > { %3618 = vmatpush3.bf16.msra.mxu0 %v3931_v40  ;;  %v3940_v49 = vld [vmem:[%s4822_s9 + $0x98] sm:$0xff]   ;;  %v3944_v53 = vld [vmem:[%s4822_s9 + $0xa0] sm:$0xff]   ;;  %v3948_v57 = vld [vmem:[%s4822_s9 + $0xa8] sm:$0xff]  }
  0xe6   : > { %3646 = vmatpush3.bf16.msra.mxu1 %v3932_v41  ;;  %3619 = vmatprep.subr.bf16.mxu0 %v3933_v42  ;;  %v3949_v58 = vld [vmem:[%s4822_s9 + $0x70] sm:$0xff]   ;;  %v3953_v62 = vld [vmem:[%s4822_s9 + $0x78] sm:$0xff]   ;;  %v3963_v5 = vld [vmem:[%s4822_s9 + $0x140] sm:$0xff]  }
  0xe7   : > { %3647 = vmatprep.subr.bf16.mxu1 %v3934_v43  ;;  %v3950_v59 = vld [vmem:[%s4822_s9 + $0xf0] sm:$0xff]   ;;  %v3954_v63 = vld [vmem:[%s4822_s9 + $0xf8] sm:$0xff]   ;;  %v3964_v6 = vld [vmem:[%s4822_s9 + $0x1c0] sm:$0xff]  }
  0xe8   : > { %v3951_v60 = vld [vmem:[%s4822_s9 + $0x30] sm:$0xff]   ;;  %v3955_v1 = vld [vmem:[%s4822_s9 + $0x38] sm:$0xff]   ;;  %v3965_v7 = vld [vmem:[%s4822_s9 + $0x100] sm:$0xff]  }
  0xe9   : > { %3620 = vmatpush3.bf16.msra.mxu0 %v3935_v44  ;;  %v3952_v61 = vld [vmem:[%s4822_s9 + $0xb0] sm:$0xff]   ;;  %v3956_v3 = vld [vmem:[%s4822_s9 + $0xb8] sm:$0xff]   ;;  %v3966_v8 = vld [vmem:[%s4822_s9 + $0x180] sm:$0xff]  }
  0xea   : > { %3648 = vmatpush3.bf16.msra.mxu1 %v3936_v45  ;;  %3621 = vmatprep.subr.bf16.mxu0 %v3937_v46  ;;  %v3967_v9 = vld [vmem:[%s4822_s9 + $0x148] sm:$0xff]   ;;  %v3971_v14 = vld [vmem:[%s4822_s9 + $0x150] sm:$0xff]   ;;  %v3975_v18 = vld [vmem:[%s4822_s9 + $0x158] sm:$0xff]  }
  0xeb   : > { %3649 = vmatprep.subr.bf16.mxu1 %v3938_v47  ;;  %v3968_v10 = vld [vmem:[%s4822_s9 + $0x1c8] sm:$0xff]   ;;  %v3972_v15 = vld [vmem:[%s4822_s9 + $0x1d0] sm:$0xff]   ;;  %v3976_v19 = vld [vmem:[%s4822_s9 + $0x1d8] sm:$0xff]  }
  0xec   : > { %v3969_v12 = vld [vmem:[%s4822_s9 + $0x108] sm:$0xff]   ;;  %v3973_v16 = vld [vmem:[%s4822_s9 + $0x110] sm:$0xff]   ;;  %v3977_v20 = vld [vmem:[%s4822_s9 + $0x118] sm:$0xff]  }
  0xed   : > { %3622 = vmatpush3.bf16.msra.mxu0 %v3939_v48  ;;  %v3970_v13 = vld [vmem:[%s4822_s9 + $0x188] sm:$0xff]   ;;  %v3974_v17 = vld [vmem:[%s4822_s9 + $0x190] sm:$0xff]   ;;  %v3978_v21 = vld [vmem:[%s4822_s9 + $0x198] sm:$0xff]  }
  0xee   : > { %3650 = vmatpush3.bf16.msra.mxu1 %v3940_v49  ;;  %3623 = vmatprep.subr.bf16.mxu0 %v3941_v50  ;;  %v3979_v22 = vld [vmem:[%s4822_s9 + $0x160] sm:$0xff]   ;;  %v3986_v26 = vld [vmem:[%s4822_s9 + $0x168] sm:$0xff]   ;;  %v3993_v32 = vld [vmem:[%s4822_s9 + $0x170] sm:$0xff]  }
  0xef   : > { %3651 = vmatprep.subr.bf16.mxu1 %v3942_v51  ;;  %v3980_v23 = vld [vmem:[%s4822_s9 + $0x1e0] sm:$0xff]   ;;  %v3987_v27 = vld [vmem:[%s4822_s9 + $0x1e8] sm:$0xff]   ;;  %v3994_v33 = vld [vmem:[%s4822_s9 + $0x1f0] sm:$0xff]  }
  0xf0   : > { %v3981_v24 = vld [vmem:[%s4822_s9 + $0x120] sm:$0xff]   ;;  %v3990_v29 = vld [vmem:[%s4822_s9 + $0x128] sm:$0xff]   ;;  %v3995_v34 = vld [vmem:[%s4822_s9 + $0x130] sm:$0xff]  }
  0xf1   : > { %3624 = vmatpush3.bf16.msra.mxu0 %v3943_v52  ;;  %v3982_v25 = vld [vmem:[%s4822_s9 + $0x1a0] sm:$0xff]   ;;  %v3991_v30 = vld [vmem:[%s4822_s9 + $0x1a8] sm:$0xff]   ;;  %v3996_v35 = vld [vmem:[%s4822_s9 + $0x1b0] sm:$0xff]  }
  0xf2   : > { %3652 = vmatpush3.bf16.msra.mxu1 %v3944_v53  ;;  %3625 = vmatprep.subr.bf16.mxu0 %v3945_v54  ;;  %v3997_v36 = vld [vmem:[%s4822_s9 + $0x178] sm:$0xff]   ;;  %v4007_v44 = vld [vmem:[%s4822_s9 + $0x240] sm:$0xff]   ;;  %v4011_v48 = vld [vmem:[%s4822_s9 + $0x248] sm:$0xff]  }
  0xf3   : > { %3653 = vmatprep.subr.bf16.mxu1 %v3946_v55  ;;  %v3998_v37 = vld [vmem:[%s4822_s9 + $0x1f8] sm:$0xff]   ;;  %v4008_v45 = vld [vmem:[%s4822_s9 + $0x2c0] sm:$0xff]   ;;  %v4012_v49 = vld [vmem:[%s4822_s9 + $0x2c8] sm:$0xff]  }
  0xf4   : > { %v3999_v38 = vld [vmem:[%s4822_s9 + $0x138] sm:$0xff]   ;;  %v4009_v46 = vld [vmem:[%s4822_s9 + $0x200] sm:$0xff]   ;;  %v4013_v50 = vld [vmem:[%s4822_s9 + $0x208] sm:$0xff]  }
  0xf5   : > { %3626 = vmatpush3.bf16.msra.mxu0 %v3947_v56  ;;  %v4000_v39 = vld [vmem:[%s4822_s9 + $0x1b8] sm:$0xff]   ;;  %v4010_v47 = vld [vmem:[%s4822_s9 + $0x280] sm:$0xff]   ;;  %v4014_v51 = vld [vmem:[%s4822_s9 + $0x288] sm:$0xff]  }
  0xf6   : > { %3654 = vmatpush3.bf16.msra.mxu1 %v3948_v57  ;;  %3627 = vmatprep.subr.bf16.mxu0 %v3949_v58  ;;  %v4001_v40 = vld [vmem:[%s5098_s0 + $0x10] ss:$72 sps:$4 sm:$0xff]   ;;  %v4003_v41 = vld [vmem:[%s5098_s0 + $0x14] ss:$72 sps:$4 sm:$0xff]   ;;  %v4015_v52 = vld [vmem:[%s5098_s0 + $0xa4] ss:$72 sps:$4 sm:$0xff]  }
  0xf7   : > { %3655 = vmatprep.subr.bf16.mxu1 %v3950_v59  ;;  %v4004_v42 = vld [vmem:[%s5098_s0 + $0x18] ss:$72 sps:$4 sm:$0xff]   ;;  %v4006_v43 = vld [vmem:[%s5098_s0 + $0x1c] ss:$72 sps:$4 sm:$0xff]   ;;  %v4018_v54 = vld [vmem:[%s4822_s9 + $0x250] sm:$0xff]  }
  0xf8   : > { %v4017_v53 = vld [vmem:[%s5098_s0 + $0xa0] ss:$72 sps:$4 sm:$0xff]   ;;  %v4019_v55 = vld [vmem:[%s4822_s9 + $0x2d0] sm:$0xff]  }
  0xf9   : > { %3628 = vmatpush3.bf16.msra.mxu0 %v3951_v60  ;;  %v4020_v56 = vld [vmem:[%s5098_s0 + $0xac] ss:$72 sps:$4 sm:$0xff]   ;;  %v4024_v59 = vld [vmem:[%s5098_s0 + $0xa8] ss:$72 sps:$4 sm:$0xff]   ;;  %v4025_v60 = vld [vmem:[%s4822_s9 + $0x258] sm:$0xff]  }
  0xfa   : > { %3656 = vmatpush3.bf16.msra.mxu1 %v3952_v61  ;;  %3629 = vmatprep.subr.bf16.mxu0 %v3953_v62  ;;  %v4022_v57 = vld [vmem:[%s4822_s9 + $0x210] sm:$0xff]   ;;  %v4026_v61 = vld [vmem:[%s4822_s9 + $0x2d8] sm:$0xff]  }
  0xfb   : > { %3657 = vmatprep.subr.bf16.mxu1 %v3954_v63  ;;  %v4023_v58 = vld [vmem:[%s4822_s9 + $0x290] sm:$0xff]   ;;  %v4027_v62 = vld [vmem:[%s4822_s9 + $0x218] sm:$0xff]  }
  0xfc   : > { %v4028_v63 = vld [vmem:[%s4822_s9 + $0x298] sm:$0xff]  }
  0xfd   : > { %3630 = vmatpush3.bf16.msra.mxu0 %v3955_v1  ;;  %v4030_v1 = vld [vmem:[%s4822_s9 + $0x2e0] sm:$0xff]  }
  0xfe   : > { %3658 = vmatpush3.bf16.msra.mxu1 %v3956_v3  ;;  %3671 = vmatprep.subr.bf16.mxu0 %v3963_v5  ;;  %v4032_v3 = vld [vmem:[%s4822_s9 + $0x2a0] sm:$0xff]   ;;  %v4034_v5 = vld [vmem:[%s4822_s9 + $0x2e8] sm:$0xff]  }
  0xff   : > { %3699 = vmatprep.subr.bf16.mxu1 %v3964_v6  ;;  %v4035_v6 = vld [vmem:[%s4822_s9 + $0x228] sm:$0xff]  }
 0x100   : > { %2817 = vmatmul.mubr.bf16.vlgmr.msra.gmra.mrb[0].mxu0 %v3957_v0  ;;  %v4029_v0 = vld [vmem:[%s4822_s9 + $0x260] sm:$0xff]  }
 0x101   : > { %2866 = vmatmul.mubr.bf16.vlgmr.msra.gmra.mrb[0].mxu1 %v3960_v2  ;;  %3672 = vmatpush3.bf16.msra.mxu0 %v3965_v7  ;;  %v4031_v2 = vld [vmem:[%s4822_s9 + $0x220] sm:$0xff]   ;;  %v4036_v7 = vld [vmem:[%s4822_s9 + $0x2a8] sm:$0xff]  }
 0x102   : > { %3700 = vmatpush3.bf16.msra.mxu1 %v3966_v8  ;;  %2824 = vmatprep.mubr.bf16.mxu0 %v3983_v4  ;;  %v4033_v4 = vld [vmem:[%s4822_s9 + $0x268] sm:$0xff]   ;;  %v4037_v8 = vld [vmem:[%s4822_s9 + $0x270] sm:$0xff]  }
 0x103   : > { %3673 = vmatprep.subr.bf16.mxu0 %v3967_v9  ;;  %3701 = vmatprep.subr.bf16.mxu1 %v3968_v10  ;;  %v4038_v9 = vld [vmem:[%s4822_s9 + $0x2f0] sm:$0xff]  }
 0x104   : > { %2873 = vmatprep.mubr.bf16.mxu1 %v3988_v28  ;;  %v4039_v10 = vld [vmem:[%s4822_s9 + $0x230] sm:$0xff]  }
 0x105   : > { %3674 = vmatpush3.bf16.msra.mxu0 %v3969_v12  ;;  %v4041_v12 = vld [vmem:[%s4822_s9 + $0x278] sm:$0xff]  }
 0x106   : > { %3702 = vmatpush3.bf16.msra.mxu1 %v3970_v13  ;;  %3675 = vmatprep.subr.bf16.mxu0 %v3971_v14  ;;  %v4042_v13 = vld [vmem:[%s4822_s9 + $0x2f8] sm:$0xff]  }
 0x107   : > { %3703 = vmatprep.subr.bf16.mxu1 %v3972_v15  ;;  %v4043_v14 = vld [vmem:[%s4822_s9 + $0x238] sm:$0xff]  }
 0x108   : > { %2825 = vmatmul.mubr.bf16.gmra.mrb[4].mxu0 %v3985_v11  ;;  %v4040_v11 = vld [vmem:[%s4822_s9 + $0x2b0] sm:$0xff]   ;;  %v4044_v15 = vld [vmem:[%s4822_s9 + $0x2b8] sm:$0xff]  }
 0x109   : > { %3676 = vmatpush3.bf16.msra.mxu0 %v3973_v16  ;;  %2874 = vmatmul.mubr.bf16.gmra.mrb[4].mxu1 %v3992_v31  ;;  %v4045_v16 = vld [vmem:[%s5098_s0 + $0x20] ss:$72 sps:$4 sm:$0xff]   ;;  %v4059_v28 = vld [vmem:[%s5098_s0 + $0xb4] ss:$72 sps:$4 sm:$0xff]  }
 0x10a   : > { %3704 = vmatpush3.bf16.msra.mxu1 %v3974_v17  ;;  %3677 = vmatprep.subr.bf16.mxu0 %v3975_v18  ;;  %v4047_v17 = vld [vmem:[%s5098_s0 + $0x24] ss:$72 sps:$4 sm:$0xff]   ;;  %v4048_v18 = vld [vmem:[%s5098_s0 + $0x28] ss:$72 sps:$4 sm:$0xff]  }
 0x10b   : > { %3705 = vmatprep.subr.bf16.mxu1 %v3976_v19  ;;  %2914 = vmatprep.mubr.bf16.mxu0 %v4003_v41  ;;  %v4050_v19 = vld [vmem:[%s5098_s0 + $0x2c] ss:$72 sps:$4 sm:$0xff]   ;;  %v4074_v41 = vld [vmem:[%s4822_s9 + $0x3e0] sm:$0xff]  }
 0x10c   : > { %2963 = vmatprep.mubr.bf16.mxu1 %v4006_v43  ;;  %v4063_v31 = vld [vmem:[%s4822_s9 + $0x3d0] sm:$0xff]   ;;  %v4076_v43 = vld [vmem:[%s4822_s9 + $0x3a0] sm:$0xff]  }
 0x10d   : > { %3678 = vmatpush3.bf16.msra.mxu0 %v3977_v20  ;;  %v4051_v20 = vld [vmem:[%s4822_s9 + $0x340] sm:$0xff]  }
 0x10e   : > { %3706 = vmatpush3.bf16.msra.mxu1 %v3978_v21  ;;  %3679 = vmatprep.subr.bf16.mxu0 %v3979_v22  ;;  %v4052_v21 = vld [vmem:[%s4822_s9 + $0x3c0] sm:$0xff]  }
 0x10f   : > { %3707 = vmatprep.subr.bf16.mxu1 %v3980_v23  ;;  %v4053_v22 = vld [vmem:[%s4822_s9 + $0x300] sm:$0xff]  }
 0x110   : > { %v4054_v23 = vld [vmem:[%s4822_s9 + $0x380] sm:$0xff]  }
 0x111   : > { %3680 = vmatpush3.bf16.msra.mxu0 %v3981_v24  ;;  %v4055_v24 = vld [vmem:[%s4822_s9 + $0x348] sm:$0xff]  }
 0x112   : > { %3708 = vmatpush3.bf16.msra.mxu1 %v3982_v25  ;;  %3681 = vmatprep.subr.bf16.mxu0 %v3986_v26  ;;  %v4056_v25 = vld [vmem:[%s4822_s9 + $0x3c8] sm:$0xff]  }
 0x113   : > { %3709 = vmatprep.subr.bf16.mxu1 %v3987_v27  ;;  %v4057_v26 = vld [vmem:[%s4822_s9 + $0x308] sm:$0xff]  }
 0x114   : > { %v4058_v27 = vld [vmem:[%s4822_s9 + $0x388] sm:$0xff]  }
 0x115   : > { %3682 = vmatpush3.bf16.msra.mxu0 %v3990_v29  ;;  %v4061_v29 = vld [vmem:[%s5098_s0 + $0xb0] ss:$72 sps:$4 sm:$0xff]  }
 0x116   : > { %3710 = vmatpush3.bf16.msra.mxu1 %v3991_v30  ;;  %3683 = vmatprep.subr.bf16.mxu0 %v3993_v32  ;;  %v4062_v30 = vld [vmem:[%s4822_s9 + $0x350] sm:$0xff]   ;;  %v4064_v32 = vld [vmem:[%s5098_s0 + $0xbc] ss:$72 sps:$4 sm:$0xff]  }
 0x117   : > { %3711 = vmatprep.subr.bf16.mxu1 %v3994_v33  ;;  %v4066_v33 = vld [vmem:[%s4822_s9 + $0x310] sm:$0xff]  }
 0x119   : > { %3684 = vmatpush3.bf16.msra.mxu0 %v3995_v34  ;;  %v4067_v34 = vld [vmem:[%s4822_s9 + $0x390] sm:$0xff]  }
 0x11a   : > { %3712 = vmatpush3.bf16.msra.mxu1 %v3996_v35  ;;  %3685 = vmatprep.subr.bf16.mxu0 %v3997_v36  ;;  %v4068_v35 = vld [vmem:[%s5098_s0 + $0xb8] ss:$72 sps:$4 sm:$0xff]  }
 0x11b   : > { %3713 = vmatprep.subr.bf16.mxu1 %v3998_v37  ;;  %v4069_v36 = vld [vmem:[%s4822_s9 + $0x358] sm:$0xff]  }
 0x11c   : > { %v4070_v37 = vld [vmem:[%s4822_s9 + $0x3d8] sm:$0xff]  }
 0x11d   : > { %3686 = vmatpush3.bf16.msra.mxu0 %v3999_v38  ;;  %v4071_v38 = vld [vmem:[%s4822_s9 + $0x318] sm:$0xff]  }
 0x11e   : > { %3714 = vmatpush3.bf16.msra.mxu1 %v4000_v39  ;;  %3727 = vmatprep.subr.bf16.mxu0 %v4007_v44  ;;  %v4072_v39 = vld [vmem:[%s4822_s9 + $0x398] sm:$0xff]   ;;  %v4077_v44 = vld [vmem:[%s4822_s9 + $0x368] sm:$0xff]  }
 0x11f   : > { %3755 = vmatprep.subr.bf16.mxu1 %v4008_v45  ;;  %v4078_v45 = vld [vmem:[%s4822_s9 + $0x3e8] sm:$0xff]  }
 0x120   : > { %2915 = vmatmul.mubr.bf16.vlgmr.msra.gmra.mrb[8].mxu0 %v4001_v40  ;;  %v4073_v40 = vld [vmem:[%s4822_s9 + $0x360] sm:$0xff]  }
 0x121   : > { %2964 = vmatmul.mubr.bf16.vlgmr.msra.gmra.mrb[8].mxu1 %v4004_v42  ;;  %3728 = vmatpush3.bf16.msra.mxu0 %v4009_v46  ;;  %v4075_v42 = vld [vmem:[%s4822_s9 + $0x320] sm:$0xff]   ;;  %v4079_v46 = vld [vmem:[%s4822_s9 + $0x328] sm:$0xff]  }
 0x122   : > { %3756 = vmatpush3.bf16.msra.mxu1 %v4010_v47  ;;  %3729 = vmatprep.subr.bf16.mxu0 %v4011_v48  ;;  %v4080_v47 = vld [vmem:[%s4822_s9 + $0x3a8] sm:$0xff]   ;;  %v4081_v48 = vld [vmem:[%s4822_s9 + $0x370] sm:$0xff]  }
 0x123   : > { %3757 = vmatprep.subr.bf16.mxu1 %v4012_v49  ;;  %2922 = vmatprep.mubr.bf16.mxu0 %v4015_v52  ;;  %v4082_v49 = vld [vmem:[%s4822_s9 + $0x3f0] sm:$0xff]   ;;  %v4085_v52 = vld [vmem:[%s4822_s9 + $0x378] sm:$0xff]  }
 0x124   : > { %2971 = vmatprep.mubr.bf16.mxu1 %v4020_v56  ;;  %v4089_v56 = vld [vmem:[%s5098_s0 + $0x30] ss:$72 sps:$4 sm:$0xff]  }
 0x125   : > { %3730 = vmatpush3.bf16.msra.mxu0 %v4013_v50  ;;  %v4083_v50 = vld [vmem:[%s4822_s9 + $0x330] sm:$0xff]  }
 0x126   : > { %3758 = vmatpush3.bf16.msra.mxu1 %v4014_v51  ;;  %3731 = vmatprep.subr.bf16.mxu0 %v4018_v54  ;;  %v4084_v51 = vld [vmem:[%s4822_s9 + $0x3b0] sm:$0xff]   ;;  %v4087_v54 = vld [vmem:[%s4822_s9 + $0x338] sm:$0xff]  }
 0x127   : > { %3759 = vmatprep.subr.bf16.mxu1 %v4019_v55  ;;  %v4088_v55 = vld [vmem:[%s4822_s9 + $0x3b8] sm:$0xff]  }
 0x128   : > { %2923 = vmatmul.mubr.bf16.gmra.mrb[12].mxu0 %v4017_v53  ;;  %v4086_v53 = vld [vmem:[%s4822_s9 + $0x3f8] sm:$0xff]  }
 0x129   : > { %3732 = vmatpush3.bf16.msra.mxu0 %v4022_v57  ;;  %2972 = vmatmul.mubr.bf16.gmra.mrb[12].mxu1 %v4024_v59  ;;  %v4091_v57 = vld [vmem:[%s5098_s0 + $0x34] ss:$72 sps:$4 sm:$0xff]  }
 0x12a   : > { %3760 = vmatpush3.bf16.msra.mxu1 %v4023_v58  ;;  %3733 = vmatprep.subr.bf16.mxu0 %v4025_v60  ;;  %v4092_v58 = vld [vmem:[%s5098_s0 + $0x38] ss:$72 sps:$4 sm:$0xff]   ;;  %v4094_v59 = vld [vmem:[%s5098_s0 + $0x3c] ss:$72 sps:$4 sm:$0xff]  }
 0x12b   : > { %3761 = vmatprep.subr.bf16.mxu1 %v4026_v61  ;;  %3012 = vmatprep.mubr.bf16.mxu0 %v4047_v17  ;;  %v4095_v60 = vld [vmem:[%s4822_s9 + $0x440] sm:$0xff]   ;;  %v4116_v17 = vld [vmem:[%s4822_s9 + $0x438] sm:$0xff]  }
 0x12c   : > { %3061 = vmatprep.mubr.bf16.mxu1 %v4050_v19  ;;  %v4096_v61 = vld [vmem:[%s4822_s9 + $0x400] sm:$0xff]   ;;  %v4120_v19 = vld [vmem:[%s5098_s0 + $0xd0] ss:$72 sps:$4 sm:$0xff]  }
 0x12d   : > { %3734 = vmatpush3.bf16.msra.mxu0 %v4027_v62  ;;  %v4097_v62 = vld [vmem:[%s4822_s9 + $0x448] sm:$0xff]  }
 0x12e   : > { %3762 = vmatpush3.bf16.msra.mxu1 %v4028_v63  ;;  %3735 = vmatprep.subr.bf16.mxu0 %v4029_v0  ;;  %v4098_v63 = vld [vmem:[%s4822_s9 + $0x408] sm:$0xff]  }
 0x12f   : > { %3763 = vmatprep.subr.bf16.mxu1 %v4030_v1  ;;  %v4099_v0 = vld [vmem:[%s5098_s0 + $0xc4] ss:$72 sps:$4 sm:$0xff]   ;;  %v4101_v1 = vld [vmem:[%s5098_s0 + $0xc0] ss:$72 sps:$4 sm:$0xff]  }
 0x131   : > { %3736 = vmatpush3.bf16.msra.mxu0 %v4031_v2  ;;  %v4102_v2 = vld [vmem:[%s4822_s9 + $0x450] sm:$0xff]  }
 0x132   : > { %3764 = vmatpush3.bf16.msra.mxu1 %v4032_v3  ;;  %3737 = vmatprep.subr.bf16.mxu0 %v4033_v4  ;;  %v4103_v3 = vld [vmem:[%s5098_s0 + $0xcc] ss:$72 sps:$4 sm:$0xff]  }
 0x133   : > { %3765 = vmatprep.subr.bf16.mxu1 %v4034_v5  ;;  %v4105_v4 = vld [vmem:[%s4822_s9 + $0x410] sm:$0xff]  }
 0x134   : > { %v4106_v5 = vld [vmem:[%s5098_s0 + $0xc8] ss:$72 sps:$4 sm:$0xff]  }
 0x135   : > { %3738 = vmatpush3.bf16.msra.mxu0 %v4035_v6  ;;  %v4107_v6 = vld [vmem:[%s4822_s9 + $0x458] sm:$0xff]  }
 0x136   : > { %3766 = vmatpush3.bf16.msra.mxu1 %v4036_v7  ;;  %3739 = vmatprep.subr.bf16.mxu0 %v4037_v8  ;;  %v4108_v7 = vld [vmem:[%s4822_s9 + $0x418] sm:$0xff]   ;;  %v4109_v8 = vld [vmem:[%s4822_s9 + $0x460] sm:$0xff]  }
 0x137   : > { %3767 = vmatprep.subr.bf16.mxu1 %v4038_v9  ;;  %v4110_v9 = vld [vmem:[%s4822_s9 + $0x420] sm:$0xff]  }
 0x139   : > { %3740 = vmatpush3.bf16.msra.mxu0 %v4039_v10  ;;  %v4111_v10 = vld [vmem:[%s4822_s9 + $0x468] sm:$0xff]  }
 0x13a   : > { %3768 = vmatpush3.bf16.msra.mxu1 %v4040_v11  ;;  %3741 = vmatprep.subr.bf16.mxu0 %v4041_v12  ;;  %v4112_v11 = vld [vmem:[%s4822_s9 + $0x428] sm:$0xff]  }
 0x13b   : > { %3769 = vmatprep.subr.bf16.mxu1 %v4042_v13  ;;  %v4119_v12 = vld [vmem:[%s5098_s0 + $0x44] ss:$72 sps:$4 sm:$0xff]   ;;  %v4113_v13 = vld [vmem:[%s4822_s9 + $0x470] sm:$0xff]  }
 0x13d   : > { %3742 = vmatpush3.bf16.msra.mxu0 %v4043_v14  ;;  %v4122_v14 = vld [vmem:[%s5098_s0 + $0xd4] ss:$72 sps:$4 sm:$0xff]  }
 0x13e   : > { %3770 = vmatpush3.bf16.msra.mxu1 %v4044_v15  ;;  %3783 = vmatprep.subr.bf16.mxu0 %v4051_v20  ;;  %v4114_v15 = vld [vmem:[%s4822_s9 + $0x430] sm:$0xff]  }
 0x13f   : > { %3811 = vmatprep.subr.bf16.mxu1 %v4052_v21 }
 0x140   : > { %3013 = vmatmul.mubr.bf16.vlgmr.msra.gmra.mrb[16].mxu0 %v4045_v16  ;;  %v4115_v16 = vld [vmem:[%s4822_s9 + $0x478] sm:$0xff]   ;;  %s1406_s9 = scalar_lea.vmem %s5100_s2, %s1405_s10 }
 0x141   : > { %3062 = vmatmul.mubr.bf16.vlgmr.msra.gmra.mrb[16].mxu1 %v4048_v18  ;;  %3784 = vmatpush3.bf16.msra.mxu0 %v4053_v22  ;;  %v4117_v18 = vld [vmem:[%s5098_s0 + $0x40] ss:$72 sps:$4 sm:$0xff]  }
 0x142   : > { %3812 = vmatpush3.bf16.msra.mxu1 %v4054_v23  ;;  %3785 = vmatprep.subr.bf16.mxu0 %v4055_v24  ;;  %v3411_v22 = vld [vmem:[%s1406_s9] ss:$0 sm:$0xff] }
 0x143   : > { %3813 = vmatprep.subr.bf16.mxu1 %v4056_v25  ;;  %3020 = vmatprep.mubr.bf16.mxu0 %v4059_v28 }
 0x144   : > { %3069 = vmatprep.mubr.bf16.mxu1 %v4064_v32 }
 0x145   : > { %3786 = vmatpush3.bf16.msra.mxu0 %v4057_v26 }
 0x146   : > { %3814 = vmatpush3.bf16.msra.mxu1 %v4058_v27  ;;  %3787 = vmatprep.subr.bf16.mxu0 %v4062_v30 }
 0x147   : > { %3815 = vmatprep.subr.bf16.mxu1 %v4063_v31 }
 0x148   : > { %3021 = vmatmul.mubr.bf16.gmra.mrb[20].mxu0 %v4061_v29 }
 0x149   : > { %3788 = vmatpush3.bf16.msra.mxu0 %v4066_v33  ;;  %3070 = vmatmul.mubr.bf16.gmra.mrb[20].mxu1 %v4068_v35 }
 0x14a   : > { %3816 = vmatpush3.bf16.msra.mxu1 %v4067_v34  ;;  %3789 = vmatprep.subr.bf16.mxu0 %v4069_v36 }
 0x14b   : > { %3817 = vmatprep.subr.bf16.mxu1 %v4070_v37  ;;  %3110 = vmatprep.mubr.bf16.mxu0 %v4091_v57 }
 0x14c   : > { %3159 = vmatprep.mubr.bf16.mxu1 %v4094_v59 }
 0x14d   : > { %3790 = vmatpush3.bf16.msra.mxu0 %v4071_v38 }
 0x14e   : > { %3818 = vmatpush3.bf16.msra.mxu1 %v4072_v39  ;;  %3791 = vmatprep.subr.bf16.mxu0 %v4073_v40 }
 0x14f   : > { %3819 = vmatprep.subr.bf16.mxu1 %v4074_v41 }
 0x151   : > { %3792 = vmatpush3.bf16.msra.mxu0 %v4075_v42 }
 0x152   : > { %3820 = vmatpush3.bf16.msra.mxu1 %v4076_v43  ;;  %3793 = vmatprep.subr.bf16.mxu0 %v4077_v44 }
 0x153   : > { %3821 = vmatprep.subr.bf16.mxu1 %v4078_v45 }
 0x155   : > { %3794 = vmatpush3.bf16.msra.mxu0 %v4079_v46 }
 0x156   : > { %3822 = vmatpush3.bf16.msra.mxu1 %v4080_v47  ;;  %3795 = vmatprep.subr.bf16.mxu0 %v4081_v48 }
 0x157   : > { %3823 = vmatprep.subr.bf16.mxu1 %v4082_v49 }
 0x159   : > { %3796 = vmatpush3.bf16.msra.mxu0 %v4083_v50 }
 0x15a   : > { %3824 = vmatpush3.bf16.msra.mxu1 %v4084_v51  ;;  %3797 = vmatprep.subr.bf16.mxu0 %v4085_v52 }
 0x15b   : > { %3825 = vmatprep.subr.bf16.mxu1 %v4086_v53 }
 0x15d   : > { %3798 = vmatpush3.bf16.msra.mxu0 %v4087_v54 }
 0x15e   : > { %3826 = vmatpush3.bf16.msra.mxu1 %v4088_v55  ;;  %3839 = vmatprep.subr.bf16.mxu0 %v4095_v60 }
 0x15f   : > { %3867 = vmatprep.subr.bf16.mxu1 %v4095_v60 }
 0x160   : > { %3111 = vmatmul.mubr.bf16.vlgmr.msra.gmra.mrb[24].mxu0 %v4089_v56 }
 0x161   : > { %3160 = vmatmul.mubr.bf16.vlgmr.msra.gmra.mrb[24].mxu1 %v4092_v58  ;;  %3840 = vmatpush3.bf16.msra.mxu0 %v4096_v61 }
 0x162   : > { %3875 = vmatpush3.bf16.msra.mxu1 %v4096_v61  ;;  %3841 = vmatprep.subr.bf16.mxu0 %v4097_v62 }
 0x163   : > { %3868 = vmatprep.subr.bf16.mxu1 %v4097_v62  ;;  %3118 = vmatprep.mubr.bf16.mxu0 %v4099_v0 }
 0x164   : > { %3167 = vmatprep.mubr.bf16.mxu1 %v4103_v3 }
 0x165   : > { %3842 = vmatpush3.bf16.msra.mxu0 %v4098_v63 }
 0x166   : > { %3876 = vmatpush3.bf16.msra.mxu1 %v4098_v63  ;;  %3843 = vmatprep.subr.bf16.mxu0 %v4102_v2 }
 0x167   : > { %3869 = vmatprep.subr.bf16.mxu1 %v4102_v2 }
 0x168   : > { %3119 = vmatmul.mubr.bf16.gmra.mrb[28].mxu0 %v4101_v1 }
 0x169   : > { %3844 = vmatpush3.bf16.msra.mxu0 %v4105_v4  ;;  %3168 = vmatmul.mubr.bf16.gmra.mrb[28].mxu1 %v4106_v5 }
 0x16a   : > { %3877 = vmatpush3.bf16.msra.mxu1 %v4105_v4  ;;  %3845 = vmatprep.subr.bf16.mxu0 %v4107_v6 }
 0x16b   : > { %3870 = vmatprep.subr.bf16.mxu1 %v4107_v6  ;;  %3208 = vmatprep.mubr.bf16.mxu0 %v4119_v12 }
 0x16c   : > { %3216 = vmatprep.mubr.bf16.mxu1 %v4122_v14 }
 0x16d   : > { %3846 = vmatpush3.bf16.msra.mxu0 %v4108_v7 }
 0x16e   : > { %3878 = vmatpush3.bf16.msra.mxu1 %v4108_v7  ;;  %3847 = vmatprep.subr.bf16.mxu0 %v4109_v8 }
 0x16f   : > { %3871 = vmatprep.subr.bf16.mxu1 %v4109_v8 }
 0x171   : > { %3848 = vmatpush3.bf16.msra.mxu0 %v4110_v9 }
 0x172   : > { %3879 = vmatpush3.bf16.msra.mxu1 %v4110_v9  ;;  %3849 = vmatprep.subr.bf16.mxu0 %v4111_v10 }
 0x173   : > { %3872 = vmatprep.subr.bf16.mxu1 %v4111_v10 }
 0x175   : > { %3850 = vmatpush3.bf16.msra.mxu0 %v4112_v11 }
 0x176   : > { %3880 = vmatpush3.bf16.msra.mxu1 %v4112_v11  ;;  %3851 = vmatprep.subr.bf16.mxu0 %v4113_v13 }
 0x177   : > { %3873 = vmatprep.subr.bf16.mxu1 %v4113_v13 }
 0x179   : > { %3852 = vmatpush3.bf16.msra.mxu0 %v4114_v15 }
 0x17a   : > { %3881 = vmatpush3.bf16.msra.mxu1 %v4114_v15  ;;  %3853 = vmatprep.subr.bf16.mxu0 %v4115_v16 }
 0x17b   : > { %3874 = vmatprep.subr.bf16.mxu1 %v4115_v16 }
 0x17d   : > { %3854 = vmatpush3.bf16.msra.mxu0 %v4116_v17 }
 0x17e   : > { %3882 = vmatpush3.bf16.msra.mxu1 %v4116_v17 }
 0x180   : > { %3209 = vmatmul.mubr.bf16.vlgmr.msra.gmra.mrb[32].mxu0 %v4117_v18 }
 0x181   : > { %3217 = vmatmul.mubr.bf16.vlgmr.msra.gmra.mrb[32].mxu1 %v4120_v19 }
 0x1d3   : > { %v3631_v20 = vpop.f32.mrb[0].mxu0 }
 0x1d4   : > { %v3659_v21 = vpop.f32.mrb[0].mxu1  ;;  %v3632_v23 = vpop.f32.mrb[1].mxu0 }
 0x1d5   : > { %v3633_v24 = vadd.f32 %v3632_v23, %v3631_v20  ;;  %v3660_v25 = vpop.f32.mrb[1].mxu1  ;;  %v3634_v26 = vpop.f32.mrb[2].mxu0 }
 0x1d6   : > { %v3661_v27 = vadd.f32 %v3660_v25, %v3659_v21  ;;  %v3662_v28 = vpop.f32.mrb[2].mxu1  ;;  %v3635_v29 = vpop.f32.mrb[3].mxu0 }
 0x1d7   : > { %v2819_v30 = vadd.f32 %v3633_v24, %v3411_v22  ;;  %v3636_v31 = vadd.f32 %v3635_v29, %v3634_v26  ;;  %v3663_v32 = vpop.f32.mrb[3].mxu1 }
 0x1d8   : > { %v3664_v33 = vadd.f32 %v3663_v32, %v3662_v28 }
 0x1d9   : > { %v2868_v34 = vadd.f32 %v3661_v27, %v2819_v30  ;;  %v2822_v35 = vadd.f32 %v3636_v31, %v3411_v22 }
 0x1db   : > { %v2871_v36 = vadd.f32 %v3664_v33, %v2822_v35  ;;  %v3637_v37 = vpop.f32.mrb[4].mxu0 }
 0x1dc   : > { %v3638_v38 = vpop.f32.mrb[5].mxu0  ;;  %v3665_v44 = vpop.f32.mrb[4].mxu1 }
 0x1dd   : > { %v3639_v39 = vadd.f32 %v3638_v38, %v3637_v37  ;;  %v3640_v40 = vpop.f32.mrb[6].mxu0  ;;  %v3666_v45 = vpop.f32.mrb[5].mxu1 }
 0x1de   : > { %v3641_v41 = vpop.f32.mrb[7].mxu0  ;;  %v3667_v47 = vadd.f32 %v3666_v45, %v3665_v44  ;;  %v3668_v48 = vpop.f32.mrb[6].mxu1 }
 0x1df   : > { %v3642_v42 = vadd.f32 %v3641_v41, %v3640_v40  ;;  %v2827_v43 = vadd.f32 %v3639_v39, %v3411_v22  ;;  %v3669_v49 = vpop.f32.mrb[7].mxu1 }
 0x1e0   : > { %v3670_v51 = vadd.f32 %v3669_v49, %v3668_v48 }
 0x1e1   : > { %v2830_v46 = vadd.f32 %v3642_v42, %v3411_v22  ;;  %v2876_v50 = vadd.f32 %v3667_v47, %v2827_v43 }
 0x1e3   : > { %v2879_v52 = vadd.f32 %v3670_v51, %v2830_v46 }
 0x1f3   : > { %v3687_v53 = vpop.f32.mrb[8].mxu0 }
 0x1f4   : > { %v3715_v54 = vpop.f32.mrb[8].mxu1  ;;  %v3688_v55 = vpop.f32.mrb[9].mxu0 }
 0x1f5   : > { %v3689_v56 = vadd.f32 %v3688_v55, %v3687_v53  ;;  %v3716_v57 = vpop.f32.mrb[9].mxu1  ;;  %v3690_v58 = vpop.f32.mrb[10].mxu0 }
 0x1f6   : > { %v3717_v59 = vadd.f32 %v3716_v57, %v3715_v54  ;;  %v3718_v60 = vpop.f32.mrb[10].mxu1  ;;  %v3691_v61 = vpop.f32.mrb[11].mxu0 }
 0x1f7   : > { %v2917_v62 = vadd.f32 %v3689_v56, %v2868_v34  ;;  %v3692_v63 = vadd.f32 %v3691_v61, %v3690_v58  ;;  %v3719_v0 = vpop.f32.mrb[11].mxu1 }
 0x1f8   : > { %v3720_v1 = vadd.f32 %v3719_v0, %v3718_v60 }
 0x1f9   : > { %v2966_v2 = vadd.f32 %v3717_v59, %v2917_v62  ;;  %v2920_v3 = vadd.f32 %v3692_v63, %v2871_v36 }
 0x1fb   : > { %v2969_v4 = vadd.f32 %v3720_v1, %v2920_v3  ;;  %v3693_v5 = vpop.f32.mrb[12].mxu0 }
 0x1fc   : > { %v3694_v6 = vpop.f32.mrb[13].mxu0  ;;  %v3721_v12 = vpop.f32.mrb[12].mxu1 }
 0x1fd   : > { %v3695_v7 = vadd.f32 %v3694_v6, %v3693_v5  ;;  %v3696_v8 = vpop.f32.mrb[14].mxu0  ;;  %v3722_v14 = vpop.f32.mrb[13].mxu1 }
 0x1fe   : > { %v3697_v9 = vpop.f32.mrb[15].mxu0  ;;  %v3723_v15 = vadd.f32 %v3722_v14, %v3721_v12  ;;  %v3724_v16 = vpop.f32.mrb[14].mxu1 }
 0x1ff   : > { %v2925_v10 = vadd.f32 %v3695_v7, %v2876_v50  ;;  %v3698_v11 = vadd.f32 %v3697_v9, %v3696_v8  ;;  %v3725_v17 = vpop.f32.mrb[15].mxu1 }
 0x200   : > { %v3726_v19 = vadd.f32 %v3725_v17, %v3724_v16 }
 0x201   : > { %v2928_v13 = vadd.f32 %v3698_v11, %v2879_v52  ;;  %v2974_v18 = vadd.f32 %v3723_v15, %v2925_v10 }
 0x203   : > { %v2977_v20 = vadd.f32 %v3726_v19, %v2928_v13 }
 0x213   : > { %v3743_v21 = vpop.f32.mrb[16].mxu0 }
 0x214   : > { %v3744_v22 = vpop.f32.mrb[17].mxu0  ;;  %v3771_v23 = vpop.f32.mrb[16].mxu1 }
 0x215   : > { %v3745_v24 = vadd.f32 %v3744_v22, %v3743_v21  ;;  %v3746_v25 = vpop.f32.mrb[18].mxu0  ;;  %v3772_v26 = vpop.f32.mrb[17].mxu1 }
 0x216   : > { %v3747_v27 = vpop.f32.mrb[19].mxu0  ;;  %v3773_v29 = vadd.f32 %v3772_v26, %v3771_v23  ;;  %v3774_v30 = vpop.f32.mrb[18].mxu1 }
 0x217   : > { %v3015_v28 = vadd.f32 %v3745_v24, %v2966_v2  ;;  %v3748_v31 = vadd.f32 %v3747_v27, %v3746_v25  ;;  %v3775_v32 = vpop.f32.mrb[19].mxu1 }
 0x218   : > { %v3776_v35 = vadd.f32 %v3775_v32, %v3774_v30 }
 0x219   : > { %v3064_v33 = vadd.f32 %v3773_v29, %v3015_v28  ;;  %v3018_v34 = vadd.f32 %v3748_v31, %v2969_v4 }
 0x21b   : > { %v3067_v36 = vadd.f32 %v3776_v35, %v3018_v34  ;;  %v3749_v37 = vpop.f32.mrb[20].mxu0 }
 0x21c   : > { %v3750_v38 = vpop.f32.mrb[21].mxu0  ;;  %v3777_v44 = vpop.f32.mrb[20].mxu1 }
 0x21d   : > { %v3751_v39 = vadd.f32 %v3750_v38, %v3749_v37  ;;  %v3752_v40 = vpop.f32.mrb[22].mxu0  ;;  %v3778_v46 = vpop.f32.mrb[21].mxu1 }
 0x21e   : > { %v3753_v41 = vpop.f32.mrb[23].mxu0  ;;  %v3779_v47 = vadd.f32 %v3778_v46, %v3777_v44  ;;  %v3780_v48 = vpop.f32.mrb[22].mxu1 }
 0x21f   : > { %v3023_v42 = vadd.f32 %v3751_v39, %v2974_v18  ;;  %v3754_v43 = vadd.f32 %v3753_v41, %v3752_v40  ;;  %v3781_v49 = vpop.f32.mrb[23].mxu1 }
 0x220   : > { %v3782_v51 = vadd.f32 %v3781_v49, %v3780_v48 }
 0x221   : > { %v3026_v45 = vadd.f32 %v3754_v43, %v2977_v20  ;;  %v3072_v50 = vadd.f32 %v3779_v47, %v3023_v42 }
 0x223   : > { %v3075_v52 = vadd.f32 %v3782_v51, %v3026_v45 }
 0x233   : > { %v3799_v53 = vpop.f32.mrb[24].mxu0 }
 0x234   : > { %v3827_v54 = vpop.f32.mrb[24].mxu1  ;;  %v3800_v55 = vpop.f32.mrb[25].mxu0 }
 0x235   : > { %v3801_v56 = vadd.f32 %v3800_v55, %v3799_v53  ;;  %v3828_v57 = vpop.f32.mrb[25].mxu1  ;;  %v3802_v58 = vpop.f32.mrb[26].mxu0 }
 0x236   : > { %v3829_v59 = vadd.f32 %v3828_v57, %v3827_v54  ;;  %v3830_v60 = vpop.f32.mrb[26].mxu1  ;;  %v3803_v61 = vpop.f32.mrb[27].mxu0 }
 0x237   : > { %v3113_v62 = vadd.f32 %v3801_v56, %v3064_v33  ;;  %v3804_v63 = vadd.f32 %v3803_v61, %v3802_v58  ;;  %v3831_v0 = vpop.f32.mrb[27].mxu1 }
 0x238   : > { %v3832_v1 = vadd.f32 %v3831_v0, %v3830_v60 }
 0x239   : > { %v3162_v2 = vadd.f32 %v3829_v59, %v3113_v62  ;;  %v3116_v3 = vadd.f32 %v3804_v63, %v3067_v36 }
 0x23b   : > { %v3165_v4 = vadd.f32 %v3832_v1, %v3116_v3  ;;  %v3805_v5 = vpop.f32.mrb[28].mxu0 }
 0x23c   : > { %v3806_v6 = vpop.f32.mrb[29].mxu0  ;;  %v3833_v9 = vpop.f32.mrb[28].mxu1 }
 0x23d   : > { %v3807_v7 = vadd.f32 %v3806_v6, %v3805_v5  ;;  %v3808_v8 = vpop.f32.mrb[30].mxu0  ;;  %v3834_v11 = vpop.f32.mrb[29].mxu1 }
 0x23e   : > { %v3809_v10 = vpop.f32.mrb[31].mxu0  ;;  %v3835_v14 = vadd.f32 %v3834_v11, %v3833_v9  ;;  %v3836_v15 = vpop.f32.mrb[30].mxu1 }
 0x23f   : > { %v3121_v12 = vadd.f32 %v3807_v7, %v3072_v50  ;;  %v3810_v13 = vadd.f32 %v3809_v10, %v3808_v8  ;;  %v3837_v16 = vpop.f32.mrb[31].mxu1 }
 0x240   : > { %v3838_v19 = vadd.f32 %v3837_v16, %v3836_v15 }
 0x241   : > { %v3124_v17 = vadd.f32 %v3810_v13, %v3075_v52  ;;  %v3170_v18 = vadd.f32 %v3835_v14, %v3121_v12 }
 0x243   : > { %v3173_v20 = vadd.f32 %v3838_v19, %v3124_v17 }
 0x253   : > { %v3855_v21 = vpop.f32.mrb[32].mxu0 }
 0x254   : > { %v3861_v22 = vpop.f32.mrb[32].mxu1  ;;  %v3856_v23 = vpop.f32.mrb[33].mxu0 }
 0x255   : > { %v3857_v24 = vadd.f32 %v3856_v23, %v3855_v21  ;;  %v3862_v25 = vpop.f32.mrb[33].mxu1  ;;  %v3858_v26 = vpop.f32.mrb[34].mxu0 }
 0x256   : > { %v3863_v27 = vadd.f32 %v3862_v25, %v3861_v22  ;;  %v3864_v28 = vpop.f32.mrb[34].mxu1  ;;  %v3859_v29 = vpop.f32.mrb[35].mxu0 }
 0x257   : > { %v3211_v30 = vadd.f32 %v3857_v24, %v3162_v2  ;;  %v3860_v31 = vadd.f32 %v3859_v29, %v3858_v26  ;;  %v3865_v32 = vpop.f32.mrb[35].mxu1 }
 0x258   : > { %v3219_v33 = vadd.f32 %v3863_v27, %v3170_v18  ;;  %v3866_v34 = vadd.f32 %v3865_v32, %v3864_v28 }
 0x259   : > { %v3214_v35 = vadd.f32 %v3860_v31, %v3165_v4  ;;  %v3225_v37 = vmax.f32 %v3211_v30, 0.0 }
 0x25a   : > { %v3222_v36 = vadd.f32 %v3866_v34, %v3173_v20  ;;  %v3227_v39 = vmax.f32 %v3219_v33, 0.0  ;;  %3255 = sbr.rel (!%p4218_p6) target bundleno = 618 (0x26a), region = 77 }
 0x25b   : > { %v3226_v38 = vmax.f32 %v3214_v35, 0.0 }
 0x25c   : > { %v3228_v40 = vmax.f32 %v3222_v36, 0.0 }
 0x25d   : > { %v3607_v41 = vpack.c.bf16 %v3226_v38, %v3225_v37 }
 0x25e   : > { %v3612_v42 = vpack.c.bf16 %v3228_v40, %v3227_v39 }
 0x25f   : > { %3608 = vst [vmem:[%s1396_s20] sm:$0xff] %v3607_v41  }
 0x260   : > { %3614 = vst [vmem:[%s1396_s20 + $0x8] sm:$0xff] %v3612_v42  }
 0x266   : > { %v3276_v43 = vld [vmem:[%s1396_s20] sm:$0xf]  ;;  %v3278_v44 = vld [vmem:[%s1396_s20 + $0x4] sm:$0xf] }
 0x267   : > { %v3280_v45 = vld [vmem:[%s1396_s20 + $0x8] sm:$0xf]  ;;  %v3282_v46 = vld [vmem:[%s1396_s20 + $0xc] sm:$0xf]  ;;  %3277 = vst [vmem:[%s3260_s24] sm:$0xf] %v3276_v43 }
 0x268   : > { %3279 = vst [vmem:[%s3260_s24 + $0x8] sm:$0xf] %v3278_v44  ;;  %3281 = vst [vmem:[%s3260_s24 + $0x10] sm:$0xf] %v3280_v45 }
 0x269   : > { %3283 = vst [vmem:[%s3260_s24 + $0x18] sm:$0xf] %v3282_v46 }
 0x26a PF: > { %s13_s16 = sadd.s32 1, %s4161_s16   ;;  %s5103_s12 = smov %s4149_s13 }
 0x26b   : > { %p10_p12 = scmp.ge.s32.totalorder %s13_s16, 4   ;;  %s5104_s13 = smov %s4223_s22 }
 0x26c   : > { %s5105_s14 = smov %s4157_s15  ;;  %s5106_s15 = smov %s5108_s17 }
 0x26d   :  { %12 = sbr.rel (!%p10_p12) target bundleno = 3 (0x3), region = 155 }

// kernel: mixed_7a_forward.7
= control target key start
LH: loop header
LB: loop body
LE: loop exit
PB: predicated region body
PF: predicated region fallthrough
CT: control target
= control target key end

     0   :  { %s4183_s12 = smov 0   ;;  %s4185_s13 = smov 0   ;;  %s5098_s0 = inlined_call_operand.vmem [shape: bf16[32,2304], index: 0, kind: input, shape index: {}]   ;;  %s5099_s1 = inlined_call_operand.vmem [shape: bf16[2304,384], index: 1, kind: input, shape index: {}]   ;;  %s5100_s2 = inlined_call_operand.vmem [shape: f32[1,384], index: 2, kind: input, shape index: {}]   ;;  %s5101_s3 = inlined_call_operand.vmem [shape: bf16[32,384], index: 3, kind: output, shape index: {}]  }
   0x1   :  { %s4187_s14 = smov 0   ;;  %s4189_s15 = smov 0  }
   0x2   :  { %s4191_s16 = smov 0  }
   0x3 LB: > { %s22_s17 = sadd.s32 1, %s4157_s15  ;;  %s3403_s18 = sadd.s32 4294967295, %s4161_s16   ;;  %s4161_s16 = sphi %s4191_s16, %s13_s16   ;;  %s4157_s15 = sphi %s4189_s15, %s5106_s15   ;;  %s4153_s14 = sphi %s4187_s14, %s5105_s14   ;;  %s4149_s13 = sphi %s4185_s13, %s5104_s13   ;;  %s4145_s12 = sphi %s4183_s12, %s5103_s12  }
   0x4   : > { %p23_p0 = scmp.ge.s32.totalorder %s22_s17, 3  ;;  %p65_p1 = scmp.ne.s32.totalorder %s4149_s13, %s4145_s12 }
   0x5   : > { %p66_p2 = scmp.eq.s32.totalorder %s4161_s16, 0  ;;  %p123_p4 = scmp.eq.s32.totalorder %s3403_s18, 2 }
   0x6   : > { %s5108_s17 = smov (%p23_p0, %s22_s17), 0  ;;  %s58_s20 = sadd.s32 1, %s4149_s13 }
   0x7   : > { %p67_p3 = por %p66_p2, %p65_p1  ;;  %s55_s19 = ssub.s32 %s4157_s15, %s5108_s17 }
   0x8   : > { %p56_p5 = scmp.eq.s32.totalorder %s55_s19, 0  ;;  %p4218_p6 = por %p123_p4, %p65_p1 }
   0x9   : > { %p3407_p7 = scmp.ge.s32.totalorder %s4161_s16, 3 }
   0xa   : > { %s4223_s22 = scalar_select %p56_p5, %s4149_s13, %s58_s20  }
   0xb   : > { %155 = sbr.rel (%p3407_p7) target bundleno = 214 (0xd6), region = 20 }
  0x12   : > { %158 = sbr.rel (!%p67_p3) target bundleno = 214 (0xd6), region = 24  ;;  %s160_s23 = sand.u32 (%p67_p3), 1, %s4149_s13  }
  0x13   : > { %s3408_s24 = sshll.u32 (%p67_p3), %s4157_s15, 2  ;;  %s3883_s25 = smul.u32 (%p67_p3), 1152, %s160_s23 }
  0x14   : > { %s4231_s28 = scalar_lea.vmem (%p67_p3), %s5099_s1, %s3408_s24 }
  0x15   : > { %v180_v0 = vld [vmem:[%s4231_s28] sm:$0xf] (%p67_p3)  ;;  %v182_v1 = vld [vmem:[%s4231_s28 + $0xc] sm:$0xf] (%p67_p3)  ;;  %v184_v2 = vld [vmem:[%s4231_s28 + $0x18] sm:$0xf] (%p67_p3) }
  0x16   : > { %v186_v3 = vld [vmem:[%s4231_s28 + $0x24] sm:$0xf] (%p67_p3)  ;;  %v188_v4 = vld [vmem:[%s4231_s28 + $0x30] sm:$0xf] (%p67_p3)  ;;  %s4238_s29 = scalar_lea.vmem (%p67_p3), [#allocation2], %s3883_s25 }
  0x17   : > { %181 = vst [vmem:[%s4238_s29] sm:$0xf] (%p67_p3), %v180_v0  ;;  %183 = vst [vmem:[%s4238_s29 + $0x4] sm:$0xf] (%p67_p3), %v182_v1  ;;  %v190_v5 = vld [vmem:[%s4231_s28 + $0x3c] sm:$0xf] (%p67_p3) }
  0x18   : > { %185 = vst [vmem:[%s4238_s29 + $0x8] sm:$0xf] (%p67_p3), %v184_v2  ;;  %187 = vst [vmem:[%s4238_s29 + $0xc] sm:$0xf] (%p67_p3), %v186_v3  ;;  %v192_v6 = vld [vmem:[%s4231_s28 + $0x48] sm:$0xf] (%p67_p3) }
  0x19   : > { %189 = vst [vmem:[%s4238_s29 + $0x10] sm:$0xf] %v188_v4  ;;  %v194_v7 = vld [vmem:[%s4231_s28 + $0x54] sm:$0xf]  ;;  %191 = vst [vmem:[%s4238_s29 + $0x14] sm:$0xf] %v190_v5 }
  0x1a   : > { %193 = vst [vmem:[%s4238_s29 + $0x18] sm:$0xf] %v192_v6  ;;  %195 = vst [vmem:[%s4238_s29 + $0x1c] sm:$0xf] %v194_v7  ;;  %v196_v8 = vld [vmem:[%s4231_s28 + $0x60] sm:$0xf] }
  0x1b   : > { %v198_v9 = vld [vmem:[%s4231_s28 + $0x6c] sm:$0xf]  ;;  %v200_v10 = vld [vmem:[%s4231_s28 + $0x78] sm:$0xf]  ;;  %197 = vst [vmem:[%s4238_s29 + $0x20] sm:$0xf] %v196_v8 }
  0x1c   : > { %199 = vst [vmem:[%s4238_s29 + $0x24] sm:$0xf] %v198_v9  ;;  %201 = vst [vmem:[%s4238_s29 + $0x28] sm:$0xf] %v200_v10  ;;  %v202_v11 = vld [vmem:[%s4231_s28 + $0x84] sm:$0xf] }
  0x1d   : > { %v204_v12 = vld [vmem:[%s4231_s28 + $0x90] sm:$0xf]  ;;  %v206_v13 = vld [vmem:[%s4231_s28 + $0x9c] sm:$0xf]  ;;  %203 = vst [vmem:[%s4238_s29 + $0x2c] sm:$0xf] %v202_v11 }
  0x1e   : > { %205 = vst [vmem:[%s4238_s29 + $0x30] sm:$0xf] %v204_v12  ;;  %207 = vst [vmem:[%s4238_s29 + $0x34] sm:$0xf] %v206_v13  ;;  %v208_v14 = vld [vmem:[%s4231_s28 + $0xa8] sm:$0xf] }
  0x1f   : > { %v210_v15 = vld [vmem:[%s4231_s28 + $0xb4] sm:$0xf]  ;;  %v212_v16 = vld [vmem:[%s4231_s28 + $0xc0] sm:$0xf]  ;;  %209 = vst [vmem:[%s4238_s29 + $0x38] sm:$0xf] %v208_v14 }
  0x20   : > { %211 = vst [vmem:[%s4238_s29 + $0x3c] sm:$0xf] %v210_v15  ;;  %213 = vst [vmem:[%s4238_s29 + $0x40] sm:$0xf] %v212_v16  ;;  %v214_v17 = vld [vmem:[%s4231_s28 + $0xcc] sm:$0xf] }
  0x21   : > { %v216_v18 = vld [vmem:[%s4231_s28 + $0xd8] sm:$0xf]  ;;  %v218_v19 = vld [vmem:[%s4231_s28 + $0xe4] sm:$0xf]  ;;  %215 = vst [vmem:[%s4238_s29 + $0x44] sm:$0xf] %v214_v17 }
  0x22   : > { %217 = vst [vmem:[%s4238_s29 + $0x48] sm:$0xf] %v216_v18  ;;  %219 = vst [vmem:[%s4238_s29 + $0x4c] sm:$0xf] %v218_v19  ;;  %v220_v20 = vld [vmem:[%s4231_s28 + $0xf0] sm:$0xf] }
  0x23   : > { %v222_v21 = vld [vmem:[%s4231_s28 + $0xfc] sm:$0xf]  ;;  %v224_v22 = vld [vmem:[%s4231_s28 + $0x108] sm:$0xf]  ;;  %221 = vst [vmem:[%s4238_s29 + $0x50] sm:$0xf] %v220_v20 }
  0x24   : > { %223 = vst [vmem:[%s4238_s29 + $0x54] sm:$0xf] %v222_v21  ;;  %225 = vst [vmem:[%s4238_s29 + $0x58] sm:$0xf] %v224_v22  ;;  %v226_v23 = vld [vmem:[%s4231_s28 + $0x114] sm:$0xf] }
  0x25   : > { %v228_v24 = vld [vmem:[%s4231_s28 + $0x120] sm:$0xf]  ;;  %v230_v25 = vld [vmem:[%s4231_s28 + $0x12c] sm:$0xf]  ;;  %227 = vst [vmem:[%s4238_s29 + $0x5c] sm:$0xf] %v226_v23 }
  0x26   : > { %229 = vst [vmem:[%s4238_s29 + $0x60] sm:$0xf] %v228_v24  ;;  %231 = vst [vmem:[%s4238_s29 + $0x64] sm:$0xf] %v230_v25  ;;  %v232_v26 = vld [vmem:[%s4231_s28 + $0x138] sm:$0xf] }
  0x27   : > { %v234_v27 = vld [vmem:[%s4231_s28 + $0x144] sm:$0xf]  ;;  %v236_v28 = vld [vmem:[%s4231_s28 + $0x150] sm:$0xf]  ;;  %233 = vst [vmem:[%s4238_s29 + $0x68] sm:$0xf] %v232_v26 }
  0x28   : > { %235 = vst [vmem:[%s4238_s29 + $0x6c] sm:$0xf] %v234_v27  ;;  %237 = vst [vmem:[%s4238_s29 + $0x70] sm:$0xf] %v236_v28  ;;  %v238_v29 = vld [vmem:[%s4231_s28 + $0x15c] sm:$0xf] }
  0x29   : > { %v240_v30 = vld [vmem:[%s4231_s28 + $0x168] sm:$0xf]  ;;  %v242_v31 = vld [vmem:[%s4231_s28 + $0x174] sm:$0xf]  ;;  %239 = vst [vmem:[%s4238_s29 + $0x74] sm:$0xf] %v238_v29 }
  0x2a   : > { %241 = vst [vmem:[%s4238_s29 + $0x78] sm:$0xf] %v240_v30  ;;  %243 = vst [vmem:[%s4238_s29 + $0x7c] sm:$0xf] %v242_v31  ;;  %v244_v32 = vld [vmem:[%s4231_s28 + $0x180] sm:$0xf] }
  0x2b   : > { %v246_v33 = vld [vmem:[%s4231_s28 + $0x18c] sm:$0xf]  ;;  %v248_v34 = vld [vmem:[%s4231_s28 + $0x198] sm:$0xf]  ;;  %245 = vst [vmem:[%s4238_s29 + $0x80] sm:$0xf] %v244_v32 }
  0x2c   : > { %247 = vst [vmem:[%s4238_s29 + $0x84] sm:$0xf] %v246_v33  ;;  %249 = vst [vmem:[%s4238_s29 + $0x88] sm:$0xf] %v248_v34  ;;  %v250_v35 = vld [vmem:[%s4231_s28 + $0x1a4] sm:$0xf] }
  0x2d   : > { %v252_v36 = vld [vmem:[%s4231_s28 + $0x1b0] sm:$0xf]  ;;  %v254_v37 = vld [vmem:[%s4231_s28 + $0x1bc] sm:$0xf]  ;;  %251 = vst [vmem:[%s4238_s29 + $0x8c] sm:$0xf] %v250_v35 }
  0x2e   : > { %253 = vst [vmem:[%s4238_s29 + $0x90] sm:$0xf] %v252_v36  ;;  %255 = vst [vmem:[%s4238_s29 + $0x94] sm:$0xf] %v254_v37  ;;  %v256_v38 = vld [vmem:[%s4231_s28 + $0x1c8] sm:$0xf] }
  0x2f   : > { %v258_v39 = vld [vmem:[%s4231_s28 + $0x1d4] sm:$0xf]  ;;  %v260_v40 = vld [vmem:[%s4231_s28 + $0x1e0] sm:$0xf]  ;;  %257 = vst [vmem:[%s4238_s29 + $0x98] sm:$0xf] %v256_v38 }
  0x30   : > { %259 = vst [vmem:[%s4238_s29 + $0x9c] sm:$0xf] %v258_v39  ;;  %261 = vst [vmem:[%s4238_s29 + $0xa0] sm:$0xf] %v260_v40  ;;  %v262_v41 = vld [vmem:[%s4231_s28 + $0x1ec] sm:$0xf] }
  0x31   : > { %v264_v42 = vld [vmem:[%s4231_s28 + $0x1f8] sm:$0xf]  ;;  %v266_v43 = vld [vmem:[%s4231_s28 + $0x204] sm:$0xf]  ;;  %263 = vst [vmem:[%s4238_s29 + $0xa4] sm:$0xf] %v262_v41 }
  0x32   : > { %265 = vst [vmem:[%s4238_s29 + $0xa8] sm:$0xf] %v264_v42  ;;  %267 = vst [vmem:[%s4238_s29 + $0xac] sm:$0xf] %v266_v43  ;;  %v268_v44 = vld [vmem:[%s4231_s28 + $0x210] sm:$0xf] }
  0x33   : > { %v270_v45 = vld [vmem:[%s4231_s28 + $0x21c] sm:$0xf]  ;;  %v272_v46 = vld [vmem:[%s4231_s28 + $0x228] sm:$0xf]  ;;  %269 = vst [vmem:[%s4238_s29 + $0xb0] sm:$0xf] %v268_v44 }
  0x34   : > { %271 = vst [vmem:[%s4238_s29 + $0xb4] sm:$0xf] %v270_v45  ;;  %273 = vst [vmem:[%s4238_s29 + $0xb8] sm:$0xf] %v272_v46  ;;  %v274_v47 = vld [vmem:[%s4231_s28 + $0x234] sm:$0xf] }
  0x35   : > { %v276_v48 = vld [vmem:[%s4231_s28 + $0x240] sm:$0xf]  ;;  %v278_v49 = vld [vmem:[%s4231_s28 + $0x24c] sm:$0xf]  ;;  %275 = vst [vmem:[%s4238_s29 + $0xbc] sm:$0xf] %v274_v47 }
  0x36   : > { %277 = vst [vmem:[%s4238_s29 + $0xc0] sm:$0xf] %v276_v48  ;;  %279 = vst [vmem:[%s4238_s29 + $0xc4] sm:$0xf] %v278_v49  ;;  %v280_v50 = vld [vmem:[%s4231_s28 + $0x258] sm:$0xf] }
  0x37   : > { %v282_v51 = vld [vmem:[%s4231_s28 + $0x264] sm:$0xf]  ;;  %v284_v52 = vld [vmem:[%s4231_s28 + $0x270] sm:$0xf]  ;;  %281 = vst [vmem:[%s4238_s29 + $0xc8] sm:$0xf] %v280_v50 }
  0x38   : > { %283 = vst [vmem:[%s4238_s29 + $0xcc] sm:$0xf] %v282_v51  ;;  %285 = vst [vmem:[%s4238_s29 + $0xd0] sm:$0xf] %v284_v52  ;;  %v286_v53 = vld [vmem:[%s4231_s28 + $0x27c] sm:$0xf] }
  0x39   : > { %v288_v54 = vld [vmem:[%s4231_s28 + $0x288] sm:$0xf]  ;;  %v290_v55 = vld [vmem:[%s4231_s28 + $0x294] sm:$0xf]  ;;  %287 = vst [vmem:[%s4238_s29 + $0xd4] sm:$0xf] %v286_v53 }
  0x3a   : > { %289 = vst [vmem:[%s4238_s29 + $0xd8] sm:$0xf] %v288_v54  ;;  %291 = vst [vmem:[%s4238_s29 + $0xdc] sm:$0xf] %v290_v55  ;;  %v292_v56 = vld [vmem:[%s4231_s28 + $0x2a0] sm:$0xf] }
  0x3b   : > { %v294_v57 = vld [vmem:[%s4231_s28 + $0x2ac] sm:$0xf]  ;;  %v296_v58 = vld [vmem:[%s4231_s28 + $0x2b8] sm:$0xf]  ;;  %293 = vst [vmem:[%s4238_s29 + $0xe0] sm:$0xf] %v292_v56 }
  0x3c   : > { %295 = vst [vmem:[%s4238_s29 + $0xe4] sm:$0xf] %v294_v57  ;;  %297 = vst [vmem:[%s4238_s29 + $0xe8] sm:$0xf] %v296_v58  ;;  %v298_v59 = vld [vmem:[%s4231_s28 + $0x2c4] sm:$0xf] }
  0x3d   : > { %v300_v60 = vld [vmem:[%s4231_s28 + $0x2d0] sm:$0xf]  ;;  %v302_v61 = vld [vmem:[%s4231_s28 + $0x2dc] sm:$0xf]  ;;  %299 = vst [vmem:[%s4238_s29 + $0xec] sm:$0xf] %v298_v59 }
  0x3e   : > { %301 = vst [vmem:[%s4238_s29 + $0xf0] sm:$0xf] %v300_v60  ;;  %303 = vst [vmem:[%s4238_s29 + $0xf4] sm:$0xf] %v302_v61  ;;  %v304_v62 = vld [vmem:[%s4231_s28 + $0x2e8] sm:$0xf] }
  0x3f   : > { %v306_v63 = vld [vmem:[%s4231_s28 + $0x2f4] sm:$0xf]  ;;  %v308_v0 = vld [vmem:[%s4231_s28 + $0x300] sm:$0xf]  ;;  %305 = vst [vmem:[%s4238_s29 + $0xf8] sm:$0xf] %v304_v62 }
  0x40   : > { %307 = vst [vmem:[%s4238_s29 + $0xfc] sm:$0xf] %v306_v63  ;;  %309 = vst [vmem:[%s4238_s29 + $0x100] sm:$0xf] %v308_v0  ;;  %v310_v1 = vld [vmem:[%s4231_s28 + $0x30c] sm:$0xf] }
  0x41   : > { %v312_v2 = vld [vmem:[%s4231_s28 + $0x318] sm:$0xf]  ;;  %v314_v3 = vld [vmem:[%s4231_s28 + $0x324] sm:$0xf]  ;;  %311 = vst [vmem:[%s4238_s29 + $0x104] sm:$0xf] %v310_v1 }
  0x42   : > { %313 = vst [vmem:[%s4238_s29 + $0x108] sm:$0xf] %v312_v2  ;;  %315 = vst [vmem:[%s4238_s29 + $0x10c] sm:$0xf] %v314_v3  ;;  %v316_v4 = vld [vmem:[%s4231_s28 + $0x330] sm:$0xf] }
  0x43   : > { %v318_v5 = vld [vmem:[%s4231_s28 + $0x33c] sm:$0xf]  ;;  %v320_v6 = vld [vmem:[%s4231_s28 + $0x348] sm:$0xf]  ;;  %317 = vst [vmem:[%s4238_s29 + $0x110] sm:$0xf] %v316_v4 }
  0x44   : > { %319 = vst [vmem:[%s4238_s29 + $0x114] sm:$0xf] %v318_v5  ;;  %321 = vst [vmem:[%s4238_s29 + $0x118] sm:$0xf] %v320_v6  ;;  %v322_v7 = vld [vmem:[%s4231_s28 + $0x354] sm:$0xf] }
  0x45   : > { %v324_v8 = vld [vmem:[%s4231_s28 + $0x360] sm:$0xf]  ;;  %v326_v9 = vld [vmem:[%s4231_s28 + $0x36c] sm:$0xf]  ;;  %323 = vst [vmem:[%s4238_s29 + $0x11c] sm:$0xf] %v322_v7 }
  0x46   : > { %325 = vst [vmem:[%s4238_s29 + $0x120] sm:$0xf] %v324_v8  ;;  %327 = vst [vmem:[%s4238_s29 + $0x124] sm:$0xf] %v326_v9  ;;  %v328_v10 = vld [vmem:[%s4231_s28 + $0x378] sm:$0xf] }
  0x47   : > { %v330_v11 = vld [vmem:[%s4231_s28 + $0x384] sm:$0xf]  ;;  %v332_v12 = vld [vmem:[%s4231_s28 + $0x390] sm:$0xf]  ;;  %329 = vst [vmem:[%s4238_s29 + $0x128] sm:$0xf] %v328_v10 }
  0x48   : > { %331 = vst [vmem:[%s4238_s29 + $0x12c] sm:$0xf] %v330_v11  ;;  %333 = vst [vmem:[%s4238_s29 + $0x130] sm:$0xf] %v332_v12  ;;  %v334_v13 = vld [vmem:[%s4231_s28 + $0x39c] sm:$0xf] }
  0x49   : > { %v336_v14 = vld [vmem:[%s4231_s28 + $0x3a8] sm:$0xf]  ;;  %v338_v15 = vld [vmem:[%s4231_s28 + $0x3b4] sm:$0xf]  ;;  %335 = vst [vmem:[%s4238_s29 + $0x134] sm:$0xf] %v334_v13 }
  0x4a   : > { %337 = vst [vmem:[%s4238_s29 + $0x138] sm:$0xf] %v336_v14  ;;  %339 = vst [vmem:[%s4238_s29 + $0x13c] sm:$0xf] %v338_v15  ;;  %v340_v16 = vld [vmem:[%s4231_s28 + $0x3c0] sm:$0xf] }
  0x4b   : > { %v342_v17 = vld [vmem:[%s4231_s28 + $0x3cc] sm:$0xf]  ;;  %v344_v18 = vld [vmem:[%s4231_s28 + $0x3d8] sm:$0xf]  ;;  %341 = vst [vmem:[%s4238_s29 + $0x140] sm:$0xf] %v340_v16 }
  0x4c   : > { %343 = vst [vmem:[%s4238_s29 + $0x144] sm:$0xf] %v342_v17  ;;  %345 = vst [vmem:[%s4238_s29 + $0x148] sm:$0xf] %v344_v18  ;;  %v346_v19 = vld [vmem:[%s4231_s28 + $0x3e4] sm:$0xf] }
  0x4d   : > { %v348_v20 = vld [vmem:[%s4231_s28 + $0x3f0] sm:$0xf]  ;;  %v350_v21 = vld [vmem:[%s4231_s28 + $0x3fc] sm:$0xf]  ;;  %347 = vst [vmem:[%s4238_s29 + $0x14c] sm:$0xf] %v346_v19 }
  0x4e   : > { %349 = vst [vmem:[%s4238_s29 + $0x150] sm:$0xf] %v348_v20  ;;  %351 = vst [vmem:[%s4238_s29 + $0x154] sm:$0xf] %v350_v21  ;;  %v352_v22 = vld [vmem:[%s4231_s28 + $0x408] sm:$0xf] }
  0x4f   : > { %v354_v23 = vld [vmem:[%s4231_s28 + $0x414] sm:$0xf]  ;;  %v356_v24 = vld [vmem:[%s4231_s28 + $0x420] sm:$0xf]  ;;  %353 = vst [vmem:[%s4238_s29 + $0x158] sm:$0xf] %v352_v22 }
  0x50   : > { %355 = vst [vmem:[%s4238_s29 + $0x15c] sm:$0xf] %v354_v23  ;;  %357 = vst [vmem:[%s4238_s29 + $0x160] sm:$0xf] %v356_v24  ;;  %v358_v25 = vld [vmem:[%s4231_s28 + $0x42c] sm:$0xf] }
  0x51   : > { %v360_v26 = vld [vmem:[%s4231_s28 + $0x438] sm:$0xf]  ;;  %v362_v27 = vld [vmem:[%s4231_s28 + $0x444] sm:$0xf]  ;;  %359 = vst [vmem:[%s4238_s29 + $0x164] sm:$0xf] %v358_v25 }
  0x52   : > { %361 = vst [vmem:[%s4238_s29 + $0x168] sm:$0xf] %v360_v26  ;;  %363 = vst [vmem:[%s4238_s29 + $0x16c] sm:$0xf] %v362_v27  ;;  %v364_v28 = vld [vmem:[%s4231_s28 + $0x450] sm:$0xf] }
  0x53   : > { %v366_v29 = vld [vmem:[%s4231_s28 + $0x45c] sm:$0xf]  ;;  %v368_v30 = vld [vmem:[%s4231_s28 + $0x468] sm:$0xf]  ;;  %365 = vst [vmem:[%s4238_s29 + $0x170] sm:$0xf] %v364_v28 }
  0x54   : > { %367 = vst [vmem:[%s4238_s29 + $0x174] sm:$0xf] %v366_v29  ;;  %369 = vst [vmem:[%s4238_s29 + $0x178] sm:$0xf] %v368_v30  ;;  %v370_v31 = vld [vmem:[%s4231_s28 + $0x474] sm:$0xf] }
  0x55   : > { %v372_v32 = vld [vmem:[%s4231_s28 + $0x480] sm:$0xf]  ;;  %v374_v33 = vld [vmem:[%s4231_s28 + $0x48c] sm:$0xf]  ;;  %371 = vst [vmem:[%s4238_s29 + $0x17c] sm:$0xf] %v370_v31 }
  0x56   : > { %373 = vst [vmem:[%s4238_s29 + $0x180] sm:$0xf] %v372_v32  ;;  %375 = vst [vmem:[%s4238_s29 + $0x184] sm:$0xf] %v374_v33  ;;  %v376_v34 = vld [vmem:[%s4231_s28 + $0x498] sm:$0xf] }
  0x57   : > { %v378_v35 = vld [vmem:[%s4231_s28 + $0x4a4] sm:$0xf]  ;;  %v380_v36 = vld [vmem:[%s4231_s28 + $0x4b0] sm:$0xf]  ;;  %377 = vst [vmem:[%s4238_s29 + $0x188] sm:$0xf] %v376_v34 }
  0x58   : > { %379 = vst [vmem:[%s4238_s29 + $0x18c] sm:$0xf] %v378_v35  ;;  %381 = vst [vmem:[%s4238_s29 + $0x190] sm:$0xf] %v380_v36  ;;  %v382_v37 = vld [vmem:[%s4231_s28 + $0x4bc] sm:$0xf] }
  0x59   : > { %v384_v38 = vld [vmem:[%s4231_s28 + $0x4c8] sm:$0xf]  ;;  %v386_v39 = vld [vmem:[%s4231_s28 + $0x4d4] sm:$0xf]  ;;  %383 = vst [vmem:[%s4238_s29 + $0x194] sm:$0xf] %v382_v37 }
  0x5a   : > { %385 = vst [vmem:[%s4238_s29 + $0x198] sm:$0xf] %v384_v38  ;;  %387 = vst [vmem:[%s4238_s29 + $0x19c] sm:$0xf] %v386_v39  ;;  %v388_v40 = vld [vmem:[%s4231_s28 + $0x4e0] sm:$0xf] }
  0x5b   : > { %v390_v41 = vld [vmem:[%s4231_s28 + $0x4ec] sm:$0xf]  ;;  %v392_v42 = vld [vmem:[%s4231_s28 + $0x4f8] sm:$0xf]  ;;  %389 = vst [vmem:[%s4238_s29 + $0x1a0] sm:$0xf] %v388_v40 }
  0x5c   : > { %391 = vst [vmem:[%s4238_s29 + $0x1a4] sm:$0xf] %v390_v41  ;;  %393 = vst [vmem:[%s4238_s29 + $0x1a8] sm:$0xf] %v392_v42  ;;  %v394_v43 = vld [vmem:[%s4231_s28 + $0x504] sm:$0xf] }
  0x5d   : > { %v396_v44 = vld [vmem:[%s4231_s28 + $0x510] sm:$0xf]  ;;  %v398_v45 = vld [vmem:[%s4231_s28 + $0x51c] sm:$0xf]  ;;  %395 = vst [vmem:[%s4238_s29 + $0x1ac] sm:$0xf] %v394_v43 }
  0x5e   : > { %397 = vst [vmem:[%s4238_s29 + $0x1b0] sm:$0xf] %v396_v44  ;;  %399 = vst [vmem:[%s4238_s29 + $0x1b4] sm:$0xf] %v398_v45  ;;  %v400_v46 = vld [vmem:[%s4231_s28 + $0x528] sm:$0xf] }
  0x5f   : > { %v402_v47 = vld [vmem:[%s4231_s28 + $0x534] sm:$0xf]  ;;  %v404_v48 = vld [vmem:[%s4231_s28 + $0x540] sm:$0xf]  ;;  %401 = vst [vmem:[%s4238_s29 + $0x1b8] sm:$0xf] %v400_v46 }
  0x60   : > { %403 = vst [vmem:[%s4238_s29 + $0x1bc] sm:$0xf] %v402_v47  ;;  %405 = vst [vmem:[%s4238_s29 + $0x1c0] sm:$0xf] %v404_v48  ;;  %v406_v49 = vld [vmem:[%s4231_s28 + $0x54c] sm:$0xf] }
  0x61   : > { %v408_v50 = vld [vmem:[%s4231_s28 + $0x558] sm:$0xf]  ;;  %v410_v51 = vld [vmem:[%s4231_s28 + $0x564] sm:$0xf]  ;;  %407 = vst [vmem:[%s4238_s29 + $0x1c4] sm:$0xf] %v406_v49 }
  0x62   : > { %409 = vst [vmem:[%s4238_s29 + $0x1c8] sm:$0xf] %v408_v50  ;;  %411 = vst [vmem:[%s4238_s29 + $0x1cc] sm:$0xf] %v410_v51  ;;  %v412_v52 = vld [vmem:[%s4231_s28 + $0x570] sm:$0xf] }
  0x63   : > { %v414_v53 = vld [vmem:[%s4231_s28 + $0x57c] sm:$0xf]  ;;  %v416_v54 = vld [vmem:[%s4231_s28 + $0x588] sm:$0xf]  ;;  %413 = vst [vmem:[%s4238_s29 + $0x1d0] sm:$0xf] %v412_v52 }
  0x64   : > { %415 = vst [vmem:[%s4238_s29 + $0x1d4] sm:$0xf] %v414_v53  ;;  %417 = vst [vmem:[%s4238_s29 + $0x1d8] sm:$0xf] %v416_v54  ;;  %v418_v55 = vld [vmem:[%s4231_s28 + $0x594] sm:$0xf] }
  0x65   : > { %v420_v56 = vld [vmem:[%s4231_s28 + $0x5a0] sm:$0xf]  ;;  %v422_v57 = vld [vmem:[%s4231_s28 + $0x5ac] sm:$0xf]  ;;  %419 = vst [vmem:[%s4238_s29 + $0x1dc] sm:$0xf] %v418_v55 }
  0x66   : > { %421 = vst [vmem:[%s4238_s29 + $0x1e0] sm:$0xf] %v420_v56  ;;  %423 = vst [vmem:[%s4238_s29 + $0x1e4] sm:$0xf] %v422_v57  ;;  %v424_v58 = vld [vmem:[%s4231_s28 + $0x5b8] sm:$0xf] }
  0x67   : > { %v426_v59 = vld [vmem:[%s4231_s28 + $0x5c4] sm:$0xf]  ;;  %v428_v60 = vld [vmem:[%s4231_s28 + $0x5d0] sm:$0xf]  ;;  %425 = vst [vmem:[%s4238_s29 + $0x1e8] sm:$0xf] %v424_v58 }
  0x68   : > { %427 = vst [vmem:[%s4238_s29 + $0x1ec] sm:$0xf] %v426_v59  ;;  %429 = vst [vmem:[%s4238_s29 + $0x1f0] sm:$0xf] %v428_v60  ;;  %v430_v61 = vld [vmem:[%s4231_s28 + $0x5dc] sm:$0xf] }
  0x69   : > { %v432_v62 = vld [vmem:[%s4231_s28 + $0x5e8] sm:$0xf]  ;;  %v434_v63 = vld [vmem:[%s4231_s28 + $0x5f4] sm:$0xf]  ;;  %431 = vst [vmem:[%s4238_s29 + $0x1f4] sm:$0xf] %v430_v61 }
  0x6a   : > { %433 = vst [vmem:[%s4238_s29 + $0x1f8] sm:$0xf] %v432_v62  ;;  %435 = vst [vmem:[%s4238_s29 + $0x1fc] sm:$0xf] %v434_v63  ;;  %v436_v0 = vld [vmem:[%s4231_s28 + $0x600] sm:$0xf] }
  0x6b   : > { %v438_v1 = vld [vmem:[%s4231_s28 + $0x60c] sm:$0xf]  ;;  %v440_v2 = vld [vmem:[%s4231_s28 + $0x618] sm:$0xf]  ;;  %437 = vst [vmem:[%s4238_s29 + $0x200] sm:$0xf] %v436_v0 }
  0x6c   : > { %439 = vst [vmem:[%s4238_s29 + $0x204] sm:$0xf] %v438_v1  ;;  %441 = vst [vmem:[%s4238_s29 + $0x208] sm:$0xf] %v440_v2  ;;  %v442_v3 = vld [vmem:[%s4231_s28 + $0x624] sm:$0xf] }
  0x6d   : > { %v444_v4 = vld [vmem:[%s4231_s28 + $0x630] sm:$0xf]  ;;  %v446_v5 = vld [vmem:[%s4231_s28 + $0x63c] sm:$0xf]  ;;  %443 = vst [vmem:[%s4238_s29 + $0x20c] sm:$0xf] %v442_v3 }
  0x6e   : > { %445 = vst [vmem:[%s4238_s29 + $0x210] sm:$0xf] %v444_v4  ;;  %447 = vst [vmem:[%s4238_s29 + $0x214] sm:$0xf] %v446_v5  ;;  %v448_v6 = vld [vmem:[%s4231_s28 + $0x648] sm:$0xf] }
  0x6f   : > { %v450_v7 = vld [vmem:[%s4231_s28 + $0x654] sm:$0xf]  ;;  %v452_v8 = vld [vmem:[%s4231_s28 + $0x660] sm:$0xf]  ;;  %449 = vst [vmem:[%s4238_s29 + $0x218] sm:$0xf] %v448_v6 }
  0x70   : > { %451 = vst [vmem:[%s4238_s29 + $0x21c] sm:$0xf] %v450_v7  ;;  %453 = vst [vmem:[%s4238_s29 + $0x220] sm:$0xf] %v452_v8  ;;  %v454_v9 = vld [vmem:[%s4231_s28 + $0x66c] sm:$0xf] }
  0x71   : > { %v456_v10 = vld [vmem:[%s4231_s28 + $0x678] sm:$0xf]  ;;  %v458_v11 = vld [vmem:[%s4231_s28 + $0x684] sm:$0xf]  ;;  %455 = vst [vmem:[%s4238_s29 + $0x224] sm:$0xf] %v454_v9 }
  0x72   : > { %457 = vst [vmem:[%s4238_s29 + $0x228] sm:$0xf] %v456_v10  ;;  %459 = vst [vmem:[%s4238_s29 + $0x22c] sm:$0xf] %v458_v11  ;;  %v460_v12 = vld [vmem:[%s4231_s28 + $0x690] sm:$0xf] }
  0x73   : > { %v462_v13 = vld [vmem:[%s4231_s28 + $0x69c] sm:$0xf]  ;;  %v464_v14 = vld [vmem:[%s4231_s28 + $0x6a8] sm:$0xf]  ;;  %461 = vst [vmem:[%s4238_s29 + $0x230] sm:$0xf] %v460_v12 }
  0x74   : > { %463 = vst [vmem:[%s4238_s29 + $0x234] sm:$0xf] %v462_v13  ;;  %465 = vst [vmem:[%s4238_s29 + $0x238] sm:$0xf] %v464_v14  ;;  %v466_v15 = vld [vmem:[%s4231_s28 + $0x6b4] sm:$0xf] }
  0x75   : > { %v468_v16 = vld [vmem:[%s4231_s28 + $0x6c0] sm:$0xf]  ;;  %v470_v17 = vld [vmem:[%s4231_s28 + $0x6cc] sm:$0xf]  ;;  %467 = vst [vmem:[%s4238_s29 + $0x23c] sm:$0xf] %v466_v15 }
  0x76   : > { %469 = vst [vmem:[%s4238_s29 + $0x240] sm:$0xf] %v468_v16  ;;  %471 = vst [vmem:[%s4238_s29 + $0x244] sm:$0xf] %v470_v17  ;;  %v472_v18 = vld [vmem:[%s4231_s28 + $0x6d8] sm:$0xf] }
  0x77   : > { %v474_v19 = vld [vmem:[%s4231_s28 + $0x6e4] sm:$0xf]  ;;  %v476_v20 = vld [vmem:[%s4231_s28 + $0x6f0] sm:$0xf]  ;;  %473 = vst [vmem:[%s4238_s29 + $0x248] sm:$0xf] %v472_v18 }
  0x78   : > { %475 = vst [vmem:[%s4238_s29 + $0x24c] sm:$0xf] %v474_v19  ;;  %477 = vst [vmem:[%s4238_s29 + $0x250] sm:$0xf] %v476_v20  ;;  %v478_v21 = vld [vmem:[%s4231_s28 + $0x6fc] sm:$0xf] }
  0x79   : > { %v480_v22 = vld [vmem:[%s4231_s28 + $0x708] sm:$0xf]  ;;  %v482_v23 = vld [vmem:[%s4231_s28 + $0x714] sm:$0xf]  ;;  %479 = vst [vmem:[%s4238_s29 + $0x254] sm:$0xf] %v478_v21 }
  0x7a   : > { %481 = vst [vmem:[%s4238_s29 + $0x258] sm:$0xf] %v480_v22  ;;  %483 = vst [vmem:[%s4238_s29 + $0x25c] sm:$0xf] %v482_v23  ;;  %v484_v24 = vld [vmem:[%s4231_s28 + $0x720] sm:$0xf] }
  0x7b   : > { %v486_v25 = vld [vmem:[%s4231_s28 + $0x72c] sm:$0xf]  ;;  %v488_v26 = vld [vmem:[%s4231_s28 + $0x738] sm:$0xf]  ;;  %485 = vst [vmem:[%s4238_s29 + $0x260] sm:$0xf] %v484_v24 }
  0x7c   : > { %487 = vst [vmem:[%s4238_s29 + $0x264] sm:$0xf] %v486_v25  ;;  %489 = vst [vmem:[%s4238_s29 + $0x268] sm:$0xf] %v488_v26  ;;  %v490_v27 = vld [vmem:[%s4231_s28 + $0x744] sm:$0xf] }
  0x7d   : > { %v492_v28 = vld [vmem:[%s4231_s28 + $0x750] sm:$0xf]  ;;  %v494_v29 = vld [vmem:[%s4231_s28 + $0x75c] sm:$0xf]  ;;  %491 = vst [vmem:[%s4238_s29 + $0x26c] sm:$0xf] %v490_v27 }
  0x7e   : > { %493 = vst [vmem:[%s4238_s29 + $0x270] sm:$0xf] %v492_v28  ;;  %495 = vst [vmem:[%s4238_s29 + $0x274] sm:$0xf] %v494_v29  ;;  %v496_v30 = vld [vmem:[%s4231_s28 + $0x768] sm:$0xf] }
  0x7f   : > { %v498_v31 = vld [vmem:[%s4231_s28 + $0x774] sm:$0xf]  ;;  %v500_v32 = vld [vmem:[%s4231_s28 + $0x780] sm:$0xf]  ;;  %497 = vst [vmem:[%s4238_s29 + $0x278] sm:$0xf] %v496_v30 }
  0x80   : > { %499 = vst [vmem:[%s4238_s29 + $0x27c] sm:$0xf] %v498_v31  ;;  %501 = vst [vmem:[%s4238_s29 + $0x280] sm:$0xf] %v500_v32  ;;  %v502_v33 = vld [vmem:[%s4231_s28 + $0x78c] sm:$0xf] }
  0x81   : > { %v504_v34 = vld [vmem:[%s4231_s28 + $0x798] sm:$0xf]  ;;  %v506_v35 = vld [vmem:[%s4231_s28 + $0x7a4] sm:$0xf]  ;;  %503 = vst [vmem:[%s4238_s29 + $0x284] sm:$0xf] %v502_v33 }
  0x82   : > { %505 = vst [vmem:[%s4238_s29 + $0x288] sm:$0xf] %v504_v34  ;;  %507 = vst [vmem:[%s4238_s29 + $0x28c] sm:$0xf] %v506_v35  ;;  %v508_v36 = vld [vmem:[%s4231_s28 + $0x7b0] sm:$0xf] }
  0x83   : > { %v510_v37 = vld [vmem:[%s4231_s28 + $0x7bc] sm:$0xf]  ;;  %v512_v38 = vld [vmem:[%s4231_s28 + $0x7c8] sm:$0xf]  ;;  %509 = vst [vmem:[%s4238_s29 + $0x290] sm:$0xf] %v508_v36 }
  0x84   : > { %511 = vst [vmem:[%s4238_s29 + $0x294] sm:$0xf] %v510_v37  ;;  %513 = vst [vmem:[%s4238_s29 + $0x298] sm:$0xf] %v512_v38  ;;  %v514_v39 = vld [vmem:[%s4231_s28 + $0x7d4] sm:$0xf] }
  0x85   : > { %v516_v40 = vld [vmem:[%s4231_s28 + $0x7e0] sm:$0xf]  ;;  %v518_v41 = vld [vmem:[%s4231_s28 + $0x7ec] sm:$0xf]  ;;  %515 = vst [vmem:[%s4238_s29 + $0x29c] sm:$0xf] %v514_v39 }
  0x86   : > { %517 = vst [vmem:[%s4238_s29 + $0x2a0] sm:$0xf] %v516_v40  ;;  %519 = vst [vmem:[%s4238_s29 + $0x2a4] sm:$0xf] %v518_v41  ;;  %v520_v42 = vld [vmem:[%s4231_s28 + $0x7f8] sm:$0xf] }
  0x87   : > { %v522_v43 = vld [vmem:[%s4231_s28 + $0x804] sm:$0xf]  ;;  %v524_v44 = vld [vmem:[%s4231_s28 + $0x810] sm:$0xf]  ;;  %521 = vst [vmem:[%s4238_s29 + $0x2a8] sm:$0xf] %v520_v42 }
  0x88   : > { %523 = vst [vmem:[%s4238_s29 + $0x2ac] sm:$0xf] %v522_v43  ;;  %525 = vst [vmem:[%s4238_s29 + $0x2b0] sm:$0xf] %v524_v44  ;;  %v526_v45 = vld [vmem:[%s4231_s28 + $0x81c] sm:$0xf] }
  0x89   : > { %v528_v46 = vld [vmem:[%s4231_s28 + $0x828] sm:$0xf]  ;;  %v530_v47 = vld [vmem:[%s4231_s28 + $0x834] sm:$0xf]  ;;  %527 = vst [vmem:[%s4238_s29 + $0x2b4] sm:$0xf] %v526_v45 }
  0x8a   : > { %529 = vst [vmem:[%s4238_s29 + $0x2b8] sm:$0xf] %v528_v46  ;;  %531 = vst [vmem:[%s4238_s29 + $0x2bc] sm:$0xf] %v530_v47  ;;  %v532_v48 = vld [vmem:[%s4231_s28 + $0x840] sm:$0xf] }
  0x8b   : > { %v534_v49 = vld [vmem:[%s4231_s28 + $0x84c] sm:$0xf]  ;;  %v536_v50 = vld [vmem:[%s4231_s28 + $0x858] sm:$0xf]  ;;  %533 = vst [vmem:[%s4238_s29 + $0x2c0] sm:$0xf] %v532_v48 }
  0x8c   : > { %535 = vst [vmem:[%s4238_s29 + $0x2c4] sm:$0xf] %v534_v49  ;;  %537 = vst [vmem:[%s4238_s29 + $0x2c8] sm:$0xf] %v536_v50  ;;  %v538_v51 = vld [vmem:[%s4231_s28 + $0x864] sm:$0xf] }
  0x8d   : > { %v540_v52 = vld [vmem:[%s4231_s28 + $0x870] sm:$0xf]  ;;  %v542_v53 = vld [vmem:[%s4231_s28 + $0x87c] sm:$0xf]  ;;  %539 = vst [vmem:[%s4238_s29 + $0x2cc] sm:$0xf] %v538_v51 }
  0x8e   : > { %541 = vst [vmem:[%s4238_s29 + $0x2d0] sm:$0xf] %v540_v52  ;;  %543 = vst [vmem:[%s4238_s29 + $0x2d4] sm:$0xf] %v542_v53  ;;  %v544_v54 = vld [vmem:[%s4231_s28 + $0x888] sm:$0xf] }
  0x8f   : > { %v546_v55 = vld [vmem:[%s4231_s28 + $0x894] sm:$0xf]  ;;  %v548_v56 = vld [vmem:[%s4231_s28 + $0x8a0] sm:$0xf]  ;;  %545 = vst [vmem:[%s4238_s29 + $0x2d8] sm:$0xf] %v544_v54 }
  0x90   : > { %547 = vst [vmem:[%s4238_s29 + $0x2dc] sm:$0xf] %v546_v55  ;;  %549 = vst [vmem:[%s4238_s29 + $0x2e0] sm:$0xf] %v548_v56  ;;  %v550_v57 = vld [vmem:[%s4231_s28 + $0x8ac] sm:$0xf] }
  0x91   : > { %v552_v58 = vld [vmem:[%s4231_s28 + $0x8b8] sm:$0xf]  ;;  %v554_v59 = vld [vmem:[%s4231_s28 + $0x8c4] sm:$0xf]  ;;  %551 = vst [vmem:[%s4238_s29 + $0x2e4] sm:$0xf] %v550_v57 }
  0x92   : > { %553 = vst [vmem:[%s4238_s29 + $0x2e8] sm:$0xf] %v552_v58  ;;  %555 = vst [vmem:[%s4238_s29 + $0x2ec] sm:$0xf] %v554_v59  ;;  %v556_v60 = vld [vmem:[%s4231_s28 + $0x8d0] sm:$0xf] }
  0x93   : > { %v558_v61 = vld [vmem:[%s4231_s28 + $0x8dc] sm:$0xf]  ;;  %v560_v62 = vld [vmem:[%s4231_s28 + $0x8e8] sm:$0xf]  ;;  %557 = vst [vmem:[%s4238_s29 + $0x2f0] sm:$0xf] %v556_v60 }
  0x94   : > { %559 = vst [vmem:[%s4238_s29 + $0x2f4] sm:$0xf] %v558_v61  ;;  %561 = vst [vmem:[%s4238_s29 + $0x2f8] sm:$0xf] %v560_v62  ;;  %v562_v63 = vld [vmem:[%s4231_s28 + $0x8f4] sm:$0xf] }
  0x95   : > { %v564_v0 = vld [vmem:[%s4231_s28 + $0x900] sm:$0xf]  ;;  %v566_v1 = vld [vmem:[%s4231_s28 + $0x90c] sm:$0xf]  ;;  %563 = vst [vmem:[%s4238_s29 + $0x2fc] sm:$0xf] %v562_v63 }
  0x96   : > { %565 = vst [vmem:[%s4238_s29 + $0x300] sm:$0xf] %v564_v0  ;;  %567 = vst [vmem:[%s4238_s29 + $0x304] sm:$0xf] %v566_v1  ;;  %v568_v2 = vld [vmem:[%s4231_s28 + $0x918] sm:$0xf] }
  0x97   : > { %v570_v3 = vld [vmem:[%s4231_s28 + $0x924] sm:$0xf]  ;;  %v572_v4 = vld [vmem:[%s4231_s28 + $0x930] sm:$0xf]  ;;  %569 = vst [vmem:[%s4238_s29 + $0x308] sm:$0xf] %v568_v2 }
  0x98   : > { %571 = vst [vmem:[%s4238_s29 + $0x30c] sm:$0xf] %v570_v3  ;;  %573 = vst [vmem:[%s4238_s29 + $0x310] sm:$0xf] %v572_v4  ;;  %v574_v5 = vld [vmem:[%s4231_s28 + $0x93c] sm:$0xf] }
  0x99   : > { %v576_v6 = vld [vmem:[%s4231_s28 + $0x948] sm:$0xf]  ;;  %v578_v7 = vld [vmem:[%s4231_s28 + $0x954] sm:$0xf]  ;;  %575 = vst [vmem:[%s4238_s29 + $0x314] sm:$0xf] %v574_v5 }
  0x9a   : > { %577 = vst [vmem:[%s4238_s29 + $0x318] sm:$0xf] %v576_v6  ;;  %579 = vst [vmem:[%s4238_s29 + $0x31c] sm:$0xf] %v578_v7  ;;  %v580_v8 = vld [vmem:[%s4231_s28 + $0x960] sm:$0xf] }
  0x9b   : > { %v582_v9 = vld [vmem:[%s4231_s28 + $0x96c] sm:$0xf]  ;;  %v584_v10 = vld [vmem:[%s4231_s28 + $0x978] sm:$0xf]  ;;  %581 = vst [vmem:[%s4238_s29 + $0x320] sm:$0xf] %v580_v8 }
  0x9c   : > { %583 = vst [vmem:[%s4238_s29 + $0x324] sm:$0xf] %v582_v9  ;;  %585 = vst [vmem:[%s4238_s29 + $0x328] sm:$0xf] %v584_v10  ;;  %v586_v11 = vld [vmem:[%s4231_s28 + $0x984] sm:$0xf] }
  0x9d   : > { %v588_v12 = vld [vmem:[%s4231_s28 + $0x990] sm:$0xf]  ;;  %v590_v13 = vld [vmem:[%s4231_s28 + $0x99c] sm:$0xf]  ;;  %587 = vst [vmem:[%s4238_s29 + $0x32c] sm:$0xf] %v586_v11 }
  0x9e   : > { %589 = vst [vmem:[%s4238_s29 + $0x330] sm:$0xf] %v588_v12  ;;  %591 = vst [vmem:[%s4238_s29 + $0x334] sm:$0xf] %v590_v13  ;;  %v592_v14 = vld [vmem:[%s4231_s28 + $0x9a8] sm:$0xf] }
  0x9f   : > { %v594_v15 = vld [vmem:[%s4231_s28 + $0x9b4] sm:$0xf]  ;;  %v596_v16 = vld [vmem:[%s4231_s28 + $0x9c0] sm:$0xf]  ;;  %593 = vst [vmem:[%s4238_s29 + $0x338] sm:$0xf] %v592_v14 }
  0xa0   : > { %595 = vst [vmem:[%s4238_s29 + $0x33c] sm:$0xf] %v594_v15  ;;  %597 = vst [vmem:[%s4238_s29 + $0x340] sm:$0xf] %v596_v16  ;;  %v598_v17 = vld [vmem:[%s4231_s28 + $0x9cc] sm:$0xf] }
  0xa1   : > { %v600_v18 = vld [vmem:[%s4231_s28 + $0x9d8] sm:$0xf]  ;;  %v602_v19 = vld [vmem:[%s4231_s28 + $0x9e4] sm:$0xf]  ;;  %599 = vst [vmem:[%s4238_s29 + $0x344] sm:$0xf] %v598_v17 }
  0xa2   : > { %601 = vst [vmem:[%s4238_s29 + $0x348] sm:$0xf] %v600_v18  ;;  %603 = vst [vmem:[%s4238_s29 + $0x34c] sm:$0xf] %v602_v19  ;;  %v604_v20 = vld [vmem:[%s4231_s28 + $0x9f0] sm:$0xf] }
  0xa3   : > { %v606_v21 = vld [vmem:[%s4231_s28 + $0x9fc] sm:$0xf]  ;;  %v608_v22 = vld [vmem:[%s4231_s28 + $0xa08] sm:$0xf]  ;;  %605 = vst [vmem:[%s4238_s29 + $0x350] sm:$0xf] %v604_v20 }
  0xa4   : > { %607 = vst [vmem:[%s4238_s29 + $0x354] sm:$0xf] %v606_v21  ;;  %609 = vst [vmem:[%s4238_s29 + $0x358] sm:$0xf] %v608_v22  ;;  %v610_v23 = vld [vmem:[%s4231_s28 + $0xa14] sm:$0xf] }
  0xa5   : > { %v612_v24 = vld [vmem:[%s4231_s28 + $0xa20] sm:$0xf]  ;;  %v614_v25 = vld [vmem:[%s4231_s28 + $0xa2c] sm:$0xf]  ;;  %611 = vst [vmem:[%s4238_s29 + $0x35c] sm:$0xf] %v610_v23 }
  0xa6   : > { %613 = vst [vmem:[%s4238_s29 + $0x360] sm:$0xf] %v612_v24  ;;  %615 = vst [vmem:[%s4238_s29 + $0x364] sm:$0xf] %v614_v25  ;;  %v616_v26 = vld [vmem:[%s4231_s28 + $0xa38] sm:$0xf] }
  0xa7   : > { %v618_v27 = vld [vmem:[%s4231_s28 + $0xa44] sm:$0xf]  ;;  %v620_v28 = vld [vmem:[%s4231_s28 + $0xa50] sm:$0xf]  ;;  %617 = vst [vmem:[%s4238_s29 + $0x368] sm:$0xf] %v616_v26 }
  0xa8   : > { %619 = vst [vmem:[%s4238_s29 + $0x36c] sm:$0xf] %v618_v27  ;;  %621 = vst [vmem:[%s4238_s29 + $0x370] sm:$0xf] %v620_v28  ;;  %v622_v29 = vld [vmem:[%s4231_s28 + $0xa5c] sm:$0xf] }
  0xa9   : > { %v624_v30 = vld [vmem:[%s4231_s28 + $0xa68] sm:$0xf]  ;;  %v626_v31 = vld [vmem:[%s4231_s28 + $0xa74] sm:$0xf]  ;;  %623 = vst [vmem:[%s4238_s29 + $0x374] sm:$0xf] %v622_v29 }
  0xaa   : > { %625 = vst [vmem:[%s4238_s29 + $0x378] sm:$0xf] %v624_v30  ;;  %627 = vst [vmem:[%s4238_s29 + $0x37c] sm:$0xf] %v626_v31  ;;  %v628_v32 = vld [vmem:[%s4231_s28 + $0xa80] sm:$0xf] }
  0xab   : > { %v630_v33 = vld [vmem:[%s4231_s28 + $0xa8c] sm:$0xf]  ;;  %v632_v34 = vld [vmem:[%s4231_s28 + $0xa98] sm:$0xf]  ;;  %629 = vst [vmem:[%s4238_s29 + $0x380] sm:$0xf] %v628_v32 }
  0xac   : > { %631 = vst [vmem:[%s4238_s29 + $0x384] sm:$0xf] %v630_v33  ;;  %633 = vst [vmem:[%s4238_s29 + $0x388] sm:$0xf] %v632_v34  ;;  %v634_v35 = vld [vmem:[%s4231_s28 + $0xaa4] sm:$0xf] }
  0xad   : > { %v636_v36 = vld [vmem:[%s4231_s28 + $0xab0] sm:$0xf]  ;;  %v638_v37 = vld [vmem:[%s4231_s28 + $0xabc] sm:$0xf]  ;;  %635 = vst [vmem:[%s4238_s29 + $0x38c] sm:$0xf] %v634_v35 }
  0xae   : > { %637 = vst [vmem:[%s4238_s29 + $0x390] sm:$0xf] %v636_v36  ;;  %639 = vst [vmem:[%s4238_s29 + $0x394] sm:$0xf] %v638_v37  ;;  %v640_v38 = vld [vmem:[%s4231_s28 + $0xac8] sm:$0xf] }
  0xaf   : > { %v642_v39 = vld [vmem:[%s4231_s28 + $0xad4] sm:$0xf]  ;;  %v644_v40 = vld [vmem:[%s4231_s28 + $0xae0] sm:$0xf]  ;;  %641 = vst [vmem:[%s4238_s29 + $0x398] sm:$0xf] %v640_v38 }
  0xb0   : > { %643 = vst [vmem:[%s4238_s29 + $0x39c] sm:$0xf] %v642_v39  ;;  %645 = vst [vmem:[%s4238_s29 + $0x3a0] sm:$0xf] %v644_v40  ;;  %v646_v41 = vld [vmem:[%s4231_s28 + $0xaec] sm:$0xf] }
  0xb1   : > { %v648_v42 = vld [vmem:[%s4231_s28 + $0xaf8] sm:$0xf]  ;;  %v650_v43 = vld [vmem:[%s4231_s28 + $0xb04] sm:$0xf]  ;;  %647 = vst [vmem:[%s4238_s29 + $0x3a4] sm:$0xf] %v646_v41 }
  0xb2   : > { %649 = vst [vmem:[%s4238_s29 + $0x3a8] sm:$0xf] %v648_v42  ;;  %651 = vst [vmem:[%s4238_s29 + $0x3ac] sm:$0xf] %v650_v43  ;;  %v652_v44 = vld [vmem:[%s4231_s28 + $0xb10] sm:$0xf] }
  0xb3   : > { %v654_v45 = vld [vmem:[%s4231_s28 + $0xb1c] sm:$0xf]  ;;  %v656_v46 = vld [vmem:[%s4231_s28 + $0xb28] sm:$0xf]  ;;  %653 = vst [vmem:[%s4238_s29 + $0x3b0] sm:$0xf] %v652_v44 }
  0xb4   : > { %655 = vst [vmem:[%s4238_s29 + $0x3b4] sm:$0xf] %v654_v45  ;;  %657 = vst [vmem:[%s4238_s29 + $0x3b8] sm:$0xf] %v656_v46  ;;  %v658_v47 = vld [vmem:[%s4231_s28 + $0xb34] sm:$0xf] }
  0xb5   : > { %v660_v48 = vld [vmem:[%s4231_s28 + $0xb40] sm:$0xf]  ;;  %v662_v49 = vld [vmem:[%s4231_s28 + $0xb4c] sm:$0xf]  ;;  %659 = vst [vmem:[%s4238_s29 + $0x3bc] sm:$0xf] %v658_v47 }
  0xb6   : > { %661 = vst [vmem:[%s4238_s29 + $0x3c0] sm:$0xf] %v660_v48  ;;  %663 = vst [vmem:[%s4238_s29 + $0x3c4] sm:$0xf] %v662_v49  ;;  %v664_v50 = vld [vmem:[%s4231_s28 + $0xb58] sm:$0xf] }
  0xb7   : > { %v666_v51 = vld [vmem:[%s4231_s28 + $0xb64] sm:$0xf]  ;;  %v668_v52 = vld [vmem:[%s4231_s28 + $0xb70] sm:$0xf]  ;;  %665 = vst [vmem:[%s4238_s29 + $0x3c8] sm:$0xf] %v664_v50 }
  0xb8   : > { %667 = vst [vmem:[%s4238_s29 + $0x3cc] sm:$0xf] %v666_v51  ;;  %669 = vst [vmem:[%s4238_s29 + $0x3d0] sm:$0xf] %v668_v52  ;;  %v670_v53 = vld [vmem:[%s4231_s28 + $0xb7c] sm:$0xf] }
  0xb9   : > { %v672_v54 = vld [vmem:[%s4231_s28 + $0xb88] sm:$0xf]  ;;  %v674_v55 = vld [vmem:[%s4231_s28 + $0xb94] sm:$0xf]  ;;  %671 = vst [vmem:[%s4238_s29 + $0x3d4] sm:$0xf] %v670_v53 }
  0xba   : > { %673 = vst [vmem:[%s4238_s29 + $0x3d8] sm:$0xf] %v672_v54  ;;  %675 = vst [vmem:[%s4238_s29 + $0x3dc] sm:$0xf] %v674_v55  ;;  %v676_v56 = vld [vmem:[%s4231_s28 + $0xba0] sm:$0xf] }
  0xbb   : > { %v678_v57 = vld [vmem:[%s4231_s28 + $0xbac] sm:$0xf]  ;;  %v680_v58 = vld [vmem:[%s4231_s28 + $0xbb8] sm:$0xf]  ;;  %677 = vst [vmem:[%s4238_s29 + $0x3e0] sm:$0xf] %v676_v56 }
  0xbc   : > { %679 = vst [vmem:[%s4238_s29 + $0x3e4] sm:$0xf] %v678_v57  ;;  %681 = vst [vmem:[%s4238_s29 + $0x3e8] sm:$0xf] %v680_v58  ;;  %v682_v59 = vld [vmem:[%s4231_s28 + $0xbc4] sm:$0xf] }
  0xbd   : > { %v684_v60 = vld [vmem:[%s4231_s28 + $0xbd0] sm:$0xf]  ;;  %v686_v61 = vld [vmem:[%s4231_s28 + $0xbdc] sm:$0xf]  ;;  %683 = vst [vmem:[%s4238_s29 + $0x3ec] sm:$0xf] %v682_v59 }
  0xbe   : > { %685 = vst [vmem:[%s4238_s29 + $0x3f0] sm:$0xf] %v684_v60  ;;  %687 = vst [vmem:[%s4238_s29 + $0x3f4] sm:$0xf] %v686_v61  ;;  %v688_v62 = vld [vmem:[%s4231_s28 + $0xbe8] sm:$0xf] }
  0xbf   : > { %v690_v63 = vld [vmem:[%s4231_s28 + $0xbf4] sm:$0xf]  ;;  %v692_v0 = vld [vmem:[%s4231_s28 + $0xc00] sm:$0xf]  ;;  %689 = vst [vmem:[%s4238_s29 + $0x3f8] sm:$0xf] %v688_v62 }
  0xc0   : > { %691 = vst [vmem:[%s4238_s29 + $0x3fc] sm:$0xf] %v690_v63  ;;  %693 = vst [vmem:[%s4238_s29 + $0x400] sm:$0xf] %v692_v0  ;;  %v694_v1 = vld [vmem:[%s4231_s28 + $0xc0c] sm:$0xf] }
  0xc1   : > { %v696_v2 = vld [vmem:[%s4231_s28 + $0xc18] sm:$0xf]  ;;  %v698_v3 = vld [vmem:[%s4231_s28 + $0xc24] sm:$0xf]  ;;  %695 = vst [vmem:[%s4238_s29 + $0x404] sm:$0xf] %v694_v1 }
  0xc2   : > { %697 = vst [vmem:[%s4238_s29 + $0x408] sm:$0xf] %v696_v2  ;;  %699 = vst [vmem:[%s4238_s29 + $0x40c] sm:$0xf] %v698_v3  ;;  %v700_v4 = vld [vmem:[%s4231_s28 + $0xc30] sm:$0xf] }
  0xc3   : > { %v702_v5 = vld [vmem:[%s4231_s28 + $0xc3c] sm:$0xf]  ;;  %v704_v6 = vld [vmem:[%s4231_s28 + $0xc48] sm:$0xf]  ;;  %701 = vst [vmem:[%s4238_s29 + $0x410] sm:$0xf] %v700_v4 }
  0xc4   : > { %703 = vst [vmem:[%s4238_s29 + $0x414] sm:$0xf] %v702_v5  ;;  %705 = vst [vmem:[%s4238_s29 + $0x418] sm:$0xf] %v704_v6  ;;  %v706_v7 = vld [vmem:[%s4231_s28 + $0xc54] sm:$0xf] }
  0xc5   : > { %v708_v8 = vld [vmem:[%s4231_s28 + $0xc60] sm:$0xf]  ;;  %v710_v9 = vld [vmem:[%s4231_s28 + $0xc6c] sm:$0xf]  ;;  %707 = vst [vmem:[%s4238_s29 + $0x41c] sm:$0xf] %v706_v7 }
  0xc6   : > { %709 = vst [vmem:[%s4238_s29 + $0x420] sm:$0xf] %v708_v8  ;;  %711 = vst [vmem:[%s4238_s29 + $0x424] sm:$0xf] %v710_v9  ;;  %v712_v10 = vld [vmem:[%s4231_s28 + $0xc78] sm:$0xf] }
  0xc7   : > { %v714_v11 = vld [vmem:[%s4231_s28 + $0xc84] sm:$0xf]  ;;  %v716_v12 = vld [vmem:[%s4231_s28 + $0xc90] sm:$0xf]  ;;  %713 = vst [vmem:[%s4238_s29 + $0x428] sm:$0xf] %v712_v10 }
  0xc8   : > { %715 = vst [vmem:[%s4238_s29 + $0x42c] sm:$0xf] %v714_v11  ;;  %717 = vst [vmem:[%s4238_s29 + $0x430] sm:$0xf] %v716_v12  ;;  %v718_v13 = vld [vmem:[%s4231_s28 + $0xc9c] sm:$0xf] }
  0xc9   : > { %v720_v14 = vld [vmem:[%s4231_s28 + $0xca8] sm:$0xf]  ;;  %v722_v15 = vld [vmem:[%s4231_s28 + $0xcb4] sm:$0xf]  ;;  %719 = vst [vmem:[%s4238_s29 + $0x434] sm:$0xf] %v718_v13 }
  0xca   : > { %721 = vst [vmem:[%s4238_s29 + $0x438] sm:$0xf] %v720_v14  ;;  %723 = vst [vmem:[%s4238_s29 + $0x43c] sm:$0xf] %v722_v15  ;;  %v724_v16 = vld [vmem:[%s4231_s28 + $0xcc0] sm:$0xf] }
  0xcb   : > { %v726_v17 = vld [vmem:[%s4231_s28 + $0xccc] sm:$0xf]  ;;  %v728_v18 = vld [vmem:[%s4231_s28 + $0xcd8] sm:$0xf]  ;;  %725 = vst [vmem:[%s4238_s29 + $0x440] sm:$0xf] %v724_v16 }
  0xcc   : > { %727 = vst [vmem:[%s4238_s29 + $0x444] sm:$0xf] %v726_v17  ;;  %729 = vst [vmem:[%s4238_s29 + $0x448] sm:$0xf] %v728_v18  ;;  %v730_v19 = vld [vmem:[%s4231_s28 + $0xce4] sm:$0xf] }
  0xcd   : > { %v732_v20 = vld [vmem:[%s4231_s28 + $0xcf0] sm:$0xf]  ;;  %v734_v21 = vld [vmem:[%s4231_s28 + $0xcfc] sm:$0xf]  ;;  %731 = vst [vmem:[%s4238_s29 + $0x44c] sm:$0xf] %v730_v19 }
  0xce   : > { %733 = vst [vmem:[%s4238_s29 + $0x450] sm:$0xf] %v732_v20  ;;  %735 = vst [vmem:[%s4238_s29 + $0x454] sm:$0xf] %v734_v21  ;;  %v736_v22 = vld [vmem:[%s4231_s28 + $0xd08] sm:$0xf] }
  0xcf   : > { %v738_v23 = vld [vmem:[%s4231_s28 + $0xd14] sm:$0xf]  ;;  %v740_v24 = vld [vmem:[%s4231_s28 + $0xd20] sm:$0xf]  ;;  %737 = vst [vmem:[%s4238_s29 + $0x458] sm:$0xf] %v736_v22 }
  0xd0   : > { %739 = vst [vmem:[%s4238_s29 + $0x45c] sm:$0xf] %v738_v23  ;;  %741 = vst [vmem:[%s4238_s29 + $0x460] sm:$0xf] %v740_v24  ;;  %v742_v25 = vld [vmem:[%s4231_s28 + $0xd2c] sm:$0xf] }
  0xd1   : > { %v744_v26 = vld [vmem:[%s4231_s28 + $0xd38] sm:$0xf]  ;;  %v746_v27 = vld [vmem:[%s4231_s28 + $0xd44] sm:$0xf]  ;;  %743 = vst [vmem:[%s4238_s29 + $0x464] sm:$0xf] %v742_v25 }
  0xd2   : > { %745 = vst [vmem:[%s4238_s29 + $0x468] sm:$0xf] %v744_v26  ;;  %747 = vst [vmem:[%s4238_s29 + $0x46c] sm:$0xf] %v746_v27  ;;  %v748_v28 = vld [vmem:[%s4231_s28 + $0xd50] sm:$0xf] }
  0xd3   : > { %v750_v29 = vld [vmem:[%s4231_s28 + $0xd5c] sm:$0xf]  ;;  %v752_v30 = vld [vmem:[%s4231_s28 + $0xd68] sm:$0xf]  ;;  %749 = vst [vmem:[%s4238_s29 + $0x470] sm:$0xf] %v748_v28 }
  0xd4   : > { %751 = vst [vmem:[%s4238_s29 + $0x474] sm:$0xf] %v750_v29  ;;  %753 = vst [vmem:[%s4238_s29 + $0x478] sm:$0xf] %v752_v30  ;;  %v754_v31 = vld [vmem:[%s4231_s28 + $0xd74] sm:$0xf] }
  0xd5   : > { %755 = vst [vmem:[%s4238_s29 + $0x47c] sm:$0xf] %v754_v31 }
  0xd6 PF: > { %p3409_p8 = scmp.ge.s32.totalorder %s4161_s16, 1  ;;  %p1359_p9 = scmp.lt.s32.totalorder %s4161_s16, 4 }
  0xd8   : > { %p1360_p10 = pnand %p3409_p8, %p1359_p9 }
  0xd9   : > { %s1366_s30 = sand.u32 (!%p1360_p10), 1, %s4145_s12   ;;  %v3959_v32 = vld [vmem:[%s5098_s0 + $0x4] ss:$72 sps:$4 sm:$0xff] (!%p1360_p10)   ;;  %v3957_v0 = vld [vmem:[%s5098_s0] ss:$72 sps:$4 sm:$0xff] (!%p1360_p10)   ;;  %p1404_p11 = scmp.lt.s32.totalorder (!%p1360_p10), %s4153_s14, 2 }
  0xda   : > { %1363 = sbr.rel (%p1360_p10) target bundleno = 618 (0x26a), region = 69  ;;  %v3962_v33 = vld [vmem:[%s5098_s0 + $0xc] ss:$72 sps:$4 sm:$0xff] (!%p1360_p10)   ;;  %2816 = vmatprep.mubr.bf16.mxu0 (!%p1360_p10), %v3959_v32  ;;  %v3960_v2 = vld [vmem:[%s5098_s0 + $0x8] ss:$72 sps:$4 sm:$0xff] (!%p1360_p10)   ;;  %s3410_s19 = sshll.u32 (!%p1360_p10), %s1366_s30, 4 }
  0xdb   : > { %s3884_s4 = smul.u32 (!%p1360_p10), 1152, %s1366_s30  ;;  %2865 = vmatprep.mubr.bf16.mxu1 (!%p1360_p10), %v3962_v33  ;;  %v3983_v4 = vld [vmem:[%s5098_s0 + $0x94] ss:$72 sps:$4 sm:$0xff] (!%p1360_p10)   ;;  %v3985_v11 = vld [vmem:[%s5098_s0 + $0x90] ss:$72 sps:$4 sm:$0xff] (!%p1360_p10)   ;;  %s1396_s20 = scalar_lea.vmem (!%p1360_p10), [#allocation3], %s3410_s19 }
  0xdc   : > { %v3988_v28 = vld [vmem:[%s5098_s0 + $0x9c] ss:$72 sps:$4 sm:$0xff] (!%p1360_p10)   ;;  %v3992_v31 = vld [vmem:[%s5098_s0 + $0x98] ss:$72 sps:$4 sm:$0xff] (!%p1360_p10)  }
  0xdd   : > { %s4822_s9 = scalar_lea.vmem (!%p1360_p10), [#allocation2], %s3884_s4 }
  0xde   : > { %v3925_v34 = vld [vmem:[%s4822_s9 + $0x40] sm:$0xff] (!%p1360_p10)   ;;  %v3929_v38 = vld [vmem:[%s4822_s9 + $0x48] sm:$0xff] (!%p1360_p10)   ;;  %v3933_v42 = vld [vmem:[%s4822_s9 + $0x50] sm:$0xff] (!%p1360_p10)  }
  0xdf   : > { %v3926_v35 = vld [vmem:[%s4822_s9 + $0xc0] sm:$0xff] (!%p1360_p10)   ;;  %3615 = vmatprep.subr.bf16.mxu0 (!%p1360_p10), %v3925_v34  ;;  %v3930_v39 = vld [vmem:[%s4822_s9 + $0xc8] sm:$0xff] (!%p1360_p10)   ;;  %v3934_v43 = vld [vmem:[%s4822_s9 + $0xd0] sm:$0xff] (!%p1360_p10)  }
  0xe0   : > { %v3927_v36 = vld [vmem:[%s4822_s9] sm:$0xff] (!%p1360_p10)   ;;  %3643 = vmatprep.subr.bf16.mxu1 (!%p1360_p10), %v3926_v35  ;;  %v3931_v40 = vld [vmem:[%s4822_s9 + $0x8] sm:$0xff] (!%p1360_p10)   ;;  %v3935_v44 = vld [vmem:[%s4822_s9 + $0x10] sm:$0xff] (!%p1360_p10)  }
  0xe1   : > { %v3928_v37 = vld [vmem:[%s4822_s9 + $0x80] sm:$0xff]   ;;  %3616 = vmatpush3.bf16.msra.mxu0 %v3927_v36  ;;  %v3932_v41 = vld [vmem:[%s4822_s9 + $0x88] sm:$0xff]   ;;  %v3936_v45 = vld [vmem:[%s4822_s9 + $0x90] sm:$0xff]   ;;  %s1405_s10 = scalar_select %p1404_p11, %s4153_s14, 2 }
  0xe2   : > { %3644 = vmatpush3.bf16.msra.mxu1 %v3928_v37  ;;  %3617 = vmatprep.subr.bf16.mxu0 %v3929_v38  ;;  %v3937_v46 = vld [vmem:[%s4822_s9 + $0x58] sm:$0xff]   ;;  %v3941_v50 = vld [vmem:[%s4822_s9 + $0x60] sm:$0xff]   ;;  %v3945_v54 = vld [vmem:[%s4822_s9 + $0x68] sm:$0xff]   ;;  %s3597_s23 = sshll.u32 (%p4218_p6), %s4153_s14, 2 }
  0xe3   : > { %3645 = vmatprep.subr.bf16.mxu1 %v3930_v39  ;;  %v3938_v47 = vld [vmem:[%s4822_s9 + $0xd8] sm:$0xff]   ;;  %v3942_v51 = vld [vmem:[%s4822_s9 + $0xe0] sm:$0xff]   ;;  %v3946_v55 = vld [vmem:[%s4822_s9 + $0xe8] sm:$0xff]   ;;  %s3260_s24 = scalar_lea.vmem (%p4218_p6), %s5101_s3, %s3597_s23 }
  0xe4   : > { %v3939_v48 = vld [vmem:[%s4822_s9 + $0x18] sm:$0xff]   ;;  %v3943_v52 = vld [vmem:[%s4822_s9 + $0x20] sm:$0xff]   ;;  %v3947_v56 = vld [vmem:[%s4822_s9 + $0x28] sm:$0xff]  }
  0xe5   : > { %3618 = vmatpush3.bf16.msra.mxu0 %v3931_v40  ;;  %v3940_v49 = vld [vmem:[%s4822_s9 + $0x98] sm:$0xff]   ;;  %v3944_v53 = vld [vmem:[%s4822_s9 + $0xa0] sm:$0xff]   ;;  %v3948_v57 = vld [vmem:[%s4822_s9 + $0xa8] sm:$0xff]  }
  0xe6   : > { %3646 = vmatpush3.bf16.msra.mxu1 %v3932_v41  ;;  %3619 = vmatprep.subr.bf16.mxu0 %v3933_v42  ;;  %v3949_v58 = vld [vmem:[%s4822_s9 + $0x70] sm:$0xff]   ;;  %v3953_v62 = vld [vmem:[%s4822_s9 + $0x78] sm:$0xff]   ;;  %v3963_v5 = vld [vmem:[%s4822_s9 + $0x140] sm:$0xff]  }
  0xe7   : > { %3647 = vmatprep.subr.bf16.mxu1 %v3934_v43  ;;  %v3950_v59 = vld [vmem:[%s4822_s9 + $0xf0] sm:$0xff]   ;;  %v3954_v63 = vld [vmem:[%s4822_s9 + $0xf8] sm:$0xff]   ;;  %v3964_v6 = vld [vmem:[%s4822_s9 + $0x1c0] sm:$0xff]  }
  0xe8   : > { %v3951_v60 = vld [vmem:[%s4822_s9 + $0x30] sm:$0xff]   ;;  %v3955_v1 = vld [vmem:[%s4822_s9 + $0x38] sm:$0xff]   ;;  %v3965_v7 = vld [vmem:[%s4822_s9 + $0x100] sm:$0xff]  }
  0xe9   : > { %3620 = vmatpush3.bf16.msra.mxu0 %v3935_v44  ;;  %v3952_v61 = vld [vmem:[%s4822_s9 + $0xb0] sm:$0xff]   ;;  %v3956_v3 = vld [vmem:[%s4822_s9 + $0xb8] sm:$0xff]   ;;  %v3966_v8 = vld [vmem:[%s4822_s9 + $0x180] sm:$0xff]  }
  0xea   : > { %3648 = vmatpush3.bf16.msra.mxu1 %v3936_v45  ;;  %3621 = vmatprep.subr.bf16.mxu0 %v3937_v46  ;;  %v3967_v9 = vld [vmem:[%s4822_s9 + $0x148] sm:$0xff]   ;;  %v3971_v14 = vld [vmem:[%s4822_s9 + $0x150] sm:$0xff]   ;;  %v3975_v18 = vld [vmem:[%s4822_s9 + $0x158] sm:$0xff]  }
  0xeb   : > { %3649 = vmatprep.subr.bf16.mxu1 %v3938_v47  ;;  %v3968_v10 = vld [vmem:[%s4822_s9 + $0x1c8] sm:$0xff]   ;;  %v3972_v15 = vld [vmem:[%s4822_s9 + $0x1d0] sm:$0xff]   ;;  %v3976_v19 = vld [vmem:[%s4822_s9 + $0x1d8] sm:$0xff]  }
  0xec   : > { %v3969_v12 = vld [vmem:[%s4822_s9 + $0x108] sm:$0xff]   ;;  %v3973_v16 = vld [vmem:[%s4822_s9 + $0x110] sm:$0xff]   ;;  %v3977_v20 = vld [vmem:[%s4822_s9 + $0x118] sm:$0xff]  }
  0xed   : > { %3622 = vmatpush3.bf16.msra.mxu0 %v3939_v48  ;;  %v3970_v13 = vld [vmem:[%s4822_s9 + $0x188] sm:$0xff]   ;;  %v3974_v17 = vld [vmem:[%s4822_s9 + $0x190] sm:$0xff]   ;;  %v3978_v21 = vld [vmem:[%s4822_s9 + $0x198] sm:$0xff]  }
  0xee   : > { %3650 = vmatpush3.bf16.msra.mxu1 %v3940_v49  ;;  %3623 = vmatprep.subr.bf16.mxu0 %v3941_v50  ;;  %v3979_v22 = vld [vmem:[%s4822_s9 + $0x160] sm:$0xff]   ;;  %v3986_v26 = vld [vmem:[%s4822_s9 + $0x168] sm:$0xff]   ;;  %v3993_v32 = vld [vmem:[%s4822_s9 + $0x170] sm:$0xff]  }
  0xef   : > { %3651 = vmatprep.subr.bf16.mxu1 %v3942_v51  ;;  %v3980_v23 = vld [vmem:[%s4822_s9 + $0x1e0] sm:$0xff]   ;;  %v3987_v27 = vld [vmem:[%s4822_s9 + $0x1e8] sm:$0xff]   ;;  %v3994_v33 = vld [vmem:[%s4822_s9 + $0x1f0] sm:$0xff]  }
  0xf0   : > { %v3981_v24 = vld [vmem:[%s4822_s9 + $0x120] sm:$0xff]   ;;  %v3990_v29 = vld [vmem:[%s4822_s9 + $0x128] sm:$0xff]   ;;  %v3995_v34 = vld [vmem:[%s4822_s9 + $0x130] sm:$0xff]  }
  0xf1   : > { %3624 = vmatpush3.bf16.msra.mxu0 %v3943_v52  ;;  %v3982_v25 = vld [vmem:[%s4822_s9 + $0x1a0] sm:$0xff]   ;;  %v3991_v30 = vld [vmem:[%s4822_s9 + $0x1a8] sm:$0xff]   ;;  %v3996_v35 = vld [vmem:[%s4822_s9 + $0x1b0] sm:$0xff]  }
  0xf2   : > { %3652 = vmatpush3.bf16.msra.mxu1 %v3944_v53  ;;  %3625 = vmatprep.subr.bf16.mxu0 %v3945_v54  ;;  %v3997_v36 = vld [vmem:[%s4822_s9 + $0x178] sm:$0xff]   ;;  %v4007_v44 = vld [vmem:[%s4822_s9 + $0x240] sm:$0xff]   ;;  %v4011_v48 = vld [vmem:[%s4822_s9 + $0x248] sm:$0xff]  }
  0xf3   : > { %3653 = vmatprep.subr.bf16.mxu1 %v3946_v55  ;;  %v3998_v37 = vld [vmem:[%s4822_s9 + $0x1f8] sm:$0xff]   ;;  %v4008_v45 = vld [vmem:[%s4822_s9 + $0x2c0] sm:$0xff]   ;;  %v4012_v49 = vld [vmem:[%s4822_s9 + $0x2c8] sm:$0xff]  }
  0xf4   : > { %v3999_v38 = vld [vmem:[%s4822_s9 + $0x138] sm:$0xff]   ;;  %v4009_v46 = vld [vmem:[%s4822_s9 + $0x200] sm:$0xff]   ;;  %v4013_v50 = vld [vmem:[%s4822_s9 + $0x208] sm:$0xff]  }
  0xf5   : > { %3626 = vmatpush3.bf16.msra.mxu0 %v3947_v56  ;;  %v4000_v39 = vld [vmem:[%s4822_s9 + $0x1b8] sm:$0xff]   ;;  %v4010_v47 = vld [vmem:[%s4822_s9 + $0x280] sm:$0xff]   ;;  %v4014_v51 = vld [vmem:[%s4822_s9 + $0x288] sm:$0xff]  }
  0xf6   : > { %3654 = vmatpush3.bf16.msra.mxu1 %v3948_v57  ;;  %3627 = vmatprep.subr.bf16.mxu0 %v3949_v58  ;;  %v4001_v40 = vld [vmem:[%s5098_s0 + $0x10] ss:$72 sps:$4 sm:$0xff]   ;;  %v4003_v41 = vld [vmem:[%s5098_s0 + $0x14] ss:$72 sps:$4 sm:$0xff]   ;;  %v4015_v52 = vld [vmem:[%s5098_s0 + $0xa4] ss:$72 sps:$4 sm:$0xff]  }
  0xf7   : > { %3655 = vmatprep.subr.bf16.mxu1 %v3950_v59  ;;  %v4004_v42 = vld [vmem:[%s5098_s0 + $0x18] ss:$72 sps:$4 sm:$0xff]   ;;  %v4006_v43 = vld [vmem:[%s5098_s0 + $0x1c] ss:$72 sps:$4 sm:$0xff]   ;;  %v4018_v54 = vld [vmem:[%s4822_s9 + $0x250] sm:$0xff]  }
  0xf8   : > { %v4017_v53 = vld [vmem:[%s5098_s0 + $0xa0] ss:$72 sps:$4 sm:$0xff]   ;;  %v4019_v55 = vld [vmem:[%s4822_s9 + $0x2d0] sm:$0xff]  }
  0xf9   : > { %3628 = vmatpush3.bf16.msra.mxu0 %v3951_v60  ;;  %v4020_v56 = vld [vmem:[%s5098_s0 + $0xac] ss:$72 sps:$4 sm:$0xff]   ;;  %v4024_v59 = vld [vmem:[%s5098_s0 + $0xa8] ss:$72 sps:$4 sm:$0xff]   ;;  %v4025_v60 = vld [vmem:[%s4822_s9 + $0x258] sm:$0xff]  }
  0xfa   : > { %3656 = vmatpush3.bf16.msra.mxu1 %v3952_v61  ;;  %3629 = vmatprep.subr.bf16.mxu0 %v3953_v62  ;;  %v4022_v57 = vld [vmem:[%s4822_s9 + $0x210] sm:$0xff]   ;;  %v4026_v61 = vld [vmem:[%s4822_s9 + $0x2d8] sm:$0xff]  }
  0xfb   : > { %3657 = vmatprep.subr.bf16.mxu1 %v3954_v63  ;;  %v4023_v58 = vld [vmem:[%s4822_s9 + $0x290] sm:$0xff]   ;;  %v4027_v62 = vld [vmem:[%s4822_s9 + $0x218] sm:$0xff]  }
  0xfc   : > { %v4028_v63 = vld [vmem:[%s4822_s9 + $0x298] sm:$0xff]  }
  0xfd   : > { %3630 = vmatpush3.bf16.msra.mxu0 %v3955_v1  ;;  %v4030_v1 = vld [vmem:[%s4822_s9 + $0x2e0] sm:$0xff]  }
  0xfe   : > { %3658 = vmatpush3.bf16.msra.mxu1 %v3956_v3  ;;  %3671 = vmatprep.subr.bf16.mxu0 %v3963_v5  ;;  %v4032_v3 = vld [vmem:[%s4822_s9 + $0x2a0] sm:$0xff]   ;;  %v4034_v5 = vld [vmem:[%s4822_s9 + $0x2e8] sm:$0xff]  }
  0xff   : > { %3699 = vmatprep.subr.bf16.mxu1 %v3964_v6  ;;  %v4035_v6 = vld [vmem:[%s4822_s9 + $0x228] sm:$0xff]  }
 0x100   : > { %2817 = vmatmul.mubr.bf16.vlgmr.msra.gmra.mrb[0].mxu0 %v3957_v0  ;;  %v4029_v0 = vld [vmem:[%s4822_s9 + $0x260] sm:$0xff]  }
 0x101   : > { %2866 = vmatmul.mubr.bf16.vlgmr.msra.gmra.mrb[0].mxu1 %v3960_v2  ;;  %3672 = vmatpush3.bf16.msra.mxu0 %v3965_v7  ;;  %v4031_v2 = vld [vmem:[%s4822_s9 + $0x220] sm:$0xff]   ;;  %v4036_v7 = vld [vmem:[%s4822_s9 + $0x2a8] sm:$0xff]  }
 0x102   : > { %3700 = vmatpush3.bf16.msra.mxu1 %v3966_v8  ;;  %2824 = vmatprep.mubr.bf16.mxu0 %v3983_v4  ;;  %v4033_v4 = vld [vmem:[%s4822_s9 + $0x268] sm:$0xff]   ;;  %v4037_v8 = vld [vmem:[%s4822_s9 + $0x270] sm:$0xff]  }
 0x103   : > { %3673 = vmatprep.subr.bf16.mxu0 %v3967_v9  ;;  %3701 = vmatprep.subr.bf16.mxu1 %v3968_v10  ;;  %v4038_v9 = vld [vmem:[%s4822_s9 + $0x2f0] sm:$0xff]  }
 0x104   : > { %2873 = vmatprep.mubr.bf16.mxu1 %v3988_v28  ;;  %v4039_v10 = vld [vmem:[%s4822_s9 + $0x230] sm:$0xff]  }
 0x105   : > { %3674 = vmatpush3.bf16.msra.mxu0 %v3969_v12  ;;  %v4041_v12 = vld [vmem:[%s4822_s9 + $0x278] sm:$0xff]  }
 0x106   : > { %3702 = vmatpush3.bf16.msra.mxu1 %v3970_v13  ;;  %3675 = vmatprep.subr.bf16.mxu0 %v3971_v14  ;;  %v4042_v13 = vld [vmem:[%s4822_s9 + $0x2f8] sm:$0xff]  }
 0x107   : > { %3703 = vmatprep.subr.bf16.mxu1 %v3972_v15  ;;  %v4043_v14 = vld [vmem:[%s4822_s9 + $0x238] sm:$0xff]  }
 0x108   : > { %2825 = vmatmul.mubr.bf16.gmra.mrb[4].mxu0 %v3985_v11  ;;  %v4040_v11 = vld [vmem:[%s4822_s9 + $0x2b0] sm:$0xff]   ;;  %v4044_v15 = vld [vmem:[%s4822_s9 + $0x2b8] sm:$0xff]  }
 0x109   : > { %3676 = vmatpush3.bf16.msra.mxu0 %v3973_v16  ;;  %2874 = vmatmul.mubr.bf16.gmra.mrb[4].mxu1 %v3992_v31  ;;  %v4045_v16 = vld [vmem:[%s5098_s0 + $0x20] ss:$72 sps:$4 sm:$0xff]   ;;  %v4059_v28 = vld [vmem:[%s5098_s0 + $0xb4] ss:$72 sps:$4 sm:$0xff]  }
 0x10a   : > { %3704 = vmatpush3.bf16.msra.mxu1 %v3974_v17  ;;  %3677 = vmatprep.subr.bf16.mxu0 %v3975_v18  ;;  %v4047_v17 = vld [vmem:[%s5098_s0 + $0x24] ss:$72 sps:$4 sm:$0xff]   ;;  %v4048_v18 = vld [vmem:[%s5098_s0 + $0x28] ss:$72 sps:$4 sm:$0xff]  }
 0x10b   : > { %3705 = vmatprep.subr.bf16.mxu1 %v3976_v19  ;;  %2914 = vmatprep.mubr.bf16.mxu0 %v4003_v41  ;;  %v4050_v19 = vld [vmem:[%s5098_s0 + $0x2c] ss:$72 sps:$4 sm:$0xff]   ;;  %v4074_v41 = vld [vmem:[%s4822_s9 + $0x3e0] sm:$0xff]  }
 0x10c   : > { %2963 = vmatprep.mubr.bf16.mxu1 %v4006_v43  ;;  %v4063_v31 = vld [vmem:[%s4822_s9 + $0x3d0] sm:$0xff]   ;;  %v4076_v43 = vld [vmem:[%s4822_s9 + $0x3a0] sm:$0xff]  }
 0x10d   : > { %3678 = vmatpush3.bf16.msra.mxu0 %v3977_v20  ;;  %v4051_v20 = vld [vmem:[%s4822_s9 + $0x340] sm:$0xff]  }
 0x10e   : > { %3706 = vmatpush3.bf16.msra.mxu1 %v3978_v21  ;;  %3679 = vmatprep.subr.bf16.mxu0 %v3979_v22  ;;  %v4052_v21 = vld [vmem:[%s4822_s9 + $0x3c0] sm:$0xff]  }
 0x10f   : > { %3707 = vmatprep.subr.bf16.mxu1 %v3980_v23  ;;  %v4053_v22 = vld [vmem:[%s4822_s9 + $0x300] sm:$0xff]  }
 0x110   : > { %v4054_v23 = vld [vmem:[%s4822_s9 + $0x380] sm:$0xff]  }
 0x111   : > { %3680 = vmatpush3.bf16.msra.mxu0 %v3981_v24  ;;  %v4055_v24 = vld [vmem:[%s4822_s9 + $0x348] sm:$0xff]  }
 0x112   : > { %3708 = vmatpush3.bf16.msra.mxu1 %v3982_v25  ;;  %3681 = vmatprep.subr.bf16.mxu0 %v3986_v26  ;;  %v4056_v25 = vld [vmem:[%s4822_s9 + $0x3c8] sm:$0xff]  }
 0x113   : > { %3709 = vmatprep.subr.bf16.mxu1 %v3987_v27  ;;  %v4057_v26 = vld [vmem:[%s4822_s9 + $0x308] sm:$0xff]  }
 0x114   : > { %v4058_v27 = vld [vmem:[%s4822_s9 + $0x388] sm:$0xff]  }
 0x115   : > { %3682 = vmatpush3.bf16.msra.mxu0 %v3990_v29  ;;  %v4061_v29 = vld [vmem:[%s5098_s0 + $0xb0] ss:$72 sps:$4 sm:$0xff]  }
 0x116   : > { %3710 = vmatpush3.bf16.msra.mxu1 %v3991_v30  ;;  %3683 = vmatprep.subr.bf16.mxu0 %v3993_v32  ;;  %v4062_v30 = vld [vmem:[%s4822_s9 + $0x350] sm:$0xff]   ;;  %v4064_v32 = vld [vmem:[%s5098_s0 + $0xbc] ss:$72 sps:$4 sm:$0xff]  }
 0x117   : > { %3711 = vmatprep.subr.bf16.mxu1 %v3994_v33  ;;  %v4066_v33 = vld [vmem:[%s4822_s9 + $0x310] sm:$0xff]  }
 0x119   : > { %3684 = vmatpush3.bf16.msra.mxu0 %v3995_v34  ;;  %v4067_v34 = vld [vmem:[%s4822_s9 + $0x390] sm:$0xff]  }
 0x11a   : > { %3712 = vmatpush3.bf16.msra.mxu1 %v3996_v35  ;;  %3685 = vmatprep.subr.bf16.mxu0 %v3997_v36  ;;  %v4068_v35 = vld [vmem:[%s5098_s0 + $0xb8] ss:$72 sps:$4 sm:$0xff]  }
 0x11b   : > { %3713 = vmatprep.subr.bf16.mxu1 %v3998_v37  ;;  %v4069_v36 = vld [vmem:[%s4822_s9 + $0x358] sm:$0xff]  }
 0x11c   : > { %v4070_v37 = vld [vmem:[%s4822_s9 + $0x3d8] sm:$0xff]  }
 0x11d   : > { %3686 = vmatpush3.bf16.msra.mxu0 %v3999_v38  ;;  %v4071_v38 = vld [vmem:[%s4822_s9 + $0x318] sm:$0xff]  }
 0x11e   : > { %3714 = vmatpush3.bf16.msra.mxu1 %v4000_v39  ;;  %3727 = vmatprep.subr.bf16.mxu0 %v4007_v44  ;;  %v4072_v39 = vld [vmem:[%s4822_s9 + $0x398] sm:$0xff]   ;;  %v4077_v44 = vld [vmem:[%s4822_s9 + $0x368] sm:$0xff]  }
 0x11f   : > { %3755 = vmatprep.subr.bf16.mxu1 %v4008_v45  ;;  %v4078_v45 = vld [vmem:[%s4822_s9 + $0x3e8] sm:$0xff]  }
 0x120   : > { %2915 = vmatmul.mubr.bf16.vlgmr.msra.gmra.mrb[8].mxu0 %v4001_v40  ;;  %v4073_v40 = vld [vmem:[%s4822_s9 + $0x360] sm:$0xff]  }
 0x121   : > { %2964 = vmatmul.mubr.bf16.vlgmr.msra.gmra.mrb[8].mxu1 %v4004_v42  ;;  %3728 = vmatpush3.bf16.msra.mxu0 %v4009_v46  ;;  %v4075_v42 = vld [vmem:[%s4822_s9 + $0x320] sm:$0xff]   ;;  %v4079_v46 = vld [vmem:[%s4822_s9 + $0x328] sm:$0xff]  }
 0x122   : > { %3756 = vmatpush3.bf16.msra.mxu1 %v4010_v47  ;;  %3729 = vmatprep.subr.bf16.mxu0 %v4011_v48  ;;  %v4080_v47 = vld [vmem:[%s4822_s9 + $0x3a8] sm:$0xff]   ;;  %v4081_v48 = vld [vmem:[%s4822_s9 + $0x370] sm:$0xff]  }
 0x123   : > { %3757 = vmatprep.subr.bf16.mxu1 %v4012_v49  ;;  %2922 = vmatprep.mubr.bf16.mxu0 %v4015_v52  ;;  %v4082_v49 = vld [vmem:[%s4822_s9 + $0x3f0] sm:$0xff]   ;;  %v4085_v52 = vld [vmem:[%s4822_s9 + $0x378] sm:$0xff]  }
 0x124   : > { %2971 = vmatprep.mubr.bf16.mxu1 %v4020_v56  ;;  %v4089_v56 = vld [vmem:[%s5098_s0 + $0x30] ss:$72 sps:$4 sm:$0xff]  }
 0x125   : > { %3730 = vmatpush3.bf16.msra.mxu0 %v4013_v50  ;;  %v4083_v50 = vld [vmem:[%s4822_s9 + $0x330] sm:$0xff]  }
 0x126   : > { %3758 = vmatpush3.bf16.msra.mxu1 %v4014_v51  ;;  %3731 = vmatprep.subr.bf16.mxu0 %v4018_v54  ;;  %v4084_v51 = vld [vmem:[%s4822_s9 + $0x3b0] sm:$0xff]   ;;  %v4087_v54 = vld [vmem:[%s4822_s9 + $0x338] sm:$0xff]  }
 0x127   : > { %3759 = vmatprep.subr.bf16.mxu1 %v4019_v55  ;;  %v4088_v55 = vld [vmem:[%s4822_s9 + $0x3b8] sm:$0xff]  }
 0x128   : > { %2923 = vmatmul.mubr.bf16.gmra.mrb[12].mxu0 %v4017_v53  ;;  %v4086_v53 = vld [vmem:[%s4822_s9 + $0x3f8] sm:$0xff]  }
 0x129   : > { %3732 = vmatpush3.bf16.msra.mxu0 %v4022_v57  ;;  %2972 = vmatmul.mubr.bf16.gmra.mrb[12].mxu1 %v4024_v59  ;;  %v4091_v57 = vld [vmem:[%s5098_s0 + $0x34] ss:$72 sps:$4 sm:$0xff]  }
 0x12a   : > { %3760 = vmatpush3.bf16.msra.mxu1 %v4023_v58  ;;  %3733 = vmatprep.subr.bf16.mxu0 %v4025_v60  ;;  %v4092_v58 = vld [vmem:[%s5098_s0 + $0x38] ss:$72 sps:$4 sm:$0xff]   ;;  %v4094_v59 = vld [vmem:[%s5098_s0 + $0x3c] ss:$72 sps:$4 sm:$0xff]  }
 0x12b   : > { %3761 = vmatprep.subr.bf16.mxu1 %v4026_v61  ;;  %3012 = vmatprep.mubr.bf16.mxu0 %v4047_v17  ;;  %v4095_v60 = vld [vmem:[%s4822_s9 + $0x440] sm:$0xff]   ;;  %v4116_v17 = vld [vmem:[%s4822_s9 + $0x438] sm:$0xff]  }
 0x12c   : > { %3061 = vmatprep.mubr.bf16.mxu1 %v4050_v19  ;;  %v4096_v61 = vld [vmem:[%s4822_s9 + $0x400] sm:$0xff]   ;;  %v4120_v19 = vld [vmem:[%s5098_s0 + $0xd0] ss:$72 sps:$4 sm:$0xff]  }
 0x12d   : > { %3734 = vmatpush3.bf16.msra.mxu0 %v4027_v62  ;;  %v4097_v62 = vld [vmem:[%s4822_s9 + $0x448] sm:$0xff]  }
 0x12e   : > { %3762 = vmatpush3.bf16.msra.mxu1 %v4028_v63  ;;  %3735 = vmatprep.subr.bf16.mxu0 %v4029_v0  ;;  %v4098_v63 = vld [vmem:[%s4822_s9 + $0x408] sm:$0xff]  }
 0x12f   : > { %3763 = vmatprep.subr.bf16.mxu1 %v4030_v1  ;;  %v4099_v0 = vld [vmem:[%s5098_s0 + $0xc4] ss:$72 sps:$4 sm:$0xff]   ;;  %v4101_v1 = vld [vmem:[%s5098_s0 + $0xc0] ss:$72 sps:$4 sm:$0xff]  }
 0x131   : > { %3736 = vmatpush3.bf16.msra.mxu0 %v4031_v2  ;;  %v4102_v2 = vld [vmem:[%s4822_s9 + $0x450] sm:$0xff]  }
 0x132   : > { %3764 = vmatpush3.bf16.msra.mxu1 %v4032_v3  ;;  %3737 = vmatprep.subr.bf16.mxu0 %v4033_v4  ;;  %v4103_v3 = vld [vmem:[%s5098_s0 + $0xcc] ss:$72 sps:$4 sm:$0xff]  }
 0x133   : > { %3765 = vmatprep.subr.bf16.mxu1 %v4034_v5  ;;  %v4105_v4 = vld [vmem:[%s4822_s9 + $0x410] sm:$0xff]  }
 0x134   : > { %v4106_v5 = vld [vmem:[%s5098_s0 + $0xc8] ss:$72 sps:$4 sm:$0xff]  }
 0x135   : > { %3738 = vmatpush3.bf16.msra.mxu0 %v4035_v6  ;;  %v4107_v6 = vld [vmem:[%s4822_s9 + $0x458] sm:$0xff]  }
 0x136   : > { %3766 = vmatpush3.bf16.msra.mxu1 %v4036_v7  ;;  %3739 = vmatprep.subr.bf16.mxu0 %v4037_v8  ;;  %v4108_v7 = vld [vmem:[%s4822_s9 + $0x418] sm:$0xff]   ;;  %v4109_v8 = vld [vmem:[%s4822_s9 + $0x460] sm:$0xff]  }
 0x137   : > { %3767 = vmatprep.subr.bf16.mxu1 %v4038_v9  ;;  %v4110_v9 = vld [vmem:[%s4822_s9 + $0x420] sm:$0xff]  }
 0x139   : > { %3740 = vmatpush3.bf16.msra.mxu0 %v4039_v10  ;;  %v4111_v10 = vld [vmem:[%s4822_s9 + $0x468] sm:$0xff]  }
 0x13a   : > { %3768 = vmatpush3.bf16.msra.mxu1 %v4040_v11  ;;  %3741 = vmatprep.subr.bf16.mxu0 %v4041_v12  ;;  %v4112_v11 = vld [vmem:[%s4822_s9 + $0x428] sm:$0xff]  }
 0x13b   : > { %3769 = vmatprep.subr.bf16.mxu1 %v4042_v13  ;;  %v4119_v12 = vld [vmem:[%s5098_s0 + $0x44] ss:$72 sps:$4 sm:$0xff]   ;;  %v4113_v13 = vld [vmem:[%s4822_s9 + $0x470] sm:$0xff]  }
 0x13d   : > { %3742 = vmatpush3.bf16.msra.mxu0 %v4043_v14  ;;  %v4122_v14 = vld [vmem:[%s5098_s0 + $0xd4] ss:$72 sps:$4 sm:$0xff]  }
 0x13e   : > { %3770 = vmatpush3.bf16.msra.mxu1 %v4044_v15  ;;  %3783 = vmatprep.subr.bf16.mxu0 %v4051_v20  ;;  %v4114_v15 = vld [vmem:[%s4822_s9 + $0x430] sm:$0xff]  }
 0x13f   : > { %3811 = vmatprep.subr.bf16.mxu1 %v4052_v21 }
 0x140   : > { %3013 = vmatmul.mubr.bf16.vlgmr.msra.gmra.mrb[16].mxu0 %v4045_v16  ;;  %v4115_v16 = vld [vmem:[%s4822_s9 + $0x478] sm:$0xff]   ;;  %s1406_s9 = scalar_lea.vmem %s5100_s2, %s1405_s10 }
 0x141   : > { %3062 = vmatmul.mubr.bf16.vlgmr.msra.gmra.mrb[16].mxu1 %v4048_v18  ;;  %3784 = vmatpush3.bf16.msra.mxu0 %v4053_v22  ;;  %v4117_v18 = vld [vmem:[%s5098_s0 + $0x40] ss:$72 sps:$4 sm:$0xff]  }
 0x142   : > { %3812 = vmatpush3.bf16.msra.mxu1 %v4054_v23  ;;  %3785 = vmatprep.subr.bf16.mxu0 %v4055_v24  ;;  %v3411_v22 = vld [vmem:[%s1406_s9] ss:$0 sm:$0xff] }
 0x143   : > { %3813 = vmatprep.subr.bf16.mxu1 %v4056_v25  ;;  %3020 = vmatprep.mubr.bf16.mxu0 %v4059_v28 }
 0x144   : > { %3069 = vmatprep.mubr.bf16.mxu1 %v4064_v32 }
 0x145   : > { %3786 = vmatpush3.bf16.msra.mxu0 %v4057_v26 }
 0x146   : > { %3814 = vmatpush3.bf16.msra.mxu1 %v4058_v27  ;;  %3787 = vmatprep.subr.bf16.mxu0 %v4062_v30 }
 0x147   : > { %3815 = vmatprep.subr.bf16.mxu1 %v4063_v31 }
 0x148   : > { %3021 = vmatmul.mubr.bf16.gmra.mrb[20].mxu0 %v4061_v29 }
 0x149   : > { %3788 = vmatpush3.bf16.msra.mxu0 %v4066_v33  ;;  %3070 = vmatmul.mubr.bf16.gmra.mrb[20].mxu1 %v4068_v35 }
 0x14a   : > { %3816 = vmatpush3.bf16.msra.mxu1 %v4067_v34  ;;  %3789 = vmatprep.subr.bf16.mxu0 %v4069_v36 }
 0x14b   : > { %3817 = vmatprep.subr.bf16.mxu1 %v4070_v37  ;;  %3110 = vmatprep.mubr.bf16.mxu0 %v4091_v57 }
 0x14c   : > { %3159 = vmatprep.mubr.bf16.mxu1 %v4094_v59 }
 0x14d   : > { %3790 = vmatpush3.bf16.msra.mxu0 %v4071_v38 }
 0x14e   : > { %3818 = vmatpush3.bf16.msra.mxu1 %v4072_v39  ;;  %3791 = vmatprep.subr.bf16.mxu0 %v4073_v40 }
 0x14f   : > { %3819 = vmatprep.subr.bf16.mxu1 %v4074_v41 }
 0x151   : > { %3792 = vmatpush3.bf16.msra.mxu0 %v4075_v42 }
 0x152   : > { %3820 = vmatpush3.bf16.msra.mxu1 %v4076_v43  ;;  %3793 = vmatprep.subr.bf16.mxu0 %v4077_v44 }
 0x153   : > { %3821 = vmatprep.subr.bf16.mxu1 %v4078_v45 }
 0x155   : > { %3794 = vmatpush3.bf16.msra.mxu0 %v4079_v46 }
 0x156   : > { %3822 = vmatpush3.bf16.msra.mxu1 %v4080_v47  ;;  %3795 = vmatprep.subr.bf16.mxu0 %v4081_v48 }
 0x157   : > { %3823 = vmatprep.subr.bf16.mxu1 %v4082_v49 }
 0x159   : > { %3796 = vmatpush3.bf16.msra.mxu0 %v4083_v50 }
 0x15a   : > { %3824 = vmatpush3.bf16.msra.mxu1 %v4084_v51  ;;  %3797 = vmatprep.subr.bf16.mxu0 %v4085_v52 }
 0x15b   : > { %3825 = vmatprep.subr.bf16.mxu1 %v4086_v53 }
 0x15d   : > { %3798 = vmatpush3.bf16.msra.mxu0 %v4087_v54 }
 0x15e   : > { %3826 = vmatpush3.bf16.msra.mxu1 %v4088_v55  ;;  %3839 = vmatprep.subr.bf16.mxu0 %v4095_v60 }
 0x15f   : > { %3867 = vmatprep.subr.bf16.mxu1 %v4095_v60 }
 0x160   : > { %3111 = vmatmul.mubr.bf16.vlgmr.msra.gmra.mrb[24].mxu0 %v4089_v56 }
 0x161   : > { %3160 = vmatmul.mubr.bf16.vlgmr.msra.gmra.mrb[24].mxu1 %v4092_v58  ;;  %3840 = vmatpush3.bf16.msra.mxu0 %v4096_v61 }
 0x162   : > { %3875 = vmatpush3.bf16.msra.mxu1 %v4096_v61  ;;  %3841 = vmatprep.subr.bf16.mxu0 %v4097_v62 }
 0x163   : > { %3868 = vmatprep.subr.bf16.mxu1 %v4097_v62  ;;  %3118 = vmatprep.mubr.bf16.mxu0 %v4099_v0 }
 0x164   : > { %3167 = vmatprep.mubr.bf16.mxu1 %v4103_v3 }
 0x165   : > { %3842 = vmatpush3.bf16.msra.mxu0 %v4098_v63 }
 0x166   : > { %3876 = vmatpush3.bf16.msra.mxu1 %v4098_v63  ;;  %3843 = vmatprep.subr.bf16.mxu0 %v4102_v2 }
 0x167   : > { %3869 = vmatprep.subr.bf16.mxu1 %v4102_v2 }
 0x168   : > { %3119 = vmatmul.mubr.bf16.gmra.mrb[28].mxu0 %v4101_v1 }
 0x169   : > { %3844 = vmatpush3.bf16.msra.mxu0 %v4105_v4  ;;  %3168 = vmatmul.mubr.bf16.gmra.mrb[28].mxu1 %v4106_v5 }
 0x16a   : > { %3877 = vmatpush3.bf16.msra.mxu1 %v4105_v4  ;;  %3845 = vmatprep.subr.bf16.mxu0 %v4107_v6 }
 0x16b   : > { %3870 = vmatprep.subr.bf16.mxu1 %v4107_v6  ;;  %3208 = vmatprep.mubr.bf16.mxu0 %v4119_v12 }
 0x16c   : > { %3216 = vmatprep.mubr.bf16.mxu1 %v4122_v14 }
 0x16d   : > { %3846 = vmatpush3.bf16.msra.mxu0 %v4108_v7 }
 0x16e   : > { %3878 = vmatpush3.bf16.msra.mxu1 %v4108_v7  ;;  %3847 = vmatprep.subr.bf16.mxu0 %v4109_v8 }
 0x16f   : > { %3871 = vmatprep.subr.bf16.mxu1 %v4109_v8 }
 0x171   : > { %3848 = vmatpush3.bf16.msra.mxu0 %v4110_v9 }
 0x172   : > { %3879 = vmatpush3.bf16.msra.mxu1 %v4110_v9  ;;  %3849 = vmatprep.subr.bf16.mxu0 %v4111_v10 }
 0x173   : > { %3872 = vmatprep.subr.bf16.mxu1 %v4111_v10 }
 0x175   : > { %3850 = vmatpush3.bf16.msra.mxu0 %v4112_v11 }
 0x176   : > { %3880 = vmatpush3.bf16.msra.mxu1 %v4112_v11  ;;  %3851 = vmatprep.subr.bf16.mxu0 %v4113_v13 }
 0x177   : > { %3873 = vmatprep.subr.bf16.mxu1 %v4113_v13 }
 0x179   : > { %3852 = vmatpush3.bf16.msra.mxu0 %v4114_v15 }
 0x17a   : > { %3881 = vmatpush3.bf16.msra.mxu1 %v4114_v15  ;;  %3853 = vmatprep.subr.bf16.mxu0 %v4115_v16 }
 0x17b   : > { %3874 = vmatprep.subr.bf16.mxu1 %v4115_v16 }
 0x17d   : > { %3854 = vmatpush3.bf16.msra.mxu0 %v4116_v17 }
 0x17e   : > { %3882 = vmatpush3.bf16.msra.mxu1 %v4116_v17 }
 0x180   : > { %3209 = vmatmul.mubr.bf16.vlgmr.msra.gmra.mrb[32].mxu0 %v4117_v18 }
 0x181   : > { %3217 = vmatmul.mubr.bf16.vlgmr.msra.gmra.mrb[32].mxu1 %v4120_v19 }
 0x1d3   : > { %v3631_v20 = vpop.f32.mrb[0].mxu0 }
 0x1d4   : > { %v3659_v21 = vpop.f32.mrb[0].mxu1  ;;  %v3632_v23 = vpop.f32.mrb[1].mxu0 }
 0x1d5   : > { %v3633_v24 = vadd.f32 %v3632_v23, %v3631_v20  ;;  %v3660_v25 = vpop.f32.mrb[1].mxu1  ;;  %v3634_v26 = vpop.f32.mrb[2].mxu0 }
 0x1d6   : > { %v3661_v27 = vadd.f32 %v3660_v25, %v3659_v21  ;;  %v3662_v28 = vpop.f32.mrb[2].mxu1  ;;  %v3635_v29 = vpop.f32.mrb[3].mxu0 }
 0x1d7   : > { %v2819_v30 = vadd.f32 %v3633_v24, %v3411_v22  ;;  %v3636_v31 = vadd.f32 %v3635_v29, %v3634_v26  ;;  %v3663_v32 = vpop.f32.mrb[3].mxu1 }
 0x1d8   : > { %v3664_v33 = vadd.f32 %v3663_v32, %v3662_v28 }
 0x1d9   : > { %v2868_v34 = vadd.f32 %v3661_v27, %v2819_v30  ;;  %v2822_v35 = vadd.f32 %v3636_v31, %v3411_v22 }
 0x1db   : > { %v2871_v36 = vadd.f32 %v3664_v33, %v2822_v35  ;;  %v3637_v37 = vpop.f32.mrb[4].mxu0 }
 0x1dc   : > { %v3638_v38 = vpop.f32.mrb[5].mxu0  ;;  %v3665_v44 = vpop.f32.mrb[4].mxu1 }
 0x1dd   : > { %v3639_v39 = vadd.f32 %v3638_v38, %v3637_v37  ;;  %v3640_v40 = vpop.f32.mrb[6].mxu0  ;;  %v3666_v45 = vpop.f32.mrb[5].mxu1 }
 0x1de   : > { %v3641_v41 = vpop.f32.mrb[7].mxu0  ;;  %v3667_v47 = vadd.f32 %v3666_v45, %v3665_v44  ;;  %v3668_v48 = vpop.f32.mrb[6].mxu1 }
 0x1df   : > { %v3642_v42 = vadd.f32 %v3641_v41, %v3640_v40  ;;  %v2827_v43 = vadd.f32 %v3639_v39, %v3411_v22  ;;  %v3669_v49 = vpop.f32.mrb[7].mxu1 }
 0x1e0   : > { %v3670_v51 = vadd.f32 %v3669_v49, %v3668_v48 }
 0x1e1   : > { %v2830_v46 = vadd.f32 %v3642_v42, %v3411_v22  ;;  %v2876_v50 = vadd.f32 %v3667_v47, %v2827_v43 }
 0x1e3   : > { %v2879_v52 = vadd.f32 %v3670_v51, %v2830_v46 }
 0x1f3   : > { %v3687_v53 = vpop.f32.mrb[8].mxu0 }
 0x1f4   : > { %v3715_v54 = vpop.f32.mrb[8].mxu1  ;;  %v3688_v55 = vpop.f32.mrb[9].mxu0 }
 0x1f5   : > { %v3689_v56 = vadd.f32 %v3688_v55, %v3687_v53  ;;  %v3716_v57 = vpop.f32.mrb[9].mxu1  ;;  %v3690_v58 = vpop.f32.mrb[10].mxu0 }
 0x1f6   : > { %v3717_v59 = vadd.f32 %v3716_v57, %v3715_v54  ;;  %v3718_v60 = vpop.f32.mrb[10].mxu1  ;;  %v3691_v61 = vpop.f32.mrb[11].mxu0 }
 0x1f7   : > { %v2917_v62 = vadd.f32 %v3689_v56, %v2868_v34  ;;  %v3692_v63 = vadd.f32 %v3691_v61, %v3690_v58  ;;  %v3719_v0 = vpop.f32.mrb[11].mxu1 }
 0x1f8   : > { %v3720_v1 = vadd.f32 %v3719_v0, %v3718_v60 }
 0x1f9   : > { %v2966_v2 = vadd.f32 %v3717_v59, %v2917_v62  ;;  %v2920_v3 = vadd.f32 %v3692_v63, %v2871_v36 }
 0x1fb   : > { %v2969_v4 = vadd.f32 %v3720_v1, %v2920_v3  ;;  %v3693_v5 = vpop.f32.mrb[12].mxu0 }
 0x1fc   : > { %v3694_v6 = vpop.f32.mrb[13].mxu0  ;;  %v3721_v12 = vpop.f32.mrb[12].mxu1 }
 0x1fd   : > { %v3695_v7 = vadd.f32 %v3694_v6, %v3693_v5  ;;  %v3696_v8 = vpop.f32.mrb[14].mxu0  ;;  %v3722_v14 = vpop.f32.mrb[13].mxu1 }
 0x1fe   : > { %v3697_v9 = vpop.f32.mrb[15].mxu0  ;;  %v3723_v15 = vadd.f32 %v3722_v14, %v3721_v12  ;;  %v3724_v16 = vpop.f32.mrb[14].mxu1 }
 0x1ff   : > { %v2925_v10 = vadd.f32 %v3695_v7, %v2876_v50  ;;  %v3698_v11 = vadd.f32 %v3697_v9, %v3696_v8  ;;  %v3725_v17 = vpop.f32.mrb[15].mxu1 }
 0x200   : > { %v3726_v19 = vadd.f32 %v3725_v17, %v3724_v16 }
 0x201   : > { %v2928_v13 = vadd.f32 %v3698_v11, %v2879_v52  ;;  %v2974_v18 = vadd.f32 %v3723_v15, %v2925_v10 }
 0x203   : > { %v2977_v20 = vadd.f32 %v3726_v19, %v2928_v13 }
 0x213   : > { %v3743_v21 = vpop.f32.mrb[16].mxu0 }
 0x214   : > { %v3744_v22 = vpop.f32.mrb[17].mxu0  ;;  %v3771_v23 = vpop.f32.mrb[16].mxu1 }
 0x215   : > { %v3745_v24 = vadd.f32 %v3744_v22, %v3743_v21  ;;  %v3746_v25 = vpop.f32.mrb[18].mxu0  ;;  %v3772_v26 = vpop.f32.mrb[17].mxu1 }
 0x216   : > { %v3747_v27 = vpop.f32.mrb[19].mxu0  ;;  %v3773_v29 = vadd.f32 %v3772_v26, %v3771_v23  ;;  %v3774_v30 = vpop.f32.mrb[18].mxu1 }
 0x217   : > { %v3015_v28 = vadd.f32 %v3745_v24, %v2966_v2  ;;  %v3748_v31 = vadd.f32 %v3747_v27, %v3746_v25  ;;  %v3775_v32 = vpop.f32.mrb[19].mxu1 }
 0x218   : > { %v3776_v35 = vadd.f32 %v3775_v32, %v3774_v30 }
 0x219   : > { %v3064_v33 = vadd.f32 %v3773_v29, %v3015_v28  ;;  %v3018_v34 = vadd.f32 %v3748_v31, %v2969_v4 }
 0x21b   : > { %v3067_v36 = vadd.f32 %v3776_v35, %v3018_v34  ;;  %v3749_v37 = vpop.f32.mrb[20].mxu0 }
 0x21c   : > { %v3750_v38 = vpop.f32.mrb[21].mxu0  ;;  %v3777_v44 = vpop.f32.mrb[20].mxu1 }
 0x21d   : > { %v3751_v39 = vadd.f32 %v3750_v38, %v3749_v37  ;;  %v3752_v40 = vpop.f32.mrb[22].mxu0  ;;  %v3778_v46 = vpop.f32.mrb[21].mxu1 }
 0x21e   : > { %v3753_v41 = vpop.f32.mrb[23].mxu0  ;;  %v3779_v47 = vadd.f32 %v3778_v46, %v3777_v44  ;;  %v3780_v48 = vpop.f32.mrb[22].mxu1 }
 0x21f   : > { %v3023_v42 = vadd.f32 %v3751_v39, %v2974_v18  ;;  %v3754_v43 = vadd.f32 %v3753_v41, %v3752_v40  ;;  %v3781_v49 = vpop.f32.mrb[23].mxu1 }
 0x220   : > { %v3782_v51 = vadd.f32 %v3781_v49, %v3780_v48 }
 0x221   : > { %v3026_v45 = vadd.f32 %v3754_v43, %v2977_v20  ;;  %v3072_v50 = vadd.f32 %v3779_v47, %v3023_v42 }
 0x223   : > { %v3075_v52 = vadd.f32 %v3782_v51, %v3026_v45 }
 0x233   : > { %v3799_v53 = vpop.f32.mrb[24].mxu0 }
 0x234   : > { %v3827_v54 = vpop.f32.mrb[24].mxu1  ;;  %v3800_v55 = vpop.f32.mrb[25].mxu0 }
 0x235   : > { %v3801_v56 = vadd.f32 %v3800_v55, %v3799_v53  ;;  %v3828_v57 = vpop.f32.mrb[25].mxu1  ;;  %v3802_v58 = vpop.f32.mrb[26].mxu0 }
 0x236   : > { %v3829_v59 = vadd.f32 %v3828_v57, %v3827_v54  ;;  %v3830_v60 = vpop.f32.mrb[26].mxu1  ;;  %v3803_v61 = vpop.f32.mrb[27].mxu0 }
 0x237   : > { %v3113_v62 = vadd.f32 %v3801_v56, %v3064_v33  ;;  %v3804_v63 = vadd.f32 %v3803_v61, %v3802_v58  ;;  %v3831_v0 = vpop.f32.mrb[27].mxu1 }
 0x238   : > { %v3832_v1 = vadd.f32 %v3831_v0, %v3830_v60 }
 0x239   : > { %v3162_v2 = vadd.f32 %v3829_v59, %v3113_v62  ;;  %v3116_v3 = vadd.f32 %v3804_v63, %v3067_v36 }
 0x23b   : > { %v3165_v4 = vadd.f32 %v3832_v1, %v3116_v3  ;;  %v3805_v5 = vpop.f32.mrb[28].mxu0 }
 0x23c   : > { %v3806_v6 = vpop.f32.mrb[29].mxu0  ;;  %v3833_v9 = vpop.f32.mrb[28].mxu1 }
 0x23d   : > { %v3807_v7 = vadd.f32 %v3806_v6, %v3805_v5  ;;  %v3808_v8 = vpop.f32.mrb[30].mxu0  ;;  %v3834_v11 = vpop.f32.mrb[29].mxu1 }
 0x23e   : > { %v3809_v10 = vpop.f32.mrb[31].mxu0  ;;  %v3835_v14 = vadd.f32 %v3834_v11, %v3833_v9  ;;  %v3836_v15 = vpop.f32.mrb[30].mxu1 }
 0x23f   : > { %v3121_v12 = vadd.f32 %v3807_v7, %v3072_v50  ;;  %v3810_v13 = vadd.f32 %v3809_v10, %v3808_v8  ;;  %v3837_v16 = vpop.f32.mrb[31].mxu1 }
 0x240   : > { %v3838_v19 = vadd.f32 %v3837_v16, %v3836_v15 }
 0x241   : > { %v3124_v17 = vadd.f32 %v3810_v13, %v3075_v52  ;;  %v3170_v18 = vadd.f32 %v3835_v14, %v3121_v12 }
 0x243   : > { %v3173_v20 = vadd.f32 %v3838_v19, %v3124_v17 }
 0x253   : > { %v3855_v21 = vpop.f32.mrb[32].mxu0 }
 0x254   : > { %v3861_v22 = vpop.f32.mrb[32].mxu1  ;;  %v3856_v23 = vpop.f32.mrb[33].mxu0 }
 0x255   : > { %v3857_v24 = vadd.f32 %v3856_v23, %v3855_v21  ;;  %v3862_v25 = vpop.f32.mrb[33].mxu1  ;;  %v3858_v26 = vpop.f32.mrb[34].mxu0 }
 0x256   : > { %v3863_v27 = vadd.f32 %v3862_v25, %v3861_v22  ;;  %v3864_v28 = vpop.f32.mrb[34].mxu1  ;;  %v3859_v29 = vpop.f32.mrb[35].mxu0 }
 0x257   : > { %v3211_v30 = vadd.f32 %v3857_v24, %v3162_v2  ;;  %v3860_v31 = vadd.f32 %v3859_v29, %v3858_v26  ;;  %v3865_v32 = vpop.f32.mrb[35].mxu1 }
 0x258   : > { %v3219_v33 = vadd.f32 %v3863_v27, %v3170_v18  ;;  %v3866_v34 = vadd.f32 %v3865_v32, %v3864_v28 }
 0x259   : > { %v3214_v35 = vadd.f32 %v3860_v31, %v3165_v4  ;;  %v3225_v37 = vmax.f32 %v3211_v30, 0.0 }
 0x25a   : > { %v3222_v36 = vadd.f32 %v3866_v34, %v3173_v20  ;;  %v3227_v39 = vmax.f32 %v3219_v33, 0.0  ;;  %3255 = sbr.rel (!%p4218_p6) target bundleno = 618 (0x26a), region = 77 }
 0x25b   : > { %v3226_v38 = vmax.f32 %v3214_v35, 0.0 }
 0x25c   : > { %v3228_v40 = vmax.f32 %v3222_v36, 0.0 }
 0x25d   : > { %v3607_v41 = vpack.c.bf16 %v3226_v38, %v3225_v37 }
 0x25e   : > { %v3612_v42 = vpack.c.bf16 %v3228_v40, %v3227_v39 }
 0x25f   : > { %3608 = vst [vmem:[%s1396_s20] sm:$0xff] %v3607_v41  }
 0x260   : > { %3614 = vst [vmem:[%s1396_s20 + $0x8] sm:$0xff] %v3612_v42  }
 0x266   : > { %v3276_v43 = vld [vmem:[%s1396_s20] sm:$0xf]  ;;  %v3278_v44 = vld [vmem:[%s1396_s20 + $0x4] sm:$0xf] }
 0x267   : > { %v3280_v45 = vld [vmem:[%s1396_s20 + $0x8] sm:$0xf]  ;;  %v3282_v46 = vld [vmem:[%s1396_s20 + $0xc] sm:$0xf]  ;;  %3277 = vst [vmem:[%s3260_s24] sm:$0xf] %v3276_v43 }
 0x268   : > { %3279 = vst [vmem:[%s3260_s24 + $0xc] sm:$0xf] %v3278_v44  ;;  %3281 = vst [vmem:[%s3260_s24 + $0x18] sm:$0xf] %v3280_v45 }
 0x269   : > { %3283 = vst [vmem:[%s3260_s24 + $0x24] sm:$0xf] %v3282_v46 }
 0x26a PF: > { %s13_s16 = sadd.s32 1, %s4161_s16   ;;  %s5103_s12 = smov %s4149_s13 }
 0x26b   : > { %p10_p12 = scmp.ge.s32.totalorder %s13_s16, 5   ;;  %s5104_s13 = smov %s4223_s22 }
 0x26c   : > { %s5105_s14 = smov %s4157_s15  ;;  %s5106_s15 = smov %s5108_s17 }
 0x26d   :  { %12 = sbr.rel (!%p10_p12) target bundleno = 3 (0x3), region = 155 }

// kernel: mixed_7a_forward.11
= control target key start
LH: loop header
LB: loop body
LE: loop exit
PB: predicated region body
PF: predicated region fallthrough
CT: control target
= control target key end

     0   :  { %s926_s0 = inlined_call_operand.vmem [shape: bf16[9,32,896], index: 0, kind: input, shape index: {}]   ;;  %s927_s1 = inlined_call_operand.vmem [shape: bf16[32,896], index: 1, kind: output, shape index: {}]  }
   0x1   :  { %v8_v0 = vld [vmem:[%s926_s0] sm:$0xff]  ;;  %v308_v1 = vld [vmem:[%s926_s0 + $0x70] sm:$0xff]  ;;  %v9_v6 = vld [vmem:[%s926_s0 + $0x8] sm:$0xff] }
   0x2   :  { %v324_v2 = vld [vmem:[%s926_s0 + $0xe0] sm:$0xff]  ;;  %v41_v3 = vmax.bf16 %v308_v1, %v8_v0  ;;  %v340_v4 = vld [vmem:[%s926_s0 + $0x150] sm:$0xff]  ;;  %v309_v7 = vld [vmem:[%s926_s0 + $0x78] sm:$0xff] }
   0x3   :  { %v325_v8 = vld [vmem:[%s926_s0 + $0xe8] sm:$0xff]  ;;  %v356_v9 = vld [vmem:[%s926_s0 + $0x1c0] sm:$0xff]  ;;  %v42_v10 = vmax.bf16 %v309_v7, %v9_v6  ;;  %v372_v12 = vld [vmem:[%s926_s0 + $0x230] sm:$0xff] }
   0x4   :  { %v74_v5 = vmax.bf16 %v324_v2, %v41_v3  ;;  %v341_v13 = vld [vmem:[%s926_s0 + $0x158] sm:$0xff]  ;;  %v10_v15 = vld [vmem:[%s926_s0 + $0x10] sm:$0xff]  ;;  %v310_v16 = vld [vmem:[%s926_s0 + $0x80] sm:$0xff] }
   0x5   :  { %v75_v14 = vmax.bf16 %v325_v8, %v42_v10  ;;  %v326_v17 = vld [vmem:[%s926_s0 + $0xf0] sm:$0xff]  ;;  %v357_v19 = vld [vmem:[%s926_s0 + $0x1c8] sm:$0xff]  ;;  %v43_v20 = vmax.bf16 %v310_v16, %v10_v15  ;;  %v388_v21 = vld [vmem:[%s926_s0 + $0x2a0] sm:$0xff] }
   0x6   :  { %v107_v11 = vmax.bf16 %v340_v4, %v74_v5  ;;  %v373_v23 = vld [vmem:[%s926_s0 + $0x238] sm:$0xff]  ;;  %v342_v24 = vld [vmem:[%s926_s0 + $0x160] sm:$0xff]  ;;  %v311_v28 = vld [vmem:[%s926_s0 + $0x88] sm:$0xf] }
   0x7   :  { %v108_v22 = vmax.bf16 %v341_v13, %v75_v14  ;;  %v76_v26 = vmax.bf16 %v326_v17, %v43_v20  ;;  %v11_v27 = vld [vmem:[%s926_s0 + $0x18] sm:$0xf]  ;;  %v404_v30 = vld [vmem:[%s926_s0 + $0x310] sm:$0xff]  ;;  %v420_v31 = vld [vmem:[%s926_s0 + $0x380] sm:$0xff] }
   0x8   :  { %v140_v18 = vmax.bf16 %v356_v9, %v107_v11  ;;  %v327_v29 = vld [vmem:[%s926_s0 + $0xf8] sm:$0xf]  ;;  %v358_v33 = vld [vmem:[%s926_s0 + $0x1d0] sm:$0xff]  ;;  %v44_v34 = vmax.bf16 %v311_v28, %v11_v27  ;;  %v389_v36 = vld [vmem:[%s926_s0 + $0x2a8] sm:$0xff] }
   0x9   :  { %v141_v32 = vmax.bf16 %v357_v19, %v108_v22  ;;  %v109_v37 = vmax.bf16 %v342_v24, %v76_v26  ;;  %v374_v38 = vld [vmem:[%s926_s0 + $0x240] sm:$0xff]  ;;  %v343_v39 = vld [vmem:[%s926_s0 + $0x168] sm:$0xf]  ;;  %v312_v43 = vld [vmem:[%s926_s0 + $0x8c] sm:$0xff] }
   0xa   :  { %v173_v25 = vmax.bf16 %v372_v12, %v140_v18  ;;  %v77_v41 = vmax.bf16 %v327_v29, %v44_v34  ;;  %v12_v42 = vld [vmem:[%s926_s0 + $0x1c] sm:$0xff]  ;;  %v421_v47 = vld [vmem:[%s926_s0 + $0x388] sm:$0xff]  ;;  %v359_v49 = vld [vmem:[%s926_s0 + $0x1d8] sm:$0xf] }
   0xb   :  { %v174_v40 = vmax.bf16 %v373_v23, %v141_v32  ;;  %v328_v44 = vld [vmem:[%s926_s0 + $0xfc] sm:$0xff]  ;;  %v142_v48 = vmax.bf16 %v358_v33, %v109_v37  ;;  %v45_v50 = vmax.bf16 %v312_v43, %v12_v42  ;;  %v390_v52 = vld [vmem:[%s926_s0 + $0x2b0] sm:$0xff]  ;;  %v375_v54 = vld [vmem:[%s926_s0 + $0x248] sm:$0xf] }
   0xc   :  { %v206_v35 = vmax.bf16 %v388_v21, %v173_v25  ;;  %v405_v46 = vld [vmem:[%s926_s0 + $0x318] sm:$0xff]  ;;  %v110_v53 = vmax.bf16 %v343_v39, %v77_v41  ;;  %v344_v55 = vld [vmem:[%s926_s0 + $0x16c] sm:$0xff]  ;;  %v13_v59 = vld [vmem:[%s926_s0 + $0x24] sm:$0xff] }
   0xd   :  { %v207_v51 = vmax.bf16 %v389_v36, %v174_v40  ;;  %v175_v57 = vmax.bf16 %v374_v38, %v142_v48  ;;  %v78_v58 = vmax.bf16 %v328_v44, %v45_v50  ;;  %v313_v60 = vld [vmem:[%s926_s0 + $0x94] sm:$0xff]  ;;  %v329_v61 = vld [vmem:[%s926_s0 + $0x104] sm:$0xff]  ;;  %v360_v2 = vld [vmem:[%s926_s0 + $0x1dc] sm:$0xff] }
   0xe   :  { %v239_v45 = vmax.bf16 %v404_v30, %v206_v35  ;;  %v406_v63 = vld [vmem:[%s926_s0 + $0x320] sm:$0xff]  ;;  %v422_v0 = vld [vmem:[%s926_s0 + $0x390] sm:$0xff]  ;;  %v143_v1 = vmax.bf16 %v359_v49, %v110_v53  ;;  %v46_v3 = vmax.bf16 %v313_v60, %v13_v59  ;;  %v391_v5 = vld [vmem:[%s926_s0 + $0x2b8] sm:$0xf] }
   0xf   :  { %v240_v62 = vmax.bf16 %v405_v46, %v207_v51  ;;  %v208_v4 = vmax.bf16 %v390_v52, %v175_v57  ;;  %v111_v6 = vmax.bf16 %v344_v55, %v78_v58  ;;  %v376_v7 = vld [vmem:[%s926_s0 + $0x24c] sm:$0xff]  ;;  %v345_v8 = vld [vmem:[%s926_s0 + $0x174] sm:$0xff]  ;;  %v314_v13 = vld [vmem:[%s926_s0 + $0x9c] sm:$0xff] }
  0x10   :  { %v272_v56 = vmax.bf16 %v420_v31, %v239_v45  ;;  %v176_v10 = vmax.bf16 %v375_v54, %v143_v1  ;;  %v79_v11 = vmax.bf16 %v329_v61, %v46_v3  ;;  %v14_v12 = vld [vmem:[%s926_s0 + $0x2c] sm:$0xff]  ;;  %v407_v16 = vld [vmem:[%s926_s0 + $0x328] sm:$0xf]  ;;  %v423_v17 = vld [vmem:[%s926_s0 + $0x398] sm:$0xf] }
  0x11   :  { %v273_v9 = vmax.bf16 %v421_v47, %v240_v62  ;;  %v330_v14 = vld [vmem:[%s926_s0 + $0x10c] sm:$0xff]  ;;  %v241_v15 = vmax.bf16 %v406_v63, %v208_v4  ;;  %v144_v18 = vmax.bf16 %v360_v2, %v111_v6  ;;  %v361_v19 = vld [vmem:[%s926_s0 + $0x1e4] sm:$0xff]  ;;  %v47_v20 = vmax.bf16 %v314_v13, %v14_v12  ;;  %v392_v22 = vld [vmem:[%s926_s0 + $0x2bc] sm:$0xff] }
  0x12   :  { %288 = vst [vmem:[%s927_s1] sm:$0xff] %v272_v56  ;;  %v209_v21 = vmax.bf16 %v391_v5, %v176_v10  ;;  %v112_v23 = vmax.bf16 %v345_v8, %v79_v11  ;;  %v377_v24 = vld [vmem:[%s926_s0 + $0x254] sm:$0xff]  ;;  %v346_v25 = vld [vmem:[%s926_s0 + $0x17c] sm:$0xff]  ;;  %v315_v30 = vld [vmem:[%s926_s0 + $0xa4] sm:$0xf] }
  0x13   :  { %289 = vst [vmem:[%s927_s1 + $0x8] sm:$0xff] %v273_v9  ;;  %v274_v26 = vmax.bf16 %v422_v0, %v241_v15  ;;  %v177_v27 = vmax.bf16 %v376_v7, %v144_v18  ;;  %v80_v28 = vmax.bf16 %v330_v14, %v47_v20  ;;  %v15_v29 = vld [vmem:[%s926_s0 + $0x34] sm:$0xf]  ;;  %v408_v33 = vld [vmem:[%s926_s0 + $0x32c] sm:$0xff]  ;;  %v424_v34 = vld [vmem:[%s926_s0 + $0x39c] sm:$0xff] }
  0x14   :  { %v331_v31 = vld [vmem:[%s926_s0 + $0x114] sm:$0xf]  ;;  %v242_v32 = vmax.bf16 %v407_v16, %v209_v21  ;;  %v145_v35 = vmax.bf16 %v361_v19, %v112_v23  ;;  %v362_v36 = vld [vmem:[%s926_s0 + $0x1ec] sm:$0xff]  ;;  %v48_v37 = vmax.bf16 %v315_v30, %v15_v29  ;;  %v393_v39 = vld [vmem:[%s926_s0 + $0x2c4] sm:$0xff] }
  0x15   :  { %290 = vst [vmem:[%s927_s1 + $0x10] sm:$0xff] %v274_v26  ;;  %v210_v38 = vmax.bf16 %v392_v22, %v177_v27  ;;  %v113_v40 = vmax.bf16 %v346_v25, %v80_v28  ;;  %v378_v41 = vld [vmem:[%s926_s0 + $0x25c] sm:$0xff]  ;;  %v347_v42 = vld [vmem:[%s926_s0 + $0x184] sm:$0xf]  ;;  %v316_v47 = vld [vmem:[%s926_s0 + $0xa8] sm:$0xff] }
  0x16   :  { %v275_v43 = vmax.bf16 %v423_v17, %v242_v32  ;;  %v178_v44 = vmax.bf16 %v377_v24, %v145_v35  ;;  %v81_v45 = vmax.bf16 %v331_v31, %v48_v37  ;;  %v16_v46 = vld [vmem:[%s926_s0 + $0x38] sm:$0xff]  ;;  %v425_v51 = vld [vmem:[%s926_s0 + $0x3a4] sm:$0xff]  ;;  %v363_v53 = vld [vmem:[%s926_s0 + $0x1f4] sm:$0xf] }
  0x17   :  { %v332_v48 = vld [vmem:[%s926_s0 + $0x118] sm:$0xff]  ;;  %v243_v49 = vmax.bf16 %v408_v33, %v210_v38  ;;  %v146_v52 = vmax.bf16 %v362_v36, %v113_v40  ;;  %v49_v54 = vmax.bf16 %v316_v47, %v16_v46  ;;  %v394_v56 = vld [vmem:[%s926_s0 + $0x2cc] sm:$0xff]  ;;  %v379_v58 = vld [vmem:[%s926_s0 + $0x264] sm:$0xf] }
  0x18   :  { %v409_v50 = vld [vmem:[%s926_s0 + $0x334] sm:$0xff]  ;;  %291 = vst [vmem:[%s927_s1 + $0x18] sm:$0xf] %v275_v43  ;;  %v211_v55 = vmax.bf16 %v393_v39, %v178_v44  ;;  %v114_v57 = vmax.bf16 %v347_v42, %v81_v45  ;;  %v348_v59 = vld [vmem:[%s926_s0 + $0x188] sm:$0xff]  ;;  %v17_v63 = vld [vmem:[%s926_s0 + $0x40] sm:$0xff] }
  0x19   :  { %v276_v60 = vmax.bf16 %v424_v34, %v243_v49  ;;  %v179_v61 = vmax.bf16 %v378_v41, %v146_v52  ;;  %v82_v62 = vmax.bf16 %v332_v48, %v49_v54  ;;  %v317_v0 = vld [vmem:[%s926_s0 + $0xb0] sm:$0xff]  ;;  %v333_v1 = vld [vmem:[%s926_s0 + $0x120] sm:$0xff]  ;;  %v364_v6 = vld [vmem:[%s926_s0 + $0x1f8] sm:$0xff] }
  0x1a   :  { %v244_v2 = vmax.bf16 %v409_v50, %v211_v55  ;;  %v410_v3 = vld [vmem:[%s926_s0 + $0x33c] sm:$0xff]  ;;  %v426_v4 = vld [vmem:[%s926_s0 + $0x3ac] sm:$0xff]  ;;  %v147_v5 = vmax.bf16 %v363_v53, %v114_v57  ;;  %v50_v7 = vmax.bf16 %v317_v0, %v17_v63  ;;  %v395_v9 = vld [vmem:[%s926_s0 + $0x2d4] sm:$0xf] }
  0x1b   :  { %292 = vst [vmem:[%s927_s1 + $0x1c] sm:$0xff] %v276_v60  ;;  %v212_v8 = vmax.bf16 %v394_v56, %v179_v61  ;;  %v115_v10 = vmax.bf16 %v348_v59, %v82_v62  ;;  %v380_v11 = vld [vmem:[%s926_s0 + $0x268] sm:$0xff]  ;;  %v349_v12 = vld [vmem:[%s926_s0 + $0x190] sm:$0xff]  ;;  %v318_v17 = vld [vmem:[%s926_s0 + $0xb8] sm:$0xff] }
  0x1c   :  { %v277_v13 = vmax.bf16 %v425_v51, %v244_v2  ;;  %v180_v14 = vmax.bf16 %v379_v58, %v147_v5  ;;  %v83_v15 = vmax.bf16 %v333_v1, %v50_v7  ;;  %v18_v16 = vld [vmem:[%s926_s0 + $0x48] sm:$0xff]  ;;  %v411_v20 = vld [vmem:[%s926_s0 + $0x344] sm:$0xf]  ;;  %v427_v21 = vld [vmem:[%s926_s0 + $0x3b4] sm:$0xf] }
  0x1d   :  { %v334_v18 = vld [vmem:[%s926_s0 + $0x128] sm:$0xff]  ;;  %v245_v19 = vmax.bf16 %v410_v3, %v212_v8  ;;  %v148_v22 = vmax.bf16 %v364_v6, %v115_v10  ;;  %v365_v23 = vld [vmem:[%s926_s0 + $0x200] sm:$0xff]  ;;  %v51_v24 = vmax.bf16 %v318_v17, %v18_v16  ;;  %v396_v26 = vld [vmem:[%s926_s0 + $0x2d8] sm:$0xff] }
  0x1e   :  { %293 = vst [vmem:[%s927_s1 + $0x24] sm:$0xff] %v277_v13  ;;  %v213_v25 = vmax.bf16 %v395_v9, %v180_v14  ;;  %v116_v27 = vmax.bf16 %v349_v12, %v83_v15  ;;  %v381_v28 = vld [vmem:[%s926_s0 + $0x270] sm:$0xff]  ;;  %v350_v29 = vld [vmem:[%s926_s0 + $0x198] sm:$0xff]  ;;  %v319_v34 = vld [vmem:[%s926_s0 + $0xc0] sm:$0xf] }
  0x1f   :  { %v278_v30 = vmax.bf16 %v426_v4, %v245_v19  ;;  %v181_v31 = vmax.bf16 %v380_v11, %v148_v22  ;;  %v84_v32 = vmax.bf16 %v334_v18, %v51_v24  ;;  %v19_v33 = vld [vmem:[%s926_s0 + $0x50] sm:$0xf]  ;;  %v412_v37 = vld [vmem:[%s926_s0 + $0x348] sm:$0xff]  ;;  %v428_v38 = vld [vmem:[%s926_s0 + $0x3b8] sm:$0xff] }
  0x20   :  { %v335_v35 = vld [vmem:[%s926_s0 + $0x130] sm:$0xf]  ;;  %v246_v36 = vmax.bf16 %v411_v20, %v213_v25  ;;  %v149_v39 = vmax.bf16 %v365_v23, %v116_v27  ;;  %v366_v40 = vld [vmem:[%s926_s0 + $0x208] sm:$0xff]  ;;  %v52_v41 = vmax.bf16 %v319_v34, %v19_v33  ;;  %v397_v43 = vld [vmem:[%s926_s0 + $0x2e0] sm:$0xff] }
  0x21   :  { %294 = vst [vmem:[%s927_s1 + $0x2c] sm:$0xff] %v278_v30  ;;  %v214_v42 = vmax.bf16 %v396_v26, %v181_v31  ;;  %v117_v44 = vmax.bf16 %v350_v29, %v84_v32  ;;  %v382_v45 = vld [vmem:[%s926_s0 + $0x278] sm:$0xff]  ;;  %v351_v46 = vld [vmem:[%s926_s0 + $0x1a0] sm:$0xf]  ;;  %v320_v51 = vld [vmem:[%s926_s0 + $0xc4] sm:$0xff] }
  0x22   :  { %v279_v47 = vmax.bf16 %v427_v21, %v246_v36  ;;  %v182_v48 = vmax.bf16 %v381_v28, %v149_v39  ;;  %v85_v49 = vmax.bf16 %v335_v35, %v52_v41  ;;  %v20_v50 = vld [vmem:[%s926_s0 + $0x54] sm:$0xff]  ;;  %v429_v55 = vld [vmem:[%s926_s0 + $0x3c0] sm:$0xff]  ;;  %v367_v57 = vld [vmem:[%s926_s0 + $0x210] sm:$0xf] }
  0x23   :  { %v336_v52 = vld [vmem:[%s926_s0 + $0x134] sm:$0xff]  ;;  %v247_v53 = vmax.bf16 %v412_v37, %v214_v42  ;;  %v150_v56 = vmax.bf16 %v366_v40, %v117_v44  ;;  %v53_v58 = vmax.bf16 %v320_v51, %v20_v50  ;;  %v398_v60 = vld [vmem:[%s926_s0 + $0x2e8] sm:$0xff]  ;;  %v383_v62 = vld [vmem:[%s926_s0 + $0x280] sm:$0xf] }
  0x24   :  { %v413_v54 = vld [vmem:[%s926_s0 + $0x350] sm:$0xff]  ;;  %295 = vst [vmem:[%s927_s1 + $0x34] sm:$0xf] %v279_v47  ;;  %v215_v59 = vmax.bf16 %v397_v43, %v182_v48  ;;  %v118_v61 = vmax.bf16 %v351_v46, %v85_v49  ;;  %v352_v63 = vld [vmem:[%s926_s0 + $0x1a4] sm:$0xff]  ;;  %v21_v3 = vld [vmem:[%s926_s0 + $0x5c] sm:$0xff] }
  0x25   :  { %v280_v0 = vmax.bf16 %v428_v38, %v247_v53  ;;  %v183_v1 = vmax.bf16 %v382_v45, %v150_v56  ;;  %v86_v2 = vmax.bf16 %v336_v52, %v53_v58  ;;  %v321_v4 = vld [vmem:[%s926_s0 + $0xcc] sm:$0xff]  ;;  %v337_v5 = vld [vmem:[%s926_s0 + $0x13c] sm:$0xff]  ;;  %v368_v10 = vld [vmem:[%s926_s0 + $0x214] sm:$0xff] }
  0x26   :  { %v248_v6 = vmax.bf16 %v413_v54, %v215_v59  ;;  %v414_v7 = vld [vmem:[%s926_s0 + $0x358] sm:$0xff]  ;;  %v430_v8 = vld [vmem:[%s926_s0 + $0x3c8] sm:$0xff]  ;;  %v151_v9 = vmax.bf16 %v367_v57, %v118_v61  ;;  %v54_v11 = vmax.bf16 %v321_v4, %v21_v3  ;;  %v399_v13 = vld [vmem:[%s926_s0 + $0x2f0] sm:$0xf] }
  0x27   :  { %296 = vst [vmem:[%s927_s1 + $0x38] sm:$0xff] %v280_v0  ;;  %v216_v12 = vmax.bf16 %v398_v60, %v183_v1  ;;  %v119_v14 = vmax.bf16 %v352_v63, %v86_v2  ;;  %v384_v15 = vld [vmem:[%s926_s0 + $0x284] sm:$0xff]  ;;  %v353_v16 = vld [vmem:[%s926_s0 + $0x1ac] sm:$0xff]  ;;  %v322_v21 = vld [vmem:[%s926_s0 + $0xd4] sm:$0xff] }
  0x28   :  { %v281_v17 = vmax.bf16 %v429_v55, %v248_v6  ;;  %v184_v18 = vmax.bf16 %v383_v62, %v151_v9  ;;  %v87_v19 = vmax.bf16 %v337_v5, %v54_v11  ;;  %v22_v20 = vld [vmem:[%s926_s0 + $0x64] sm:$0xff]  ;;  %v415_v24 = vld [vmem:[%s926_s0 + $0x360] sm:$0xf]  ;;  %v431_v25 = vld [vmem:[%s926_s0 + $0x3d0] sm:$0xf] }
  0x29   :  { %v338_v22 = vld [vmem:[%s926_s0 + $0x144] sm:$0xff]  ;;  %v249_v23 = vmax.bf16 %v414_v7, %v216_v12  ;;  %v152_v26 = vmax.bf16 %v368_v10, %v119_v14  ;;  %v369_v27 = vld [vmem:[%s926_s0 + $0x21c] sm:$0xff]  ;;  %v55_v28 = vmax.bf16 %v322_v21, %v22_v20  ;;  %v400_v30 = vld [vmem:[%s926_s0 + $0x2f4] sm:$0xff] }
  0x2a   :  { %297 = vst [vmem:[%s927_s1 + $0x40] sm:$0xff] %v281_v17  ;;  %v217_v29 = vmax.bf16 %v399_v13, %v184_v18  ;;  %v120_v31 = vmax.bf16 %v353_v16, %v87_v19  ;;  %v385_v32 = vld [vmem:[%s926_s0 + $0x28c] sm:$0xff]  ;;  %v354_v33 = vld [vmem:[%s926_s0 + $0x1b4] sm:$0xff]  ;;  %v323_v38 = vld [vmem:[%s926_s0 + $0xdc] sm:$0xf] }
  0x2b   :  { %v282_v34 = vmax.bf16 %v430_v8, %v249_v23  ;;  %v185_v35 = vmax.bf16 %v384_v15, %v152_v26  ;;  %v88_v36 = vmax.bf16 %v338_v22, %v55_v28  ;;  %v23_v37 = vld [vmem:[%s926_s0 + $0x6c] sm:$0xf]  ;;  %v416_v41 = vld [vmem:[%s926_s0 + $0x364] sm:$0xff]  ;;  %v401_v46 = vld [vmem:[%s926_s0 + $0x2fc] sm:$0xff] }
  0x2c   :  { %v339_v39 = vld [vmem:[%s926_s0 + $0x14c] sm:$0xf]  ;;  %v250_v40 = vmax.bf16 %v415_v24, %v217_v29  ;;  %v153_v42 = vmax.bf16 %v369_v27, %v120_v31  ;;  %v370_v43 = vld [vmem:[%s926_s0 + $0x224] sm:$0xff]  ;;  %v56_v44 = vmax.bf16 %v323_v38, %v23_v37  ;;  %v355_v48 = vld [vmem:[%s926_s0 + $0x1bc] sm:$0xf] }
  0x2d   :  { %298 = vst [vmem:[%s927_s1 + $0x48] sm:$0xff] %v282_v34  ;;  %v218_v45 = vmax.bf16 %v400_v30, %v185_v35  ;;  %v121_v47 = vmax.bf16 %v354_v33, %v88_v36  ;;  %v432_v50 = vld [vmem:[%s926_s0 + $0x3d4] sm:$0xff]  ;;  %v417_v55 = vld [vmem:[%s926_s0 + $0x36c] sm:$0xff]  ;;  %v402_v59 = vld [vmem:[%s926_s0 + $0x304] sm:$0xff] }
  0x2e   :  { %v283_v49 = vmax.bf16 %v431_v25, %v250_v40  ;;  %v186_v51 = vmax.bf16 %v385_v32, %v153_v42  ;;  %v386_v52 = vld [vmem:[%s926_s0 + $0x294] sm:$0xff]  ;;  %v89_v53 = vmax.bf16 %v339_v39, %v56_v44  ;;  %v371_v57 = vld [vmem:[%s926_s0 + $0x22c] sm:$0xf]  ;;  %v433_v62 = vld [vmem:[%s926_s0 + $0x3dc] sm:$0xff] }
  0x2f   :  { %v251_v54 = vmax.bf16 %v416_v41, %v218_v45  ;;  %v154_v56 = vmax.bf16 %v370_v43, %v121_v47  ;;  %v387_v0 = vld [vmem:[%s926_s0 + $0x29c] sm:$0xf]  ;;  %v418_v2 = vld [vmem:[%s926_s0 + $0x374] sm:$0xff]  ;;  %v403_v5 = vld [vmem:[%s926_s0 + $0x30c] sm:$0xf] }
  0x30   :  { %299 = vst [vmem:[%s927_s1 + $0x50] sm:$0xf] %v283_v49  ;;  %v219_v58 = vmax.bf16 %v401_v46, %v186_v51  ;;  %v122_v60 = vmax.bf16 %v355_v48, %v89_v53  ;;  %v434_v7 = vld [vmem:[%s926_s0 + $0x3e4] sm:$0xff]  ;;  %v419_v10 = vld [vmem:[%s926_s0 + $0x37c] sm:$0xf] }
  0x31   :  { %v284_v61 = vmax.bf16 %v432_v50, %v251_v54  ;;  %v187_v63 = vmax.bf16 %v386_v52, %v154_v56  ;;  %v435_v13 = vld [vmem:[%s926_s0 + $0x3ec] sm:$0xf] }
  0x32   :  { %v252_v1 = vmax.bf16 %v417_v55, %v219_v58  ;;  %v155_v3 = vmax.bf16 %v371_v57, %v122_v60 }
  0x33   :  { %300 = vst [vmem:[%s927_s1 + $0x54] sm:$0xff] %v284_v61  ;;  %v220_v4 = vmax.bf16 %v402_v59, %v187_v63 }
  0x34   :  { %v285_v6 = vmax.bf16 %v433_v62, %v252_v1  ;;  %v188_v8 = vmax.bf16 %v387_v0, %v155_v3 }
  0x35   :  { %v253_v9 = vmax.bf16 %v418_v2, %v220_v4 }
  0x36   :  { %301 = vst [vmem:[%s927_s1 + $0x5c] sm:$0xff] %v285_v6  ;;  %v221_v11 = vmax.bf16 %v403_v5, %v188_v8 }
  0x37   :  { %v286_v12 = vmax.bf16 %v434_v7, %v253_v9 }
  0x38   :  { %v254_v14 = vmax.bf16 %v419_v10, %v221_v11 }
  0x39   :  { %302 = vst [vmem:[%s927_s1 + $0x64] sm:$0xff] %v286_v12 }
  0x3a   :  { %v287_v15 = vmax.bf16 %v435_v13, %v254_v14 }
  0x3c   :  { %303 = vst [vmem:[%s927_s1 + $0x6c] sm:$0xf] %v287_v15 }

// kernel: mixed_7a_forward.9
= control target key start
LH: loop header
LB: loop body
LE: loop exit
PB: predicated region body
PF: predicated region fallthrough
CT: control target
= control target key end

     0   :  { %s6652_s12 = smov 0   ;;  %s6654_s13 = smov 0   ;;  %s8047_s0 = inlined_call_operand.vmem [shape: bf16[162,2304], index: 0, kind: input, shape index: {}]   ;;  %s8048_s1 = inlined_call_operand.vmem [shape: bf16[2304,256], index: 1, kind: input, shape index: {}]   ;;  %s8049_s2 = inlined_call_operand.vmem [shape: f32[1,256], index: 2, kind: input, shape index: {}]   ;;  %s8050_s3 = inlined_call_operand.vmem [shape: bf16[162,256], index: 3, kind: output, shape index: {}]  }
   0x1   :  { %s6656_s14 = smov 0   ;;  %s6658_s15 = smov 0  }
   0x2   :  { %s6660_s16 = smov 0  }
   0x3 LB: > { %s4789_s17 = sadd.s32 4294967295, %s6598_s16   ;;  %s25_s18 = sadd.s32 1, %s6594_s15  ;;  %s6598_s16 = sphi %s6660_s16, %s13_s16   ;;  %s6594_s15 = sphi %s6658_s15, %s8058_s15   ;;  %s6590_s14 = sphi %s6656_s14, %s8057_s14   ;;  %s6586_s13 = sphi %s6654_s13, %s8056_s13   ;;  %s6582_s12 = sphi %s6652_s12, %s8055_s12  }
   0x4   : > { %p27_p0 = scmp.ge.s32.totalorder %s25_s18, 2  ;;  %s112_s19 = sadd.s32 1, %s6586_s13 }
   0x5   : > { %p122_p1 = scmp.ne.s32.totalorder %s6586_s13, %s6582_s12  ;;  %p123_p2 = scmp.eq.s32.totalorder %s4789_s17, 1 }
   0x6   : > { %s8060_s18 = smov (%p27_p0, %s25_s18), 0  ;;  %p4795_p4 = scmp.ge.s32.totalorder %s6598_s16, 1 }
   0x7   : > { %p6684_p3 = por %p123_p2, %p122_p1  ;;  %s107_s21 = ssub.s32 %s6594_s15, %s8060_s18 }
   0x8   : > { %p184_p5 = scmp.lt.s32.totalorder %s6598_s16, 3  ;;  %p110_p6 = scmp.eq.s32.totalorder %s107_s21, 0 }
   0xa   : > { %p185_p7 = pnand %p4795_p4, %p184_p5 }
   0xb   : > { %s6693_s22 = scalar_select %p110_p6, %s6586_s13, %s112_s19  }
   0xc   : > { %188 = sbr.rel (%p185_p7) target bundleno = 715 (0x2cb), region = 32  ;;  %v5822_v0 = vld [vmem:[%s8048_s1 + $0x4] ss:$8 sps:$4 sm:$0xff] (!%p185_p7)   ;;  %v5826_v2 = vld [vmem:[%s8048_s1] ss:$8 sps:$4 sm:$0xff] (!%p185_p7)   ;;  %s219_s10 = sand.u32 (!%p185_p7), 1, %s6582_s12  }
   0xd   : > { %v5824_v1 = vld [vmem:[%s8048_s1 + $0x404] ss:$8 sps:$4 sm:$0xff] (!%p185_p7)   ;;  %3077 = vmatprep.subr.bf16.mxu1 (!%p185_p7), %v5822_v0  ;;  %v5827_v3 = vld [vmem:[%s8048_s1 + $0x400] ss:$8 sps:$4 sm:$0xff] (!%p185_p7)   ;;  %v5828_v4 = vld [vmem:[%s8048_s1 + $0x14] ss:$8 sps:$4 sm:$0xff] (!%p185_p7)  }
   0xe   : > { %3609 = vmatprep.subr.bf16.mxu0 (!%p185_p7), %v5824_v1  ;;  %3078 = vmatpush1.bf16.msra.mxu1 (!%p185_p7), %v5826_v2  ;;  %v5830_v5 = vld [vmem:[%s8048_s1 + $0x414] ss:$8 sps:$4 sm:$0xff] (!%p185_p7)   ;;  %v5832_v6 = vld [vmem:[%s8048_s1 + $0x10] ss:$8 sps:$4 sm:$0xff] (!%p185_p7)   ;;  %v5834_v8 = vld [vmem:[%s8048_s1 + $0x24] ss:$8 sps:$4 sm:$0xff] (!%p185_p7)  }
   0xf   : > { %3610 = vmatpush1.bf16.msra.mxu0 (!%p185_p7), %v5827_v3  ;;  %3079 = vmatprep.subr.bf16.mxu1 (!%p185_p7), %v5828_v4  ;;  %v5833_v7 = vld [vmem:[%s8048_s1 + $0x410] ss:$8 sps:$4 sm:$0xff] (!%p185_p7)   ;;  %v5836_v9 = vld [vmem:[%s8048_s1 + $0x424] ss:$8 sps:$4 sm:$0xff] (!%p185_p7)   ;;  %v5838_v10 = vld [vmem:[%s8048_s1 + $0x20] ss:$8 sps:$4 sm:$0xff] (!%p185_p7)  }
  0x10   : > { %3611 = vmatprep.subr.bf16.mxu0 (!%p185_p7), %v5830_v5  ;;  %v5839_v11 = vld [vmem:[%s8048_s1 + $0x420] ss:$8 sps:$4 sm:$0xff] (!%p185_p7)   ;;  %v5840_v12 = vld [vmem:[%s8048_s1 + $0x34] ss:$8 sps:$4 sm:$0xff] (!%p185_p7)   ;;  %v5844_v14 = vld [vmem:[%s8048_s1 + $0x30] ss:$8 sps:$4 sm:$0xff] (!%p185_p7)  }
  0x11   : > { %v5842_v13 = vld [vmem:[%s8048_s1 + $0x434] ss:$8 sps:$4 sm:$0xff] (!%p185_p7)   ;;  %v5845_v15 = vld [vmem:[%s8048_s1 + $0x430] ss:$8 sps:$4 sm:$0xff] (!%p185_p7)   ;;  %v5846_v16 = vld [vmem:[%s8048_s1 + $0x44] ss:$8 sps:$4 sm:$0xff] (!%p185_p7)  }
  0x12   : > { %3080 = vmatpush1.bf16.msra.mxu1 (!%p185_p7), %v5832_v6  ;;  %v5848_v17 = vld [vmem:[%s8048_s1 + $0x444] ss:$8 sps:$4 sm:$0xff] (!%p185_p7)   ;;  %v5850_v18 = vld [vmem:[%s8048_s1 + $0x40] ss:$8 sps:$4 sm:$0xff] (!%p185_p7)   ;;  %v5852_v20 = vld [vmem:[%s8048_s1 + $0x54] ss:$8 sps:$4 sm:$0xff] (!%p185_p7)  }
  0x13   : > { %3612 = vmatpush1.bf16.msra.mxu0 %v5833_v7  ;;  %3081 = vmatprep.subr.bf16.mxu1 %v5834_v8  ;;  %v5851_v19 = vld [vmem:[%s8048_s1 + $0x440] ss:$8 sps:$4 sm:$0xff]   ;;  %v5854_v21 = vld [vmem:[%s8048_s1 + $0x454] ss:$8 sps:$4 sm:$0xff]   ;;  %v5856_v22 = vld [vmem:[%s8048_s1 + $0x50] ss:$8 sps:$4 sm:$0xff]  }
  0x14   : > { %3613 = vmatprep.subr.bf16.mxu0 %v5836_v9  ;;  %v5857_v23 = vld [vmem:[%s8048_s1 + $0x450] ss:$8 sps:$4 sm:$0xff]   ;;  %v5858_v24 = vld [vmem:[%s8048_s1 + $0x64] ss:$8 sps:$4 sm:$0xff]   ;;  %v5862_v26 = vld [vmem:[%s8048_s1 + $0x60] ss:$8 sps:$4 sm:$0xff]  }
  0x15   : > { %v5860_v25 = vld [vmem:[%s8048_s1 + $0x464] ss:$8 sps:$4 sm:$0xff]   ;;  %v5863_v27 = vld [vmem:[%s8048_s1 + $0x460] ss:$8 sps:$4 sm:$0xff]   ;;  %v5864_v28 = vld [vmem:[%s8048_s1 + $0x74] ss:$8 sps:$4 sm:$0xff]  }
  0x16   : > { %3082 = vmatpush1.bf16.msra.mxu1 %v5838_v10  ;;  %s6783_s24 = smul.u32 20, %s6590_s14  ;;  %v5866_v29 = vld [vmem:[%s8048_s1 + $0x474] ss:$8 sps:$4 sm:$0xff]   ;;  %v5868_v30 = vld [vmem:[%s8048_s1 + $0x70] ss:$8 sps:$4 sm:$0xff]  }
  0x17   : > { %3614 = vmatpush1.bf16.msra.mxu0 %v5839_v11  ;;  %3083 = vmatprep.subr.bf16.mxu1 %v5840_v12  ;;  %v5869_v31 = vld [vmem:[%s8048_s1 + $0x470] ss:$8 sps:$4 sm:$0xff]   ;;  %v5870_v32 = vld [vmem:[%s8048_s1 + $0x84] ss:$8 sps:$4 sm:$0xff]   ;;  %v5874_v34 = vld [vmem:[%s8048_s1 + $0x80] ss:$8 sps:$4 sm:$0xff]  }
  0x18   : > { %3615 = vmatprep.subr.bf16.mxu0 %v5842_v13  ;;  %p228_p8 = scmp.lt.s32.totalorder %s6783_s24, 20  ;;  %v5872_v33 = vld [vmem:[%s8048_s1 + $0x484] ss:$8 sps:$4 sm:$0xff]   ;;  %v5875_v35 = vld [vmem:[%s8048_s1 + $0x480] ss:$8 sps:$4 sm:$0xff]   ;;  %s5715_s11 = smul.u32 160, %s219_s10 }
  0x19   : > { %v5876_v36 = vld [vmem:[%s8048_s1 + $0x94] ss:$8 sps:$4 sm:$0xff]   ;;  %v5880_v38 = vld [vmem:[%s8048_s1 + $0x90] ss:$8 sps:$4 sm:$0xff]   ;;  %v5882_v40 = vld [vmem:[%s8048_s1 + $0xa4] ss:$8 sps:$4 sm:$0xff]  }
  0x1a   : > { %3084 = vmatpush1.bf16.msra.mxu1 %v5844_v14  ;;  %s229_s21 = scalar_select %p228_p8, %s6783_s24, 20  ;;  %v5878_v37 = vld [vmem:[%s8048_s1 + $0x494] ss:$8 sps:$4 sm:$0xff]   ;;  %v5881_v39 = vld [vmem:[%s8048_s1 + $0x490] ss:$8 sps:$4 sm:$0xff]  }
  0x1b   : > { %3616 = vmatpush1.bf16.msra.mxu0 %v5845_v15  ;;  %3085 = vmatprep.subr.bf16.mxu1 %v5846_v16  ;;  %v5884_v41 = vld [vmem:[%s8048_s1 + $0x4a4] ss:$8 sps:$4 sm:$0xff]   ;;  %v5886_v42 = vld [vmem:[%s8048_s1 + $0xa0] ss:$8 sps:$4 sm:$0xff]   ;;  %v5888_v44 = vld [vmem:[%s8048_s1 + $0xb4] ss:$8 sps:$4 sm:$0xff]  }
  0x1c   : > { %3617 = vmatprep.subr.bf16.mxu0 %v5848_v17  ;;  %s5716_s5 = smul.u32 72, %s229_s21  ;;  %v5887_v43 = vld [vmem:[%s8048_s1 + $0x4a0] ss:$8 sps:$4 sm:$0xff]   ;;  %v5890_v45 = vld [vmem:[%s8048_s1 + $0x4b4] ss:$8 sps:$4 sm:$0xff]   ;;  %s7873_s12 = scalar_lea.vmem [#allocation2], %s5715_s11  }
  0x1d   : > { %v5892_v46 = vld [vmem:[%s8048_s1 + $0xb0] ss:$8 sps:$4 sm:$0xff]   ;;  %v5894_v48 = vld [vmem:[%s8048_s1 + $0xc4] ss:$8 sps:$4 sm:$0xff]   ;;  %v5898_v52 = vld [vmem:[%s8048_s1 + $0xc0] ss:$8 sps:$4 sm:$0xff]  }
  0x1e   : > { %3086 = vmatpush1.bf16.msra.mxu1 %v5850_v18  ;;  %s6838_s25 = scalar_lea.vmem %s8047_s0, %s5716_s5  ;;  %v5893_v47 = vld [vmem:[%s8048_s1 + $0x4b0] ss:$8 sps:$4 sm:$0xff]   ;;  %v5896_v50 = vld [vmem:[%s8048_s1 + $0x4c4] ss:$8 sps:$4 sm:$0xff]   ;;  %v5899_v53 = vld [vmem:[%s8048_s1 + $0x4c0] ss:$8 sps:$4 sm:$0xff]  }
  0x1f   : > { %3618 = vmatpush1.bf16.msra.mxu0 %v5851_v19  ;;  %3087 = vmatprep.subr.bf16.mxu1 %v5852_v20  ;;  %v5920_v49 = vld [vmem:[%s6838_s25 + $0x4] ss:$72 sps:$4 sm:$0xff]   ;;  %v5900_v54 = vld [vmem:[%s8048_s1 + $0xd4] ss:$8 sps:$4 sm:$0xff]   ;;  %v5904_v56 = vld [vmem:[%s8048_s1 + $0xd0] ss:$8 sps:$4 sm:$0xff]  }
  0x20   : > { %3619 = vmatprep.subr.bf16.mxu0 %v5854_v21  ;;  %v5923_v51 = vld [vmem:[%s6838_s25 + $0x24] ss:$72 sps:$4 sm:$0xff]   ;;  %3109 = vmatprep.mubr.bf16.mxu1 %v5920_v49  ;;  %v5902_v55 = vld [vmem:[%s8048_s1 + $0x4d4] ss:$8 sps:$4 sm:$0xff]   ;;  %v5905_v57 = vld [vmem:[%s8048_s1 + $0x4d0] ss:$8 sps:$4 sm:$0xff]  }
  0x21   : > { %3641 = vmatprep.mubr.bf16.mxu0 %v5923_v51  ;;  %v5906_v58 = vld [vmem:[%s8048_s1 + $0xe4] ss:$8 sps:$4 sm:$0xff]   ;;  %v5910_v60 = vld [vmem:[%s8048_s1 + $0xe0] ss:$8 sps:$4 sm:$0xff]   ;;  %v5912_v62 = vld [vmem:[%s8048_s1 + $0xf4] ss:$8 sps:$4 sm:$0xff]  }
  0x22   : > { %3088 = vmatpush1.bf16.msra.mxu1 %v5856_v22  ;;  %v5908_v59 = vld [vmem:[%s8048_s1 + $0x4e4] ss:$8 sps:$4 sm:$0xff]   ;;  %v5911_v61 = vld [vmem:[%s8048_s1 + $0x4e0] ss:$8 sps:$4 sm:$0xff]   ;;  %v5914_v63 = vld [vmem:[%s8048_s1 + $0x4f4] ss:$8 sps:$4 sm:$0xff]  }
  0x23   : > { %3620 = vmatpush1.bf16.msra.mxu0 %v5857_v23  ;;  %3089 = vmatprep.subr.bf16.mxu1 %v5858_v24  ;;  %v5916_v0 = vld [vmem:[%s8048_s1 + $0xf0] ss:$8 sps:$4 sm:$0xff]   ;;  %v5926_v2 = vld [vmem:[%s8048_s1 + $0x104] ss:$8 sps:$4 sm:$0xff]   ;;  %v5918_v4 = vld [vmem:[%s6838_s25] ss:$72 sps:$4 sm:$0xff]  }
  0x24   : > { %3621 = vmatprep.subr.bf16.mxu0 %v5860_v25  ;;  %v5917_v1 = vld [vmem:[%s8048_s1 + $0x4f0] ss:$8 sps:$4 sm:$0xff]   ;;  %v5929_v3 = vld [vmem:[%s8048_s1 + $0x504] ss:$8 sps:$4 sm:$0xff]   ;;  %v5921_v5 = vld [vmem:[%s6838_s25 + $0x20] ss:$72 sps:$4 sm:$0xff]  }
  0x25   : > { %v5924_v6 = vld [vmem:[%s8048_s1 + $0x100] ss:$8 sps:$4 sm:$0xff]   ;;  %v5932_v8 = vld [vmem:[%s8048_s1 + $0x114] ss:$8 sps:$4 sm:$0xff]   ;;  %v5930_v12 = vld [vmem:[%s8048_s1 + $0x110] ss:$8 sps:$4 sm:$0xff]  }
  0x26   : > { %3090 = vmatpush1.bf16.msra.mxu1 %v5862_v26  ;;  %v5927_v7 = vld [vmem:[%s8048_s1 + $0x500] ss:$8 sps:$4 sm:$0xff]   ;;  %v5935_v9 = vld [vmem:[%s8048_s1 + $0x514] ss:$8 sps:$4 sm:$0xff]   ;;  %v5933_v13 = vld [vmem:[%s8048_s1 + $0x510] ss:$8 sps:$4 sm:$0xff]  }
  0x27   : > { %3622 = vmatpush1.bf16.msra.mxu0 %v5863_v27  ;;  %3091 = vmatprep.subr.bf16.mxu1 %v5864_v28  ;;  %v5936_v10 = vld [vmem:[%s6838_s25 + $0x94] ss:$72 sps:$4 sm:$0xff]   ;;  %v5944_v14 = vld [vmem:[%s8048_s1 + $0x124] ss:$8 sps:$4 sm:$0xff]   ;;  %v5940_v16 = vld [vmem:[%s6838_s25 + $0x90] ss:$72 sps:$4 sm:$0xff]  }
  0x28   : > { %3623 = vmatprep.subr.bf16.mxu0 %v5866_v29  ;;  %v5938_v11 = vld [vmem:[%s6838_s25 + $0xb4] ss:$72 sps:$4 sm:$0xff]   ;;  %v5947_v15 = vld [vmem:[%s8048_s1 + $0x524] ss:$8 sps:$4 sm:$0xff]   ;;  %v5941_v17 = vld [vmem:[%s6838_s25 + $0xb0] ss:$72 sps:$4 sm:$0xff]  }
  0x29   : > { %v5942_v18 = vld [vmem:[%s8048_s1 + $0x120] ss:$8 sps:$4 sm:$0xff]   ;;  %v5948_v20 = vld [vmem:[%s6838_s25 + $0x124] ss:$72 sps:$4 sm:$0xff]   ;;  %v5952_v21 = vld [vmem:[%s8048_s1 + $0x134] ss:$8 sps:$4 sm:$0xff]  }
  0x2a   : > { %3092 = vmatpush1.bf16.msra.mxu1 %v5868_v30  ;;  %v5945_v19 = vld [vmem:[%s8048_s1 + $0x520] ss:$8 sps:$4 sm:$0xff]   ;;  %v5953_v22 = vld [vmem:[%s6838_s25 + $0x144] ss:$72 sps:$4 sm:$0xff]   ;;  %v5957_v23 = vld [vmem:[%s8048_s1 + $0x534] ss:$8 sps:$4 sm:$0xff]  }
  0x2b   : > { %3624 = vmatpush1.bf16.msra.mxu0 %v5869_v31  ;;  %3093 = vmatprep.subr.bf16.mxu1 %v5870_v32  ;;  %v5950_v24 = vld [vmem:[%s8048_s1 + $0x130] ss:$8 sps:$4 sm:$0xff]   ;;  %v5962_v26 = vld [vmem:[%s8048_s1 + $0x144] ss:$8 sps:$4 sm:$0xff]   ;;  %v5958_v28 = vld [vmem:[%s6838_s25 + $0x120] ss:$72 sps:$4 sm:$0xff]  }
  0x2c   : > { %3625 = vmatprep.subr.bf16.mxu0 %v5872_v33  ;;  %v5955_v25 = vld [vmem:[%s8048_s1 + $0x530] ss:$8 sps:$4 sm:$0xff]   ;;  %v5965_v27 = vld [vmem:[%s8048_s1 + $0x544] ss:$8 sps:$4 sm:$0xff]   ;;  %v5959_v29 = vld [vmem:[%s6838_s25 + $0x140] ss:$72 sps:$4 sm:$0xff]  }
  0x2d   : > { %v5960_v30 = vld [vmem:[%s8048_s1 + $0x140] ss:$8 sps:$4 sm:$0xff]   ;;  %v5966_v32 = vld [vmem:[%s6838_s25 + $0x1b4] ss:$72 sps:$4 sm:$0xff]   ;;  %v5993_v49 = vld [vmem:[%s8048_s1 + $0x570] ss:$8 sps:$4 sm:$0xff]  }
  0x2e   : > { %3094 = vmatpush1.bf16.msra.mxu1 %v5874_v34  ;;  %v5963_v31 = vld [vmem:[%s8048_s1 + $0x540] ss:$8 sps:$4 sm:$0xff]   ;;  %v5968_v33 = vld [vmem:[%s6838_s25 + $0x1d4] ss:$72 sps:$4 sm:$0xff]   ;;  %v6003_v51 = vld [vmem:[%s8048_s1 + $0x184] ss:$8 sps:$4 sm:$0xff]  }
  0x2f   : > { %3626 = vmatpush1.bf16.msra.mxu0 %v5875_v35  ;;  %3095 = vmatprep.subr.bf16.mxu1 %v5876_v36  ;;  %v5974_v34 = vld [vmem:[%s8048_s1 + $0x154] ss:$8 sps:$4 sm:$0xff]   ;;  %v5972_v36 = vld [vmem:[%s8048_s1 + $0x150] ss:$8 sps:$4 sm:$0xff]   ;;  %s4463_s17 = ssub.s32 (%p6684_p3), 21, %s6783_s24  ;;  %s5322_s19 = smul.u32 (%p6684_p3), 160, %s6590_s14 }
  0x30   : > { %3627 = vmatprep.subr.bf16.mxu0 %v5878_v37  ;;  %v5977_v35 = vld [vmem:[%s8048_s1 + $0x554] ss:$8 sps:$4 sm:$0xff]   ;;  %v5975_v37 = vld [vmem:[%s8048_s1 + $0x550] ss:$8 sps:$4 sm:$0xff]   ;;  %p4464_p9 = scmp.lt.s32.totalorder (%p6684_p3), %s4463_s17, 20 }
  0x31   : > { %s7946_s26 = scalar_lea.vmem (%p6684_p3), %s8050_s3, %s5322_s19  }
  0x32   : > { %3096 = vmatpush1.bf16.msra.mxu1 %v5880_v38  ;;  %v5980_v38 = vld [vmem:[%s8048_s1 + $0x164] ss:$8 sps:$4 sm:$0xff]  }
  0x33   : > { %3628 = vmatpush1.bf16.msra.mxu0 %v5881_v39  ;;  %3097 = vmatprep.subr.bf16.mxu1 %v5882_v40  ;;  %v5983_v39 = vld [vmem:[%s8048_s1 + $0x564] ss:$8 sps:$4 sm:$0xff]   ;;  %v5970_v40 = vld [vmem:[%s6838_s25 + $0x1b0] ss:$72 sps:$4 sm:$0xff]  }
  0x34   : > { %3629 = vmatprep.subr.bf16.mxu0 %v5884_v41  ;;  %v5971_v41 = vld [vmem:[%s6838_s25 + $0x1d0] ss:$72 sps:$4 sm:$0xff]  }
  0x36   : > { %3098 = vmatpush1.bf16.msra.mxu1 %v5886_v42  ;;  %v5978_v42 = vld [vmem:[%s8048_s1 + $0x160] ss:$8 sps:$4 sm:$0xff]  }
  0x37   : > { %3630 = vmatpush1.bf16.msra.mxu0 %v5887_v43  ;;  %3099 = vmatprep.subr.bf16.mxu1 %v5888_v44  ;;  %v5981_v43 = vld [vmem:[%s8048_s1 + $0x560] ss:$8 sps:$4 sm:$0xff]   ;;  %v5984_v44 = vld [vmem:[%s6838_s25 + $0x244] ss:$72 sps:$4 sm:$0xff]  }
  0x38   : > { %3631 = vmatprep.subr.bf16.mxu0 %v5890_v45  ;;  %v5986_v45 = vld [vmem:[%s6838_s25 + $0x264] ss:$72 sps:$4 sm:$0xff]  }
  0x3a   : > { %3100 = vmatpush1.bf16.msra.mxu1 %v5892_v46  ;;  %v5992_v46 = vld [vmem:[%s8048_s1 + $0x174] ss:$8 sps:$4 sm:$0xff]  }
  0x3b   : > { %3632 = vmatpush1.bf16.msra.mxu0 %v5893_v47  ;;  %3101 = vmatprep.subr.bf16.mxu1 %v5894_v48  ;;  %v5995_v47 = vld [vmem:[%s8048_s1 + $0x574] ss:$8 sps:$4 sm:$0xff]   ;;  %v5990_v48 = vld [vmem:[%s8048_s1 + $0x170] ss:$8 sps:$4 sm:$0xff]  }
  0x3c   : > { %3633 = vmatprep.subr.bf16.mxu0 %v5896_v50  ;;  %v5988_v50 = vld [vmem:[%s6838_s25 + $0x240] ss:$72 sps:$4 sm:$0xff]  }
  0x3e   : > { %3102 = vmatpush1.bf16.msra.mxu1 %v5898_v52  ;;  %v6007_v52 = vld [vmem:[%s8048_s1 + $0x584] ss:$8 sps:$4 sm:$0xff]  }
  0x3f   : > { %3634 = vmatpush1.bf16.msra.mxu0 %v5899_v53  ;;  %3103 = vmatprep.subr.bf16.mxu1 %v5900_v54  ;;  %v5989_v53 = vld [vmem:[%s6838_s25 + $0x260] ss:$72 sps:$4 sm:$0xff]   ;;  %v5996_v54 = vld [vmem:[%s6838_s25 + $0x2d4] ss:$72 sps:$4 sm:$0xff]  }
  0x40   : > { %3635 = vmatprep.subr.bf16.mxu0 %v5902_v55  ;;  %v5998_v55 = vld [vmem:[%s6838_s25 + $0x2f4] ss:$72 sps:$4 sm:$0xff]  }
  0x42   : > { %3104 = vmatpush1.bf16.msra.mxu1 %v5904_v56  ;;  %v6001_v56 = vld [vmem:[%s8048_s1 + $0x180] ss:$8 sps:$4 sm:$0xff]  }
  0x43   : > { %3636 = vmatpush1.bf16.msra.mxu0 %v5905_v57  ;;  %3105 = vmatprep.subr.bf16.mxu1 %v5906_v58  ;;  %v6005_v57 = vld [vmem:[%s8048_s1 + $0x580] ss:$8 sps:$4 sm:$0xff]   ;;  %v6010_v58 = vld [vmem:[%s8048_s1 + $0x194] ss:$8 sps:$4 sm:$0xff]  }
  0x44   : > { %3637 = vmatprep.subr.bf16.mxu0 %v5908_v59  ;;  %v6013_v59 = vld [vmem:[%s8048_s1 + $0x594] ss:$8 sps:$4 sm:$0xff]  }
  0x46   : > { %3106 = vmatpush1.bf16.msra.mxu1 %v5910_v60  ;;  %v6008_v60 = vld [vmem:[%s8048_s1 + $0x190] ss:$8 sps:$4 sm:$0xff]  }
  0x47   : > { %3638 = vmatpush1.bf16.msra.mxu0 %v5911_v61  ;;  %3107 = vmatprep.subr.bf16.mxu1 %v5912_v62  ;;  %v6000_v61 = vld [vmem:[%s6838_s25 + $0x2d0] ss:$72 sps:$4 sm:$0xff]  }
  0x48   : > { %3639 = vmatprep.subr.bf16.mxu0 %v5914_v63  ;;  %v6004_v62 = vld [vmem:[%s6838_s25 + $0x2f0] ss:$72 sps:$4 sm:$0xff]  }
  0x49   : > { %v6011_v63 = vld [vmem:[%s8048_s1 + $0x590] ss:$8 sps:$4 sm:$0xff]  }
  0x4a   : > { %3108 = vmatpush1.bf16.msra.mxu1 %v5916_v0  ;;  %v6022_v0 = vld [vmem:[%s8048_s1 + $0x1a4] ss:$8 sps:$4 sm:$0xff]  }
  0x4b   : > { %3640 = vmatpush1.bf16.msra.mxu0 %v5917_v1  ;;  %3210 = vmatprep.subr.bf16.mxu1 %v5926_v2  ;;  %v6025_v1 = vld [vmem:[%s8048_s1 + $0x5a4] ss:$8 sps:$4 sm:$0xff]  }
  0x4c   : > { %3742 = vmatprep.subr.bf16.mxu0 %v5929_v3  ;;  %v6014_v2 = vld [vmem:[%s6838_s25 + $0x364] ss:$72 sps:$4 sm:$0xff]  }
  0x4d   : > { %3110 = vmatmul.mubr.bf16.vlgmr.msra.gmra.mrb[0].mxu1 %v5918_v4  ;;  %v6016_v3 = vld [vmem:[%s6838_s25 + $0x384] ss:$72 sps:$4 sm:$0xff]   ;;  %v6020_v4 = vld [vmem:[%s8048_s1 + $0x1a0] ss:$8 sps:$4 sm:$0xff]  }
  0x4e   : > { %3642 = vmatmul.mubr.bf16.vlgmr.msra.gmra.mrb[0].mxu0 %v5921_v5  ;;  %3211 = vmatpush1.bf16.msra.mxu1 %v5924_v6  ;;  %v6023_v5 = vld [vmem:[%s8048_s1 + $0x5a0] ss:$8 sps:$4 sm:$0xff]   ;;  %v6030_v6 = vld [vmem:[%s8048_s1 + $0x1b4] ss:$8 sps:$4 sm:$0xff]  }
  0x4f   : > { %3743 = vmatpush1.bf16.msra.mxu0 %v5927_v7  ;;  %3212 = vmatprep.subr.bf16.mxu1 %v5932_v8  ;;  %v6035_v7 = vld [vmem:[%s8048_s1 + $0x5b4] ss:$8 sps:$4 sm:$0xff]   ;;  %v6028_v8 = vld [vmem:[%s8048_s1 + $0x1b0] ss:$8 sps:$4 sm:$0xff]  }
  0x50   : > { %3744 = vmatprep.subr.bf16.mxu0 %v5935_v9  ;;  %3119 = vmatprep.mubr.bf16.mxu1 %v5936_v10  ;;  %v6018_v9 = vld [vmem:[%s6838_s25 + $0x360] ss:$72 sps:$4 sm:$0xff]  }
  0x51   : > { %3651 = vmatprep.mubr.bf16.mxu0 %v5938_v11  ;;  %v6019_v10 = vld [vmem:[%s6838_s25 + $0x380] ss:$72 sps:$4 sm:$0xff]   ;;  %v6033_v11 = vld [vmem:[%s8048_s1 + $0x5b0] ss:$8 sps:$4 sm:$0xff]  }
  0x52   : > { %3213 = vmatpush1.bf16.msra.mxu1 %v5930_v12  ;;  %v6040_v12 = vld [vmem:[%s8048_s1 + $0x1c4] ss:$8 sps:$4 sm:$0xff]  }
  0x53   : > { %3745 = vmatpush1.bf16.msra.mxu0 %v5933_v13  ;;  %3214 = vmatprep.subr.bf16.mxu1 %v5944_v14  ;;  %v6043_v13 = vld [vmem:[%s8048_s1 + $0x5c4] ss:$8 sps:$4 sm:$0xff]   ;;  %v6026_v14 = vld [vmem:[%s6838_s25 + $0x3f4] ss:$72 sps:$4 sm:$0xff]  }
  0x54   : > { %3746 = vmatprep.subr.bf16.mxu0 %v5947_v15  ;;  %v6031_v15 = vld [vmem:[%s6838_s25 + $0x414] ss:$72 sps:$4 sm:$0xff]  }
  0x55   : > { %3120 = vmatmul.mubr.bf16.gmra.mrb[4].mxu1 %v5940_v16  ;;  %v6038_v16 = vld [vmem:[%s8048_s1 + $0x1c0] ss:$8 sps:$4 sm:$0xff]  }
  0x56   : > { %3652 = vmatmul.mubr.bf16.gmra.mrb[4].mxu0 %v5941_v17  ;;  %3215 = vmatpush1.bf16.msra.mxu1 %v5942_v18  ;;  %v6041_v17 = vld [vmem:[%s8048_s1 + $0x5c0] ss:$8 sps:$4 sm:$0xff]   ;;  %v6052_v18 = vld [vmem:[%s8048_s1 + $0x1d4] ss:$8 sps:$4 sm:$0xff]  }
  0x57   : > { %3747 = vmatpush1.bf16.msra.mxu0 %v5945_v19  ;;  %3129 = vmatprep.mubr.bf16.mxu1 %v5948_v20  ;;  %v6055_v19 = vld [vmem:[%s8048_s1 + $0x5d4] ss:$8 sps:$4 sm:$0xff]   ;;  %v6050_v20 = vld [vmem:[%s8048_s1 + $0x1d0] ss:$8 sps:$4 sm:$0xff]  }
  0x58   : > { %3216 = vmatprep.subr.bf16.mxu1 %v5952_v21  ;;  %3661 = vmatprep.mubr.bf16.mxu0 %v5953_v22  ;;  %v6036_v21 = vld [vmem:[%s6838_s25 + $0x3f0] ss:$72 sps:$4 sm:$0xff]  }
  0x59   : > { %3748 = vmatprep.subr.bf16.mxu0 %v5957_v23  ;;  %v6037_v22 = vld [vmem:[%s6838_s25 + $0x410] ss:$72 sps:$4 sm:$0xff]  }
  0x5a   : > { %3217 = vmatpush1.bf16.msra.mxu1 %v5950_v24  ;;  %v6053_v23 = vld [vmem:[%s8048_s1 + $0x5d0] ss:$8 sps:$4 sm:$0xff]   ;;  %v6058_v24 = vld [vmem:[%s8048_s1 + $0x1e4] ss:$8 sps:$4 sm:$0xff]  }
  0x5b   : > { %3749 = vmatpush1.bf16.msra.mxu0 %v5955_v25  ;;  %3218 = vmatprep.subr.bf16.mxu1 %v5962_v26  ;;  %v6061_v25 = vld [vmem:[%s8048_s1 + $0x5e4] ss:$8 sps:$4 sm:$0xff]  }
  0x5c   : > { %3750 = vmatprep.subr.bf16.mxu0 %v5965_v27  ;;  %v6044_v26 = vld [vmem:[%s6838_s25 + $0x484] ss:$72 sps:$4 sm:$0xff]  }
  0x5d   : > { %3130 = vmatmul.mubr.bf16.gmra.mrb[8].mxu1 %v5958_v28  ;;  %v6046_v27 = vld [vmem:[%s6838_s25 + $0x4a4] ss:$72 sps:$4 sm:$0xff]   ;;  %v6056_v28 = vld [vmem:[%s8048_s1 + $0x1e0] ss:$8 sps:$4 sm:$0xff]  }
  0x5e   : > { %3662 = vmatmul.mubr.bf16.gmra.mrb[8].mxu0 %v5959_v29  ;;  %3219 = vmatpush1.bf16.msra.mxu1 %v5960_v30  ;;  %v6059_v29 = vld [vmem:[%s8048_s1 + $0x5e0] ss:$8 sps:$4 sm:$0xff]   ;;  %v6070_v30 = vld [vmem:[%s8048_s1 + $0x1f4] ss:$8 sps:$4 sm:$0xff]  }
  0x5f   : > { %3751 = vmatpush1.bf16.msra.mxu0 %v5963_v31  ;;  %3139 = vmatprep.mubr.bf16.mxu1 %v5966_v32  ;;  %v6073_v31 = vld [vmem:[%s8048_s1 + $0x5f4] ss:$8 sps:$4 sm:$0xff]   ;;  %v6068_v32 = vld [vmem:[%s8048_s1 + $0x1f0] ss:$8 sps:$4 sm:$0xff]  }
  0x60   : > { %3671 = vmatprep.mubr.bf16.mxu0 %v5968_v33  ;;  %3220 = vmatprep.subr.bf16.mxu1 %v5974_v34  ;;  %v6071_v33 = vld [vmem:[%s8048_s1 + $0x5f0] ss:$8 sps:$4 sm:$0xff]   ;;  %v6048_v34 = vld [vmem:[%s6838_s25 + $0x480] ss:$72 sps:$4 sm:$0xff]  }
  0x61   : > { %3752 = vmatprep.subr.bf16.mxu0 %v5977_v35  ;;  %v6082_v35 = vld [vmem:[%s8048_s1 + $0x204] ss:$8 sps:$4 sm:$0xff]  }
  0x62   : > { %3221 = vmatpush1.bf16.msra.mxu1 %v5972_v36  ;;  %v6085_v36 = vld [vmem:[%s8048_s1 + $0x604] ss:$8 sps:$4 sm:$0xff]  }
  0x63   : > { %3753 = vmatpush1.bf16.msra.mxu0 %v5975_v37  ;;  %3222 = vmatprep.subr.bf16.mxu1 %v5980_v38  ;;  %v6049_v37 = vld [vmem:[%s6838_s25 + $0x4a0] ss:$72 sps:$4 sm:$0xff]   ;;  %v6062_v38 = vld [vmem:[%s6838_s25 + $0x514] ss:$72 sps:$4 sm:$0xff]  }
  0x64   : > { %3754 = vmatprep.subr.bf16.mxu0 %v5983_v39  ;;  %v6064_v39 = vld [vmem:[%s6838_s25 + $0x534] ss:$72 sps:$4 sm:$0xff]  }
  0x65   : > { %3140 = vmatmul.mubr.bf16.gmra.mrb[12].mxu1 %v5970_v40  ;;  %v6066_v40 = vld [vmem:[%s6838_s25 + $0x510] ss:$72 sps:$4 sm:$0xff]  }
  0x66   : > { %3672 = vmatmul.mubr.bf16.gmra.mrb[12].mxu0 %v5971_v41  ;;  %3149 = vmatprep.mubr.bf16.mxu1 %v5984_v44  ;;  %v6067_v41 = vld [vmem:[%s6838_s25 + $0x530] ss:$72 sps:$4 sm:$0xff]  }
  0x67   : > { %3223 = vmatpush1.bf16.msra.mxu1 %v5978_v42  ;;  %3681 = vmatprep.mubr.bf16.mxu0 %v5986_v45  ;;  %v6076_v42 = vld [vmem:[%s6838_s25 + $0xc] ss:$72 sps:$4 sm:$0xff]   ;;  %v6074_v44 = vld [vmem:[%s6838_s25 + $0x8] ss:$72 sps:$4 sm:$0xff]  }
  0x68   : > { %3755 = vmatpush1.bf16.msra.mxu0 %v5981_v43  ;;  %3224 = vmatprep.subr.bf16.mxu1 %v5992_v46  ;;  %v6079_v43 = vld [vmem:[%s6838_s25 + $0x2c] ss:$72 sps:$4 sm:$0xff]   ;;  %v6077_v45 = vld [vmem:[%s6838_s25 + $0x28] ss:$72 sps:$4 sm:$0xff]  }
  0x69   : > { %3756 = vmatprep.subr.bf16.mxu0 %v5995_v47  ;;  %v6080_v46 = vld [vmem:[%s8048_s1 + $0x200] ss:$8 sps:$4 sm:$0xff]  }
  0x6a   : > { %v6083_v47 = vld [vmem:[%s8048_s1 + $0x600] ss:$8 sps:$4 sm:$0xff]  }
  0x6b   : > { %3225 = vmatpush1.bf16.msra.mxu1 %v5990_v48  ;;  %v6088_v48 = vld [vmem:[%s8048_s1 + $0x214] ss:$8 sps:$4 sm:$0xff]  }
  0x6c   : > { %3757 = vmatpush1.bf16.msra.mxu0 %v5993_v49  ;;  %3226 = vmatprep.subr.bf16.mxu1 %v6003_v51  ;;  %v6091_v49 = vld [vmem:[%s8048_s1 + $0x614] ss:$8 sps:$4 sm:$0xff]  }
  0x6d   : > { %3758 = vmatprep.subr.bf16.mxu0 %v6007_v52  ;;  %3150 = vmatmul.mubr.bf16.gmra.mrb[16].mxu1 %v5988_v50  ;;  %v6092_v50 = vld [vmem:[%s6838_s25 + $0x9c] ss:$72 sps:$4 sm:$0xff]   ;;  %v6086_v52 = vld [vmem:[%s8048_s1 + $0x210] ss:$8 sps:$4 sm:$0xff]  }
  0x6e   : > { %3682 = vmatmul.mubr.bf16.gmra.mrb[16].mxu0 %v5989_v53  ;;  %3159 = vmatprep.mubr.bf16.mxu1 %v5996_v54  ;;  %v6094_v51 = vld [vmem:[%s6838_s25 + $0xbc] ss:$72 sps:$4 sm:$0xff]   ;;  %v6089_v53 = vld [vmem:[%s8048_s1 + $0x610] ss:$8 sps:$4 sm:$0xff]  }
  0x6f   : > { %3691 = vmatprep.mubr.bf16.mxu0 %v5998_v55  ;;  %3227 = vmatpush1.bf16.msra.mxu1 %v6001_v56  ;;  %v6100_v54 = vld [vmem:[%s8048_s1 + $0x224] ss:$8 sps:$4 sm:$0xff]   ;;  %v6096_v56 = vld [vmem:[%s6838_s25 + $0x98] ss:$72 sps:$4 sm:$0xff]  }
  0x70   : > { %3759 = vmatpush1.bf16.msra.mxu0 %v6005_v57  ;;  %3228 = vmatprep.subr.bf16.mxu1 %v6010_v58  ;;  %v6103_v55 = vld [vmem:[%s8048_s1 + $0x624] ss:$8 sps:$4 sm:$0xff]   ;;  %v6097_v57 = vld [vmem:[%s6838_s25 + $0xb8] ss:$72 sps:$4 sm:$0xff]  }
  0x71   : > { %3760 = vmatprep.subr.bf16.mxu0 %v6013_v59  ;;  %v6098_v58 = vld [vmem:[%s8048_s1 + $0x220] ss:$8 sps:$4 sm:$0xff]  }
  0x72   : > { %v6101_v59 = vld [vmem:[%s8048_s1 + $0x620] ss:$8 sps:$4 sm:$0xff]  }
  0x73   : > { %3229 = vmatpush1.bf16.msra.mxu1 %v6008_v60  ;;  %v6104_v60 = vld [vmem:[%s6838_s25 + $0x12c] ss:$72 sps:$4 sm:$0xff]  }
  0x74   : > { %3761 = vmatpush1.bf16.msra.mxu0 %v6011_v63  ;;  %3230 = vmatprep.subr.bf16.mxu1 %v6022_v0  ;;  %v6113_v63 = vld [vmem:[%s8048_s1 + $0x634] ss:$8 sps:$4 sm:$0xff]   ;;  %v6106_v0 = vld [vmem:[%s8048_s1 + $0x230] ss:$8 sps:$4 sm:$0xff]  }
  0x75   : > { %3762 = vmatprep.subr.bf16.mxu0 %v6025_v1  ;;  %3160 = vmatmul.mubr.bf16.gmra.mrb[20].mxu1 %v6000_v61  ;;  %v6108_v61 = vld [vmem:[%s8048_s1 + $0x234] ss:$8 sps:$4 sm:$0xff]   ;;  %v6111_v1 = vld [vmem:[%s8048_s1 + $0x630] ss:$8 sps:$4 sm:$0xff]  }
  0x76   : > { %3692 = vmatmul.mubr.bf16.gmra.mrb[20].mxu0 %v6004_v62  ;;  %3169 = vmatprep.mubr.bf16.mxu1 %v6014_v2  ;;  %v6109_v62 = vld [vmem:[%s6838_s25 + $0x14c] ss:$72 sps:$4 sm:$0xff]  }
  0x77   : > { %3701 = vmatprep.mubr.bf16.mxu0 %v6016_v3  ;;  %3231 = vmatpush1.bf16.msra.mxu1 %v6020_v4  ;;  %v6118_v2 = vld [vmem:[%s8048_s1 + $0x244] ss:$8 sps:$4 sm:$0xff]   ;;  %v6114_v3 = vld [vmem:[%s6838_s25 + $0x128] ss:$72 sps:$4 sm:$0xff]  }
  0x78   : > { %3763 = vmatpush1.bf16.msra.mxu0 %v6023_v5  ;;  %3232 = vmatprep.subr.bf16.mxu1 %v6030_v6  ;;  %v6121_v4 = vld [vmem:[%s8048_s1 + $0x644] ss:$8 sps:$4 sm:$0xff]   ;;  %v6115_v5 = vld [vmem:[%s6838_s25 + $0x148] ss:$72 sps:$4 sm:$0xff]  }
  0x79   : > { %3764 = vmatprep.subr.bf16.mxu0 %v6035_v7  ;;  %v6116_v6 = vld [vmem:[%s8048_s1 + $0x240] ss:$8 sps:$4 sm:$0xff]  }
  0x7a   : > { %v6119_v7 = vld [vmem:[%s8048_s1 + $0x640] ss:$8 sps:$4 sm:$0xff]  }
  0x7b   : > { %3233 = vmatpush1.bf16.msra.mxu1 %v6028_v8  ;;  %v6122_v8 = vld [vmem:[%s6838_s25 + $0x1bc] ss:$72 sps:$4 sm:$0xff]  }
  0x7c   : > { %3765 = vmatpush1.bf16.msra.mxu0 %v6033_v11  ;;  %3234 = vmatprep.subr.bf16.mxu1 %v6040_v12  ;;  %v6133_v11 = vld [vmem:[%s8048_s1 + $0x654] ss:$8 sps:$4 sm:$0xff]   ;;  %v6128_v12 = vld [vmem:[%s8048_s1 + $0x250] ss:$8 sps:$4 sm:$0xff]  }
  0x7d   : > { %3766 = vmatprep.subr.bf16.mxu0 %v6043_v13  ;;  %3170 = vmatmul.mubr.bf16.gmra.mrb[24].mxu1 %v6018_v9  ;;  %v6124_v9 = vld [vmem:[%s6838_s25 + $0x1dc] ss:$72 sps:$4 sm:$0xff]   ;;  %v6131_v13 = vld [vmem:[%s8048_s1 + $0x650] ss:$8 sps:$4 sm:$0xff]  }
  0x7e   : > { %3702 = vmatmul.mubr.bf16.gmra.mrb[24].mxu0 %v6019_v10  ;;  %3179 = vmatprep.mubr.bf16.mxu1 %v6026_v14  ;;  %v6130_v10 = vld [vmem:[%s8048_s1 + $0x254] ss:$8 sps:$4 sm:$0xff]   ;;  %v6136_v14 = vld [vmem:[%s8048_s1 + $0x264] ss:$8 sps:$4 sm:$0xff]  }
  0x7f   : > { %3711 = vmatprep.mubr.bf16.mxu0 %v6031_v15  ;;  %3235 = vmatpush1.bf16.msra.mxu1 %v6038_v16  ;;  %v6139_v15 = vld [vmem:[%s8048_s1 + $0x664] ss:$8 sps:$4 sm:$0xff]   ;;  %v6126_v16 = vld [vmem:[%s6838_s25 + $0x1b8] ss:$72 sps:$4 sm:$0xff]  }
  0x80   : > { %3767 = vmatpush1.bf16.msra.mxu0 %v6041_v17  ;;  %3236 = vmatprep.subr.bf16.mxu1 %v6052_v18  ;;  %v6127_v17 = vld [vmem:[%s6838_s25 + $0x1d8] ss:$72 sps:$4 sm:$0xff]  }
  0x81   : > { %3768 = vmatprep.subr.bf16.mxu0 %v6055_v19  ;;  %v6134_v18 = vld [vmem:[%s8048_s1 + $0x260] ss:$8 sps:$4 sm:$0xff]  }
  0x82   : > { %v6137_v19 = vld [vmem:[%s8048_s1 + $0x660] ss:$8 sps:$4 sm:$0xff]  }
  0x83   : > { %3237 = vmatpush1.bf16.msra.mxu1 %v6050_v20  ;;  %v6140_v20 = vld [vmem:[%s6838_s25 + $0x24c] ss:$72 sps:$4 sm:$0xff]  }
  0x84   : > { %3769 = vmatpush1.bf16.msra.mxu0 %v6053_v23  ;;  %3238 = vmatprep.subr.bf16.mxu1 %v6058_v24  ;;  %v6151_v23 = vld [vmem:[%s8048_s1 + $0x674] ss:$8 sps:$4 sm:$0xff]   ;;  %v6146_v24 = vld [vmem:[%s8048_s1 + $0x270] ss:$8 sps:$4 sm:$0xff]  }
  0x85   : > { %3770 = vmatprep.subr.bf16.mxu0 %v6061_v25  ;;  %3180 = vmatmul.mubr.bf16.gmra.mrb[28].mxu1 %v6036_v21  ;;  %v6142_v21 = vld [vmem:[%s6838_s25 + $0x26c] ss:$72 sps:$4 sm:$0xff]   ;;  %v6149_v25 = vld [vmem:[%s8048_s1 + $0x670] ss:$8 sps:$4 sm:$0xff]  }
  0x86   : > { %3712 = vmatmul.mubr.bf16.gmra.mrb[28].mxu0 %v6037_v22  ;;  %3189 = vmatprep.mubr.bf16.mxu1 %v6044_v26  ;;  %v6148_v22 = vld [vmem:[%s8048_s1 + $0x274] ss:$8 sps:$4 sm:$0xff]   ;;  %v6144_v26 = vld [vmem:[%s6838_s25 + $0x248] ss:$72 sps:$4 sm:$0xff]  }
  0x87   : > { %3721 = vmatprep.mubr.bf16.mxu0 %v6046_v27  ;;  %3239 = vmatpush1.bf16.msra.mxu1 %v6056_v28  ;;  %v6159_v27 = vld [vmem:[%s8048_s1 + $0x284] ss:$8 sps:$4 sm:$0xff]   ;;  %v6145_v28 = vld [vmem:[%s6838_s25 + $0x268] ss:$72 sps:$4 sm:$0xff]  }
  0x88   : > { %3771 = vmatpush1.bf16.msra.mxu0 %v6059_v29  ;;  %3240 = vmatprep.subr.bf16.mxu1 %v6070_v30  ;;  %v6163_v29 = vld [vmem:[%s8048_s1 + $0x684] ss:$8 sps:$4 sm:$0xff]  }
  0x89   : > { %3772 = vmatprep.subr.bf16.mxu0 %v6073_v31  ;;  %v6152_v30 = vld [vmem:[%s6838_s25 + $0x2dc] ss:$72 sps:$4 sm:$0xff]  }
  0x8a   : > { %v6154_v31 = vld [vmem:[%s6838_s25 + $0x2fc] ss:$72 sps:$4 sm:$0xff]  }
  0x8b   : > { %3241 = vmatpush1.bf16.msra.mxu1 %v6068_v32  ;;  %v6157_v32 = vld [vmem:[%s8048_s1 + $0x280] ss:$8 sps:$4 sm:$0xff]  }
  0x8c   : > { %3773 = vmatpush1.bf16.msra.mxu0 %v6071_v33  ;;  %3343 = vmatprep.subr.bf16.mxu1 %v6082_v35  ;;  %v6161_v33 = vld [vmem:[%s8048_s1 + $0x680] ss:$8 sps:$4 sm:$0xff]   ;;  %v6169_v35 = vld [vmem:[%s8048_s1 + $0x694] ss:$8 sps:$4 sm:$0xff]  }
  0x8d   : > { %3875 = vmatprep.subr.bf16.mxu0 %v6085_v36  ;;  %3190 = vmatmul.mubr.bf16.gmra.mrb[32].mxu1 %v6048_v34  ;;  %v6166_v34 = vld [vmem:[%s8048_s1 + $0x294] ss:$8 sps:$4 sm:$0xff]   ;;  %v6164_v36 = vld [vmem:[%s8048_s1 + $0x290] ss:$8 sps:$4 sm:$0xff]  }
  0x8e   : > { %3722 = vmatmul.mubr.bf16.gmra.mrb[32].mxu0 %v6049_v37  ;;  %3199 = vmatprep.mubr.bf16.mxu1 %v6062_v38  ;;  %v6156_v37 = vld [vmem:[%s6838_s25 + $0x2d8] ss:$72 sps:$4 sm:$0xff]  }
  0x8f   : > { %3731 = vmatprep.mubr.bf16.mxu0 %v6064_v39  ;;  %v6160_v38 = vld [vmem:[%s6838_s25 + $0x2f8] ss:$72 sps:$4 sm:$0xff]  }
  0x90   : > { %v6167_v39 = vld [vmem:[%s8048_s1 + $0x690] ss:$8 sps:$4 sm:$0xff]  }
  0x95   : > { %3200 = vmatmul.mubr.bf16.gmra.mrb[36].mxu1 %v6066_v40  ;;  %v6178_v40 = vld [vmem:[%s8048_s1 + $0x2a4] ss:$8 sps:$4 sm:$0xff]  }
  0x96   : > { %3732 = vmatmul.mubr.bf16.gmra.mrb[36].mxu0 %v6067_v41  ;;  %3242 = vmatprep.mubr.bf16.mxu1 %v6076_v42  ;;  %v6181_v41 = vld [vmem:[%s8048_s1 + $0x6a4] ss:$8 sps:$4 sm:$0xff]  }
  0x97   : > { %3774 = vmatprep.mubr.bf16.mxu0 %v6079_v43  ;;  %v6170_v42 = vld [vmem:[%s6838_s25 + $0x36c] ss:$72 sps:$4 sm:$0xff]  }
  0x98   : > { %v6172_v43 = vld [vmem:[%s6838_s25 + $0x38c] ss:$72 sps:$4 sm:$0xff]  }
  0x9d   : > { %3243 = vmatmul.mubr.bf16.vlgmr.msra.gmra.mrb[0].mxu1 %v6074_v44  ;;  %v6176_v44 = vld [vmem:[%s8048_s1 + $0x2a0] ss:$8 sps:$4 sm:$0xff]  }
  0x9e   : > { %3775 = vmatmul.mubr.bf16.vlgmr.msra.gmra.mrb[0].mxu0 %v6077_v45  ;;  %3344 = vmatpush1.bf16.msra.mxu1 %v6080_v46  ;;  %v6179_v45 = vld [vmem:[%s8048_s1 + $0x6a0] ss:$8 sps:$4 sm:$0xff]   ;;  %v6186_v46 = vld [vmem:[%s8048_s1 + $0x2b4] ss:$8 sps:$4 sm:$0xff]  }
  0x9f   : > { %3876 = vmatpush1.bf16.msra.mxu0 %v6083_v47  ;;  %3345 = vmatprep.subr.bf16.mxu1 %v6088_v48  ;;  %v6191_v47 = vld [vmem:[%s8048_s1 + $0x6b4] ss:$8 sps:$4 sm:$0xff]   ;;  %v6184_v48 = vld [vmem:[%s8048_s1 + $0x2b0] ss:$8 sps:$4 sm:$0xff]  }
  0xa0   : > { %3877 = vmatprep.subr.bf16.mxu0 %v6091_v49  ;;  %3252 = vmatprep.mubr.bf16.mxu1 %v6092_v50  ;;  %v6189_v49 = vld [vmem:[%s8048_s1 + $0x6b0] ss:$8 sps:$4 sm:$0xff]  }
  0xa1   : > { %3784 = vmatprep.mubr.bf16.mxu0 %v6094_v51  ;;  %v6174_v50 = vld [vmem:[%s6838_s25 + $0x368] ss:$72 sps:$4 sm:$0xff]   ;;  %v6196_v51 = vld [vmem:[%s8048_s1 + $0x2c4] ss:$8 sps:$4 sm:$0xff]  }
  0xa2   : > { %3346 = vmatpush1.bf16.msra.mxu1 %v6086_v52  ;;  %v6199_v52 = vld [vmem:[%s8048_s1 + $0x6c4] ss:$8 sps:$4 sm:$0xff]  }
  0xa3   : > { %3878 = vmatpush1.bf16.msra.mxu0 %v6089_v53  ;;  %3347 = vmatprep.subr.bf16.mxu1 %v6100_v54  ;;  %v6175_v53 = vld [vmem:[%s6838_s25 + $0x388] ss:$72 sps:$4 sm:$0xff]   ;;  %v6182_v54 = vld [vmem:[%s6838_s25 + $0x3fc] ss:$72 sps:$4 sm:$0xff]  }
  0xa4   : > { %3879 = vmatprep.subr.bf16.mxu0 %v6103_v55  ;;  %v6187_v55 = vld [vmem:[%s6838_s25 + $0x41c] ss:$72 sps:$4 sm:$0xff]  }
  0xa5   : > { %3253 = vmatmul.mubr.bf16.gmra.mrb[4].mxu1 %v6096_v56  ;;  %v6194_v56 = vld [vmem:[%s8048_s1 + $0x2c0] ss:$8 sps:$4 sm:$0xff]  }
  0xa6   : > { %3785 = vmatmul.mubr.bf16.gmra.mrb[4].mxu0 %v6097_v57  ;;  %3348 = vmatpush1.bf16.msra.mxu1 %v6098_v58  ;;  %v6197_v57 = vld [vmem:[%s8048_s1 + $0x6c0] ss:$8 sps:$4 sm:$0xff]   ;;  %v6208_v58 = vld [vmem:[%s8048_s1 + $0x2d4] ss:$8 sps:$4 sm:$0xff]  }
  0xa7   : > { %3880 = vmatpush1.bf16.msra.mxu0 %v6101_v59  ;;  %3262 = vmatprep.mubr.bf16.mxu1 %v6104_v60  ;;  %v6211_v59 = vld [vmem:[%s8048_s1 + $0x6d4] ss:$8 sps:$4 sm:$0xff]   ;;  %v6206_v60 = vld [vmem:[%s8048_s1 + $0x2d0] ss:$8 sps:$4 sm:$0xff]  }
  0xa8   : > { %3349 = vmatprep.subr.bf16.mxu1 %v6108_v61  ;;  %3794 = vmatprep.mubr.bf16.mxu0 %v6109_v62  ;;  %v6209_v61 = vld [vmem:[%s8048_s1 + $0x6d0] ss:$8 sps:$4 sm:$0xff]  }
  0xa9   : > { %3881 = vmatprep.subr.bf16.mxu0 %v6113_v63  ;;  %v6192_v62 = vld [vmem:[%s6838_s25 + $0x3f8] ss:$72 sps:$4 sm:$0xff]   ;;  %v6214_v63 = vld [vmem:[%s8048_s1 + $0x2e4] ss:$8 sps:$4 sm:$0xff]  }
  0xaa   : > { %3350 = vmatpush1.bf16.msra.mxu1 %v6106_v0  ;;  %v6217_v0 = vld [vmem:[%s8048_s1 + $0x6e4] ss:$8 sps:$4 sm:$0xff]  }
  0xab   : > { %3882 = vmatpush1.bf16.msra.mxu0 %v6111_v1  ;;  %3351 = vmatprep.subr.bf16.mxu1 %v6118_v2  ;;  %v6193_v1 = vld [vmem:[%s6838_s25 + $0x418] ss:$72 sps:$4 sm:$0xff]   ;;  %v6200_v2 = vld [vmem:[%s6838_s25 + $0x48c] ss:$72 sps:$4 sm:$0xff]  }
  0xac   : > { %3883 = vmatprep.subr.bf16.mxu0 %v6121_v4  ;;  %v6212_v4 = vld [vmem:[%s8048_s1 + $0x2e0] ss:$8 sps:$4 sm:$0xff]  }
  0xad   : > { %3263 = vmatmul.mubr.bf16.gmra.mrb[8].mxu1 %v6114_v3  ;;  %v6202_v3 = vld [vmem:[%s6838_s25 + $0x4ac] ss:$72 sps:$4 sm:$0xff]  }
  0xae   : > { %3795 = vmatmul.mubr.bf16.gmra.mrb[8].mxu0 %v6115_v5  ;;  %3352 = vmatpush1.bf16.msra.mxu1 %v6116_v6  ;;  %v6215_v5 = vld [vmem:[%s8048_s1 + $0x6e0] ss:$8 sps:$4 sm:$0xff]   ;;  %v6226_v6 = vld [vmem:[%s8048_s1 + $0x2f4] ss:$8 sps:$4 sm:$0xff]  }
  0xaf   : > { %3884 = vmatpush1.bf16.msra.mxu0 %v6119_v7  ;;  %3272 = vmatprep.mubr.bf16.mxu1 %v6122_v8  ;;  %v6229_v7 = vld [vmem:[%s8048_s1 + $0x6f4] ss:$8 sps:$4 sm:$0xff]   ;;  %v6224_v8 = vld [vmem:[%s8048_s1 + $0x2f0] ss:$8 sps:$4 sm:$0xff]  }
  0xb0   : > { %3804 = vmatprep.mubr.bf16.mxu0 %v6124_v9  ;;  %3353 = vmatprep.subr.bf16.mxu1 %v6130_v10  ;;  %v6204_v9 = vld [vmem:[%s6838_s25 + $0x488] ss:$72 sps:$4 sm:$0xff]  }
  0xb1   : > { %3885 = vmatprep.subr.bf16.mxu0 %v6133_v11  ;;  %v6227_v10 = vld [vmem:[%s8048_s1 + $0x6f0] ss:$8 sps:$4 sm:$0xff]   ;;  %v6238_v11 = vld [vmem:[%s8048_s1 + $0x304] ss:$8 sps:$4 sm:$0xff]  }
  0xb2   : > { %3354 = vmatpush1.bf16.msra.mxu1 %v6128_v12  ;;  %v6241_v12 = vld [vmem:[%s8048_s1 + $0x704] ss:$8 sps:$4 sm:$0xff]  }
  0xb3   : > { %3886 = vmatpush1.bf16.msra.mxu0 %v6131_v13  ;;  %3355 = vmatprep.subr.bf16.mxu1 %v6136_v14  ;;  %v6205_v13 = vld [vmem:[%s6838_s25 + $0x4a8] ss:$72 sps:$4 sm:$0xff]   ;;  %v6218_v14 = vld [vmem:[%s6838_s25 + $0x51c] ss:$72 sps:$4 sm:$0xff]  }
  0xb4   : > { %3887 = vmatprep.subr.bf16.mxu0 %v6139_v15  ;;  %v6220_v15 = vld [vmem:[%s6838_s25 + $0x53c] ss:$72 sps:$4 sm:$0xff]  }
  0xb5   : > { %3273 = vmatmul.mubr.bf16.gmra.mrb[12].mxu1 %v6126_v16  ;;  %v6222_v16 = vld [vmem:[%s6838_s25 + $0x518] ss:$72 sps:$4 sm:$0xff]  }
  0xb6   : > { %3805 = vmatmul.mubr.bf16.gmra.mrb[12].mxu0 %v6127_v17  ;;  %3282 = vmatprep.mubr.bf16.mxu1 %v6140_v20  ;;  %v6223_v17 = vld [vmem:[%s6838_s25 + $0x538] ss:$72 sps:$4 sm:$0xff]  }
  0xb7   : > { %3356 = vmatpush1.bf16.msra.mxu1 %v6134_v18  ;;  %3814 = vmatprep.mubr.bf16.mxu0 %v6142_v21  ;;  %v6232_v18 = vld [vmem:[%s6838_s25 + $0x14] ss:$72 sps:$4 sm:$0xff]   ;;  %v6230_v20 = vld [vmem:[%s6838_s25 + $0x10] ss:$72 sps:$4 sm:$0xff]  }
  0xb8   : > { %3888 = vmatpush1.bf16.msra.mxu0 %v6137_v19  ;;  %3357 = vmatprep.subr.bf16.mxu1 %v6148_v22  ;;  %v6235_v19 = vld [vmem:[%s6838_s25 + $0x34] ss:$72 sps:$4 sm:$0xff]   ;;  %v6233_v21 = vld [vmem:[%s6838_s25 + $0x30] ss:$72 sps:$4 sm:$0xff]   ;;  %v6236_v22 = vld [vmem:[%s8048_s1 + $0x300] ss:$8 sps:$4 sm:$0xff]  }
  0xb9   : > { %3889 = vmatprep.subr.bf16.mxu0 %v6151_v23  ;;  %v6239_v23 = vld [vmem:[%s8048_s1 + $0x700] ss:$8 sps:$4 sm:$0xff]  }
  0xbb   : > { %3358 = vmatpush1.bf16.msra.mxu1 %v6146_v24  ;;  %v6244_v24 = vld [vmem:[%s8048_s1 + $0x314] ss:$8 sps:$4 sm:$0xff]  }
  0xbc   : > { %3890 = vmatpush1.bf16.msra.mxu0 %v6149_v25  ;;  %3359 = vmatprep.subr.bf16.mxu1 %v6159_v27  ;;  %v6247_v25 = vld [vmem:[%s8048_s1 + $0x714] ss:$8 sps:$4 sm:$0xff]   ;;  %v6250_v27 = vld [vmem:[%s6838_s25 + $0xc4] ss:$72 sps:$4 sm:$0xff]  }
  0xbd   : > { %3891 = vmatprep.subr.bf16.mxu0 %v6163_v29  ;;  %3283 = vmatmul.mubr.bf16.gmra.mrb[16].mxu1 %v6144_v26  ;;  %v6248_v26 = vld [vmem:[%s6838_s25 + $0xa4] ss:$72 sps:$4 sm:$0xff]   ;;  %v6245_v29 = vld [vmem:[%s8048_s1 + $0x710] ss:$8 sps:$4 sm:$0xff]  }
  0xbe   : > { %3815 = vmatmul.mubr.bf16.gmra.mrb[16].mxu0 %v6145_v28  ;;  %3292 = vmatprep.mubr.bf16.mxu1 %v6152_v30  ;;  %v6242_v28 = vld [vmem:[%s8048_s1 + $0x310] ss:$8 sps:$4 sm:$0xff]   ;;  %v6256_v30 = vld [vmem:[%s8048_s1 + $0x324] ss:$8 sps:$4 sm:$0xff]  }
  0xbf   : > { %3824 = vmatprep.mubr.bf16.mxu0 %v6154_v31  ;;  %3360 = vmatpush1.bf16.msra.mxu1 %v6157_v32  ;;  %v6259_v31 = vld [vmem:[%s8048_s1 + $0x724] ss:$8 sps:$4 sm:$0xff]   ;;  %v6252_v32 = vld [vmem:[%s6838_s25 + $0xa0] ss:$72 sps:$4 sm:$0xff]  }
  0xc0   : > { %3892 = vmatpush1.bf16.msra.mxu0 %v6161_v33  ;;  %3361 = vmatprep.subr.bf16.mxu1 %v6166_v34  ;;  %v6253_v33 = vld [vmem:[%s6838_s25 + $0xc0] ss:$72 sps:$4 sm:$0xff]  }
  0xc1   : > { %3893 = vmatprep.subr.bf16.mxu0 %v6169_v35  ;;  %v6254_v34 = vld [vmem:[%s8048_s1 + $0x320] ss:$8 sps:$4 sm:$0xff]  }
  0xc2   : > { %v6257_v35 = vld [vmem:[%s8048_s1 + $0x720] ss:$8 sps:$4 sm:$0xff]  }
  0xc3   : > { %3362 = vmatpush1.bf16.msra.mxu1 %v6164_v36  ;;  %v6260_v36 = vld [vmem:[%s6838_s25 + $0x134] ss:$72 sps:$4 sm:$0xff]  }
  0xc4   : > { %3894 = vmatpush1.bf16.msra.mxu0 %v6167_v39  ;;  %3363 = vmatprep.subr.bf16.mxu1 %v6178_v40  ;;  %v6269_v39 = vld [vmem:[%s8048_s1 + $0x734] ss:$8 sps:$4 sm:$0xff]   ;;  %v6262_v40 = vld [vmem:[%s8048_s1 + $0x330] ss:$8 sps:$4 sm:$0xff]  }
  0xc5   : > { %3895 = vmatprep.subr.bf16.mxu0 %v6181_v41  ;;  %3293 = vmatmul.mubr.bf16.gmra.mrb[20].mxu1 %v6156_v37  ;;  %v6264_v37 = vld [vmem:[%s8048_s1 + $0x334] ss:$8 sps:$4 sm:$0xff]   ;;  %v6267_v41 = vld [vmem:[%s8048_s1 + $0x730] ss:$8 sps:$4 sm:$0xff]  }
  0xc6   : > { %3825 = vmatmul.mubr.bf16.gmra.mrb[20].mxu0 %v6160_v38  ;;  %3302 = vmatprep.mubr.bf16.mxu1 %v6170_v42  ;;  %v6265_v38 = vld [vmem:[%s6838_s25 + $0x154] ss:$72 sps:$4 sm:$0xff]   ;;  %v6274_v42 = vld [vmem:[%s8048_s1 + $0x344] ss:$8 sps:$4 sm:$0xff]  }
  0xc7   : > { %3834 = vmatprep.mubr.bf16.mxu0 %v6172_v43  ;;  %3364 = vmatpush1.bf16.msra.mxu1 %v6176_v44  ;;  %v6277_v43 = vld [vmem:[%s8048_s1 + $0x744] ss:$8 sps:$4 sm:$0xff]   ;;  %v6270_v44 = vld [vmem:[%s6838_s25 + $0x130] ss:$72 sps:$4 sm:$0xff]  }
  0xc8   : > { %3896 = vmatpush1.bf16.msra.mxu0 %v6179_v45  ;;  %3365 = vmatprep.subr.bf16.mxu1 %v6186_v46  ;;  %v6271_v45 = vld [vmem:[%s6838_s25 + $0x150] ss:$72 sps:$4 sm:$0xff]   ;;  %v6272_v46 = vld [vmem:[%s8048_s1 + $0x340] ss:$8 sps:$4 sm:$0xff]  }
  0xc9   : > { %3897 = vmatprep.subr.bf16.mxu0 %v6191_v47  ;;  %v6275_v47 = vld [vmem:[%s8048_s1 + $0x740] ss:$8 sps:$4 sm:$0xff]  }
  0xcb   : > { %3366 = vmatpush1.bf16.msra.mxu1 %v6184_v48  ;;  %v6278_v48 = vld [vmem:[%s6838_s25 + $0x1c4] ss:$72 sps:$4 sm:$0xff]  }
  0xcc   : > { %3898 = vmatpush1.bf16.msra.mxu0 %v6189_v49  ;;  %3367 = vmatprep.subr.bf16.mxu1 %v6196_v51  ;;  %v6280_v49 = vld [vmem:[%s6838_s25 + $0x1e4] ss:$72 sps:$4 sm:$0xff]   ;;  %v6289_v51 = vld [vmem:[%s8048_s1 + $0x754] ss:$8 sps:$4 sm:$0xff]  }
  0xcd   : > { %3899 = vmatprep.subr.bf16.mxu0 %v6199_v52  ;;  %3303 = vmatmul.mubr.bf16.gmra.mrb[24].mxu1 %v6174_v50  ;;  %v6286_v50 = vld [vmem:[%s8048_s1 + $0x354] ss:$8 sps:$4 sm:$0xff]   ;;  %v6284_v52 = vld [vmem:[%s8048_s1 + $0x350] ss:$8 sps:$4 sm:$0xff]  }
  0xce   : > { %3835 = vmatmul.mubr.bf16.gmra.mrb[24].mxu0 %v6175_v53  ;;  %3312 = vmatprep.mubr.bf16.mxu1 %v6182_v54  ;;  %v6287_v53 = vld [vmem:[%s8048_s1 + $0x750] ss:$8 sps:$4 sm:$0xff]   ;;  %v6292_v54 = vld [vmem:[%s8048_s1 + $0x364] ss:$8 sps:$4 sm:$0xff]  }
  0xcf   : > { %3844 = vmatprep.mubr.bf16.mxu0 %v6187_v55  ;;  %3368 = vmatpush1.bf16.msra.mxu1 %v6194_v56  ;;  %v6295_v55 = vld [vmem:[%s8048_s1 + $0x764] ss:$8 sps:$4 sm:$0xff]   ;;  %v6282_v56 = vld [vmem:[%s6838_s25 + $0x1c0] ss:$72 sps:$4 sm:$0xff]  }
  0xd0   : > { %3900 = vmatpush1.bf16.msra.mxu0 %v6197_v57  ;;  %3369 = vmatprep.subr.bf16.mxu1 %v6208_v58  ;;  %v6283_v57 = vld [vmem:[%s6838_s25 + $0x1e0] ss:$72 sps:$4 sm:$0xff]  }
  0xd1   : > { %3901 = vmatprep.subr.bf16.mxu0 %v6211_v59  ;;  %v6290_v58 = vld [vmem:[%s8048_s1 + $0x360] ss:$8 sps:$4 sm:$0xff]  }
  0xd2   : > { %v6293_v59 = vld [vmem:[%s8048_s1 + $0x760] ss:$8 sps:$4 sm:$0xff]  }
  0xd3   : > { %3370 = vmatpush1.bf16.msra.mxu1 %v6206_v60  ;;  %v6296_v60 = vld [vmem:[%s6838_s25 + $0x254] ss:$72 sps:$4 sm:$0xff]  }
  0xd4   : > { %3902 = vmatpush1.bf16.msra.mxu0 %v6209_v61  ;;  %3371 = vmatprep.subr.bf16.mxu1 %v6214_v63  ;;  %v6298_v61 = vld [vmem:[%s6838_s25 + $0x274] ss:$72 sps:$4 sm:$0xff]  }
  0xd5   : > { %3903 = vmatprep.subr.bf16.mxu0 %v6217_v0  ;;  %3313 = vmatmul.mubr.bf16.gmra.mrb[28].mxu1 %v6192_v62  ;;  %v6304_v62 = vld [vmem:[%s8048_s1 + $0x374] ss:$8 sps:$4 sm:$0xff]   ;;  %v6302_v0 = vld [vmem:[%s8048_s1 + $0x370] ss:$8 sps:$4 sm:$0xff]  }
  0xd6   : > { %3845 = vmatmul.mubr.bf16.gmra.mrb[28].mxu0 %v6193_v1  ;;  %3322 = vmatprep.mubr.bf16.mxu1 %v6200_v2  ;;  %v6307_v63 = vld [vmem:[%s8048_s1 + $0x774] ss:$8 sps:$4 sm:$0xff]   ;;  %v6305_v1 = vld [vmem:[%s8048_s1 + $0x770] ss:$8 sps:$4 sm:$0xff]  }
  0xd7   : > { %3854 = vmatprep.mubr.bf16.mxu0 %v6202_v3  ;;  %3372 = vmatpush1.bf16.msra.mxu1 %v6212_v4  ;;  %v6300_v2 = vld [vmem:[%s6838_s25 + $0x250] ss:$72 sps:$4 sm:$0xff]   ;;  %v6315_v3 = vld [vmem:[%s8048_s1 + $0x384] ss:$8 sps:$4 sm:$0xff]  }
  0xd8   : > { %3904 = vmatpush1.bf16.msra.mxu0 %v6215_v5  ;;  %3373 = vmatprep.subr.bf16.mxu1 %v6226_v6  ;;  %v6301_v4 = vld [vmem:[%s6838_s25 + $0x270] ss:$72 sps:$4 sm:$0xff]   ;;  %v6319_v5 = vld [vmem:[%s8048_s1 + $0x784] ss:$8 sps:$4 sm:$0xff]  }
  0xd9   : > { %3905 = vmatprep.subr.bf16.mxu0 %v6229_v7  ;;  %v6308_v6 = vld [vmem:[%s6838_s25 + $0x2e4] ss:$72 sps:$4 sm:$0xff]  }
  0xda   : > { %v6310_v7 = vld [vmem:[%s6838_s25 + $0x304] ss:$72 sps:$4 sm:$0xff]  }
  0xdb   : > { %3374 = vmatpush1.bf16.msra.mxu1 %v6224_v8  ;;  %v6313_v8 = vld [vmem:[%s8048_s1 + $0x380] ss:$8 sps:$4 sm:$0xff]  }
  0xdc   : > { %3906 = vmatpush1.bf16.msra.mxu0 %v6227_v10  ;;  %3476 = vmatprep.subr.bf16.mxu1 %v6238_v11  ;;  %v6322_v10 = vld [vmem:[%s8048_s1 + $0x394] ss:$8 sps:$4 sm:$0xff]  }
  0xdd   : > { %4008 = vmatprep.subr.bf16.mxu0 %v6241_v12  ;;  %3323 = vmatmul.mubr.bf16.gmra.mrb[32].mxu1 %v6204_v9  ;;  %v6317_v9 = vld [vmem:[%s8048_s1 + $0x780] ss:$8 sps:$4 sm:$0xff]   ;;  %v6325_v11 = vld [vmem:[%s8048_s1 + $0x794] ss:$8 sps:$4 sm:$0xff]   ;;  %v6320_v12 = vld [vmem:[%s8048_s1 + $0x390] ss:$8 sps:$4 sm:$0xff]  }
  0xde   : > { %3855 = vmatmul.mubr.bf16.gmra.mrb[32].mxu0 %v6205_v13  ;;  %3332 = vmatprep.mubr.bf16.mxu1 %v6218_v14  ;;  %v6323_v13 = vld [vmem:[%s8048_s1 + $0x790] ss:$8 sps:$4 sm:$0xff]   ;;  %v6312_v14 = vld [vmem:[%s6838_s25 + $0x2e0] ss:$72 sps:$4 sm:$0xff]  }
  0xdf   : > { %3864 = vmatprep.mubr.bf16.mxu0 %v6220_v15  ;;  %v6316_v15 = vld [vmem:[%s6838_s25 + $0x300] ss:$72 sps:$4 sm:$0xff]  }
  0xe5   : > { %3333 = vmatmul.mubr.bf16.gmra.mrb[36].mxu1 %v6222_v16  ;;  %v6334_v16 = vld [vmem:[%s8048_s1 + $0x3a4] ss:$8 sps:$4 sm:$0xff]  }
  0xe6   : > { %3865 = vmatmul.mubr.bf16.gmra.mrb[36].mxu0 %v6223_v17  ;;  %3375 = vmatprep.mubr.bf16.mxu1 %v6232_v18  ;;  %v6337_v17 = vld [vmem:[%s8048_s1 + $0x7a4] ss:$8 sps:$4 sm:$0xff]   ;;  %v6326_v18 = vld [vmem:[%s6838_s25 + $0x374] ss:$72 sps:$4 sm:$0xff]  }
  0xe7   : > { %3907 = vmatprep.mubr.bf16.mxu0 %v6235_v19  ;;  %v6328_v19 = vld [vmem:[%s6838_s25 + $0x394] ss:$72 sps:$4 sm:$0xff]  }
  0xed   : > { %3376 = vmatmul.mubr.bf16.vlgmr.msra.gmra.mrb[0].mxu1 %v6230_v20  ;;  %v6332_v20 = vld [vmem:[%s8048_s1 + $0x3a0] ss:$8 sps:$4 sm:$0xff]  }
  0xee   : > { %3908 = vmatmul.mubr.bf16.vlgmr.msra.gmra.mrb[0].mxu0 %v6233_v21  ;;  %3477 = vmatpush1.bf16.msra.mxu1 %v6236_v22  ;;  %v6335_v21 = vld [vmem:[%s8048_s1 + $0x7a0] ss:$8 sps:$4 sm:$0xff]   ;;  %v6342_v22 = vld [vmem:[%s8048_s1 + $0x3b4] ss:$8 sps:$4 sm:$0xff]  }
  0xef   : > { %4009 = vmatpush1.bf16.msra.mxu0 %v6239_v23  ;;  %3478 = vmatprep.subr.bf16.mxu1 %v6244_v24  ;;  %v6347_v23 = vld [vmem:[%s8048_s1 + $0x7b4] ss:$8 sps:$4 sm:$0xff]   ;;  %v6340_v24 = vld [vmem:[%s8048_s1 + $0x3b0] ss:$8 sps:$4 sm:$0xff]  }
  0xf0   : > { %4010 = vmatprep.subr.bf16.mxu0 %v6247_v25  ;;  %3385 = vmatprep.mubr.bf16.mxu1 %v6248_v26  ;;  %v6330_v25 = vld [vmem:[%s6838_s25 + $0x370] ss:$72 sps:$4 sm:$0xff]  }
  0xf1   : > { %3917 = vmatprep.mubr.bf16.mxu0 %v6250_v27  ;;  %v6331_v26 = vld [vmem:[%s6838_s25 + $0x390] ss:$72 sps:$4 sm:$0xff]  }
  0xf2   : > { %3479 = vmatpush1.bf16.msra.mxu1 %v6242_v28  ;;  %v6345_v27 = vld [vmem:[%s8048_s1 + $0x7b0] ss:$8 sps:$4 sm:$0xff]   ;;  %v6352_v28 = vld [vmem:[%s8048_s1 + $0x3c4] ss:$8 sps:$4 sm:$0xff]  }
  0xf3   : > { %4011 = vmatpush1.bf16.msra.mxu0 %v6245_v29  ;;  %3480 = vmatprep.subr.bf16.mxu1 %v6256_v30  ;;  %v6355_v29 = vld [vmem:[%s8048_s1 + $0x7c4] ss:$8 sps:$4 sm:$0xff]  }
  0xf4   : > { %4012 = vmatprep.subr.bf16.mxu0 %v6259_v31  ;;  %v6338_v30 = vld [vmem:[%s6838_s25 + $0x404] ss:$72 sps:$4 sm:$0xff]  }
  0xf5   : > { %3386 = vmatmul.mubr.bf16.gmra.mrb[4].mxu1 %v6252_v32  ;;  %v6343_v31 = vld [vmem:[%s6838_s25 + $0x424] ss:$72 sps:$4 sm:$0xff]   ;;  %v6350_v32 = vld [vmem:[%s8048_s1 + $0x3c0] ss:$8 sps:$4 sm:$0xff]  }
  0xf6   : > { %3918 = vmatmul.mubr.bf16.gmra.mrb[4].mxu0 %v6253_v33  ;;  %3481 = vmatpush1.bf16.msra.mxu1 %v6254_v34  ;;  %v6353_v33 = vld [vmem:[%s8048_s1 + $0x7c0] ss:$8 sps:$4 sm:$0xff]   ;;  %v6364_v34 = vld [vmem:[%s8048_s1 + $0x3d4] ss:$8 sps:$4 sm:$0xff]  }
  0xf7   : > { %4013 = vmatpush1.bf16.msra.mxu0 %v6257_v35  ;;  %3395 = vmatprep.mubr.bf16.mxu1 %v6260_v36  ;;  %v6367_v35 = vld [vmem:[%s8048_s1 + $0x7d4] ss:$8 sps:$4 sm:$0xff]   ;;  %v6362_v36 = vld [vmem:[%s8048_s1 + $0x3d0] ss:$8 sps:$4 sm:$0xff]  }
  0xf8   : > { %3482 = vmatprep.subr.bf16.mxu1 %v6264_v37  ;;  %3927 = vmatprep.mubr.bf16.mxu0 %v6265_v38  ;;  %v6348_v37 = vld [vmem:[%s6838_s25 + $0x400] ss:$72 sps:$4 sm:$0xff]  }
  0xf9   : > { %4014 = vmatprep.subr.bf16.mxu0 %v6269_v39  ;;  %v6349_v38 = vld [vmem:[%s6838_s25 + $0x420] ss:$72 sps:$4 sm:$0xff]   ;;  %v6365_v39 = vld [vmem:[%s8048_s1 + $0x7d0] ss:$8 sps:$4 sm:$0xff]  }
  0xfa   : > { %3483 = vmatpush1.bf16.msra.mxu1 %v6262_v40  ;;  %v6370_v40 = vld [vmem:[%s8048_s1 + $0x3e4] ss:$8 sps:$4 sm:$0xff]  }
  0xfb   : > { %4015 = vmatpush1.bf16.msra.mxu0 %v6267_v41  ;;  %3484 = vmatprep.subr.bf16.mxu1 %v6274_v42  ;;  %v6373_v41 = vld [vmem:[%s8048_s1 + $0x7e4] ss:$8 sps:$4 sm:$0xff]   ;;  %v6356_v42 = vld [vmem:[%s6838_s25 + $0x494] ss:$72 sps:$4 sm:$0xff]  }
  0xfc   : > { %4016 = vmatprep.subr.bf16.mxu0 %v6277_v43  ;;  %v6358_v43 = vld [vmem:[%s6838_s25 + $0x4b4] ss:$72 sps:$4 sm:$0xff]  }
  0xfd   : > { %3396 = vmatmul.mubr.bf16.gmra.mrb[8].mxu1 %v6270_v44  ;;  %v6368_v44 = vld [vmem:[%s8048_s1 + $0x3e0] ss:$8 sps:$4 sm:$0xff]  }
  0xfe   : > { %3928 = vmatmul.mubr.bf16.gmra.mrb[8].mxu0 %v6271_v45  ;;  %3485 = vmatpush1.bf16.msra.mxu1 %v6272_v46  ;;  %v6371_v45 = vld [vmem:[%s8048_s1 + $0x7e0] ss:$8 sps:$4 sm:$0xff]   ;;  %v6382_v46 = vld [vmem:[%s8048_s1 + $0x3f4] ss:$8 sps:$4 sm:$0xff]  }
  0xff   : > { %4017 = vmatpush1.bf16.msra.mxu0 %v6275_v47  ;;  %3405 = vmatprep.mubr.bf16.mxu1 %v6278_v48  ;;  %v6385_v47 = vld [vmem:[%s8048_s1 + $0x7f4] ss:$8 sps:$4 sm:$0xff]   ;;  %v6380_v48 = vld [vmem:[%s8048_s1 + $0x3f0] ss:$8 sps:$4 sm:$0xff]  }
 0x100   : > { %3937 = vmatprep.mubr.bf16.mxu0 %v6280_v49  ;;  %3486 = vmatprep.subr.bf16.mxu1 %v6286_v50  ;;  %v6383_v49 = vld [vmem:[%s8048_s1 + $0x7f0] ss:$8 sps:$4 sm:$0xff]   ;;  %v6394_v50 = vld [vmem:[%s8048_s1 + $0x804] ss:$8 sps:$4 sm:$0xff]  }
 0x101   : > { %4018 = vmatprep.subr.bf16.mxu0 %v6289_v51  ;;  %v6360_v51 = vld [vmem:[%s6838_s25 + $0x490] ss:$72 sps:$4 sm:$0xff]  }
 0x102   : > { %3487 = vmatpush1.bf16.msra.mxu1 %v6284_v52  ;;  %v6361_v52 = vld [vmem:[%s6838_s25 + $0x4b0] ss:$72 sps:$4 sm:$0xff]  }
 0x103   : > { %4019 = vmatpush1.bf16.msra.mxu0 %v6287_v53  ;;  %3488 = vmatprep.subr.bf16.mxu1 %v6292_v54  ;;  %v6374_v53 = vld [vmem:[%s6838_s25 + $0x524] ss:$72 sps:$4 sm:$0xff]  }
 0x104   : > { %4020 = vmatprep.subr.bf16.mxu0 %v6295_v55  ;;  %v6376_v54 = vld [vmem:[%s6838_s25 + $0x544] ss:$72 sps:$4 sm:$0xff]   ;;  %v6378_v55 = vld [vmem:[%s6838_s25 + $0x520] ss:$72 sps:$4 sm:$0xff]  }
 0x105   : > { %3406 = vmatmul.mubr.bf16.gmra.mrb[12].mxu1 %v6282_v56  ;;  %v6379_v56 = vld [vmem:[%s6838_s25 + $0x540] ss:$72 sps:$4 sm:$0xff]  }
 0x106   : > { %3938 = vmatmul.mubr.bf16.gmra.mrb[12].mxu0 %v6283_v57  ;;  %3415 = vmatprep.mubr.bf16.mxu1 %v6296_v60  ;;  %v6388_v57 = vld [vmem:[%s6838_s25 + $0x1c] ss:$72 sps:$4 sm:$0xff]   ;;  %v6389_v60 = vld [vmem:[%s6838_s25 + $0x38] ss:$72 sps:$4 sm:$0xff]  }
 0x107   : > { %3489 = vmatpush1.bf16.msra.mxu1 %v6290_v58  ;;  %3947 = vmatprep.mubr.bf16.mxu0 %v6298_v61  ;;  %v6391_v58 = vld [vmem:[%s6838_s25 + $0x3c] ss:$72 sps:$4 sm:$0xff]   ;;  %v6392_v61 = vld [vmem:[%s8048_s1 + $0x800] ss:$8 sps:$4 sm:$0xff]  }
 0x108   : > { %4021 = vmatpush1.bf16.msra.mxu0 %v6293_v59  ;;  %3490 = vmatprep.subr.bf16.mxu1 %v6304_v62  ;;  %v6386_v59 = vld [vmem:[%s6838_s25 + $0x18] ss:$72 sps:$4 sm:$0xff]   ;;  %v6397_v62 = vld [vmem:[%s8048_s1 + $0x814] ss:$8 sps:$4 sm:$0xff]  }
 0x109   : > { %4022 = vmatprep.subr.bf16.mxu0 %v6307_v63  ;;  %v6398_v63 = vld [vmem:[%s6838_s25 + $0xac] ss:$72 sps:$4 sm:$0xff]  }
 0x10b   : > { %3491 = vmatpush1.bf16.msra.mxu1 %v6302_v0  ;;  %v6400_v0 = vld [vmem:[%s6838_s25 + $0xcc] ss:$72 sps:$4 sm:$0xff]  }
 0x10c   : > { %4023 = vmatpush1.bf16.msra.mxu0 %v6305_v1  ;;  %3492 = vmatprep.subr.bf16.mxu1 %v6315_v3  ;;  %v6395_v1 = vld [vmem:[%s8048_s1 + $0x810] ss:$8 sps:$4 sm:$0xff]  }
 0x10d   : > { %4024 = vmatprep.subr.bf16.mxu0 %v6319_v5  ;;  %3416 = vmatmul.mubr.bf16.gmra.mrb[16].mxu1 %v6300_v2  ;;  %v6406_v2 = vld [vmem:[%s8048_s1 + $0x824] ss:$8 sps:$4 sm:$0xff]   ;;  %v6402_v3 = vld [vmem:[%s6838_s25 + $0xa8] ss:$72 sps:$4 sm:$0xff]  }
 0x10e   : > { %3948 = vmatmul.mubr.bf16.gmra.mrb[16].mxu0 %v6301_v4  ;;  %3425 = vmatprep.mubr.bf16.mxu1 %v6308_v6  ;;  %v6403_v4 = vld [vmem:[%s6838_s25 + $0xc8] ss:$72 sps:$4 sm:$0xff]   ;;  %v6407_v6 = vld [vmem:[%s6838_s25 + $0x13c] ss:$72 sps:$4 sm:$0xff]  }
 0x10f   : > { %3957 = vmatprep.mubr.bf16.mxu0 %v6310_v7  ;;  %3493 = vmatpush1.bf16.msra.mxu1 %v6313_v8  ;;  %v6404_v5 = vld [vmem:[%s8048_s1 + $0x820] ss:$8 sps:$4 sm:$0xff]   ;;  %v6409_v7 = vld [vmem:[%s6838_s25 + $0x15c] ss:$72 sps:$4 sm:$0xff]  }
 0x110   : > { %4025 = vmatpush1.bf16.msra.mxu0 %v6317_v9  ;;  %3494 = vmatprep.subr.bf16.mxu1 %v6322_v10  ;;  %v6413_v8 = vld [vmem:[%s8048_s1 + $0x834] ss:$8 sps:$4 sm:$0xff]   ;;  %v6411_v9 = vld [vmem:[%s8048_s1 + $0x830] ss:$8 sps:$4 sm:$0xff]   ;;  %v6418_v10 = vld [vmem:[%s8048_s1 + $0x844] ss:$8 sps:$4 sm:$0xff]  }
 0x111   : > { %4026 = vmatprep.subr.bf16.mxu0 %v6325_v11  ;;  %v6414_v11 = vld [vmem:[%s6838_s25 + $0x138] ss:$72 sps:$4 sm:$0xff]  }
 0x113   : > { %3495 = vmatpush1.bf16.msra.mxu1 %v6320_v12  ;;  %v6415_v12 = vld [vmem:[%s6838_s25 + $0x158] ss:$72 sps:$4 sm:$0xff]  }
 0x114   : > { %4027 = vmatpush1.bf16.msra.mxu0 %v6323_v13  ;;  %3496 = vmatprep.subr.bf16.mxu1 %v6334_v16  ;;  %v6416_v13 = vld [vmem:[%s8048_s1 + $0x840] ss:$8 sps:$4 sm:$0xff]   ;;  %v6427_v16 = vld [vmem:[%s8048_s1 + $0x854] ss:$8 sps:$4 sm:$0xff]  }
 0x115   : > { %4028 = vmatprep.subr.bf16.mxu0 %v6337_v17  ;;  %3426 = vmatmul.mubr.bf16.gmra.mrb[20].mxu1 %v6312_v14  ;;  %v6419_v14 = vld [vmem:[%s6838_s25 + $0x1cc] ss:$72 sps:$4 sm:$0xff]   ;;  %v6425_v17 = vld [vmem:[%s8048_s1 + $0x850] ss:$8 sps:$4 sm:$0xff]  }
 0x116   : > { %3958 = vmatmul.mubr.bf16.gmra.mrb[20].mxu0 %v6316_v15  ;;  %3435 = vmatprep.mubr.bf16.mxu1 %v6326_v18  ;;  %v6421_v15 = vld [vmem:[%s6838_s25 + $0x1ec] ss:$72 sps:$4 sm:$0xff]  }
 0x117   : > { %3967 = vmatprep.mubr.bf16.mxu0 %v6328_v19  ;;  %3497 = vmatpush1.bf16.msra.mxu1 %v6332_v20  ;;  %v6430_v18 = vld [vmem:[%s8048_s1 + $0x864] ss:$8 sps:$4 sm:$0xff]   ;;  %v6423_v19 = vld [vmem:[%s6838_s25 + $0x1c8] ss:$72 sps:$4 sm:$0xff]  }
 0x118   : > { %4029 = vmatpush1.bf16.msra.mxu0 %v6335_v21  ;;  %3498 = vmatprep.subr.bf16.mxu1 %v6342_v22  ;;  %v6424_v20 = vld [vmem:[%s6838_s25 + $0x1e8] ss:$72 sps:$4 sm:$0xff]   ;;  %v6431_v21 = vld [vmem:[%s6838_s25 + $0x25c] ss:$72 sps:$4 sm:$0xff]  }
 0x119   : > { %4030 = vmatprep.subr.bf16.mxu0 %v6347_v23  ;;  %v6433_v22 = vld [vmem:[%s6838_s25 + $0x27c] ss:$72 sps:$4 sm:$0xff]   ;;  %v6428_v23 = vld [vmem:[%s8048_s1 + $0x860] ss:$8 sps:$4 sm:$0xff]  }
 0x11b   : > { %3499 = vmatpush1.bf16.msra.mxu1 %v6340_v24  ;;  %v6439_v24 = vld [vmem:[%s8048_s1 + $0x874] ss:$8 sps:$4 sm:$0xff]  }
 0x11c   : > { %4031 = vmatpush1.bf16.msra.mxu0 %v6345_v27  ;;  %3500 = vmatprep.subr.bf16.mxu1 %v6352_v28  ;;  %v6435_v27 = vld [vmem:[%s6838_s25 + $0x258] ss:$72 sps:$4 sm:$0xff]  }
 0x11d   : > { %4032 = vmatprep.subr.bf16.mxu0 %v6355_v29  ;;  %3436 = vmatmul.mubr.bf16.gmra.mrb[24].mxu1 %v6330_v25  ;;  %v6437_v25 = vld [vmem:[%s8048_s1 + $0x870] ss:$8 sps:$4 sm:$0xff]   ;;  %v6440_v29 = vld [vmem:[%s6838_s25 + $0x2ec] ss:$72 sps:$4 sm:$0xff]  }
 0x11e   : > { %3968 = vmatmul.mubr.bf16.gmra.mrb[24].mxu0 %v6331_v26  ;;  %3445 = vmatprep.mubr.bf16.mxu1 %v6338_v30  ;;  %v6448_v26 = vld [vmem:[%s8048_s1 + $0x884] ss:$8 sps:$4 sm:$0xff]   ;;  %v6436_v28 = vld [vmem:[%s6838_s25 + $0x278] ss:$72 sps:$4 sm:$0xff]  }
 0x11f   : > { %3977 = vmatprep.mubr.bf16.mxu0 %v6343_v31  ;;  %3501 = vmatpush1.bf16.msra.mxu1 %v6350_v32  ;;  %v6442_v30 = vld [vmem:[%s6838_s25 + $0x30c] ss:$72 sps:$4 sm:$0xff]   ;;  %v6446_v31 = vld [vmem:[%s8048_s1 + $0x880] ss:$8 sps:$4 sm:$0xff]  }
 0x120   : > { %4033 = vmatpush1.bf16.msra.mxu0 %v6353_v33  ;;  %3502 = vmatprep.subr.bf16.mxu1 %v6364_v34  ;;  %v6451_v32 = vld [vmem:[%s8048_s1 + $0x894] ss:$8 sps:$4 sm:$0xff]   ;;  %v6449_v33 = vld [vmem:[%s8048_s1 + $0x890] ss:$8 sps:$4 sm:$0xff]   ;;  %v6460_v34 = vld [vmem:[%s8048_s1 + $0x8a4] ss:$8 sps:$4 sm:$0xff]  }
 0x121   : > { %4034 = vmatprep.subr.bf16.mxu0 %v6367_v35  ;;  %v6444_v35 = vld [vmem:[%s6838_s25 + $0x2e8] ss:$72 sps:$4 sm:$0xff]  }
 0x123   : > { %3503 = vmatpush1.bf16.msra.mxu1 %v6362_v36  ;;  %v6445_v36 = vld [vmem:[%s6838_s25 + $0x308] ss:$72 sps:$4 sm:$0xff]  }
 0x124   : > { %4035 = vmatpush1.bf16.msra.mxu0 %v6365_v39  ;;  %3504 = vmatprep.subr.bf16.mxu1 %v6370_v40  ;;  %v6458_v39 = vld [vmem:[%s8048_s1 + $0x8a0] ss:$8 sps:$4 sm:$0xff]   ;;  %v6467_v40 = vld [vmem:[%s8048_s1 + $0x8b4] ss:$8 sps:$4 sm:$0xff]  }
 0x125   : > { %4036 = vmatprep.subr.bf16.mxu0 %v6373_v41  ;;  %3446 = vmatmul.mubr.bf16.gmra.mrb[28].mxu1 %v6348_v37  ;;  %v6452_v37 = vld [vmem:[%s6838_s25 + $0x37c] ss:$72 sps:$4 sm:$0xff]   ;;  %v6465_v41 = vld [vmem:[%s8048_s1 + $0x8b0] ss:$8 sps:$4 sm:$0xff]  }
 0x126   : > { %3978 = vmatmul.mubr.bf16.gmra.mrb[28].mxu0 %v6349_v38  ;;  %3455 = vmatprep.mubr.bf16.mxu1 %v6356_v42  ;;  %v6454_v38 = vld [vmem:[%s6838_s25 + $0x39c] ss:$72 sps:$4 sm:$0xff]  }
 0x127   : > { %3987 = vmatprep.mubr.bf16.mxu0 %v6358_v43  ;;  %3505 = vmatpush1.bf16.msra.mxu1 %v6368_v44  ;;  %v6472_v42 = vld [vmem:[%s8048_s1 + $0x8c4] ss:$8 sps:$4 sm:$0xff]   ;;  %v6456_v43 = vld [vmem:[%s6838_s25 + $0x378] ss:$72 sps:$4 sm:$0xff]  }
 0x128   : > { %4037 = vmatpush1.bf16.msra.mxu0 %v6371_v45  ;;  %3506 = vmatprep.subr.bf16.mxu1 %v6382_v46  ;;  %v6457_v44 = vld [vmem:[%s6838_s25 + $0x398] ss:$72 sps:$4 sm:$0xff]   ;;  %v6461_v45 = vld [vmem:[%s6838_s25 + $0x40c] ss:$72 sps:$4 sm:$0xff]  }
 0x129   : > { %4038 = vmatprep.subr.bf16.mxu0 %v6385_v47  ;;  %v6463_v46 = vld [vmem:[%s6838_s25 + $0x42c] ss:$72 sps:$4 sm:$0xff]   ;;  %v6470_v47 = vld [vmem:[%s8048_s1 + $0x8c0] ss:$8 sps:$4 sm:$0xff]  }
 0x12b   : > { %3507 = vmatpush1.bf16.msra.mxu1 %v6380_v48  ;;  %v6481_v48 = vld [vmem:[%s8048_s1 + $0x8d4] ss:$8 sps:$4 sm:$0xff]  }
 0x12c   : > { %4039 = vmatpush1.bf16.msra.mxu0 %v6383_v49  ;;  %5323 = vmatprep.subr.bf16.mxu1 %v6394_v50  ;;  %v6479_v49 = vld [vmem:[%s8048_s1 + $0x8d0] ss:$8 sps:$4 sm:$0xff]  }
 0x12d   : > { %4141 = vmatprep.subr.bf16.mxu0 %v6394_v50  ;;  %3456 = vmatmul.mubr.bf16.gmra.mrb[32].mxu1 %v6360_v51  ;;  %v6484_v50 = vld [vmem:[%s8048_s1 + $0x8e4] ss:$8 sps:$4 sm:$0xff]   ;;  %v6468_v51 = vld [vmem:[%s6838_s25 + $0x408] ss:$72 sps:$4 sm:$0xff]  }
 0x12e   : > { %3988 = vmatmul.mubr.bf16.gmra.mrb[32].mxu0 %v6361_v52  ;;  %3465 = vmatprep.mubr.bf16.mxu1 %v6374_v53  ;;  %v6469_v52 = vld [vmem:[%s6838_s25 + $0x428] ss:$72 sps:$4 sm:$0xff]   ;;  %v6473_v53 = vld [vmem:[%s6838_s25 + $0x49c] ss:$72 sps:$4 sm:$0xff]  }
 0x12f   : > { %3997 = vmatprep.mubr.bf16.mxu0 %v6376_v54  ;;  %v6475_v54 = vld [vmem:[%s6838_s25 + $0x4bc] ss:$72 sps:$4 sm:$0xff]  }
 0x135   : > { %3466 = vmatmul.mubr.bf16.gmra.mrb[36].mxu1 %v6378_v55  ;;  %v6482_v55 = vld [vmem:[%s8048_s1 + $0x8e0] ss:$8 sps:$4 sm:$0xff]  }
 0x136   : > { %3998 = vmatmul.mubr.bf16.gmra.mrb[36].mxu0 %v6379_v56  ;;  %3508 = vmatprep.mubr.bf16.mxu1 %v6388_v57  ;;  %v6493_v56 = vld [vmem:[%s8048_s1 + $0x8f4] ss:$8 sps:$4 sm:$0xff]   ;;  %v6491_v57 = vld [vmem:[%s8048_s1 + $0x8f0] ss:$8 sps:$4 sm:$0xff]  }
 0x137   : > { %4040 = vmatprep.mubr.bf16.mxu0 %v6391_v58  ;;  %v6477_v58 = vld [vmem:[%s6838_s25 + $0x498] ss:$72 sps:$4 sm:$0xff]  }
 0x13d   : > { %3509 = vmatmul.mubr.bf16.vlgmr.msra.gmra.mrb[0].mxu1 %v6386_v59  ;;  %v6478_v59 = vld [vmem:[%s6838_s25 + $0x4b8] ss:$72 sps:$4 sm:$0xff]  }
 0x13e   : > { %4041 = vmatmul.mubr.bf16.vlgmr.msra.gmra.mrb[0].mxu0 %v6389_v60  ;;  %5339 = vmatpush1.bf16.msra.mxu1 %v6392_v61  ;;  %v6485_v60 = vld [vmem:[%s6838_s25 + $0x52c] ss:$72 sps:$4 sm:$0xff]  }
 0x13f   : > { %4142 = vmatpush1.bf16.msra.mxu0 %v6392_v61  ;;  %5324 = vmatprep.subr.bf16.mxu1 %v6397_v62  ;;  %v6487_v61 = vld [vmem:[%s6838_s25 + $0x54c] ss:$72 sps:$4 sm:$0xff]  }
 0x140   : > { %4143 = vmatprep.subr.bf16.mxu0 %v6397_v62  ;;  %3518 = vmatprep.mubr.bf16.mxu1 %v6398_v63  ;;  %v6489_v62 = vld [vmem:[%s6838_s25 + $0x528] ss:$72 sps:$4 sm:$0xff]  }
 0x141   : > { %4050 = vmatprep.mubr.bf16.mxu0 %v6400_v0  ;;  %v6490_v63 = vld [vmem:[%s6838_s25 + $0x548] ss:$72 sps:$4 sm:$0xff]   ;;  %v6496_v0 = vld [vmem:[%s6838_s25 + $0x44] ss:$72 sps:$4 sm:$0xff]  }
 0x142   : > { %5340 = vmatpush1.bf16.msra.mxu1 %v6395_v1 }
 0x143   : > { %4144 = vmatpush1.bf16.msra.mxu0 %v6395_v1  ;;  %5325 = vmatprep.subr.bf16.mxu1 %v6406_v2  ;;  %v6499_v1 = vld [vmem:[%s6838_s25 + $0x314] ss:$72 sps:$4 sm:$0xff]  }
 0x144   : > { %4145 = vmatprep.subr.bf16.mxu0 %v6406_v2  ;;  %v6494_v2 = vld [vmem:[%s6838_s25 + $0x40] ss:$72 sps:$4 sm:$0xff]  }
 0x145   : > { %3519 = vmatmul.mubr.bf16.gmra.mrb[4].mxu1 %v6402_v3  ;;  %v6497_v3 = vld [vmem:[%s6838_s25 + $0x310] ss:$72 sps:$4 sm:$0xff]  }
 0x146   : > { %4051 = vmatmul.mubr.bf16.gmra.mrb[4].mxu0 %v6403_v4  ;;  %5341 = vmatpush1.bf16.msra.mxu1 %v6404_v5  ;;  %v6500_v4 = vld [vmem:[%s6838_s25 + $0xd4] ss:$72 sps:$4 sm:$0xff]  }
 0x147   : > { %4146 = vmatpush1.bf16.msra.mxu0 %v6404_v5  ;;  %3528 = vmatprep.mubr.bf16.mxu1 %v6407_v6  ;;  %v6502_v5 = vld [vmem:[%s6838_s25 + $0x3a4] ss:$72 sps:$4 sm:$0xff]   ;;  %v6504_v6 = vld [vmem:[%s6838_s25 + $0xd0] ss:$72 sps:$4 sm:$0xff]  }
 0x148   : > { %4060 = vmatprep.mubr.bf16.mxu0 %v6409_v7  ;;  %4147 = vmatprep.subr.bf16.mxu0 %v6413_v8  ;;  %v6505_v7 = vld [vmem:[%s6838_s25 + $0x3a0] ss:$72 sps:$4 sm:$0xff]  }
 0x149   : > { %5326 = vmatprep.subr.bf16.mxu1 %v6413_v8  ;;  %v6506_v8 = vld [vmem:[%s6838_s25 + $0x164] ss:$72 sps:$4 sm:$0xff]  }
 0x14a   : > { %5342 = vmatpush1.bf16.msra.mxu1 %v6411_v9 }
 0x14b   : > { %4148 = vmatpush1.bf16.msra.mxu0 %v6411_v9  ;;  %5327 = vmatprep.subr.bf16.mxu1 %v6418_v10  ;;  %v6508_v9 = vld [vmem:[%s6838_s25 + $0x434] ss:$72 sps:$4 sm:$0xff]  }
 0x14c   : > { %4149 = vmatprep.subr.bf16.mxu0 %v6418_v10  ;;  %v6510_v10 = vld [vmem:[%s6838_s25 + $0x160] ss:$72 sps:$4 sm:$0xff]  }
 0x14d   : > { %3529 = vmatmul.mubr.bf16.gmra.mrb[8].mxu1 %v6414_v11  ;;  %v6511_v11 = vld [vmem:[%s6838_s25 + $0x430] ss:$72 sps:$4 sm:$0xff]  }
 0x14e   : > { %4061 = vmatmul.mubr.bf16.gmra.mrb[8].mxu0 %v6415_v12  ;;  %5343 = vmatpush1.bf16.msra.mxu1 %v6416_v13  ;;  %v6512_v12 = vld [vmem:[%s6838_s25 + $0x1f4] ss:$72 sps:$4 sm:$0xff]  }
 0x14f   : > { %4150 = vmatpush1.bf16.msra.mxu0 %v6416_v13  ;;  %3538 = vmatprep.mubr.bf16.mxu1 %v6419_v14  ;;  %v6514_v13 = vld [vmem:[%s6838_s25 + $0x4c4] ss:$72 sps:$4 sm:$0xff]   ;;  %v6516_v14 = vld [vmem:[%s6838_s25 + $0x1f0] ss:$72 sps:$4 sm:$0xff]  }
 0x150   : > { %4070 = vmatprep.mubr.bf16.mxu0 %v6421_v15  ;;  %4151 = vmatprep.subr.bf16.mxu0 %v6427_v16  ;;  %v6517_v15 = vld [vmem:[%s6838_s25 + $0x4c0] ss:$72 sps:$4 sm:$0xff]  }
 0x151   : > { %5328 = vmatprep.subr.bf16.mxu1 %v6427_v16  ;;  %v6518_v16 = vld [vmem:[%s6838_s25 + $0x284] ss:$72 sps:$4 sm:$0xff]  }
 0x152   : > { %5344 = vmatpush1.bf16.msra.mxu1 %v6425_v17 }
 0x153   : > { %4152 = vmatpush1.bf16.msra.mxu0 %v6425_v17  ;;  %5329 = vmatprep.subr.bf16.mxu1 %v6430_v18  ;;  %v6520_v17 = vld [vmem:[%s6838_s25 + $0x554] ss:$72 sps:$4 sm:$0xff]  }
 0x154   : > { %4153 = vmatprep.subr.bf16.mxu0 %v6430_v18  ;;  %v6522_v18 = vld [vmem:[%s6838_s25 + $0x280] ss:$72 sps:$4 sm:$0xff]  }
 0x155   : > { %3539 = vmatmul.mubr.bf16.gmra.mrb[12].mxu1 %v6423_v19  ;;  %v6523_v19 = vld [vmem:[%s6838_s25 + $0x550] ss:$72 sps:$4 sm:$0xff]  }
 0x156   : > { %4071 = vmatmul.mubr.bf16.gmra.mrb[12].mxu0 %v6424_v20  ;;  %3548 = vmatprep.mubr.bf16.mxu1 %v6431_v21 }
 0x157   : > { %4080 = vmatprep.mubr.bf16.mxu0 %v6433_v22  ;;  %4154 = vmatpush1.bf16.msra.mxu0 %v6428_v23 }
 0x158   : > { %5345 = vmatpush1.bf16.msra.mxu1 %v6428_v23  ;;  %4155 = vmatprep.subr.bf16.mxu0 %v6439_v24 }
 0x159   : > { %5330 = vmatprep.subr.bf16.mxu1 %v6439_v24 }
 0x15b   : > { %4156 = vmatpush1.bf16.msra.mxu0 %v6437_v25 }
 0x15c   : > { %5346 = vmatpush1.bf16.msra.mxu1 %v6437_v25  ;;  %4157 = vmatprep.subr.bf16.mxu0 %v6448_v26 }
 0x15d   : > { %5331 = vmatprep.subr.bf16.mxu1 %v6448_v26  ;;  %3549 = vmatmul.mubr.bf16.gmra.mrb[16].mxu1 %v6435_v27 }
 0x15e   : > { %4081 = vmatmul.mubr.bf16.gmra.mrb[16].mxu0 %v6436_v28  ;;  %3558 = vmatprep.mubr.bf16.mxu1 %v6440_v29 }
 0x15f   : > { %4090 = vmatprep.mubr.bf16.mxu0 %v6442_v30  ;;  %4158 = vmatpush1.bf16.msra.mxu0 %v6446_v31 }
 0x160   : > { %5347 = vmatpush1.bf16.msra.mxu1 %v6446_v31  ;;  %4159 = vmatprep.subr.bf16.mxu0 %v6451_v32 }
 0x161   : > { %5332 = vmatprep.subr.bf16.mxu1 %v6451_v32 }
 0x163   : > { %4160 = vmatpush1.bf16.msra.mxu0 %v6449_v33 }
 0x164   : > { %5348 = vmatpush1.bf16.msra.mxu1 %v6449_v33  ;;  %4161 = vmatprep.subr.bf16.mxu0 %v6460_v34 }
 0x165   : > { %5333 = vmatprep.subr.bf16.mxu1 %v6460_v34  ;;  %3559 = vmatmul.mubr.bf16.gmra.mrb[20].mxu1 %v6444_v35  ;;  %v727_v35 = vlaneseq }
 0x166   : > { %4091 = vmatmul.mubr.bf16.gmra.mrb[20].mxu0 %v6445_v36  ;;  %3568 = vmatprep.mubr.bf16.mxu1 %v6452_v37 }
 0x167   : > { %4100 = vmatprep.mubr.bf16.mxu0 %v6454_v38  ;;  %4162 = vmatpush1.bf16.msra.mxu0 %v6458_v39  ;;  %v728_v37 = vshrl.u32 %v727_v35, 7 }
 0x168   : > { %5349 = vmatpush1.bf16.msra.mxu1 %v6458_v39  ;;  %4163 = vmatprep.subr.bf16.mxu0 %v6467_v40 }
 0x169   : > { %5334 = vmatprep.subr.bf16.mxu1 %v6467_v40 }
 0x16b   : > { %4164 = vmatpush1.bf16.msra.mxu0 %v6465_v41 }
 0x16c   : > { %5350 = vmatpush1.bf16.msra.mxu1 %v6465_v41  ;;  %4165 = vmatprep.subr.bf16.mxu0 %v6472_v42  ;;  %v729_v41 = vsub.s32 0, %v728_v37 }
 0x16d   : > { %5335 = vmatprep.subr.bf16.mxu1 %v6472_v42  ;;  %3569 = vmatmul.mubr.bf16.gmra.mrb[24].mxu1 %v6456_v43  ;;  %v725_v43 = vld [vmem:[%s8049_s2] sm:$0x3] }
 0x16e   : > { %4101 = vmatmul.mubr.bf16.gmra.mrb[24].mxu0 %v6457_v44  ;;  %3578 = vmatprep.mubr.bf16.mxu1 %v6461_v45  ;;  %v733_v44 = vsub.s32 1, %v728_v37  ;;  %v7792_v45 = vrot.slane %v725_v43, %v729_v41 }
 0x16f   : > { %4110 = vmatprep.mubr.bf16.mxu0 %v6463_v46  ;;  %4166 = vmatpush1.bf16.msra.mxu0 %v6470_v47 }
 0x170   : > { %5351 = vmatpush1.bf16.msra.mxu1 %v6470_v47  ;;  %4167 = vmatprep.subr.bf16.mxu0 %v6481_v48  ;;  %v7794_v46 = vrot.slane %v725_v43, %v733_v44 }
 0x171   : > { %5336 = vmatprep.subr.bf16.mxu1 %v6481_v48 }
 0x173   : > { %4168 = vmatpush1.bf16.msra.mxu0 %v6479_v49 }
 0x174   : > { %5352 = vmatpush1.bf16.msra.mxu1 %v6479_v49  ;;  %4169 = vmatprep.subr.bf16.mxu0 %v6484_v50 }
 0x175   : > { %5337 = vmatprep.subr.bf16.mxu1 %v6484_v50  ;;  %3579 = vmatmul.mubr.bf16.gmra.mrb[28].mxu1 %v6468_v51 }
 0x176   : > { %4111 = vmatmul.mubr.bf16.gmra.mrb[28].mxu0 %v6469_v52  ;;  %3588 = vmatprep.mubr.bf16.mxu1 %v6473_v53 }
 0x177   : > { %4120 = vmatprep.mubr.bf16.mxu0 %v6475_v54  ;;  %4170 = vmatpush1.bf16.msra.mxu0 %v6482_v55 }
 0x178   : > { %5353 = vmatpush1.bf16.msra.mxu1 %v6482_v55  ;;  %4171 = vmatprep.subr.bf16.mxu0 %v6493_v56 }
 0x179   : > { %5338 = vmatprep.subr.bf16.mxu1 %v6493_v56 }
 0x17b   : > { %4172 = vmatpush1.bf16.msra.mxu0 %v6491_v57 }
 0x17c   : > { %5354 = vmatpush1.bf16.msra.mxu1 %v6491_v57 }
 0x17d   : > { %3589 = vmatmul.mubr.bf16.gmra.mrb[32].mxu1 %v6477_v58 }
 0x17e   : > { %4121 = vmatmul.mubr.bf16.gmra.mrb[32].mxu0 %v6478_v59  ;;  %3598 = vmatprep.mubr.bf16.mxu1 %v6485_v60 }
 0x17f   : > { %4130 = vmatprep.mubr.bf16.mxu0 %v6487_v61 }
 0x185   : > { %3599 = vmatmul.mubr.bf16.gmra.mrb[36].mxu1 %v6489_v62 }
 0x186   : > { %4131 = vmatmul.mubr.bf16.gmra.mrb[36].mxu0 %v6490_v63  ;;  %4223 = vmatprep.mubr.bf16.mxu1 %v6499_v1 }
 0x187   : > { %4173 = vmatprep.mubr.bf16.mxu0 %v6496_v0 }
 0x18d   : > { %4224 = vmatmul.mubr.bf16.vlgmr.msra.gmra.mrb[40].mxu1 %v6497_v3 }
 0x18e   : > { %4174 = vmatmul.mubr.bf16.vlgmr.msra.gmra.mrb[0].mxu0 %v6494_v2  ;;  %4233 = vmatprep.mubr.bf16.mxu1 %v6502_v5 }
 0x18f   : > { %4183 = vmatprep.mubr.bf16.mxu0 %v6500_v4 }
 0x195   : > { %4234 = vmatmul.mubr.bf16.gmra.mrb[44].mxu1 %v6505_v7 }
 0x196   : > { %4184 = vmatmul.mubr.bf16.gmra.mrb[4].mxu0 %v6504_v6  ;;  %4243 = vmatprep.mubr.bf16.mxu1 %v6508_v9 }
 0x197   : > { %4193 = vmatprep.mubr.bf16.mxu0 %v6506_v8 }
 0x19d   : > { %4244 = vmatmul.mubr.bf16.gmra.mrb[48].mxu1 %v6511_v11 }
 0x19e   : > { %4194 = vmatmul.mubr.bf16.gmra.mrb[8].mxu0 %v6510_v10  ;;  %4253 = vmatprep.mubr.bf16.mxu1 %v6514_v13 }
 0x19f   : > { %4203 = vmatprep.mubr.bf16.mxu0 %v6512_v12 }
 0x1a5   : > { %4254 = vmatmul.mubr.bf16.gmra.mrb[52].mxu1 %v6517_v15 }
 0x1a6   : > { %4204 = vmatmul.mubr.bf16.gmra.mrb[12].mxu0 %v6516_v14  ;;  %4263 = vmatprep.mubr.bf16.mxu1 %v6520_v17 }
 0x1a7   : > { %4213 = vmatprep.mubr.bf16.mxu0 %v6518_v16 }
 0x1ad   : > { %4264 = vmatmul.mubr.bf16.gmra.mrb[56].mxu1 %v6523_v19 }
 0x1ae   : > { %4214 = vmatmul.mubr.bf16.gmra.mrb[16].mxu0 %v6522_v18 }
 0x210   : > { %v7749_v20 = vpop.f32.mrb[0].mxu1 }
 0x211   : > { %v7751_v21 = vpop.f32.mrb[1].mxu1 }
 0x212   : > { %v7753_v22 = vpop.f32.mrb[2].mxu1 }
 0x213   : > { %v7755_v23 = vpop.f32.mrb[3].mxu1 }
 0x218   : > { %v7757_v24 = vpop.f32.mrb[4].mxu1 }
 0x219   : > { %v7759_v25 = vpop.f32.mrb[5].mxu1 }
 0x21a   : > { %v7761_v26 = vpop.f32.mrb[6].mxu1 }
 0x21b   : > { %v7763_v27 = vpop.f32.mrb[7].mxu1 }
 0x220   : > { %v7765_v28 = vpop.f32.mrb[8].mxu1 }
 0x221   : > { %v7767_v29 = vpop.f32.mrb[9].mxu1 }
 0x222   : > { %v7769_v30 = vpop.f32.mrb[10].mxu1 }
 0x223   : > { %v7771_v31 = vpop.f32.mrb[11].mxu1 }
 0x228   : > { %v7773_v32 = vpop.f32.mrb[12].mxu1 }
 0x229   : > { %v7775_v33 = vpop.f32.mrb[13].mxu1 }
 0x22a   : > { %v7777_v34 = vpop.f32.mrb[14].mxu1 }
 0x22b   : > { %v7779_v36 = vpop.f32.mrb[15].mxu1 }
 0x230   : > { %v7781_v38 = vpop.f32.mrb[16].mxu1 }
 0x231   : > { %v7783_v39 = vpop.f32.mrb[17].mxu1 }
 0x232   : > { %v7785_v40 = vpop.f32.mrb[18].mxu1 }
 0x233   : > { %v7787_v42 = vpop.f32.mrb[19].mxu1 }
 0x238   : > { %v3560_v47 = vpop.f32.mrb[20].mxu1 }
 0x239   : > { %v4092_v48 = vpop.f32.mrb[20].mxu0  ;;  %v5395_v49 = vadd.f32 %v3560_v47, %v7792_v45  ;;  %v3562_v50 = vpop.f32.mrb[21].mxu1 }
 0x23a   : > { %v4094_v51 = vpop.f32.mrb[21].mxu0  ;;  %v5398_v52 = vadd.f32 %v3562_v50, %v7794_v46  ;;  %v3564_v53 = vpop.f32.mrb[22].mxu1 }
 0x23b   : > { %v4096_v54 = vpop.f32.mrb[22].mxu0  ;;  %v7798_v55 = vadd.f32 %v5395_v49, %v4092_v48  ;;  %v5401_v56 = vadd.f32 %v3564_v53, %v7792_v45  ;;  %v3566_v57 = vpop.f32.mrb[23].mxu1 }
 0x23c   : > { %v4098_v58 = vpop.f32.mrb[23].mxu0  ;;  %v7801_v59 = vadd.f32 %v5398_v52, %v4094_v51  ;;  %v5404_v60 = vadd.f32 %v3566_v57, %v7794_v46 }
 0x23d   : > { %v7804_v61 = vadd.f32 %v5401_v56, %v4096_v54 }
 0x23e   : > { %v7806_v62 = vadd.f32 %v5404_v60, %v4098_v58 }
 0x240   : > { %v3570_v63 = vpop.f32.mrb[24].mxu1 }
 0x241   : > { %v4102_v0 = vpop.f32.mrb[24].mxu0  ;;  %v5407_v1 = vadd.f32 %v3570_v63, %v7792_v45  ;;  %v3572_v2 = vpop.f32.mrb[25].mxu1 }
 0x242   : > { %v4104_v3 = vpop.f32.mrb[25].mxu0  ;;  %v5410_v4 = vadd.f32 %v3572_v2, %v7794_v46  ;;  %v3574_v5 = vpop.f32.mrb[26].mxu1 }
 0x243   : > { %v4106_v6 = vpop.f32.mrb[26].mxu0  ;;  %v7810_v7 = vadd.f32 %v5407_v1, %v4102_v0  ;;  %v5413_v8 = vadd.f32 %v3574_v5, %v7792_v45  ;;  %v3576_v9 = vpop.f32.mrb[27].mxu1 }
 0x244   : > { %v4108_v10 = vpop.f32.mrb[27].mxu0  ;;  %v7813_v11 = vadd.f32 %v5410_v4, %v4104_v3  ;;  %v5416_v12 = vadd.f32 %v3576_v9, %v7794_v46 }
 0x245   : > { %v7816_v13 = vadd.f32 %v5413_v8, %v4106_v6 }
 0x246   : > { %v7818_v14 = vadd.f32 %v5416_v12, %v4108_v10 }
 0x248   : > { %v3580_v15 = vpop.f32.mrb[28].mxu1 }
 0x249   : > { %v4112_v16 = vpop.f32.mrb[28].mxu0  ;;  %v5419_v17 = vadd.f32 %v3580_v15, %v7792_v45  ;;  %v3582_v18 = vpop.f32.mrb[29].mxu1 }
 0x24a   : > { %v4114_v19 = vpop.f32.mrb[29].mxu0  ;;  %v5422_v35 = vadd.f32 %v3582_v18, %v7794_v46  ;;  %v3584_v37 = vpop.f32.mrb[30].mxu1 }
 0x24b   : > { %v4116_v41 = vpop.f32.mrb[30].mxu0  ;;  %v7822_v43 = vadd.f32 %v5419_v17, %v4112_v16  ;;  %v5425_v44 = vadd.f32 %v3584_v37, %v7792_v45  ;;  %v3586_v47 = vpop.f32.mrb[31].mxu1 }
 0x24c   : > { %v4118_v48 = vpop.f32.mrb[31].mxu0  ;;  %v7825_v49 = vadd.f32 %v5422_v35, %v4114_v19  ;;  %v5428_v50 = vadd.f32 %v3586_v47, %v7794_v46 }
 0x24d   : > { %v7828_v51 = vadd.f32 %v5425_v44, %v4116_v41 }
 0x24e   : > { %v7830_v52 = vadd.f32 %v5428_v50, %v4118_v48 }
 0x250   : > { %v3590_v53 = vpop.f32.mrb[32].mxu1 }
 0x251   : > { %v4122_v54 = vpop.f32.mrb[32].mxu0  ;;  %v5431_v56 = vadd.f32 %v3590_v53, %v7792_v45  ;;  %v3592_v57 = vpop.f32.mrb[33].mxu1 }
 0x252   : > { %v4124_v58 = vpop.f32.mrb[33].mxu0  ;;  %v5434_v60 = vadd.f32 %v3592_v57, %v7794_v46  ;;  %v3594_v63 = vpop.f32.mrb[34].mxu1  ;;  %v5357_v57 = vadd.f32 %v7751_v21, %v7794_v46 }
 0x253   : > { %v4126_v0 = vpop.f32.mrb[34].mxu0  ;;  %v7834_v1 = vadd.f32 %v5431_v56, %v4122_v54  ;;  %v5437_v2 = vadd.f32 %v3594_v63, %v7792_v45  ;;  %v3596_v3 = vpop.f32.mrb[35].mxu1  ;;  %v5355_v56 = vadd.f32 %v7749_v20, %v7792_v45  ;;  %v5359_v63 = vadd.f32 %v7753_v22, %v7792_v45 }
 0x254   : > { %v4128_v4 = vpop.f32.mrb[35].mxu0  ;;  %v7837_v5 = vadd.f32 %v5434_v60, %v4124_v58  ;;  %v5440_v6 = vadd.f32 %v3596_v3, %v7794_v46 }
 0x255   : > { %v7840_v8 = vadd.f32 %v5437_v2, %v4126_v0 }
 0x256   : > { %v7842_v9 = vadd.f32 %v5440_v6, %v4128_v4  ;;  %v5361_v6 = vadd.f32 %v7755_v23, %v7794_v46 }
 0x258   : > { %v3600_v10 = vpop.f32.mrb[36].mxu1 }
 0x259   : > { %v4132_v12 = vpop.f32.mrb[36].mxu0  ;;  %v5443_v15 = vadd.f32 %v3600_v10, %v7792_v45  ;;  %v3602_v16 = vpop.f32.mrb[37].mxu1 }
 0x25a   : > { %v4134_v17 = vpop.f32.mrb[37].mxu0  ;;  %v5446_v18 = vadd.f32 %v3602_v16, %v7794_v46  ;;  %v3604_v19 = vpop.f32.mrb[38].mxu1 }
 0x25b   : > { %v4136_v35 = vpop.f32.mrb[38].mxu0  ;;  %v7846_v37 = vadd.f32 %v5443_v15, %v4132_v12  ;;  %v5449_v41 = vadd.f32 %v3604_v19, %v7792_v45  ;;  %v3606_v44 = vpop.f32.mrb[39].mxu1 }
 0x25c   : > { %v4138_v47 = vpop.f32.mrb[39].mxu0  ;;  %v7849_v48 = vadd.f32 %v5446_v18, %v4134_v17  ;;  %v5452_v50 = vadd.f32 %v3606_v44, %v7794_v46 }
 0x25d   : > { %v7852_v53 = vadd.f32 %v5449_v41, %v4136_v35 }
 0x25e   : > { %v7854_v54 = vadd.f32 %v5452_v50, %v4138_v47 }
 0x260   : > { %v4225_v60 = vpop.f32.mrb[40].mxu1 }
 0x261   : > { %v4175_v58 = vpop.f32.mrb[0].mxu0  ;;  %v5397_v2 = vadd.f32 %v7798_v55, %v4225_v60  ;;  %v4227_v4 = vpop.f32.mrb[41].mxu1  ;;  %v5365_v60 = vadd.f32 %v7759_v25, %v7794_v46 }
 0x262   : > { %v5356_v0 = vadd.f32 %v5355_v56, %v4175_v58  ;;  %v4177_v3 = vpop.f32.mrb[1].mxu0  ;;  %v5400_v20 = vadd.f32 %v7801_v59, %v4227_v4  ;;  %v4229_v15 = vpop.f32.mrb[42].mxu1  ;;  %v5363_v58 = vadd.f32 %v7757_v24, %v7792_v45 }
 0x263   : > { %v5358_v10 = vadd.f32 %v5357_v57, %v4177_v3  ;;  %v4179_v12 = vpop.f32.mrb[2].mxu0  ;;  %v4294_v16 = vmax.f32 %v5397_v2, 0.0  ;;  %v5403_v18 = vadd.f32 %v7804_v61, %v4229_v15  ;;  %v4231_v19 = vpop.f32.mrb[43].mxu1  ;;  %v5367_v2 = vadd.f32 %v7761_v26, %v7792_v45 }
 0x264   : > { %v4274_v21 = vmax.f32 %v5356_v0, 0.0  ;;  %v5360_v17 = vadd.f32 %v5359_v63, %v4179_v12  ;;  %v4181_v22 = vpop.f32.mrb[3].mxu0  ;;  %v4295_v55 = vmax.f32 %v5400_v20, 0.0  ;;  %v5406_v44 = vadd.f32 %v7806_v62, %v4231_v19 }
 0x265   : > { %v4275_v35 = vmax.f32 %v5358_v10, 0.0  ;;  %v5362_v41 = vadd.f32 %v5361_v6, %v4181_v22  ;;  %v4296_v50 = vmax.f32 %v5403_v18, 0.0  ;;  %v5369_v6 = vadd.f32 %v7763_v27, %v7794_v46 }
 0x266   : > { %v4276_v47 = vmax.f32 %v5360_v17, 0.0  ;;  %v5309_v56 = vpack.c.bf16 %v4295_v55, %v4294_v16  ;;  %v4297_v59 = vmax.f32 %v5406_v44, 0.0 }
 0x267   : > { %v5299_v23 = vpack.c.bf16 %v4275_v35, %v4274_v21  ;;  %v4277_v57 = vmax.f32 %v5362_v41, 0.0 }
 0x268   : > { %4444 = vst [vmem:[%s7873_s12 + $0x50] sm:$0xff] %v5309_v56  ;;  %v5310_v62 = vpack.c.bf16 %v4297_v59, %v4296_v50  ;;  %v4235_v0 = vpop.f32.mrb[44].mxu1 }
 0x269   : > { %4434 = vst [vmem:[%s7873_s12] sm:$0xff] %v5299_v23  ;;  %v5300_v61 = vpack.c.bf16 %v4277_v57, %v4276_v47  ;;  %v4185_v63 = vpop.f32.mrb[4].mxu0  ;;  %v5409_v24 = vadd.f32 %v7810_v7, %v4235_v0  ;;  %v4237_v25 = vpop.f32.mrb[45].mxu1  ;;  %v5371_v23 = vadd.f32 %v7765_v28, %v7792_v45  ;;  %v5377_v28 = vadd.f32 %v7771_v31, %v7794_v46 }
 0x26a   : > { %v5364_v3 = vadd.f32 %v5363_v58, %v4185_v63  ;;  %v4187_v4 = vpop.f32.mrb[5].mxu0  ;;  %4445 = vst [vmem:[%s7873_s12 + $0x58] sm:$0xff] %v5310_v62  ;;  %v5412_v20 = vadd.f32 %v7813_v11, %v4237_v25  ;;  %v4239_v15 = vpop.f32.mrb[46].mxu1  ;;  %v5375_v58 = vadd.f32 %v7769_v30, %v7792_v45 }
 0x26b   : > { %4435 = vst [vmem:[%s7873_s12 + $0x8] sm:$0xff] %v5300_v61  ;;  %v5366_v10 = vadd.f32 %v5365_v60, %v4187_v4  ;;  %v4189_v12 = vpop.f32.mrb[6].mxu0  ;;  %v4298_v16 = vmax.f32 %v5409_v24, 0.0  ;;  %v5415_v26 = vadd.f32 %v7816_v13, %v4239_v15  ;;  %v4241_v18 = vpop.f32.mrb[47].mxu1  ;;  %v5373_v13 = vadd.f32 %v7767_v29, %v7794_v46 }
 0x26c   : > { %v4278_v21 = vmax.f32 %v5364_v3, 0.0  ;;  %v5368_v17 = vadd.f32 %v5367_v2, %v4189_v12  ;;  %v4191_v7 = vpop.f32.mrb[7].mxu0  ;;  %v4299_v19 = vmax.f32 %v5412_v20, 0.0  ;;  %v5418_v27 = vadd.f32 %v7818_v14, %v4241_v18 }
 0x26d   : > { %v4279_v22 = vmax.f32 %v5366_v10, 0.0  ;;  %v5370_v35 = vadd.f32 %v5369_v6, %v4191_v7  ;;  %v4300_v41 = vmax.f32 %v5415_v26, 0.0  ;;  %v5379_v7 = vadd.f32 %v7773_v32, %v7792_v45 }
 0x26e   : > { %v4280_v55 = vmax.f32 %v5368_v17, 0.0  ;;  %v5311_v11 = vpack.c.bf16 %v4299_v19, %v4298_v16  ;;  %v4301_v50 = vmax.f32 %v5418_v27, 0.0  ;;  %v5385_v32 = vadd.f32 %v7779_v36, %v7794_v46 }
 0x26f   : > { %v5301_v44 = vpack.c.bf16 %v4279_v22, %v4278_v21  ;;  %v4281_v47 = vmax.f32 %v5370_v35, 0.0  ;;  %v5383_v35 = vadd.f32 %v7777_v34, %v7792_v45 }
 0x270   : > { %4446 = vst [vmem:[%s7873_s12 + $0x60] sm:$0xff] %v5311_v11  ;;  %v5312_v57 = vpack.c.bf16 %v4301_v50, %v4300_v41  ;;  %v4245_v14 = vpop.f32.mrb[48].mxu1 }
 0x271   : > { %4436 = vst [vmem:[%s7873_s12 + $0x10] sm:$0xff] %v5301_v44  ;;  %v5302_v56 = vpack.c.bf16 %v4281_v47, %v4280_v55  ;;  %v4195_v59 = vpop.f32.mrb[8].mxu0  ;;  %v5421_v61 = vadd.f32 %v7822_v43, %v4245_v14  ;;  %v4247_v63 = vpop.f32.mrb[49].mxu1 }
 0x272   : > { %v5372_v60 = vadd.f32 %v5371_v23, %v4195_v59  ;;  %v4197_v62 = vpop.f32.mrb[9].mxu0  ;;  %4447 = vst [vmem:[%s7873_s12 + $0x68] sm:$0xff] %v5312_v57  ;;  %v5424_v0 = vadd.f32 %v7825_v49, %v4247_v63  ;;  %v4249_v3 = vpop.f32.mrb[50].mxu1 }
 0x273   : > { %4437 = vst [vmem:[%s7873_s12 + $0x18] sm:$0xff] %v5302_v56  ;;  %v5374_v29 = vadd.f32 %v5373_v13, %v4197_v62  ;;  %v4199_v2 = vpop.f32.mrb[10].mxu0  ;;  %v4302_v4 = vmax.f32 %v5421_v61, 0.0  ;;  %v5427_v30 = vadd.f32 %v7828_v51, %v4249_v3  ;;  %v4251_v6 = vpop.f32.mrb[51].mxu1  ;;  %v5381_v51 = vadd.f32 %v7775_v33, %v7794_v46 }
 0x274   : > { %v4282_v24 = vmax.f32 %v5372_v60, 0.0  ;;  %v5376_v25 = vadd.f32 %v5375_v58, %v4199_v2  ;;  %v4201_v43 = vpop.f32.mrb[11].mxu0  ;;  %v4303_v20 = vmax.f32 %v5424_v0, 0.0  ;;  %v5430_v31 = vadd.f32 %v7830_v52, %v4251_v6 }
 0x275   : > { %v4283_v10 = vmax.f32 %v5374_v29, 0.0  ;;  %v5378_v12 = vadd.f32 %v5377_v28, %v4201_v43  ;;  %v4304_v21 = vmax.f32 %v5427_v30, 0.0  ;;  %v5387_v29 = vadd.f32 %v7781_v38, %v7792_v45 }
 0x276   : > { %v4284_v15 = vmax.f32 %v5376_v25, 0.0  ;;  %v5313_v49 = vpack.c.bf16 %v4303_v20, %v4302_v4  ;;  %v4305_v26 = vmax.f32 %v5430_v31, 0.0  ;;  %v5393_v38 = vadd.f32 %v7787_v42, %v7794_v46 }
 0x277   : > { %v5303_v16 = vpack.c.bf16 %v4283_v10, %v4282_v24  ;;  %v4285_v17 = vmax.f32 %v5378_v12, 0.0  ;;  %v5391_v24 = vadd.f32 %v7785_v40, %v7792_v45 }
 0x278   : > { %4448 = vst [vmem:[%s7873_s12 + $0x70] sm:$0xff] %v5313_v49  ;;  %v5314_v22 = vpack.c.bf16 %v4305_v26, %v4304_v21  ;;  %v4255_v52 = vpop.f32.mrb[52].mxu1 }
 0x279   : > { %4438 = vst [vmem:[%s7873_s12 + $0x20] sm:$0xff] %v5303_v16  ;;  %v5304_v18 = vpack.c.bf16 %v4285_v17, %v4284_v15  ;;  %v4205_v19 = vpop.f32.mrb[12].mxu0  ;;  %v5433_v55 = vadd.f32 %v7834_v1, %v4255_v52  ;;  %v4257_v44 = vpop.f32.mrb[53].mxu1 }
 0x27a   : > { %v5380_v27 = vadd.f32 %v5379_v7, %v4205_v19  ;;  %v4207_v41 = vpop.f32.mrb[13].mxu0  ;;  %4449 = vst [vmem:[%s7873_s12 + $0x78] sm:$0xff] %v5314_v22  ;;  %v5436_v11 = vadd.f32 %v7837_v5, %v4257_v44  ;;  %v4259_v50 = vpop.f32.mrb[54].mxu1 }
 0x27b   : > { %4439 = vst [vmem:[%s7873_s12 + $0x28] sm:$0xff] %v5304_v18  ;;  %v5382_v33 = vadd.f32 %v5381_v51, %v4207_v41  ;;  %v4209_v47 = vpop.f32.mrb[14].mxu0  ;;  %v4306_v13 = vmax.f32 %v5433_v55, 0.0  ;;  %v5439_v34 = vadd.f32 %v7840_v8, %v4259_v50  ;;  %v4261_v57 = vpop.f32.mrb[55].mxu1  ;;  %v5389_v8 = vadd.f32 %v7783_v39, %v7794_v46 }
 0x27c   : > { %v4286_v23 = vmax.f32 %v5380_v27, 0.0  ;;  %v5384_v56 = vadd.f32 %v5383_v35, %v4209_v47  ;;  %v4211_v1 = vpop.f32.mrb[15].mxu0  ;;  %v4307_v14 = vmax.f32 %v5436_v11, 0.0  ;;  %v5442_v36 = vadd.f32 %v7842_v9, %v4261_v57 }
 0x27d   : > { %v4287_v59 = vmax.f32 %v5382_v33, 0.0  ;;  %v5386_v58 = vadd.f32 %v5385_v32, %v4211_v1  ;;  %v4308_v61 = vmax.f32 %v5439_v34, 0.0 }
 0x27e   : > { %v4288_v60 = vmax.f32 %v5384_v56, 0.0  ;;  %v5315_v5 = vpack.c.bf16 %v4307_v14, %v4306_v13  ;;  %v4309_v28 = vmax.f32 %v5442_v36, 0.0 }
 0x27f   : > { %v5305_v62 = vpack.c.bf16 %v4287_v59, %v4286_v23  ;;  %v4289_v63 = vmax.f32 %v5386_v58, 0.0 }
 0x280   : > { %4450 = vst [vmem:[%s7873_s12 + $0x80] sm:$0xff] %v5315_v5  ;;  %v5316_v2 = vpack.c.bf16 %v4309_v28, %v4308_v61  ;;  %v4265_v9 = vpop.f32.mrb[56].mxu1 }
 0x281   : > { %4440 = vst [vmem:[%s7873_s12 + $0x30] sm:$0xff] %v5305_v62  ;;  %v5306_v0 = vpack.c.bf16 %v4289_v63, %v4288_v60  ;;  %v4215_v3 = vpop.f32.mrb[16].mxu0  ;;  %v5445_v25 = vadd.f32 %v7846_v37, %v4265_v9  ;;  %v4267_v43 = vpop.f32.mrb[57].mxu1 }
 0x282   : > { %v5388_v4 = vadd.f32 %v5387_v29, %v4215_v3  ;;  %v4217_v30 = vpop.f32.mrb[17].mxu0  ;;  %4451 = vst [vmem:[%s7873_s12 + $0x88] sm:$0xff] %v5316_v2  ;;  %v5448_v6 = vadd.f32 %v7849_v48, %v4267_v43  ;;  %v4269_v20 = vpop.f32.mrb[58].mxu1 }
 0x283   : > { %4441 = vst [vmem:[%s7873_s12 + $0x38] sm:$0xff] %v5306_v0  ;;  %v5390_v39 = vadd.f32 %v5389_v8, %v4217_v30  ;;  %v4219_v10 = vpop.f32.mrb[18].mxu0  ;;  %v4310_v31 = vmax.f32 %v5445_v25, 0.0  ;;  %v5451_v45 = vadd.f32 %v7852_v53, %v4269_v20  ;;  %v4271_v15 = vpop.f32.mrb[59].mxu1 }
 0x284   : > { %v4290_v12 = vmax.f32 %v5388_v4, 0.0  ;;  %v5392_v40 = vadd.f32 %v5391_v24, %v4219_v10  ;;  %v4221_v37 = vpop.f32.mrb[19].mxu0  ;;  %v4311_v42 = vmax.f32 %v5448_v6, 0.0  ;;  %v5454_v16 = vadd.f32 %v7854_v54, %v4271_v15 }
 0x285   : > { %v4291_v21 = vmax.f32 %v5390_v39, 0.0  ;;  %v5394_v46 = vadd.f32 %v5393_v38, %v4221_v37  ;;  %v4312_v48 = vmax.f32 %v5451_v45, 0.0  ;;  %4460 = sbr.rel (!%p6684_p3) target bundleno = 715 (0x2cb), region = 36 }
 0x286   : > { %v4292_v49 = vmax.f32 %v5392_v40, 0.0  ;;  %v5317_v26 = vpack.c.bf16 %v4311_v42, %v4310_v31  ;;  %v4313_v51 = vmax.f32 %v5454_v16, 0.0 }
 0x287   : > { %v5307_v17 = vpack.c.bf16 %v4291_v21, %v4290_v12  ;;  %v4293_v7 = vmax.f32 %v5394_v46, 0.0 }
 0x288   : > { %4452 = vst [vmem:[%s7873_s12 + $0x90] sm:$0xff] %v5317_v26  ;;  %v5318_v22 = vpack.c.bf16 %v4313_v51, %v4312_v48 }
 0x289   : > { %4442 = vst [vmem:[%s7873_s12 + $0x40] sm:$0xff] %v5307_v17  ;;  %v5308_v18 = vpack.c.bf16 %v4293_v7, %v4292_v49 }
 0x28a   : > { %4453 = vst [vmem:[%s7873_s12 + $0x98] sm:$0xff] %v5318_v22 }
 0x28b   : > { %4443 = vst [vmem:[%s7873_s12 + $0x48] sm:$0xff] %v5308_v18 }
 0x28c   : > { %s8062_s17 = smov (!%p4464_p9, %s4463_s17), 20 }
 0x28d   : > { %s5319_s27 = sshll.u32 %s8062_s17, 7 }
 0x28e   : > { %p5290_p10 = scmp.eq.s32.totalorder %s5319_s27, 0 }
 0x28f   : > { %6524 = sdivrem.u32 (!%p5290_p10), %s8062_s17, 20 }
 0x290   : > { %4475 = sbr.rel (%p5290_p10) target bundleno = 715 (0x2cb), region = 40 }
 0x298   : > { %s7952_s20 = spop.drf %6524 }
 0x299   : > { %p5291_p11 = scmp.le.s32.totalorder %s7952_s20, 0 }
 0x29a   : > { %s8052_s14 = smov (!%p5291_p11), %s7946_s26  ;;  %s8053_s24 = smov (!%p5291_p11), %s7873_s12 }
 0x29b   : > { %4719 = sbr.rel (%p5291_p11) target bundleno = 686 (0x2ae), region = 122  ;;  %s7961_s28 = smov (!%p5291_p11), 0  }
 0x29c   : > { %s7963_s29 = smov (!%p5291_p11), 0  }
 0x2a2 LB: >> { %v4577_v53 = vld [vmem:[%s6606_s24] sm:$0xff]  ;;  %v4579_v54 = vld [vmem:[%s6606_s24 + $0x8] sm:$0xff]  ;;  %v4581_v19 = vld [vmem:[%s6606_s24 + $0x10] sm:$0xff]  ;;  %s4617_s30 = sadd.s32 1, %s6610_s28  ;;  %s4571_s29 = sadd.s32 1, %s6614_s29   ;;  %s6614_s29 = sphi %s7963_s29, %s4571_s29   ;;  %s6610_s28 = sphi %s7961_s28, %s8054_s28   ;;  %s6606_s24 = sphi %s8053_s24, %s4622_s24   ;;  %s6602_s14 = sphi %s8052_s14, %s4623_s14  }
 0x2a3   : >> { %4578 = vst [vmem:[%s6602_s14] sm:$0xff] %v4577_v53  ;;  %4580 = vst [vmem:[%s6602_s14 + $0x8] sm:$0xff] %v4579_v54  ;;  %v4583_v52 = vld [vmem:[%s6606_s24 + $0x18] sm:$0xff]  ;;  %v4585_v35 = vld [vmem:[%s6606_s24 + $0x20] sm:$0xff]  ;;  %p4618_p12 = scmp.ge.s32.totalorder %s4617_s30, %s7952_s20  ;;  %p4570_p13 = scmp.ge.s32.totalorder %s4571_s29, %s7952_s20 }
 0x2a4   : >> { %4582 = vst [vmem:[%s6602_s14 + $0x10] sm:$0xff] %v4581_v19  ;;  %v4587_v27 = vld [vmem:[%s6606_s24 + $0x28] sm:$0xff]  ;;  %4584 = vst [vmem:[%s6602_s14 + $0x18] sm:$0xff] %v4583_v52  ;;  %v4589_v55 = vld [vmem:[%s6606_s24 + $0x30] sm:$0xff] }
 0x2a5   : >> { %4586 = vst [vmem:[%s6602_s14 + $0x20] sm:$0xff] %v4585_v35  ;;  %4588 = vst [vmem:[%s6602_s14 + $0x28] sm:$0xff] %v4587_v27  ;;  %v4591_v41 = vld [vmem:[%s6606_s24 + $0x38] sm:$0xff]  ;;  %v4593_v44 = vld [vmem:[%s6606_s24 + $0x40] sm:$0xff]  ;;  %s8064_s30 = smov (%p4618_p12, %s4617_s30), 0 }
 0x2a6   : >> { %4590 = vst [vmem:[%s6602_s14 + $0x30] sm:$0xff] %v4589_v55  ;;  %4592 = vst [vmem:[%s6602_s14 + $0x38] sm:$0xff] %v4591_v41  ;;  %v4595_v32 = vld [vmem:[%s6606_s24 + $0x48] sm:$0xff]  ;;  %v4597_v33 = vld [vmem:[%s6606_s24 + $0x50] sm:$0xff]  ;;  %s4620_s4 = smul.u32 160, %s8064_s30  ;;  %s8054_s28 = smov %s8064_s30 }
 0x2a7   : >> { %4594 = vst [vmem:[%s6602_s14 + $0x40] sm:$0xff] %v4593_v44  ;;  %v4599_v11 = vld [vmem:[%s6606_s24 + $0x58] sm:$0xff]  ;;  %4596 = vst [vmem:[%s6602_s14 + $0x48] sm:$0xff] %v4595_v32  ;;  %v4601_v47 = vld [vmem:[%s6606_s24 + $0x60] sm:$0xff]  ;;  %4573 = sbr.rel (!%p4570_p13) target bundleno = 674 (0x2a2), region = 128 }
 0x2a8   : >> { %4598 = vst [vmem:[%s6602_s14 + $0x50] sm:$0xff] %v4597_v33  ;;  %4600 = vst [vmem:[%s6602_s14 + $0x58] sm:$0xff] %v4599_v11  ;;  %v4603_v50 = vld [vmem:[%s6606_s24 + $0x68] sm:$0xff]  ;;  %v4605_v23 = vld [vmem:[%s6606_s24 + $0x70] sm:$0xff] }
 0x2a9   : >> { %4602 = vst [vmem:[%s6602_s14 + $0x60] sm:$0xff] %v4601_v47  ;;  %4604 = vst [vmem:[%s6602_s14 + $0x68] sm:$0xff] %v4603_v50  ;;  %v4607_v13 = vld [vmem:[%s6606_s24 + $0x78] sm:$0xff]  ;;  %v4609_v56 = vld [vmem:[%s6606_s24 + $0x80] sm:$0xff] }
 0x2aa   : >> { %4606 = vst [vmem:[%s6602_s14 + $0x70] sm:$0xff] %v4605_v23  ;;  %v4611_v34 = vld [vmem:[%s6606_s24 + $0x88] sm:$0xff]  ;;  %4608 = vst [vmem:[%s6602_s14 + $0x78] sm:$0xff] %v4607_v13  ;;  %v4613_v1 = vld [vmem:[%s6606_s24 + $0x90] sm:$0xff] }
 0x2ab   : >> { %4610 = vst [vmem:[%s6602_s14 + $0x80] sm:$0xff] %v4609_v56  ;;  %4612 = vst [vmem:[%s6602_s14 + $0x88] sm:$0xff] %v4611_v34  ;;  %v4615_v57 = vld [vmem:[%s6606_s24 + $0x98] sm:$0xff]  ;;  %s4622_s24 = scalar_lea.vmem %s7873_s12, %s4620_s4 [#allocation2]  }
 0x2ac   : >> { %4614 = vst [vmem:[%s6602_s14 + $0x90] sm:$0xff] %v4613_v1  ;;  %4616 = vst [vmem:[%s6602_s14 + $0x98] sm:$0xff] %v4615_v57  ;;  %s4623_s14 = scalar_lea.vmem %s7946_s26, %s4620_s4  }
 0x2ae PF: > { %6526 = sdivrem.u32 %s8062_s17, 20 }
 0x2af   : > { %s5292_s6 = smul.u32 160, %s7952_s20 }
 0x2b1   : > { %s4628_s7 = scalar_lea.vmem %s7873_s12, %s5292_s6 [#allocation2]   ;;  %s4630_s5 = scalar_lea.vmem %s7946_s26, %s5292_s6  }
 0x2b7   : > { %s6527_s8 = spop.drf %6526 }
 0x2b8   : > { %p5294_p0 = scmp.le.s32.totalorder %s6527_s8, 0 }
 0x2b9   : > { %s6616_s25 = smov (!%p5294_p0), %s4630_s5   ;;  %s6620_s9 = smov (!%p5294_p0), %s4628_s7  }
 0x2ba   : > { %4733 = sbr.rel (%p5294_p0) target bundleno = 715 (0x2cb), region = 133  ;;  %s6624_s10 = smov (!%p5294_p0), 0  }
 0x2bb   : > { %s6628_s11 = smov (!%p5294_p0), 0  }
 0x2c1 LB: >> { %v4640_v59 = vld [vmem:[%s6622_s9] sm:$0xff]  ;;  %s4642_s19 = sadd.s32 1, %s6626_s10  ;;  %s4634_s11 = sadd.s32 1, %s6630_s11   ;;  %s6630_s11 = sphi %s6628_s11, %s4634_s11   ;;  %s6626_s10 = sphi %s6624_s10, %s6625_s10   ;;  %s6622_s9 = sphi %s6620_s9, %s4647_s9   ;;  %s6618_s25 = sphi %s6616_s25, %s4648_s25  }
 0x2c2   : >> { %4641 = vst [vmem:[%s6618_s25] sm:$0xff] %v4640_v59  ;;  %p4643_p1 = scmp.ge.s32.totalorder %s4642_s19, %s6527_s8  ;;  %p4633_p2 = scmp.ge.s32.totalorder %s4634_s11, %s6527_s8 }
 0x2c4   : >> { %s8066_s19 = smov (%p4643_p1, %s4642_s19), 0  ;;  %4636 = sbr.rel (!%p4633_p2) target bundleno = 705 (0x2c1), region = 139 }
 0x2c5   : >> { %s5295_s12 = sshll.u32 %s8066_s19, 3  ;;  %s6625_s10 = smov %s8066_s19  }
 0x2c6   : >> { %s4647_s9 = scalar_lea.vmem %s4628_s7, %s5295_s12 [#allocation2]   ;;  %s4648_s25 = scalar_lea.vmem %s4630_s5, %s5295_s12  }
 0x2cb PF: > { %s13_s16 = sadd.s32 1, %s6598_s16   ;;  %s8055_s12 = smov %s6586_s13 }
 0x2cc   : > { %p10_p3 = scmp.ge.s32.totalorder %s13_s16, 4   ;;  %s8056_s13 = smov %s6693_s22 }
 0x2cd   : > { %s8057_s14 = smov %s6594_s15  ;;  %s8058_s15 = smov %s8060_s18 }
 0x2ce   :  { %12 = sbr.rel (!%p10_p3) target bundleno = 3 (0x3), region = 150 }

</bundles_post_ra>
